<compile_context>
chip_gen: v6e
topology: v6e:2x2x1
jax: 0.10.0
libtpu: 0.0.40
codegen_flags: <defaults>
</compile_context>

<pallas_src>
import functools

import jax
import jax.numpy as jnp
from jax import lax
from jax.experimental import pallas as pl
from jax.experimental.pallas import tpu as pltpu

SELU_ALPHA = 1.6732632423543772
SELU_SCALE = 1.0507009873554805
K = 3  # kernel size (module default)


def _selu(x):
    # Clamp the exp argument so the unselected branch never produces inf.
    return SELU_SCALE * jnp.where(
        x > 0, x, SELU_ALPHA * (jnp.exp(jnp.minimum(x, 0.0)) - 1.0))


def _conv_selu_tile(x_ref, w_ref, c_out, out_dtype):
    """3x3x3 conv on one halo tile: kd-split im2col + MXU matmuls, then SELU.

    x_ref: (TD+2, H+2, W+2, Cin)   VMEM ref, channels-last halo'd input tile.
    w_ref: (3, Cout_pad, 9*Cin)    VMEM ref; per-kd tap order is (kh, kw, ci).
    Returns (c_out, TD*H*W) in out_dtype, flat (d, h, w) order (NCDHW layout).
    """
    TDp, Hp, Wp, Ci = x_ref.shape
    TD, H, W = TDp - (K - 1), Hp - (K - 1), Wp - (K - 1)
    M = TD * H * W

    acc = None
    # Split the 27*Cin contraction over kd: 3 dots with a 9*Cin contraction each.
    # Peak im2col slab is ~3x smaller than the single-dot formulation.
    for kd in range(K):
        xk = x_ref[kd:kd + TD]  # (TD, Hp, Wp, Ci)
        # Lane-axis concats; resulting channel index = kh*3*Ci + kw*Ci + ci,
        # matching the weight layout built in the wrapper.
        xw = jnp.concatenate([xk[:, :, kw:kw + W, :] for kw in range(K)], axis=-1)
        xh = jnp.concatenate([xw[:, kh:kh + H, :, :] for kh in range(K)], axis=-1)
        # Free retile when W % 8 == 0 (W is the sublane dim of the slab).
        xp = xh.reshape(M, K * K * Ci)
        part = lax.dot_general(w_ref[kd], xp, (((1,), (1,)), ((), ())),
                               preferred_element_type=jnp.float32)
        acc = part if acc is None else acc + part

    # SELU in f32; Dropout3d(p=0.0) is the identity. Drop the padded Cout rows.
    return _selu(acc[:c_out, :]).astype(out_dtype)


def _tconv3_kernel_full(x_ref, w_ref, o_ref, *, c_out):
    # Full-D halo block delivered by the auto-pipelined BlockSpec.
    o_ref[...] = _conv_selu_tile(x_ref, w_ref, c_out, o_ref.dtype)


def _tconv3_kernel_tiled(x_hbm, w_ref, o_ref, xbuf, sem, *, tile_d, c_out):
    # x_hbm: (N, D+2, Hp, Wp, Cin) raw HBM ref (memory_space=pl.ANY).
    n = pl.program_id(0)
    d = pl.program_id(1)
    # DMA the (TD+2)-deep halo window straight out of the padded HBM input --
    # no halo-duplicated copy of the input is ever materialized in HBM.
    cp = pltpu.make_async_copy(x_hbm.at[n, pl.ds(d * tile_d, tile_d + K - 1)],
                               xbuf, sem)
    cp.start()
    cp.wait()
    # TODO(synk): double-buffer this DMA (2-deep xbuf + prefetch of tile d+1, or
    # pl.Buffered(3)-style depth) so the halo-window copy overlaps the matmul.
    o_ref[...] = _conv_selu_tile(xbuf, w_ref, c_out, o_ref.dtype)


def _vmem_budget_bytes():
    """Chip-aware scoped-VMEM budget: ~96 MiB on 128-MiB parts, ~48 MiB on v7x."""
    try:
        cap = int(pltpu.get_tpu_info().vmem_capacity_bytes)
    except Exception:
        cap = 64 * 1024 * 1024  # conservative (v7x-sized) fallback
    return min(cap * 3 // 4, 96 * 1024 * 1024)


def _tile_vmem_bytes(td, H, W, Cin, Cout_pad, cbytes, obytes):
    """Rough per-grid-step VMEM estimate (2x in, 2x out, weight, im2col slab, acc)."""
    Hp, Wp = H + K - 1, W + K - 1
    m = td * H * W
    in_tile = (td + K - 1) * Hp * Wp * Cin * cbytes
    w_bytes = K * Cout_pad * K * K * Cin * cbytes
    out_tile = Cout_pad * m * obytes
    slab = m * K * K * Cin * cbytes        # one kd-slice im2col slab
    acc = Cout_pad * m * 4                 # f32 accumulator
    return 2 * in_tile + 2 * w_bytes + 2 * out_tile + 2 * slab + acc


def _pick_tile_d(D, H, W, Cin, Cout_pad, cbytes, obytes, budget):
    # Prefer the full-D block: no D grid axis, no halo re-reads at all.
    if _tile_vmem_bytes(D, H, W, Cin, Cout_pad, cbytes, obytes) <= budget:
        return D
    # Otherwise the largest divisor of D whose flat output block stays lane-dense
    # (multiple of 128 -> unmasked stores and a legal (8,128) BlockSpec).
    cands = [td for td in range(D - 1, 0, -1)
             if D % td == 0 and (td * H * W) % 128 == 0]
    for td in cands:
        if _tile_vmem_bytes(td, H, W, Cin, Cout_pad, cbytes, obytes) <= budget:
            return td
    return cands[-1] if cands else D


@functools.partial(jax.jit, static_argnames=("tile_d", "compute_dtype"))
def tconv3_forward(x_ncdhw, w_pt, tile_d=None, compute_dtype=jnp.bfloat16):
    """TConv3 forward.

    x_ncdhw: (N, Cin, D, H, W) activations.
    w_pt:    PyTorch ConvTranspose3d weight, shape (Cin, Cout, 3, 3, 3).
    Returns (N, Cout, D, H, W) in x's dtype.
    """
    N, Cin, D, H, W = x_ncdhw.shape
    Cout = w_pt.shape[1]
    Cout_pad = -(-Cout // 8) * 8          # MXU-row / sublane alignment
    out_dtype = x_ncdhw.dtype
    cbytes = jnp.dtype(compute_dtype).itemsize
    obytes = jnp.dtype(out_dtype).itemsize
    Hp, Wp = H + K - 1, W + K - 1

    budget = _vmem_budget_bytes()
    if tile_d is None:
        td = _pick_tile_d(D, H, W, Cin, Cout_pad, cbytes, obytes, budget)
    else:
        td = int(tile_d)
        if D % td != 0 or (td != D and (td * H * W) % 128 != 0):
            raise ValueError(
                f"tile_d={td} must divide D={D} and give tile_d*H*W % 128 == 0 "
                f"(got {td * H * W}) unless tile_d == D.")
    nb = D // td
    Mt = td * H * W

    # Input prep: NCDHW -> channels-last, zero-pad by k-1-p = 1, cast to the MXU
    # compute dtype.  ONE fused pass over the input; no halo duplication in HBM.
    # (Note: W % 8 == 0 keeps the in-kernel im2col reshape a free retile.)
    x_pad = jnp.pad(jnp.transpose(x_ncdhw, (0, 2, 3, 4, 1)),
                    ((0, 0), (1, 1), (1, 1), (1, 1), (0, 0))).astype(compute_dtype)

    # Stride-1 ConvTranspose3d(pad=1) == regular conv with the spatially flipped
    # weight and pad=1.  Lay out as (kd, Cout_pad, kh*kw*Cin) to match the kd-split
    # im2col; zero-pad Cout to the sublane multiple; cast once to compute dtype.
    w_flip = jnp.flip(w_pt, axis=(2, 3, 4))                       # (Cin, Cout, 3, 3, 3)
    w_mat = (jnp.transpose(w_flip, (2, 1, 3, 4, 0))               # (kd, Cout, kh, kw, Cin)
             .reshape(K, Cout, K * K * Cin))
    w_mat = jnp.pad(w_mat, ((0, 0), (0, Cout_pad - Cout), (0, 0))).astype(compute_dtype)

    out_shape = jax.ShapeDtypeStruct((N, Cout, D * H * W), out_dtype)

    if td == D:
        # ---- full-D path: auto-pipelined BlockSpecs, grid over batch only ----
        out_flat = pl.pallas_call(
            functools.partial(_tconv3_kernel_full, c_out=Cout),
            out_shape=out_shape,
            grid_spec=pltpu.PrefetchScalarGridSpec(
                num_scalar_prefetch=0,
                grid=(N,),
                in_specs=[
                    pl.BlockSpec((pl.Squeezed(), D + K - 1, Hp, Wp, Cin),
                                 lambda n: (n, 0, 0, 0, 0)),
                    pl.BlockSpec((K, Cout_pad, K * K * Cin), lambda n: (0, 0, 0)),
                ],
                out_specs=pl.BlockSpec((pl.Squeezed(), Cout, D * H * W),
                                       lambda n: (n, 0, 0)),
            ),
            compiler_params=pltpu.CompilerParams(
                dimension_semantics=("parallel",),
                vmem_limit_bytes=budget),
        )(x_pad, w_mat)
    else:
        # ---- D-tiled path: padded input stays in HBM; kernel DMAs halo windows ----
        out_flat = pl.pallas_call(
            functools.partial(_tconv3_kernel_tiled, tile_d=td, c_out=Cout),
            out_shape=out_shape,
            grid_spec=pltpu.PrefetchScalarGridSpec(
                num_scalar_prefetch=0,
                grid=(N, nb),
                in_specs=[
                    pl.BlockSpec(memory_space=pl.ANY),       # raw HBM ref
                    pl.BlockSpec((K, Cout_pad, K * K * Cin), lambda n, d: (0, 0, 0)),
                ],
                out_specs=pl.BlockSpec((pl.Squeezed(), Cout, Mt),
                                       lambda n, d: (n, 0, d)),
                scratch_shapes=[
                    pltpu.VMEM((td + K - 1, Hp, Wp, Cin), compute_dtype),
                    pltpu.SemaphoreType.DMA,
                ],
            ),
            compiler_params=pltpu.CompilerParams(
                dimension_semantics=("parallel", "arbitrary"),
                vmem_limit_bytes=budget),
        )(x_pad, w_mat)

    # Free reshape: the kernel already wrote flat NCDHW, lane-dense.
    return out_flat.reshape(N, Cout, D, H, W)


def _reference(x_ncdhw, w_pt, compute_dtype=jnp.bfloat16):
    # Quantize operands exactly like the kernel (bf16 inputs, f32 accumulation),
    # then run an exact f32 conv + SELU.
    xq = x_ncdhw.astype(compute_dtype).astype(jnp.float32)
    wq = w_pt.astype(compute_dtype).astype(jnp.float32)
    w_conv = jnp.transpose(jnp.flip(wq, axis=(2, 3, 4)), (1, 0, 2, 3, 4))  # (Cout,Cin,3,3,3)
    y = lax.conv_general_dilated(
        xq, w_conv,
        window_strides=(1, 1, 1),
        padding=((1, 1), (1, 1), (1, 1)),
        dimension_numbers=("NCDHW", "OIDHW", "NCDHW"),
        precision=lax.Precision.HIGHEST)
    return _selu(y)


if __name__ == "__main__":
    key = jax.random.PRNGKey(0)
    kx, kw, kx2 = jax.random.split(key, 3)

    N, Cin, Cout = 2, 4, 8
    D = H = W = 8

    x = jax.random.normal(kx, (N, Cin, D, H, W), dtype=jnp.float32)
    # ConvTranspose3d weight shape: (Cin, Cout, kD, kH, kW).
    w = 0.1 * jax.random.normal(kw, (Cin, Cout, K, K, K), dtype=jnp.float32)

    # Path 1: full-D halo block (auto-pipelined BlockSpecs, grid over batch).
    out = jax.block_until_ready(tconv3_forward(x, w))
    ref = _reference(x, w)
    assert out.shape == (N, Cout, D, H, W), out.shape
    err = float(jnp.max(jnp.abs(out - ref)))
    assert err < 5e-3, f"full-D path max err {err}"

    # Path 2: D-tiled path with in-kernel halo-window DMA (no halo copy in HBM).
    D2 = 16
    x2 = jax.random.normal(kx2, (N, Cin, D2, H, W), dtype=jnp.float32)
    out2 = jax.block_until_ready(tconv3_forward(x2, w, tile_d=4))
    ref2 = _reference(x2, w)
    assert out2.shape == (N, Cout, D2, H, W), out2.shape
    err2 = float(jnp.max(jnp.abs(out2 - ref2)))
    assert err2 < 5e-3, f"tiled path max err {err2}"

    print("KERNEL_OK")
</pallas_src>

<mosaic_0001>
module attributes {stable_mosaic.version = 11 : i64} {
  func.func @_tconv3_kernel_full(%arg0: i32, %arg1: memref<1x10x10x10x4xbf16, #tpu.memory_space<vmem>>, %arg2: memref<3x8x36xbf16, #tpu.memory_space<vmem>>, %arg3: memref<1x8x512xf32, #tpu.memory_space<vmem>>) attributes {dimension_semantics = [#tpu.dimension_semantics<parallel>], iteration_bounds = array<i64: 2>, scalar_prefetch = 0 : i64, scratch_operands = 0 : i64, tpu.core_type = #tpu.core_type<tc>, window_params = [{transform_indices = @transform_0, window_bounds = array<i64: 1, 10, 10, 10, 4>}, {pipeline_mode = #tpu.pipeline_mode<synchronous>, transform_indices = @transform_1, window_bounds = array<i64: 3, 8, 36>}, {transform_indices = @transform_2, window_bounds = array<i64: 1, 8, 512>}]} {
    %c0 = arith.constant 0 : index
    %c0_0 = arith.constant 0 : index
    %c0_1 = arith.constant 0 : index
    %c0_2 = arith.constant 0 : index
    %c0_3 = arith.constant 0 : index
    %0 = vector.load %arg1[%c0, %c0_0, %c0_1, %c0_2, %c0_3] : memref<1x10x10x10x4xbf16, #tpu.memory_space<vmem>>, vector<1x8x10x10x4xbf16>
    %1 = vector.shape_cast %0 : vector<1x8x10x10x4xbf16> to vector<8x10x10x4xbf16>
    %2 = vector.extract_strided_slice %1 {offsets = [0, 0, 0, 0], sizes = [8, 10, 8, 4], strides = [1, 1, 1, 1]} : vector<8x10x10x4xbf16> to vector<8x10x8x4xbf16>
    %3 = vector.extract_strided_slice %1 {offsets = [0, 0, 1, 0], sizes = [8, 10, 8, 4], strides = [1, 1, 1, 1]} : vector<8x10x10x4xbf16> to vector<8x10x8x4xbf16>
    %4 = vector.extract_strided_slice %1 {offsets = [0, 0, 2, 0], sizes = [8, 10, 8, 4], strides = [1, 1, 1, 1]} : vector<8x10x10x4xbf16> to vector<8x10x8x4xbf16>
    %5 = tpu.concatenate %2, %3, %4 in 3 : vector<8x10x8x4xbf16>, vector<8x10x8x4xbf16>, vector<8x10x8x4xbf16> -> vector<8x10x8x12xbf16>
    %6 = vector.extract_strided_slice %5 {offsets = [0, 0, 0, 0], sizes = [8, 8, 8, 12], strides = [1, 1, 1, 1]} : vector<8x10x8x12xbf16> to vector<8x8x8x12xbf16>
    %7 = vector.extract_strided_slice %5 {offsets = [0, 1, 0, 0], sizes = [8, 8, 8, 12], strides = [1, 1, 1, 1]} : vector<8x10x8x12xbf16> to vector<8x8x8x12xbf16>
    %8 = vector.extract_strided_slice %5 {offsets = [0, 2, 0, 0], sizes = [8, 8, 8, 12], strides = [1, 1, 1, 1]} : vector<8x10x8x12xbf16> to vector<8x8x8x12xbf16>
    %9 = tpu.concatenate %6, %7, %8 in 3 : vector<8x8x8x12xbf16>, vector<8x8x8x12xbf16>, vector<8x8x8x12xbf16> -> vector<8x8x8x36xbf16>
    %10 = vector.shape_cast %9 : vector<8x8x8x36xbf16> to vector<512x36xbf16>
    %c0_4 = arith.constant 0 : index
    %c0_5 = arith.constant 0 : index
    %c0_6 = arith.constant 0 : index
    %11 = vector.load %arg2[%c0_4, %c0_5, %c0_6] : memref<3x8x36xbf16, #tpu.memory_space<vmem>>, vector<1x8x36xbf16>
    %12 = vector.shape_cast %11 : vector<1x8x36xbf16> to vector<8x36xbf16>
    %cst = arith.constant dense<0.000000e+00> : vector<8x512xf32>
    %13 = tpu.matmul %12, %10, %cst {dimension_numbers = #tpu.dot_dimension_numbers<[1], [1], [0], [0], [0, 0, 1, 0], [], []>} : vector<8x36xbf16>, vector<512x36xbf16>, vector<8x512xf32> -> vector<8x512xf32>
    %c0_7 = arith.constant 0 : index
    %c1 = arith.constant 1 : index
    %c0_8 = arith.constant 0 : index
    %c0_9 = arith.constant 0 : index
    %c0_10 = arith.constant 0 : index
    %14 = vector.load %arg1[%c0_7, %c1, %c0_8, %c0_9, %c0_10] : memref<1x10x10x10x4xbf16, #tpu.memory_space<vmem>>, vector<1x8x10x10x4xbf16>
    %15 = vector.shape_cast %14 : vector<1x8x10x10x4xbf16> to vector<8x10x10x4xbf16>
    %16 = vector.extract_strided_slice %15 {offsets = [0, 0, 0, 0], sizes = [8, 10, 8, 4], strides = [1, 1, 1, 1]} : vector<8x10x10x4xbf16> to vector<8x10x8x4xbf16>
    %17 = vector.extract_strided_slice %15 {offsets = [0, 0, 1, 0], sizes = [8, 10, 8, 4], strides = [1, 1, 1, 1]} : vector<8x10x10x4xbf16> to vector<8x10x8x4xbf16>
    %18 = vector.extract_strided_slice %15 {offsets = [0, 0, 2, 0], sizes = [8, 10, 8, 4], strides = [1, 1, 1, 1]} : vector<8x10x10x4xbf16> to vector<8x10x8x4xbf16>
    %19 = tpu.concatenate %16, %17, %18 in 3 : vector<8x10x8x4xbf16>, vector<8x10x8x4xbf16>, vector<8x10x8x4xbf16> -> vector<8x10x8x12xbf16>
    %20 = vector.extract_strided_slice %19 {offsets = [0, 0, 0, 0], sizes = [8, 8, 8, 12], strides = [1, 1, 1, 1]} : vector<8x10x8x12xbf16> to vector<8x8x8x12xbf16>
    %21 = vector.extract_strided_slice %19 {offsets = [0, 1, 0, 0], sizes = [8, 8, 8, 12], strides = [1, 1, 1, 1]} : vector<8x10x8x12xbf16> to vector<8x8x8x12xbf16>
    %22 = vector.extract_strided_slice %19 {offsets = [0, 2, 0, 0], sizes = [8, 8, 8, 12], strides = [1, 1, 1, 1]} : vector<8x10x8x12xbf16> to vector<8x8x8x12xbf16>
    %23 = tpu.concatenate %20, %21, %22 in 3 : vector<8x8x8x12xbf16>, vector<8x8x8x12xbf16>, vector<8x8x8x12xbf16> -> vector<8x8x8x36xbf16>
    %24 = vector.shape_cast %23 : vector<8x8x8x36xbf16> to vector<512x36xbf16>
    %c1_11 = arith.constant 1 : index
    %c0_12 = arith.constant 0 : index
    %c0_13 = arith.constant 0 : index
    %25 = vector.load %arg2[%c1_11, %c0_12, %c0_13] : memref<3x8x36xbf16, #tpu.memory_space<vmem>>, vector<1x8x36xbf16>
    %26 = vector.shape_cast %25 : vector<1x8x36xbf16> to vector<8x36xbf16>
    %cst_14 = arith.constant dense<0.000000e+00> : vector<8x512xf32>
    %27 = tpu.matmul %26, %24, %cst_14 {dimension_numbers = #tpu.dot_dimension_numbers<[1], [1], [0], [0], [0, 0, 1, 0], [], []>} : vector<8x36xbf16>, vector<512x36xbf16>, vector<8x512xf32> -> vector<8x512xf32>
    %28 = arith.addf %13, %27 : vector<8x512xf32>
    %c0_15 = arith.constant 0 : index
    %c2 = arith.constant 2 : index
    %c0_16 = arith.constant 0 : index
    %c0_17 = arith.constant 0 : index
    %c0_18 = arith.constant 0 : index
    %29 = vector.load %arg1[%c0_15, %c2, %c0_16, %c0_17, %c0_18] : memref<1x10x10x10x4xbf16, #tpu.memory_space<vmem>>, vector<1x8x10x10x4xbf16>
    %30 = vector.shape_cast %29 : vector<1x8x10x10x4xbf16> to vector<8x10x10x4xbf16>
    %31 = vector.extract_strided_slice %30 {offsets = [0, 0, 0, 0], sizes = [8, 10, 8, 4], strides = [1, 1, 1, 1]} : vector<8x10x10x4xbf16> to vector<8x10x8x4xbf16>
    %32 = vector.extract_strided_slice %30 {offsets = [0, 0, 1, 0], sizes = [8, 10, 8, 4], strides = [1, 1, 1, 1]} : vector<8x10x10x4xbf16> to vector<8x10x8x4xbf16>
    %33 = vector.extract_strided_slice %30 {offsets = [0, 0, 2, 0], sizes = [8, 10, 8, 4], strides = [1, 1, 1, 1]} : vector<8x10x10x4xbf16> to vector<8x10x8x4xbf16>
    %34 = tpu.concatenate %31, %32, %33 in 3 : vector<8x10x8x4xbf16>, vector<8x10x8x4xbf16>, vector<8x10x8x4xbf16> -> vector<8x10x8x12xbf16>
    %35 = vector.extract_strided_slice %34 {offsets = [0, 0, 0, 0], sizes = [8, 8, 8, 12], strides = [1, 1, 1, 1]} : vector<8x10x8x12xbf16> to vector<8x8x8x12xbf16>
    %36 = vector.extract_strided_slice %34 {offsets = [0, 1, 0, 0], sizes = [8, 8, 8, 12], strides = [1, 1, 1, 1]} : vector<8x10x8x12xbf16> to vector<8x8x8x12xbf16>
    %37 = vector.extract_strided_slice %34 {offsets = [0, 2, 0, 0], sizes = [8, 8, 8, 12], strides = [1, 1, 1, 1]} : vector<8x10x8x12xbf16> to vector<8x8x8x12xbf16>
    %38 = tpu.concatenate %35, %36, %37 in 3 : vector<8x8x8x12xbf16>, vector<8x8x8x12xbf16>, vector<8x8x8x12xbf16> -> vector<8x8x8x36xbf16>
    %39 = vector.shape_cast %38 : vector<8x8x8x36xbf16> to vector<512x36xbf16>
    %c2_19 = arith.constant 2 : index
    %c0_20 = arith.constant 0 : index
    %c0_21 = arith.constant 0 : index
    %40 = vector.load %arg2[%c2_19, %c0_20, %c0_21] : memref<3x8x36xbf16, #tpu.memory_space<vmem>>, vector<1x8x36xbf16>
    %41 = vector.shape_cast %40 : vector<1x8x36xbf16> to vector<8x36xbf16>
    %cst_22 = arith.constant dense<0.000000e+00> : vector<8x512xf32>
    %42 = tpu.matmul %41, %39, %cst_22 {dimension_numbers = #tpu.dot_dimension_numbers<[1], [1], [0], [0], [0, 0, 1, 0], [], []>} : vector<8x36xbf16>, vector<512x36xbf16>, vector<8x512xf32> -> vector<8x512xf32>
    %43 = arith.addf %28, %42 : vector<8x512xf32>
    %cst_23 = arith.constant 0.000000e+00 : f32
    %44 = vector.broadcast %cst_23 : f32 to vector<8x512xf32>
    %45 = arith.cmpf ogt, %43, %44 : vector<8x512xf32>
    %cst_24 = arith.constant 0.000000e+00 : f32
    %46 = vector.broadcast %cst_24 : f32 to vector<8x512xf32>
    %47 = arith.minimumf %43, %46 : vector<8x512xf32>
    %48 = math.exp %47 : vector<8x512xf32>
    %cst_25 = arith.constant 1.000000e+00 : f32
    %49 = vector.broadcast %cst_25 : f32 to vector<8x512xf32>
    %50 = arith.subf %48, %49 : vector<8x512xf32>
    %cst_26 = arith.constant 1.67326319 : f32
    %51 = vector.broadcast %cst_26 : f32 to vector<8x512xf32>
    %52 = arith.mulf %51, %50 : vector<8x512xf32>
    %53 = arith.select %45, %43, %52 : vector<8x512xi1>, vector<8x512xf32>
    %cst_27 = arith.constant 1.05070102 : f32
    %54 = vector.broadcast %cst_27 : f32 to vector<8x512xf32>
    %55 = arith.mulf %54, %53 : vector<8x512xf32>
    %c0_28 = arith.constant 0 : index
    %c0_29 = arith.constant 0 : index
    %c0_30 = arith.constant 0 : index
    %56 = vector.load %arg3[%c0_28, %c0_29, %c0_30] : memref<1x8x512xf32, #tpu.memory_space<vmem>>, vector<1x8x512xf32>
    %57 = vector.shape_cast %56 : vector<1x8x512xf32> to vector<8x512xf32>
    %58 = vector.shape_cast %55 : vector<8x512xf32> to vector<1x8x512xf32>
    tpu.vector_store %arg3[%c0_28, %c0_29, %c0_30], %58 {strides = array<i32>} : memref<1x8x512xf32, #tpu.memory_space<vmem>>, vector<1x8x512xf32>,
    return
  }
  func.func @transform_0(%arg0: i32) -> (i32, i32, i32, i32, i32) {
    %c0_i32 = arith.constant 0 : i32
    %c0_i32_0 = arith.constant 0 : i32
    %c0_i32_1 = arith.constant 0 : i32
    %c0_i32_2 = arith.constant 0 : i32
    %c0_i32_3 = arith.constant 0 : i32
    return %arg0, %c0_i32, %c0_i32_0, %c0_i32_1, %c0_i32_2 : i32, i32, i32, i32, i32
  }
  func.func @transform_1(%arg0: i32) -> (i32, i32, i32) {
    %c0_i32 = arith.constant 0 : i32
    %c0_i32_0 = arith.constant 0 : i32
    %c0_i32_1 = arith.constant 0 : i32
    %c0_i32_2 = arith.constant 0 : i32
    return %c0_i32, %c0_i32_0, %c0_i32_1 : i32, i32, i32
  }
  func.func @transform_2(%arg0: i32) -> (i32, i32, i32) {
    %c0_i32 = arith.constant 0 : i32
    %c0_i32_0 = arith.constant 0 : i32
    %c0_i32_1 = arith.constant 0 : i32
    return %arg0, %c0_i32, %c0_i32_0 : i32, i32, i32
  }
}

</mosaic_0001>

<bundles_post_ra>
// kernel: tconv3_forward.1
= control target key start
LH: loop header
LB: loop body
LE: loop exit
PB: predicated region body
PF: predicated region fallthrough
CT: control target
= control target key end

     0   :  { %s10150_s9 = smov 0   ;;  %s17048_s0 = inlined_call_operand.vmem [shape: bf16[2,10,10,10,4], index: 0, kind: input, shape index: {}]   ;;  %s17049_s1 = inlined_call_operand.vmem [shape: bf16[3,8,36], index: 1, kind: input, shape index: {}]   ;;  %s17050_s2 = inlined_call_operand.vmem [shape: f32[2,8,512], index: 2, kind: output, shape index: {}]  }
   0x1 LB: > { %s8787_s10 = sadd.s32 4294967295, %s10129_s9   ;;  %p8791_p0 = scmp.ge.s32.totalorder %s10129_s9, 1  ;;  %s10129_s9 = sphi %s10150_s9, %s12_s9  }
   0x2   : > { %p112_p1 = scmp.lt.s32.totalorder %s10129_s9, 3 }
   0x4   : > { %p113_p2 = pnand %p8791_p0, %p112_p1 }
   0x6   : > { %116 = sbr.rel (%p113_p2) target bundleno = 2106 (0x83a), region = 28 }
   0xb   : > { %p134_p3 = scmp.lt.s32.totalorder %s8787_s10, 1  ;;  %s10131_s15 = smov 4   ;;  %vm1665_vm0 = vcmask 31744   ;;  %vm1906_vm1 = vcmask 64512   ;;  %vm5321_vm2 = vcmask 293888   ;;  %vm2395_vm3 = vcmask 97280  }
   0xc   : > { %s10132_s16 = smov 8   ;;  %s10133_s17 = smov 12   ;;  %vm2524_vm4 = vcmask 195584  }
   0xd   : > { %s18609_s10 = smov (!%p134_p3, %s8787_s10), 1  ;;  %s10134_s18 = smov 24  }
   0xe   : > { %s9622_s11 = smul.u32 800, %s18609_s10  ;;  %s9465_s27 = sshll.u32 %s18609_s10, 5 }
   0xf   : > { %s143_s30 = scalar_lea.vmem %s17050_s2, %s9465_s27 }
  0x10   : > { %s10164_s14 = scalar_lea.vmem %s17048_s0, %s9622_s11 }
  0x11   : > { %v149_v0 = vld [vmem:[%s10164_s14 + $0x10] sm:$0xf]  ;;  %v150_v1 = vld [vmem:[%s10164_s14 + $0x14] sm:$0x1]  ;;  %v145_v2 = vld [vmem:[%s10164_s14] sm:$0xf] }
  0x12   : > { %v10169_v3 = vcombine.low %v149_v0, %v150_v1  ;;  %v146_v4 = vld [vmem:[%s10164_s14 + $0x4] sm:$0x1]  ;;  %v151_v5 = vld [vmem:[%s10164_s14 + $0x18] sm:$0xf]  ;;  %v152_v6 = vld [vmem:[%s10164_s14 + $0x1c] sm:$0x1] }
  0x13   : > { %v10174_v7 = vcombine.low %v145_v2, %v146_v4  ;;  %v10176_v8 = vcombine.low %v151_v5, %v152_v6  ;;  %v147_v9 = vld [vmem:[%s10164_s14 + $0x8] sm:$0xf]  ;;  %v148_v10 = vld [vmem:[%s10164_s14 + $0xc] sm:$0x1]  ;;  %v153_v16 = vld [vmem:[%s10164_s14 + $0x20] sm:$0xf] }
  0x14   : > { %v155_v11 = vld [vmem:[%s10164_s14 + $0x28] sm:$0xf]  ;;  %v720_v12 = vshrl.u32 %v10169_v3, 16  ;;  %v722_v13 = vshll.u32 %v10169_v3, 16  ;;  %v10183_v14 = vcombine.low %v147_v9, %v148_v10  ;;  %v156_v15 = vld [vmem:[%s10164_s14 + $0x2c] sm:$0x1] }
  0x15   : > { %v706_v17 = vshrl.u32 %v10174_v7, 16  ;;  %v708_v18 = vshll.u32 %v10174_v7, 16  ;;  %v727_v19 = vshrl.u32 %v10176_v8, 16  ;;  %v729_v20 = vshll.u32 %v10176_v8, 16  ;;  %v154_v21 = vld [vmem:[%s10164_s14 + $0x24] sm:$0x1] }
  0x16   : > { %v724_v22 = vrot.slane %v722_v13, 1  ;;  %v713_v23 = vshrl.u32 %v10183_v14, 16  ;;  %v715_v24 = vshll.u32 %v10183_v14, 16  ;;  %v10194_v25 = vcombine.low %v155_v11, %v156_v15  ;;  %v159_v26 = vld [vmem:[%s10164_s14 + $0x38] sm:$0xf] }
  0x17   : > { %v710_v27 = vrot.slane %v708_v18, 1  ;;  %v731_v28 = vrot.slane %v729_v20, 1  ;;  %v10197_v29 = vcombine.low %v153_v16, %v154_v21  ;;  %v160_v30 = vld [vmem:[%s10164_s14 + $0x3c] sm:$0x1]  ;;  %v157_v31 = vld [vmem:[%s10164_s14 + $0x30] sm:$0xf] }
  0x18   : > { %v725_v32 = vor.u32 %v724_v22, %v720_v12  ;;  %v717_v33 = vrot.slane %v715_v24, 1  ;;  %v743_v34 = vshll.u32 %v10194_v25, 16  ;;  %v158_v35 = vld [vmem:[%s10164_s14 + $0x34] sm:$0x1]  ;;  %v741_v38 = vshrl.u32 %v10194_v25, 16 }
  0x19   : > { %v711_v36 = vor.u32 %v710_v27, %v706_v17  ;;  %v732_v37 = vor.u32 %v731_v28, %v727_v19  ;;  %v736_v39 = vshll.u32 %v10197_v29, 16  ;;  %v163_v40 = vld [vmem:[%s10164_s14 + $0x48] sm:$0xf]  ;;  %v164_v41 = vld [vmem:[%s10164_s14 + $0x4c] sm:$0x1]  ;;  %v734_v43 = vshrl.u32 %v10197_v29, 16 }
  0x1a   : > { %1269 = vrot.lane.b32.xlu1 %v725_v32, %s10131_s15  ;;  %v745_v42 = vrot.slane %v743_v34, 1  ;;  %v10209_v44 = vcombine.low %v159_v26, %v160_v30  ;;  %v10211_v45 = vcombine.low %v157_v31, %v158_v35  ;;  %v161_v46 = vld [vmem:[%s10164_s14 + $0x40] sm:$0xf]  ;;  %v162_v47 = vld [vmem:[%s10164_s14 + $0x44] sm:$0x1]  ;;  %v718_v48 = vor.u32 %v717_v33, %v713_v23 }
  0x1b   : > { %1265 = vrot.lane.b32.xlu0 %v711_v36, %s10131_s15  ;;  %v738_v49 = vrot.slane %v736_v39, 1  ;;  %v10216_v50 = vcombine.low %v163_v40, %v164_v41  ;;  %v10218_v51 = vcombine.low %v161_v46, %v162_v47  ;;  %v167_v52 = vld [vmem:[%s10164_s14 + $0x58] sm:$0xf]  ;;  %v168_v53 = vld [vmem:[%s10164_s14 + $0x5c] sm:$0x1] }
  0x1c   : > { %v757_v54 = vshll.u32 %v10209_v44, 16  ;;  %v165_v55 = vld [vmem:[%s10164_s14 + $0x50] sm:$0xf]  ;;  %v746_v56 = vor.u32 %v745_v42, %v741_v38  ;;  %v755_v57 = vshrl.u32 %v10209_v44, 16  ;;  %v750_v58 = vshll.u32 %v10211_v45, 16 }
  0x1d   : > { %v166_v59 = vld [vmem:[%s10164_s14 + $0x54] sm:$0x1]  ;;  %v748_v61 = vshrl.u32 %v10211_v45, 16  ;;  %v771_v62 = vshll.u32 %v10216_v50, 16  ;;  %v10230_v63 = vcombine.low %v167_v52, %v168_v53  ;;  %v739_v0 = vor.u32 %v738_v49, %v734_v43  ;;  %v171_v5 = vld [vmem:[%s10164_s14 + $0x68] sm:$0xf] }
  0x1e   : > { %1271 = vrot.lane.b32.xlu1 %v732_v37, %s10131_s15  ;;  %v759_v60 = vrot.slane %v757_v54, 1  ;;  %v752_v1 = vrot.slane %v750_v58, 1  ;;  %v764_v2 = vshll.u32 %v10218_v51, 16  ;;  %v10234_v4 = vcombine.low %v165_v55, %v166_v59  ;;  %v172_v6 = vld [vmem:[%s10164_s14 + $0x6c] sm:$0x1] }
  0x1f   : > { %1267 = vrot.lane.b32.xlu0 %v718_v48, %s10131_s15  ;;  %v169_v9 = vld [vmem:[%s10164_s14 + $0x60] sm:$0xf]  ;;  %v170_v10 = vld [vmem:[%s10164_s14 + $0x64] sm:$0x1]  ;;  %v769_v11 = vshrl.u32 %v10216_v50, 16  ;;  %v785_v12 = vshll.u32 %v10230_v63, 16  ;;  %v10244_v17 = vcombine.low %v171_v5, %v172_v6 }
  0x20   : > { %v760_v13 = vor.u32 %v759_v60, %v755_v57  ;;  %v773_v15 = vrot.slane %v771_v62, 1  ;;  %v762_v16 = vshrl.u32 %v10218_v51, 16  ;;  %v753_v18 = vor.u32 %v752_v1, %v748_v61  ;;  %v175_v22 = vld [vmem:[%s10164_s14 + $0x78] sm:$0xf]  ;;  %v176_v23 = vld [vmem:[%s10164_s14 + $0x7c] sm:$0x1] }
  0x21   : > { %v766_v19 = vrot.slane %v764_v2, 1  ;;  %v778_v20 = vshll.u32 %v10234_v4, 16  ;;  %v10248_v21 = vcombine.low %v169_v9, %v170_v10  ;;  %v173_v24 = vld [vmem:[%s10164_s14 + $0x70] sm:$0xf]  ;;  %v174_v26 = vld [vmem:[%s10164_s14 + $0x74] sm:$0x1]  ;;  %v10258_v33 = vcombine.low %v175_v22, %v176_v23 }
  0x22   : > { %1275 = vrot.lane.b32.xlu1 %v746_v56, %s10131_s15  ;;  %v783_v27 = vshrl.u32 %v10230_v63, 16  ;;  %v787_v28 = vrot.slane %v785_v12, 1  ;;  %v774_v30 = vor.u32 %v773_v15, %v769_v11  ;;  %v776_v31 = vshrl.u32 %v10234_v4, 16  ;;  %v179_v34 = vld [vmem:[%s10164_s14 + $0x88] sm:$0xf] }
  0x23   : > { %1273 = vrot.lane.b32.xlu0 %v739_v0, %s10131_s15  ;;  %v799_v32 = vshll.u32 %v10244_v17, 16  ;;  %v180_v35 = vld [vmem:[%s10164_s14 + $0x8c] sm:$0x1]  ;;  %v767_v36 = vor.u32 %v766_v19, %v762_v16  ;;  %v780_v37 = vrot.slane %v778_v20, 1  ;;  %v792_v38 = vshll.u32 %v10248_v21, 16 }
  0x24   : > { %v10264_v39 = vcombine.low %v173_v24, %v174_v26  ;;  %v177_v40 = vld [vmem:[%s10164_s14 + $0x80] sm:$0xf]  ;;  %v178_v41 = vld [vmem:[%s10164_s14 + $0x84] sm:$0x1]  ;;  %v788_v42 = vor.u32 %v787_v28, %v783_v27  ;;  %v10268_v43 = vcombine.low %v179_v34, %v180_v35  ;;  %v797_v46 = vshrl.u32 %v10244_v17, 16 }
  0x25   : > { %v801_v47 = vrot.slane %v799_v32, 1  ;;  %v790_v48 = vshrl.u32 %v10248_v21, 16  ;;  %v813_v49 = vshll.u32 %v10258_v33, 16  ;;  %v781_v52 = vor.u32 %v780_v37, %v776_v31  ;;  %v183_v56 = vld [vmem:[%s10164_s14 + $0x98] sm:$0xf] }
  0x26   : > { %1279 = vrot.lane.b32.xlu1 %v760_v13, %s10131_s15  ;;  %v794_v53 = vrot.slane %v792_v38, 1  ;;  %v806_v54 = vshll.u32 %v10264_v39, 16  ;;  %v10276_v55 = vcombine.low %v177_v40, %v178_v41  ;;  %v184_v57 = vld [vmem:[%s10164_s14 + $0x9c] sm:$0x1]  ;;  %v181_v58 = vld [vmem:[%s10164_s14 + $0x90] sm:$0xf] }
  0x27   : > { %1277 = vrot.lane.b32.xlu0 %v753_v18, %s10131_s15  ;;  %v182_v59 = vld [vmem:[%s10164_s14 + $0x94] sm:$0x1]  ;;  %v811_v60 = vshrl.u32 %v10258_v33, 16  ;;  %v827_v61 = vshll.u32 %v10268_v43, 16  ;;  %v802_v62 = vor.u32 %v801_v47, %v797_v46  ;;  %v815_v0 = vrot.slane %v813_v49, 1 }
  0x28   : > { %v804_v1 = vshrl.u32 %v10264_v39, 16  ;;  %v10286_v2 = vcombine.low %v183_v56, %v184_v57  ;;  %v795_v5 = vor.u32 %v794_v53, %v790_v48  ;;  %v808_v6 = vrot.slane %v806_v54, 1  ;;  %v187_v11 = vld [vmem:[%s10164_s14 + $0xa8] sm:$0xf]  ;;  %v188_v12 = vld [vmem:[%s10164_s14 + $0xac] sm:$0x1] }
  0x29   : > { %v820_v9 = vshll.u32 %v10276_v55, 16  ;;  %v10290_v10 = vcombine.low %v181_v58, %v182_v59  ;;  %v185_v13 = vld [vmem:[%s10164_s14 + $0xa0] sm:$0xf]  ;;  %v186_v15 = vld [vmem:[%s10164_s14 + $0xa4] sm:$0x1]  ;;  %v825_v16 = vshrl.u32 %v10268_v43, 16  ;;  %v816_v19 = vor.u32 %v815_v0, %v811_v60 }
  0x2a   : > { %1283 = vrot.lane.b32.xlu1 %v774_v30, %s10131_s15  ;;  %v829_v18 = vrot.slane %v827_v61, 1  ;;  %v818_v20 = vshrl.u32 %v10276_v55, 16  ;;  %v841_v22 = vshll.u32 %v10286_v2, 16  ;;  %v10300_v23 = vcombine.low %v187_v11, %v188_v12  ;;  %v191_v24 = vld [vmem:[%s10164_s14 + $0xb8] sm:$0xf] }
  0x2b   : > { %1281 = vrot.lane.b32.xlu0 %v767_v36, %s10131_s15  ;;  %v192_v26 = vld [vmem:[%s10164_s14 + $0xbc] sm:$0x1]  ;;  %v809_v27 = vor.u32 %v808_v6, %v804_v1  ;;  %v822_v28 = vrot.slane %v820_v9, 1  ;;  %v834_v30 = vshll.u32 %v10290_v10, 16  ;;  %v10306_v31 = vcombine.low %v185_v13, %v186_v15  ;;  %v189_v32 = vld [vmem:[%s10164_s14 + $0xb0] sm:$0xf] }
  0x2c   : > { %v190_v34 = vld [vmem:[%s10164_s14 + $0xb4] sm:$0x1]  ;;  %v830_v35 = vor.u32 %v829_v18, %v825_v16  ;;  %v10310_v36 = vcombine.low %v191_v24, %v192_v26  ;;  %v839_v37 = vshrl.u32 %v10286_v2, 16  ;;  %v843_v38 = vrot.slane %v841_v22, 1  ;;  %v195_v49 = vld [vmem:[%s10164_s14 + $0xc8] sm:$0xf] }
  0x2d   : > { %v832_v40 = vshrl.u32 %v10290_v10, 16  ;;  %v855_v41 = vshll.u32 %v10300_v23, 16  ;;  %v836_v46 = vrot.slane %v834_v30, 1  ;;  %v848_v47 = vshll.u32 %v10306_v31, 16  ;;  %v193_v53 = vld [vmem:[%s10164_s14 + $0xc0] sm:$0xf] }
  0x2e   : > { %1287 = vrot.lane.b32.xlu1 %v788_v42, %s10131_s15  ;;  %v823_v42 = vor.u32 %v822_v28, %v818_v20  ;;  %v10318_v48 = vcombine.low %v189_v32, %v190_v34  ;;  %v194_v54 = vld [vmem:[%s10164_s14 + $0xc4] sm:$0x1]  ;;  %v853_v56 = vshrl.u32 %v10300_v23, 16  ;;  %v869_v57 = vshll.u32 %v10310_v36, 16  ;;  %v199_v6 = vld [vmem:[%s10164_s14 + $0xd8] sm:$0xf] }
  0x2f   : > { %1285 = vrot.lane.b32.xlu0 %v781_v52, %s10131_s15  ;;  %v196_v52 = vld [vmem:[%s10164_s14 + $0xcc] sm:$0x1]  ;;  %v844_v58 = vor.u32 %v843_v38, %v839_v37  ;;  %v857_v59 = vrot.slane %v855_v41, 1  ;;  %v846_v60 = vshrl.u32 %v10306_v31, 16  ;;  %v850_v0 = vrot.slane %v848_v47, 1 }
  0x30   : > { %v10328_v61 = vcombine.low %v195_v49, %v196_v52  ;;  %v862_v1 = vshll.u32 %v10318_v48, 16  ;;  %v200_v9 = vld [vmem:[%s10164_s14 + $0xdc] sm:$0x1]  ;;  %v197_v11 = vld [vmem:[%s10164_s14 + $0xd0] sm:$0xf]  ;;  %v867_v13 = vshrl.u32 %v10310_v36, 16 }
  0x31   : > { %v198_v12 = vld [vmem:[%s10164_s14 + $0xd4] sm:$0x1]  ;;  %v871_v15 = vrot.slane %v869_v57, 1  ;;  %v858_v16 = vor.u32 %v857_v59, %v853_v56  ;;  %v860_v18 = vshrl.u32 %v10318_v48, 16  ;;  %v10342_v20 = vcombine.low %v199_v6, %v200_v9  ;;  %v203_v22 = vld [vmem:[%s10164_s14 + $0xe8] sm:$0xf] }
  0x32   : > { %1291 = vrot.lane.b32.xlu1 %v802_v62, %s10131_s15  ;;  %v837_v62 = vor.u32 %v836_v46, %v832_v40  ;;  %v204_v24 = vld [vmem:[%s10164_s14 + $0xec] sm:$0x1]  ;;  %v851_v26 = vor.u32 %v850_v0, %v846_v60  ;;  %v10348_v30 = vcombine.low %v197_v11, %v198_v12  ;;  %v201_v32 = vld [vmem:[%s10164_s14 + $0xe0] sm:$0xf]  ;;  %v202_v34 = vld [vmem:[%s10164_s14 + $0xe4] sm:$0x1] }
  0x33   : > { %1289 = vrot.lane.b32.xlu0 %v795_v5, %s10131_s15  ;;  %v10332_v5 = vcombine.low %v193_v53, %v194_v54  ;;  %v10352_v37 = vcombine.low %v203_v22, %v204_v24  ;;  %v881_v38 = vshrl.u32 %v10328_v61, 16  ;;  %v10360_v52 = vcombine.low %v201_v32, %v202_v34  ;;  %v207_v53 = vld [vmem:[%s10164_s14 + $0xf8] sm:$0xf]  ;;  %v208_v54 = vld [vmem:[%s10164_s14 + $0xfc] sm:$0x1] }
  0x34   : > { %v890_v49 = vshll.u32 %v10348_v30, 16  ;;  %v205_v56 = vld [vmem:[%s10164_s14 + $0xf0] sm:$0xf]  ;;  %v206_v57 = vld [vmem:[%s10164_s14 + $0xf4] sm:$0x1]  ;;  %v888_v0 = vshrl.u32 %v10348_v30, 16 }
  0x35   : > { %v876_v28 = vshll.u32 %v10332_v5, 16  ;;  %v874_v41 = vshrl.u32 %v10332_v5, 16  ;;  %v911_v59 = vshll.u32 %v10352_v37, 16  ;;  %v904_v11 = vshll.u32 %v10360_v52, 16  ;;  %v215_v32 = vld [vmem:[%s10164_s14 + $0x118] sm:$0xf] }
  0x36   : > { %1295 = vrot.lane.b32.xlu1 %v816_v19, %s10131_s15  ;;  %v883_v19 = vshll.u32 %v10328_v61, 16  ;;  %v892_v9 = vrot.slane %v890_v49, 1  ;;  %v10374_v12 = vcombine.low %v205_v56, %v206_v57  ;;  %v216_v34 = vld [vmem:[%s10164_s14 + $0x11c] sm:$0x1] }
  0x37   : > { %1293 = vrot.lane.b32.xlu0 %v809_v27, %s10131_s15  ;;  %v864_v27 = vrot.slane %v862_v1, 1  ;;  %v878_v47 = vrot.slane %v876_v28, 1  ;;  %v10370_v1 = vcombine.low %v207_v53, %v208_v54  ;;  %v913_v22 = vrot.slane %v911_v59, 1 }
  0x38   : > { %v885_v40 = vrot.slane %v883_v19, 1  ;;  %v909_v19 = vshrl.u32 %v10352_v37, 16  ;;  %v10394_v49 = vcombine.low %v215_v32, %v216_v34  ;;  %v916_v56 = vshrl.u32 %v10374_v12, 16  ;;  %v223_v34 = vld [vmem:[%s10164_s14 + $0x138] sm:$0xf] }
  0x39   : > { %v865_v46 = vor.u32 %v864_v27, %v860_v18  ;;  %v879_v6 = vor.u32 %v878_v47, %v874_v41  ;;  %v210_v18 = vld [vmem:[%s10164_s14 + $0x104] sm:$0x1]  ;;  %v925_v27 = vshll.u32 %v10370_v1, 16  ;;  %v923_v53 = vshrl.u32 %v10370_v1, 16 }
  0x3a   : > { %1299 = vrot.lane.b32.xlu1 %v830_v35, %s10131_s15  ;;  %v872_v35 = vor.u32 %v871_v15, %v867_v13  ;;  %v886_v60 = vor.u32 %v885_v40, %v881_v38  ;;  %v211_v13 = vld [vmem:[%s10164_s14 + $0x108] sm:$0xf]  ;;  %v212_v15 = vld [vmem:[%s10164_s14 + $0x10c] sm:$0x1]  ;;  %v906_v38 = vrot.slane %v904_v11, 1  ;;  %v918_v40 = vshll.u32 %v10374_v12, 16 }
  0x3b   : > { %1297 = vrot.lane.b32.xlu0 %v823_v42, %s10131_s15  ;;  %v897_v42 = vshll.u32 %v10342_v20, 16  ;;  %v10384_v28 = vcombine.low %v211_v13, %v212_v15  ;;  %v914_v47 = vor.u32 %v913_v22, %v909_v19  ;;  %v927_v54 = vrot.slane %v925_v27, 1  ;;  %v218_v11 = vld [vmem:[%s10164_s14 + $0x124] sm:$0x1] }
  0x3c   : > { %v920_v59 = vrot.slane %v918_v40, 1  ;;  %v953_v15 = vshll.u32 %v10394_v49, 16  ;;  %v222_v40 = vld [vmem:[%s10164_s14 + $0x134] sm:$0x1] }
  0x3d   : > { %v939_v57 = vshll.u32 %v10384_v28, 16  ;;  %v937_v13 = vshrl.u32 %v10384_v28, 16 }
  0x3e   : > { %1303 = vrot.lane.b32.xlu1 %v844_v58, %s10131_s15  ;;  %v895_v58 = vshrl.u32 %v10342_v20, 16 }
  0x3f   : > { %1301 = vrot.lane.b32.xlu0 %v837_v62, %s10131_s15  ;;  %v899_v62 = vrot.slane %v897_v42, 1  ;;  %v213_v42 = vld [vmem:[%s10164_s14 + $0x110] sm:$0xf] }
  0x41   : > { %v900_v24 = vor.u32 %v899_v62, %v895_v58 }
  0x42   : > { %1307 = vrot.lane.b32.xlu1 %v858_v16, %s10131_s15  ;;  %v209_v16 = vld [vmem:[%s10164_s14 + $0x100] sm:$0xf] }
  0x43   : > { %1305 = vrot.lane.b32.xlu0 %v851_v26, %s10131_s15  ;;  %v902_v26 = vshrl.u32 %v10360_v52, 16  ;;  %v10390_v41 = vcombine.low %v209_v16, %v210_v18  ;;  %v928_v16 = vor.u32 %v927_v54, %v923_v53  ;;  %v941_v18 = vrot.slane %v939_v57, 1  ;;  %v227_v57 = vld [vmem:[%s10164_s14 + $0x148] sm:$0xf] }
  0x45   : > { %v907_v58 = vor.u32 %v906_v38, %v902_v26  ;;  %v930_v19 = vshrl.u32 %v10390_v41, 16  ;;  %v221_v38 = vld [vmem:[%s10164_s14 + $0x130] sm:$0xf] }
  0x46   : > { %1311 = vrot.lane.b32.xlu1 %v872_v35, %s10131_s15  ;;  %v893_v35 = vor.u32 %v892_v9, %v888_v0  ;;  %v219_v0 = vld [vmem:[%s10164_s14 + $0x128] sm:$0xf]  ;;  %v217_v9 = vld [vmem:[%s10164_s14 + $0x120] sm:$0xf] }
  0x47   : > { %1309 = vrot.lane.b32.xlu0 %v865_v46, %s10131_s15  ;;  %v214_v46 = vld [vmem:[%s10164_s14 + $0x114] sm:$0x1]  ;;  %v10416_v32 = vcombine.low %v217_v9, %v218_v11  ;;  %v225_v9 = vld [vmem:[%s10164_s14 + $0x140] sm:$0xf]  ;;  %v226_v11 = vld [vmem:[%s10164_s14 + $0x144] sm:$0x1] }
  0x48   : > { %v10402_v62 = vcombine.low %v213_v42, %v214_v46  ;;  %v951_v42 = vshrl.u32 %v10394_v49, 16  ;;  %v955_v46 = vrot.slane %v953_v15, 1 }
  0x49   : > { %17315 = vst [vmem:[#allocation3_spill] sm:$0xff] %v10416_v32 }
  0x4a   : > { %1315 = vrot.lane.b32.xlu1 %v886_v60, %s10131_s15  ;;  %v932_v60 = vshll.u32 %v10390_v41, 16  ;;  %v946_v27 = vshll.u32 %v10402_v62, 16  ;;  %v944_v53 = vshrl.u32 %v10402_v62, 16 }
  0x4b   : > { %1313 = vrot.lane.b32.xlu0 %v879_v6, %s10131_s15  ;;  %v220_v6 = vld [vmem:[%s10164_s14 + $0x12c] sm:$0x1] }
  0x4c   : > { %v10412_v22 = vcombine.low %v219_v0, %v220_v6  ;;  %v934_v26 = vrot.slane %v932_v60, 1  ;;  %v948_v60 = vrot.slane %v946_v27, 1  ;;  %v960_v0 = vshll.u32 %v10416_v32, 16 }
  0x4d   : > { %v10432_v6 = vcombine.low %v221_v38, %v222_v40  ;;  %v231_v38 = vld [vmem:[%s10164_s14 + $0x158] sm:$0xf]  ;;  %v232_v40 = vld [vmem:[%s10164_s14 + $0x15c] sm:$0x1] }
  0x4e   : > { %1319 = vrot.lane.b32.xlu1 %v900_v24, %s10131_s15  ;;  %17314 = vst [vmem:[#allocation2_spill] sm:$0xff] %v10412_v22  ;;  %v921_v24 = vor.u32 %v920_v59, %v916_v56  ;;  %v967_v54 = vshll.u32 %v10412_v22, 16  ;;  %v935_v59 = vor.u32 %v934_v26, %v930_v19  ;;  %v958_v19 = vshrl.u32 %v10416_v32, 16  ;;  %v236_v32 = vld [vmem:[%s10164_s14 + $0x16c] sm:$0x1] }
  0x4f   : > { %1317 = vrot.lane.b32.xlu0 %v893_v35, %s10131_s15  ;;  %v224_v35 = vld [vmem:[%s10164_s14 + $0x13c] sm:$0x1]  ;;  %17317 = vst [vmem:[#allocation5_spill] sm:$0xff] %v10432_v6  ;;  %v949_v26 = vor.u32 %v948_v60, %v944_v53  ;;  %v962_v27 = vrot.slane %v960_v0, 1 }
  0x50   : > { %v10426_v56 = vcombine.low %v223_v34, %v224_v35  ;;  %v974_v34 = vshll.u32 %v10432_v6, 16  ;;  %v10444_v35 = vcombine.low %v225_v9, %v226_v11 }
  0x51   : > { %v963_v60 = vor.u32 %v962_v27, %v958_v19 }
  0x52   : > { %1323 = vrot.lane.b32.xlu1 %v914_v47, %s10131_s15  ;;  %v942_v47 = vor.u32 %v941_v18, %v937_v13  ;;  %17316 = vst [vmem:[#allocation4_spill] sm:$0xff] %v10426_v56  ;;  %v956_v13 = vor.u32 %v955_v46, %v951_v42  ;;  %v969_v18 = vrot.slane %v967_v54, 1  ;;  %17319 = vst [vmem:[#allocation7_spill] sm:$0xff] %v10444_v35  ;;  %v229_v42 = vld [vmem:[%s10164_s14 + $0x150] sm:$0xf]  ;;  %v976_v0 = vrot.slane %v974_v34, 1 }
  0x53   : > { %1321 = vrot.lane.b32.xlu0 %v907_v58, %s10131_s15  ;;  %v228_v58 = vld [vmem:[%s10164_s14 + $0x14c] sm:$0x1]  ;;  %v230_v46 = vld [vmem:[%s10164_s14 + $0x154] sm:$0x1]  ;;  %v988_v9 = vshll.u32 %v10444_v35, 16  ;;  %v986_v19 = vshrl.u32 %v10444_v35, 16 }
  0x54   : > { %v10436_v15 = vcombine.low %v227_v57, %v228_v58  ;;  %v972_v58 = vshrl.u32 %v10432_v6, 16  ;;  %v10458_v11 = vcombine.low %v229_v42, %v230_v46  ;;  %v239_v34 = vld [vmem:[%s10164_s14 + $0x178] sm:$0xf]  ;;  %v248_v35 = vld [vmem:[%s10164_s14 + $0x19c] sm:$0x1] }
  0x55   : > { %v990_v42 = vrot.slane %v988_v9, 1  ;;  %v245_v6 = vld [vmem:[%s10164_s14 + $0x190] sm:$0xf] }
  0x56   : > { %1327 = vrot.lane.b32.xlu1 %v928_v16, %s10131_s15  ;;  %17318 = vst [vmem:[#allocation6_spill] sm:$0xff] %v10436_v15  ;;  %v965_v16 = vshrl.u32 %v10412_v22, 16  ;;  %v995_v54 = vshll.u32 %v10436_v15, 16  ;;  %17321 = vst [vmem:[#allocation9_spill] sm:$0xff] %v10458_v11  ;;  %v233_v22 = vld [vmem:[%s10164_s14 + $0x160] sm:$0xf] }
  0x57   : > { %1325 = vrot.lane.b32.xlu0 %v921_v24, %s10131_s15  ;;  %v981_v24 = vshll.u32 %v10426_v56, 16  ;;  %v1002_v46 = vshll.u32 %v10458_v11, 16 }
  0x58   : > { %v970_v53 = vor.u32 %v969_v18, %v965_v16  ;;  %v993_v16 = vshrl.u32 %v10436_v15, 16  ;;  %v997_v18 = vrot.slane %v995_v54, 1  ;;  %v237_v54 = vld [vmem:[%s10164_s14 + $0x170] sm:$0xf] }
  0x59   : > { %v983_v57 = vrot.slane %v981_v24, 1 }
  0x5a   : > { %1331 = vrot.lane.b32.xlu1 %v942_v47, %s10131_s15  ;;  %v979_v47 = vshrl.u32 %v10426_v56, 16  ;;  %v235_v56 = vld [vmem:[%s10164_s14 + $0x168] sm:$0xf] }
  0x5b   : > { %1329 = vrot.lane.b32.xlu0 %v935_v59, %s10131_s15  ;;  %v10454_v59 = vcombine.low %v231_v38, %v232_v40  ;;  %v10468_v27 = vcombine.low %v235_v56, %v236_v32  ;;  %v240_v38 = vld [vmem:[%s10164_s14 + $0x17c] sm:$0x1]  ;;  %v977_v40 = vor.u32 %v976_v0, %v972_v58  ;;  %v1000_v58 = vshrl.u32 %v10458_v11, 16 }
  0x5c   : > { %v984_v24 = vor.u32 %v983_v57, %v979_v47  ;;  %v238_v47 = vld [vmem:[%s10164_s14 + $0x174] sm:$0x1]  ;;  %v10478_v57 = vcombine.low %v239_v34, %v240_v38  ;;  %v1004_v0 = vrot.slane %v1002_v46, 1  ;;  %v242_v34 = vld [vmem:[%s10164_s14 + $0x184] sm:$0x1] }
  0x5d   : > { %17320 = vst [vmem:[#allocation8_spill] sm:$0xff] %v10454_v59  ;;  %17322 = vst [vmem:[#allocation10_spill] sm:$0xff] %v10468_v27  ;;  %v1007_v32 = vshrl.u32 %v10454_v59, 16 }
  0x5e   : > { %1335 = vrot.lane.b32.xlu1 %v956_v13, %s10131_s15  ;;  %v234_v13 = vld [vmem:[%s10164_s14 + $0x164] sm:$0x1]  ;;  %17324 = vst [vmem:[#allocation12_spill] sm:$0xff] %v10478_v57  ;;  %v1037_v38 = vshll.u32 %v10478_v57, 16 }
  0x5f   : > { %1333 = vrot.lane.b32.xlu0 %v949_v26, %s10131_s15  ;;  %v1009_v26 = vshll.u32 %v10454_v59, 16  ;;  %v10474_v15 = vcombine.low %v233_v22, %v234_v13  ;;  %v991_v22 = vor.u32 %v990_v42, %v986_v19  ;;  %v10486_v13 = vcombine.low %v237_v54, %v238_v47 }
  0x60   : > { %v1005_v54 = vor.u32 %v1004_v0, %v1000_v58 }
  0x61   : > { %17323 = vst [vmem:[#allocation11_spill] sm:$0xff] %v10474_v15  ;;  %v1011_v56 = vrot.slane %v1009_v26, 1  ;;  %v1016_v9 = vshll.u32 %v10474_v15, 16  ;;  %17325 = vst [vmem:[#allocation13_spill] sm:$0xff] %v10486_v13  ;;  %v1021_v26 = vshrl.u32 %v10468_v27, 16  ;;  %v1014_v42 = vshrl.u32 %v10474_v15, 16 }
  0x62   : > { %1339 = vrot.lane.b32.xlu1 %v970_v53, %s10131_s15  ;;  %v998_v53 = vor.u32 %v997_v18, %v993_v16  ;;  %v243_v16 = vld [vmem:[%s10164_s14 + $0x188] sm:$0xf]  ;;  %v244_v18 = vld [vmem:[%s10164_s14 + $0x18c] sm:$0x1]  ;;  %v1030_v11 = vshll.u32 %v10486_v13, 16  ;;  %v1028_v58 = vshrl.u32 %v10486_v13, 16 }
  0x63   : > { %1337 = vrot.lane.b32.xlu0 %v963_v60, %s10131_s15  ;;  %v1023_v60 = vshll.u32 %v10468_v27, 16  ;;  %v1012_v19 = vor.u32 %v1011_v56, %v1007_v32  ;;  %v10496_v46 = vcombine.low %v243_v16, %v244_v18  ;;  %v1018_v47 = vrot.slane %v1016_v9, 1  ;;  %v247_v27 = vld [vmem:[%s10164_s14 + $0x198] sm:$0xf]  ;;  %v251_v9 = vld [vmem:[%s10164_s14 + $0x1a8] sm:$0xf] }
  0x64   : > { %v1035_v32 = vshrl.u32 %v10478_v57, 16  ;;  %v1039_v56 = vrot.slane %v1037_v38, 1  ;;  %v10510_v0 = vcombine.low %v247_v27, %v248_v35  ;;  %v252_v16 = vld [vmem:[%s10164_s14 + $0x1ac] sm:$0x1]  ;;  %v249_v38 = vld [vmem:[%s10164_s14 + $0x1a0] sm:$0xf] }
  0x65   : > { %17326 = vst [vmem:[#allocation14_spill] sm:$0xff] %v10496_v46  ;;  %v1019_v18 = vor.u32 %v1018_v47, %v1014_v42  ;;  %v1049_v35 = vshrl.u32 %v10496_v46, 16  ;;  %v260_v13 = vld [vmem:[%s10164_s14 + $0x1cc] sm:$0x1]  ;;  %v257_v15 = vld [vmem:[%s10164_s14 + $0x1c0] sm:$0xf] }
  0x66   : > { %1343 = vrot.lane.b32.xlu1 %v984_v24, %s10131_s15  ;;  %v241_v24 = vld [vmem:[%s10164_s14 + $0x180] sm:$0xf]  ;;  %17328 = vst [vmem:[#allocation16_spill] sm:$0xff] %v10510_v0  ;;  %v1065_v42 = vshll.u32 %v10510_v0, 16 }
  0x67   : > { %1341 = vrot.lane.b32.xlu0 %v977_v40, %s10131_s15  ;;  %v1025_v40 = vrot.slane %v1023_v60, 1  ;;  %v10500_v59 = vcombine.low %v241_v24, %v242_v34  ;;  %v1032_v24 = vrot.slane %v1030_v11, 1 }
  0x69   : > { %17327 = vst [vmem:[#allocation15_spill] sm:$0xff] %v10500_v59  ;;  %v1026_v60 = vor.u32 %v1025_v40, %v1021_v26  ;;  %v1044_v34 = vshll.u32 %v10500_v59, 16  ;;  %v250_v26 = vld [vmem:[%s10164_s14 + $0x1a4] sm:$0x1]  ;;  %v10520_v40 = vcombine.low %v251_v9, %v252_v16  ;;  %v1042_v11 = vshrl.u32 %v10500_v59, 16 }
  0x6a   : > { %1347 = vrot.lane.b32.xlu1 %v998_v53, %s10131_s15  ;;  %v246_v53 = vld [vmem:[%s10164_s14 + $0x194] sm:$0x1] }
  0x6b   : > { %1345 = vrot.lane.b32.xlu0 %v991_v22, %s10131_s15  ;;  %v1051_v22 = vshll.u32 %v10496_v46, 16  ;;  %v10516_v57 = vcombine.low %v245_v6, %v246_v53  ;;  %17330 = vst [vmem:[#allocation18_spill] sm:$0xff] %v10520_v40  ;;  %v1033_v6 = vor.u32 %v1032_v24, %v1028_v58  ;;  %v10528_v53 = vcombine.low %v249_v38, %v250_v26  ;;  %v254_v9 = vld [vmem:[%s10164_s14 + $0x1b4] sm:$0x1] }
  0x6c   : > { %v1079_v16 = vshll.u32 %v10520_v40, 16 }
  0x6d   : > { %17329 = vst [vmem:[#allocation17_spill] sm:$0xff] %v10516_v57  ;;  %v1053_v27 = vrot.slane %v1051_v22, 1  ;;  %v1058_v47 = vshll.u32 %v10516_v57, 16  ;;  %17331 = vst [vmem:[#allocation19_spill] sm:$0xff] %v10528_v53  ;;  %v1063_v22 = vshrl.u32 %v10510_v0, 16  ;;  %v1056_v24 = vshrl.u32 %v10516_v57, 16 }
  0x6e   : > { %1351 = vrot.lane.b32.xlu1 %v1012_v19, %s10131_s15  ;;  %v1040_v19 = vor.u32 %v1039_v56, %v1035_v32  ;;  %v255_v32 = vld [vmem:[%s10164_s14 + $0x1b8] sm:$0xf]  ;;  %v256_v56 = vld [vmem:[%s10164_s14 + $0x1bc] sm:$0x1]  ;;  %v1072_v59 = vshll.u32 %v10528_v53, 16 }
  0x6f   : > { %1349 = vrot.lane.b32.xlu0 %v1005_v54, %s10131_s15  ;;  %v1046_v54 = vrot.slane %v1044_v34, 1  ;;  %v1054_v58 = vor.u32 %v1053_v27, %v1049_v35  ;;  %v10538_v34 = vcombine.low %v255_v32, %v256_v56  ;;  %v1060_v26 = vrot.slane %v1058_v47, 1  ;;  %v259_v0 = vld [vmem:[%s10164_s14 + $0x1c8] sm:$0xf]  ;;  %v263_v47 = vld [vmem:[%s10164_s14 + $0x1d8] sm:$0xf] }
  0x70   : > { %v1077_v35 = vshrl.u32 %v10520_v40, 16  ;;  %v1081_v27 = vrot.slane %v1079_v16, 1  ;;  %v264_v32 = vld [vmem:[%s10164_s14 + $0x1dc] sm:$0x1]  ;;  %v261_v16 = vld [vmem:[%s10164_s14 + $0x1d0] sm:$0xf] }
  0x71   : > { %17332 = vst [vmem:[#allocation20_spill] sm:$0xff] %v10538_v34  ;;  %v1047_v38 = vor.u32 %v1046_v54, %v1042_v11  ;;  %v1070_v11 = vshrl.u32 %v10528_v53, 16  ;;  %v10552_v54 = vcombine.low %v259_v0, %v260_v13  ;;  %v1061_v56 = vor.u32 %v1060_v26, %v1056_v24  ;;  %v272_v53 = vld [vmem:[%s10164_s14 + $0x1fc] sm:$0x1]  ;;  %v269_v57 = vld [vmem:[%s10164_s14 + $0x1f0] sm:$0xf] }
  0x72   : > { %1355 = vrot.lane.b32.xlu1 %v1026_v60, %s10131_s15  ;;  %v253_v60 = vld [vmem:[%s10164_s14 + $0x1b0] sm:$0xf]  ;;  %v1091_v13 = vshrl.u32 %v10538_v34, 16 }
  0x73   : > { %1353 = vrot.lane.b32.xlu0 %v1019_v18, %s10131_s15  ;;  %v1067_v18 = vrot.slane %v1065_v42, 1  ;;  %v10542_v46 = vcombine.low %v253_v60, %v254_v9  ;;  %17334 = vst [vmem:[#allocation22_spill] sm:$0xff] %v10552_v54  ;;  %v1074_v60 = vrot.slane %v1072_v59, 1  ;;  %v1107_v24 = vshll.u32 %v10552_v54, 16 }
  0x75   : > { %17333 = vst [vmem:[#allocation21_spill] sm:$0xff] %v10542_v46  ;;  %v1068_v42 = vor.u32 %v1067_v18, %v1063_v22  ;;  %v1086_v9 = vshll.u32 %v10542_v46, 16  ;;  %v262_v22 = vld [vmem:[%s10164_s14 + $0x1d4] sm:$0x1]  ;;  %v10562_v18 = vcombine.low %v263_v47, %v264_v32  ;;  %v1084_v59 = vshrl.u32 %v10542_v46, 16 }
  0x76   : > { %1359 = vrot.lane.b32.xlu1 %v1040_v19, %s10131_s15  ;;  %v258_v19 = vld [vmem:[%s10164_s14 + $0x1c4] sm:$0x1] }
  0x77   : > { %1357 = vrot.lane.b32.xlu0 %v1033_v6, %s10131_s15  ;;  %v1093_v6 = vshll.u32 %v10538_v34, 16  ;;  %v10558_v40 = vcombine.low %v257_v15, %v258_v19  ;;  %17336 = vst [vmem:[#allocation24_spill] sm:$0xff] %v10562_v18  ;;  %v1075_v15 = vor.u32 %v1074_v60, %v1070_v11  ;;  %v10570_v19 = vcombine.low %v261_v16, %v262_v22  ;;  %v266_v47 = vld [vmem:[%s10164_s14 + $0x1e4] sm:$0x1] }
  0x78   : > { %v1121_v32 = vshll.u32 %v10562_v18, 16 }
  0x79   : > { %17335 = vst [vmem:[#allocation23_spill] sm:$0xff] %v10558_v40  ;;  %v1095_v0 = vrot.slane %v1093_v6, 1  ;;  %v1100_v26 = vshll.u32 %v10558_v40, 16  ;;  %17337 = vst [vmem:[#allocation25_spill] sm:$0xff] %v10570_v19  ;;  %v1105_v6 = vshrl.u32 %v10552_v54, 16  ;;  %v1098_v60 = vshrl.u32 %v10558_v40, 16 }
  0x7a   : > { %1363 = vrot.lane.b32.xlu1 %v1054_v58, %s10131_s15  ;;  %v1082_v58 = vor.u32 %v1081_v27, %v1077_v35  ;;  %v267_v35 = vld [vmem:[%s10164_s14 + $0x1e8] sm:$0xf]  ;;  %v268_v27 = vld [vmem:[%s10164_s14 + $0x1ec] sm:$0x1]  ;;  %v1114_v46 = vshll.u32 %v10570_v19, 16 }
  0x7b   : > { %1361 = vrot.lane.b32.xlu0 %v1047_v38, %s10131_s15  ;;  %v1088_v38 = vrot.slane %v1086_v9, 1  ;;  %v1096_v11 = vor.u32 %v1095_v0, %v1091_v13  ;;  %v10580_v9 = vcombine.low %v267_v35, %v268_v27  ;;  %v1102_v22 = vrot.slane %v1100_v26, 1  ;;  %v271_v54 = vld [vmem:[%s10164_s14 + $0x1f8] sm:$0xf]  ;;  %v275_v26 = vld [vmem:[%s10164_s14 + $0x208] sm:$0xf] }
  0x7c   : > { %v1119_v13 = vshrl.u32 %v10562_v18, 16  ;;  %v1123_v0 = vrot.slane %v1121_v32, 1  ;;  %v276_v35 = vld [vmem:[%s10164_s14 + $0x20c] sm:$0x1]  ;;  %v273_v32 = vld [vmem:[%s10164_s14 + $0x200] sm:$0xf] }
  0x7d   : > { %17338 = vst [vmem:[#allocation26_spill] sm:$0xff] %v10580_v9  ;;  %v1089_v16 = vor.u32 %v1088_v38, %v1084_v59  ;;  %v1112_v59 = vshrl.u32 %v10570_v19, 16  ;;  %v10594_v38 = vcombine.low %v271_v54, %v272_v53  ;;  %v1103_v27 = vor.u32 %v1102_v22, %v1098_v60  ;;  %v284_v19 = vld [vmem:[%s10164_s14 + $0x22c] sm:$0x1] }
  0x7e   : > { %1367 = vrot.lane.b32.xlu1 %v1068_v42, %s10131_s15  ;;  %v265_v42 = vld [vmem:[%s10164_s14 + $0x1e0] sm:$0xf]  ;;  %v1133_v53 = vshrl.u32 %v10580_v9, 16 }
  0x7f   : > { %1365 = vrot.lane.b32.xlu0 %v1061_v56, %s10131_s15  ;;  %v1109_v56 = vrot.slane %v1107_v24, 1  ;;  %v10584_v34 = vcombine.low %v265_v42, %v266_v47  ;;  %17340 = vst [vmem:[#allocation28_spill] sm:$0xff] %v10594_v38  ;;  %v1116_v42 = vrot.slane %v1114_v46, 1  ;;  %v1149_v60 = vshll.u32 %v10594_v38, 16 }
  0x81   : > { %17339 = vst [vmem:[#allocation27_spill] sm:$0xff] %v10584_v34  ;;  %v1110_v24 = vor.u32 %v1109_v56, %v1105_v6  ;;  %v1128_v47 = vshll.u32 %v10584_v34, 16  ;;  %v274_v6 = vld [vmem:[%s10164_s14 + $0x204] sm:$0x1]  ;;  %v10604_v56 = vcombine.low %v275_v26, %v276_v35  ;;  %v1126_v46 = vshrl.u32 %v10584_v34, 16 }
  0x82   : > { %1371 = vrot.lane.b32.xlu1 %v1082_v58, %s10131_s15  ;;  %v270_v58 = vld [vmem:[%s10164_s14 + $0x1f4] sm:$0x1]  ;;  %v1147_v34 = vshrl.u32 %v10594_v38, 16 }
  0x83   : > { %1369 = vrot.lane.b32.xlu0 %v1075_v15, %s10131_s15  ;;  %v1135_v15 = vshll.u32 %v10580_v9, 16  ;;  %v10600_v18 = vcombine.low %v269_v57, %v270_v58  ;;  %17342 = vst [vmem:[#allocation30_spill] sm:$0xff] %v10604_v56  ;;  %v1117_v57 = vor.u32 %v1116_v42, %v1112_v59  ;;  %v10612_v58 = vcombine.low %v273_v32, %v274_v6  ;;  %v283_v9 = vld [vmem:[%s10164_s14 + $0x228] sm:$0xf] }
  0x84   : > { %v1163_v59 = vshll.u32 %v10604_v56, 16  ;;  %v1151_v42 = vrot.slane %v1149_v60, 1  ;;  %v1161_v60 = vshrl.u32 %v10604_v56, 16 }
  0x85   : > { %17341 = vst [vmem:[#allocation29_spill] sm:$0xff] %v10600_v18  ;;  %v1137_v54 = vrot.slane %v1135_v15, 1  ;;  %v1142_v22 = vshll.u32 %v10600_v18, 16  ;;  %17343 = vst [vmem:[#allocation31_spill] sm:$0xff] %v10612_v58  ;;  %v278_v15 = vld [vmem:[%s10164_s14 + $0x214] sm:$0x1] }
  0x86   : > { %1375 = vrot.lane.b32.xlu1 %v1096_v11, %s10131_s15  ;;  %v1124_v11 = vor.u32 %v1123_v0, %v1119_v13  ;;  %v279_v13 = vld [vmem:[%s10164_s14 + $0x218] sm:$0xf]  ;;  %v280_v0 = vld [vmem:[%s10164_s14 + $0x21c] sm:$0x1] }
  0x87   : > { %1373 = vrot.lane.b32.xlu0 %v1089_v16, %s10131_s15  ;;  %v1130_v16 = vrot.slane %v1128_v47, 1  ;;  %v1140_v47 = vshrl.u32 %v10600_v18, 16  ;;  %v10626_v32 = vcombine.low %v279_v13, %v280_v0  ;;  %v10644_v13 = vcombine.low %v283_v9, %v284_v19  ;;  %v287_v0 = vld [vmem:[%s10164_s14 + $0x238] sm:$0xf] }
  0x89   : > { %17346 = vst [vmem:[#allocation34_spill] sm:$0xff] %v10626_v32  ;;  %v1131_v6 = vor.u32 %v1130_v16, %v1126_v46  ;;  %v1165_v46 = vrot.slane %v1163_v59, 1  ;;  %v1154_v16 = vshrl.u32 %v10612_v58, 16  ;;  %17350 = vst [vmem:[#allocation38_spill] sm:$0xff] %v10644_v13 }
  0x8a   : > { %1379 = vrot.lane.b32.xlu1 %v1110_v24, %s10131_s15  ;;  %v277_v24 = vld [vmem:[%s10164_s14 + $0x210] sm:$0xf] }
  0x8b   : > { %1377 = vrot.lane.b32.xlu0 %v1103_v27, %s10131_s15  ;;  %v1138_v27 = vor.u32 %v1137_v54, %v1133_v53  ;;  %v10630_v38 = vcombine.low %v277_v24, %v278_v15  ;;  %v282_v53 = vld [vmem:[%s10164_s14 + $0x224] sm:$0x1]  ;;  %v288_v24 = vld [vmem:[%s10164_s14 + $0x23c] sm:$0x1]  ;;  %v1166_v19 = vor.u32 %v1165_v46, %v1161_v60  ;;  %v291_v60 = vld [vmem:[%s10164_s14 + $0x248] sm:$0xf] }
  0x8c   : > { %v10616_v26 = vpop.permute.xlu1 %1269  ;;  %v10658_v9 = vcombine.low %v287_v0, %v288_v24  ;;  %v292_v46 = vld [vmem:[%s10164_s14 + $0x24c] sm:$0x1] }
  0x8d   : > { %17344 = vst [vmem:[#allocation32_spill] sm:$0xff] %v10616_v26  ;;  %v10620_v35 = vpop.permute.xlu0 %1265  ;;  %v1144_v26 = vrot.slane %v1142_v22, 1  ;;  %17347 = vst [vmem:[#allocation35_spill] sm:$0xff] %v10630_v38  ;;  %v1177_v22 = vshll.u32 %v10626_v32, 16 }
  0x8e   : > { %17345 = vst [vmem:[#allocation33_spill] sm:$0xff] %v10620_v35  ;;  %1383 = vrot.lane.b32.xlu1 %v1124_v11, %s10131_s15  ;;  %v1156_v35 = vshll.u32 %v10612_v58, 16  ;;  %v281_v11 = vld [vmem:[%s10164_s14 + $0x220] sm:$0xf]  ;;  %17353 = vst [vmem:[#allocation41_spill] sm:$0xff] %v10658_v9 }
  0x8f   : > { %1381 = vrot.lane.b32.xlu0 %v1117_v57, %s10131_s15  ;;  %v1152_v57 = vor.u32 %v1151_v42, %v1147_v34  ;;  %v1145_v15 = vor.u32 %v1144_v26, %v1140_v47  ;;  %v10650_v56 = vcombine.low %v281_v11, %v282_v53  ;;  %v285_v34 = vld [vmem:[%s10164_s14 + $0x230] sm:$0xf]  ;;  %v1175_v26 = vshrl.u32 %v10626_v32, 16  ;;  %v296_v58 = vld [vmem:[%s10164_s14 + $0x25c] sm:$0x1] }
  0x90   : > { %v10634_v40 = vpop.permute.xlu1 %1271  ;;  %v1168_v47 = vshrl.u32 %v10630_v38, 16 }
  0x91   : > { %17348 = vst [vmem:[#allocation36_spill] sm:$0xff] %v10634_v40  ;;  %v10638_v54 = vpop.permute.xlu0 %1267  ;;  %v1158_v40 = vrot.slane %v1156_v35, 1  ;;  %v1179_v35 = vrot.slane %v1177_v22, 1  ;;  %v290_v22 = vld [vmem:[%s10164_s14 + $0x244] sm:$0x1] }
  0x92   : > { %17349 = vst [vmem:[#allocation37_spill] sm:$0xff] %v10638_v54  ;;  %1387 = vrot.lane.b32.xlu1 %v1138_v27, %s10131_s15  ;;  %v1170_v54 = vshll.u32 %v10630_v38, 16  ;;  %v286_v27 = vld [vmem:[%s10164_s14 + $0x234] sm:$0x1]  ;;  %v1189_v38 = vshrl.u32 %v10644_v13, 16 }
  0x93   : > { %1385 = vrot.lane.b32.xlu0 %v1131_v6, %s10131_s15  ;;  %v1191_v6 = vshll.u32 %v10644_v13, 16  ;;  %v1159_v11 = vor.u32 %v1158_v40, %v1154_v16  ;;  %v1205_v40 = vshll.u32 %v10658_v9, 16  ;;  %v295_v13 = vld [vmem:[%s10164_s14 + $0x258] sm:$0xf] }
  0x94   : > { %v10652_v59 = vpop.permute.xlu1 %1275  ;;  %v1172_v53 = vrot.slane %v1170_v54, 1  ;;  %v1180_v54 = vor.u32 %v1179_v35, %v1175_v26  ;;  %v294_v26 = vld [vmem:[%s10164_s14 + $0x254] sm:$0x1] }
  0x95   : > { %17351 = vst [vmem:[#allocation39_spill] sm:$0xff] %v10652_v59  ;;  %v10656_v42 = vpop.permute.xlu0 %1273  ;;  %v1184_v59 = vshll.u32 %v10650_v56, 16  ;;  %v1193_v16 = vrot.slane %v1191_v6, 1  ;;  %v1203_v6 = vshrl.u32 %v10658_v9, 16  ;;  %v300_v9 = vld [vmem:[%s10164_s14 + $0x26c] sm:$0x1] }
  0x96   : > { %17352 = vst [vmem:[#allocation40_spill] sm:$0xff] %v10656_v42  ;;  %1391 = vrot.lane.b32.xlu1 %v1152_v57, %s10131_s15  ;;  %v10666_v42 = vcombine.low %v285_v34, %v286_v27  ;;  %v289_v57 = vld [vmem:[%s10164_s14 + $0x240] sm:$0xf]  ;;  %v10680_v34 = vcombine.low %v291_v60, %v292_v46  ;;  %v1173_v27 = vor.u32 %v1172_v53, %v1168_v47  ;;  %v1207_v47 = vrot.slane %v1205_v40, 1 }
  0x97   : > { %1389 = vrot.lane.b32.xlu0 %v1145_v15, %s10131_s15  ;;  %v1182_v15 = vshrl.u32 %v10650_v56, 16  ;;  %v10684_v32 = vcombine.low %v289_v57, %v290_v22  ;;  %v10698_v60 = vcombine.low %v295_v13, %v296_v58 }
  0x98   : > { %17354 = vst [vmem:[#allocation42_spill] sm:$0xff] %v10666_v42  ;;  %v10670_v0 = vpop.permute.xlu1 %1279  ;;  %17357 = vst [vmem:[#allocation45_spill] sm:$0xff] %v10680_v34  ;;  %v1219_v53 = vshll.u32 %v10680_v34, 16  ;;  %v1208_v58 = vor.u32 %v1207_v47, %v1203_v6  ;;  %v1217_v13 = vshrl.u32 %v10680_v34, 16  ;;  %v303_v6 = vld [vmem:[%s10164_s14 + $0x278] sm:$0xf] }
  0x99   : > { %17355 = vst [vmem:[#allocation43_spill] sm:$0xff] %v10670_v0  ;;  %v10674_v24 = vpop.permute.xlu0 %1277  ;;  %v1186_v0 = vrot.slane %v1184_v59, 1  ;;  %17358 = vst [vmem:[#allocation46_spill] sm:$0xff] %v10684_v32  ;;  %v1194_v59 = vor.u32 %v1193_v16, %v1189_v38  ;;  %v1212_v22 = vshll.u32 %v10684_v32, 16  ;;  %v297_v38 = vld [vmem:[%s10164_s14 + $0x260] sm:$0xf] }
  0x9a   : > { %17356 = vst [vmem:[#allocation44_spill] sm:$0xff] %v10674_v24  ;;  %1395 = vrot.lane.b32.xlu1 %v1166_v19, %s10131_s15  ;;  %v1198_v24 = vshll.u32 %v10666_v42, 16  ;;  %v293_v19 = vld [vmem:[%s10164_s14 + $0x250] sm:$0xf]  ;;  %17361 = vst [vmem:[#allocation49_spill] sm:$0xff] %v10698_v60 }
  0x9b   : > { %1393 = vrot.lane.b32.xlu0 %v1159_v11, %s10131_s15  ;;  %v1196_v11 = vshrl.u32 %v10666_v42, 16  ;;  %v1187_v46 = vor.u32 %v1186_v0, %v1182_v15  ;;  %v1221_v0 = vrot.slane %v1219_v53, 1  ;;  %v1233_v15 = vshll.u32 %v10698_v60, 16  ;;  %v304_v47 = vld [vmem:[%s10164_s14 + $0x27c] sm:$0x1] }
  0x9c   : > { %v10688_v18 = vpop.permute.xlu1 %1283  ;;  %v1200_v57 = vrot.slane %v1198_v24, 1  ;;  %v1210_v24 = vshrl.u32 %v10684_v32, 16  ;;  %v302_v53 = vld [vmem:[%s10164_s14 + $0x274] sm:$0x1]  ;;  %v1231_v32 = vshrl.u32 %v10698_v60, 16 }
  0x9d   : > { %17359 = vst [vmem:[#allocation47_spill] sm:$0xff] %v10688_v18  ;;  %v10692_v35 = vpop.permute.xlu0 %1281  ;;  %v10702_v18 = vcombine.low %v293_v19, %v294_v26  ;;  %v1214_v26 = vrot.slane %v1212_v22, 1 }
  0x9e   : > { %17360 = vst [vmem:[#allocation48_spill] sm:$0xff] %v10692_v35  ;;  %1399 = vrot.lane.b32.xlu1 %v1180_v54, %s10131_s15  ;;  %v299_v35 = vld [vmem:[%s10164_s14 + $0x268] sm:$0xf]  ;;  %v298_v54 = vld [vmem:[%s10164_s14 + $0x264] sm:$0x1]  ;;  %v1201_v19 = vor.u32 %v1200_v57, %v1196_v11  ;;  %v1235_v11 = vrot.slane %v1233_v15, 1  ;;  %v10734_v57 = vcombine.low %v303_v6, %v304_v47 }
  0x9f   : > { %1397 = vrot.lane.b32.xlu0 %v1173_v27, %s10131_s15  ;;  %v10716_v27 = vcombine.low %v299_v35, %v300_v9  ;;  %v1224_v9 = vshrl.u32 %v10702_v18, 16  ;;  %v1222_v35 = vor.u32 %v1221_v0, %v1217_v13  ;;  %v1215_v22 = vor.u32 %v1214_v26, %v1210_v24 }
  0xa0   : > { %v10706_v40 = vpop.permute.xlu1 %1287  ;;  %v1261_v15 = vshll.u32 %v10734_v57, 16 }
  0xa1   : > { %17362 = vst [vmem:[#allocation50_spill] sm:$0xff] %v10706_v40  ;;  %v10710_v16 = vpop.permute.xlu0 %1285  ;;  %v10720_v40 = vcombine.low %v297_v38, %v298_v54  ;;  %v1245_v13 = vshrl.u32 %v10716_v27, 16 }
  0xa2   : > { %17363 = vst [vmem:[#allocation51_spill] sm:$0xff] %v10710_v16  ;;  %1403 = vrot.lane.b32.xlu1 %v1194_v59, %s10131_s15  ;;  %v1226_v16 = vshll.u32 %v10702_v18, 16  ;;  %v301_v59 = vld [vmem:[%s10164_s14 + $0x270] sm:$0xf] }
  0xa3   : > { %1401 = vrot.lane.b32.xlu0 %v1187_v46, %s10131_s15  ;;  %v1247_v46 = vshll.u32 %v10716_v27, 16  ;;  %v1240_v54 = vshll.u32 %v10720_v40, 16 }
  0xa4   : > { %v10724_v34 = vpop.permute.xlu1 %1291  ;;  %v1228_v38 = vrot.slane %v1226_v16, 1  ;;  %v1238_v16 = vshrl.u32 %v10720_v40, 16 }
  0xa5   : > { %17364 = vst [vmem:[#allocation52_spill] sm:$0xff] %v10724_v34  ;;  %v10728_v42 = vpop.permute.xlu0 %1289  ;;  %v10738_v34 = vcombine.low %v301_v59, %v302_v53  ;;  %v1249_v0 = vrot.slane %v1247_v46, 1  ;;  %v1259_v59 = vshrl.u32 %v10734_v57, 16  ;;  %v1263_v53 = vrot.slane %v1261_v15, 1 }
  0xa6   : > { %17365 = vst [vmem:[#allocation53_spill] sm:$0xff] %v10728_v42  ;;  %1407 = vrot.lane.b32.xlu1 %v1208_v58, %s10131_s15  ;;  %v1236_v58 = vor.u32 %v1235_v11, %v1231_v32  ;;  %v1229_v24 = vor.u32 %v1228_v38, %v1224_v9  ;;  %v1425_v15 = vrot.slane %v10174_v7, 1  ;;  %v1430_v7 = vrot.slane %v10194_v25, 1 }
  0xa7   : > { %1405 = vrot.lane.b32.xlu0 %v1201_v19, %s10131_s15  ;;  %v1242_v19 = vrot.slane %v1240_v54, 1  ;;  %v1254_v26 = vshll.u32 %v10738_v34, 16  ;;  %v1250_v32 = vor.u32 %v1249_v0, %v1245_v13  ;;  %v1252_v9 = vshrl.u32 %v10738_v34, 16 }
  0xa8   : > { %v10740_v42 = vpop.permute.xlu1 %1295  ;;  %v1264_v38 = vor.u32 %v1263_v53, %v1259_v59  ;;  %v1426_v0 = vrot.slane %v10183_v14, 1  ;;  %v1429_v59 = vrot.slane %v10197_v29, 1  ;;  %v1434_v25 = vrot.slane %v10216_v50, 1 }
  0xa9   : > { %v10742_v60 = vpop.permute.xlu0 %1293  ;;  %v1256_v11 = vrot.slane %v1254_v26, 1  ;;  %v1427_v26 = vrot.slane %v10169_v3, 1  ;;  %v1432_v3 = vrot.slane %v10209_v44, 1  ;;  %v1433_v29 = vrot.slane %v10218_v51, 1 }
  0xaa   : > { %1411 = vrot.lane.b32.xlu1 %v1222_v35, %s10131_s15  ;;  %v1243_v35 = vor.u32 %v1242_v19, %v1238_v16  ;;  %v1428_v19 = vrot.slane %v10176_v8, 1  ;;  %v1431_v8 = vrot.slane %v10211_v45, 1  ;;  %v1436_v44 = vrot.slane %v10230_v63, 1 }
  0xab   : > { %1409 = vrot.lane.b32.xlu0 %v1215_v22, %s10131_s15  ;;  %v1257_v54 = vor.u32 %v1256_v11, %v1252_v9  ;;  %v1435_v45 = vrot.slane %v10234_v4, 1  ;;  %v1438_v50 = vrot.slane %v10244_v17, 1  ;;  %v1437_v51 = vrot.slane %v10248_v21, 1 }
  0xac   : > { %v10750_v6 = vpop.permute.xlu1 %1299  ;;  %v1440_v63 = vrot.slane %v10258_v33, 1  ;;  %v1439_v4 = vrot.slane %v10264_v39, 1  ;;  %v1442_v17 = vrot.slane %v10268_v43, 1  ;;  %v1441_v21 = vrot.slane %v10276_v55, 1 }
  0xad   : > { %v10752_v47 = vpop.permute.xlu0 %1297  ;;  %v1444_v33 = vrot.slane %v10286_v2, 1  ;;  %v1443_v39 = vrot.slane %v10290_v10, 1  ;;  %v1446_v43 = vrot.slane %v10300_v23, 1  ;;  %v1445_v55 = vrot.slane %v10306_v31, 1 }
  0xae   : > { %1415 = vrot.lane.b32.xlu1 %v1236_v58, %s10131_s15  ;;  %v1448_v2 = vrot.slane %v10310_v36, 1  ;;  %v1447_v10 = vrot.slane %v10318_v48, 1  ;;  %v1450_v23 = vrot.slane %v10328_v61, 1  ;;  %v1449_v31 = vrot.slane %v10332_v5, 1 }
  0xaf   : > { %1413 = vrot.lane.b32.xlu0 %v1229_v24, %s10131_s15  ;;  %v1452_v36 = vrot.slane %v10342_v20, 1  ;;  %v1451_v48 = vrot.slane %v10348_v30, 1  ;;  %v1454_v61 = vrot.slane %v10352_v37, 1  ;;  %v1453_v5 = vrot.slane %v10360_v52, 1 }
  0xb0   : > { %v10758_v46 = vpop.permute.xlu1 %1303  ;;  %v1456_v20 = vrot.slane %v10370_v1, 1  ;;  %v1455_v30 = vrot.slane %v10374_v12, 1  ;;  %v1458_v37 = vrot.slane %v10384_v28, 1  ;;  %v1457_v52 = vrot.slane %v10390_v41, 1  ;;  %v17375_v28 = vld [vmem:[#allocation2_spill] sm:$0xff] }
  0xb1   : > { %17366 = vst [vmem:[#allocation54_spill] sm:$0xff] %v10758_v46  ;;  %v10760_v22 = vpop.permute.xlu0 %1301  ;;  %v1460_v1 = vrot.slane %v10394_v49, 1  ;;  %v1459_v12 = vrot.slane %v10402_v62, 1  ;;  %v1462_v41 = vrot.slane %v17375_v28, 1  ;;  %v17378_v49 = vld [vmem:[#allocation4_spill] sm:$0xff]  ;;  %v17383_v28 = vld [vmem:[#allocation7_spill] sm:$0xff] }
  0xb2   : > { %1419 = vrot.lane.b32.xlu1 %v1250_v32, %s10131_s15  ;;  %v1464_v62 = vrot.slane %v17378_v49, 1 }
  0xb3   : > { %1417 = vrot.lane.b32.xlu0 %v1243_v35, %s10131_s15 }
  0xb4   : > { %v10764_v58 = vpop.permute.xlu1 %1307 }
  0xb5   : > { %v10766_v13 = vpop.permute.xlu0 %1305 }
  0xb6   : > { %17367 = vst [vmem:[#allocation55_spill] sm:$0xff] %v10766_v13  ;;  %1423 = vrot.lane.b32.xlu1 %v1264_v38, %s10131_s15 }
  0xb7   : > { %1421 = vrot.lane.b32.xlu0 %v1257_v54, %s10131_s15 }
  0xb8   : > { %v10772_v24 = vpop.permute.xlu1 %1311 }
  0xb9   : > { %v10774_v16 = vpop.permute.xlu0 %1309 }
  0xba   : > { %1507 = vrot.lane.b32.xlu1 %v1426_v0, %s10132_s16 }
  0xbb   : > { %1505 = vrot.lane.b32.xlu0 %v1425_v15, %s10132_s16 }
  0xbc   : > { %v10780_v32 = vpop.permute.xlu1 %1315 }
  0xbd   : > { %v10782_v14 = vpop.permute.xlu0 %1313 }
  0xbe   : > { %1511 = vrot.lane.b32.xlu1 %v1428_v19, %s10132_s16 }
  0xbf   : > { %1509 = vrot.lane.b32.xlu0 %v1427_v26, %s10132_s16 }
  0xc0   : > { %v10788_v53 = vpop.permute.xlu1 %1319 }
  0xc1   : > { %v10790_v35 = vpop.permute.xlu0 %1317 }
  0xc2   : > { %1515 = vrot.lane.b32.xlu1 %v1430_v7, %s10132_s16 }
  0xc3   : > { %1513 = vrot.lane.b32.xlu0 %v1429_v59, %s10132_s16 }
  0xc4   : > { %v10796_v9 = vpop.permute.xlu1 %1323 }
  0xc5   : > { %17368 = vst [vmem:[#allocation56_spill] sm:$0xff] %v10796_v9  ;;  %v10798_v11 = vpop.permute.xlu0 %1321 }
  0xc6   : > { %1519 = vrot.lane.b32.xlu1 %v1432_v3, %s10132_s16 }
  0xc7   : > { %1517 = vrot.lane.b32.xlu0 %v1431_v8, %s10132_s16 }
  0xc8   : > { %v10804_v38 = vpop.permute.xlu1 %1327 }
  0xc9   : > { %v10806_v54 = vpop.permute.xlu0 %1325 }
  0xca   : > { %17369 = vst [vmem:[#allocation57_spill] sm:$0xff] %v10806_v54  ;;  %1523 = vrot.lane.b32.xlu1 %v1434_v25, %s10132_s16 }
  0xcb   : > { %1521 = vrot.lane.b32.xlu0 %v1433_v29, %s10132_s16 }
  0xcc   : > { %v10812_v0 = vpop.permute.xlu1 %1331 }
  0xcd   : > { %v10814_v15 = vpop.permute.xlu0 %1329 }
  0xce   : > { %1527 = vrot.lane.b32.xlu1 %v1436_v44, %s10132_s16 }
  0xcf   : > { %1525 = vrot.lane.b32.xlu0 %v1435_v45, %s10132_s16 }
  0xd0   : > { %v10820_v19 = vpop.permute.xlu1 %1335 }
  0xd1   : > { %v10822_v26 = vpop.permute.xlu0 %1333 }
  0xd2   : > { %1531 = vrot.lane.b32.xlu1 %v1438_v50, %s10132_s16 }
  0xd3   : > { %1529 = vrot.lane.b32.xlu0 %v1437_v51, %s10132_s16 }
  0xd4   : > { %v10828_v7 = vpop.permute.xlu1 %1339 }
  0xd5   : > { %v10830_v59 = vpop.permute.xlu0 %1337 }
  0xd6   : > { %1535 = vrot.lane.b32.xlu1 %v1440_v63, %s10132_s16 }
  0xd7   : > { %1533 = vrot.lane.b32.xlu0 %v1439_v4, %s10132_s16 }
  0xd8   : > { %v10836_v3 = vpop.permute.xlu1 %1343 }
  0xd9   : > { %17370 = vst [vmem:[#allocation58_spill] sm:$0xff] %v10836_v3  ;;  %v10838_v8 = vpop.permute.xlu0 %1341 }
  0xda   : > { %1539 = vrot.lane.b32.xlu1 %v1442_v17, %s10132_s16 }
  0xdb   : > { %1537 = vrot.lane.b32.xlu0 %v1441_v21, %s10132_s16 }
  0xdc   : > { %v10844_v25 = vpop.permute.xlu1 %1347 }
  0xdd   : > { %v10846_v29 = vpop.permute.xlu0 %1345 }
  0xde   : > { %17371 = vst [vmem:[#allocation59_spill] sm:$0xff] %v10846_v29  ;;  %1543 = vrot.lane.b32.xlu1 %v1444_v33, %s10132_s16 }
  0xdf   : > { %1541 = vrot.lane.b32.xlu0 %v1443_v39, %s10132_s16 }
  0xe0   : > { %v10852_v44 = vpop.permute.xlu1 %1351 }
  0xe1   : > { %v10854_v45 = vpop.permute.xlu0 %1349 }
  0xe2   : > { %1547 = vrot.lane.b32.xlu1 %v1446_v43, %s10132_s16 }
  0xe3   : > { %1545 = vrot.lane.b32.xlu0 %v1445_v55, %s10132_s16 }
  0xe4   : > { %v10860_v50 = vpop.permute.xlu1 %1355 }
  0xe5   : > { %v10862_v51 = vpop.permute.xlu0 %1353 }
  0xe6   : > { %1551 = vrot.lane.b32.xlu1 %v1448_v2, %s10132_s16 }
  0xe7   : > { %1549 = vrot.lane.b32.xlu0 %v1447_v10, %s10132_s16 }
  0xe8   : > { %v10868_v63 = vpop.permute.xlu1 %1359 }
  0xe9   : > { %v10870_v4 = vpop.permute.xlu0 %1357 }
  0xea   : > { %1555 = vrot.lane.b32.xlu1 %v1450_v23, %s10132_s16 }
  0xeb   : > { %1553 = vrot.lane.b32.xlu0 %v1449_v31, %s10132_s16 }
  0xec   : > { %v10876_v17 = vpop.permute.xlu1 %1363 }
  0xed   : > { %17372 = vst [vmem:[#allocation60_spill] sm:$0xff] %v10876_v17  ;;  %v10878_v21 = vpop.permute.xlu0 %1361 }
  0xee   : > { %1559 = vrot.lane.b32.xlu1 %v1452_v36, %s10132_s16  ;;  %v17376_v36 = vld [vmem:[#allocation3_spill] sm:$0xff] }
  0xef   : > { %1557 = vrot.lane.b32.xlu0 %v1451_v48, %s10132_s16  ;;  %v1461_v48 = vrot.slane %v17376_v36, 1  ;;  %v1465_v36 = vrot.slane %v17383_v28, 1  ;;  %v17391_v28 = vld [vmem:[#allocation11_spill] sm:$0xff] }
  0xf0   : > { %v10884_v33 = vpop.permute.xlu1 %1367  ;;  %v1469_v54 = vrot.slane %v17391_v28, 1  ;;  %v17399_v28 = vld [vmem:[#allocation15_spill] sm:$0xff] }
  0xf1   : > { %v10886_v39 = vpop.permute.xlu0 %1365  ;;  %v1473_v3 = vrot.slane %v17399_v28, 1  ;;  %v17407_v28 = vld [vmem:[#allocation19_spill] sm:$0xff] }
  0xf2   : > { %17373 = vst [vmem:[#allocation61_spill] sm:$0xff] %v10886_v39  ;;  %1563 = vrot.lane.b32.xlu1 %v1454_v61, %s10132_s16 }
  0xf3   : > { %1561 = vrot.lane.b32.xlu0 %v1453_v5, %s10132_s16 }
  0xf4   : > { %v10892_v43 = vpop.permute.xlu1 %1371 }
  0xf5   : > { %v10894_v55 = vpop.permute.xlu0 %1369 }
  0xf6   : > { %1567 = vrot.lane.b32.xlu1 %v1456_v20, %s10132_s16  ;;  %v17379_v20 = vld [vmem:[#allocation5_spill] sm:$0xff] }
  0xf7   : > { %1565 = vrot.lane.b32.xlu0 %v1455_v30, %s10132_s16  ;;  %v1463_v30 = vrot.slane %v17379_v20, 1  ;;  %v17387_v20 = vld [vmem:[#allocation9_spill] sm:$0xff] }
  0xf8   : > { %v10900_v2 = vpop.permute.xlu1 %1375 }
  0xf9   : > { %v10902_v10 = vpop.permute.xlu0 %1373 }
  0xfa   : > { %1571 = vrot.lane.b32.xlu1 %v1458_v37, %s10132_s16 }
  0xfb   : > { %1569 = vrot.lane.b32.xlu0 %v1457_v52, %s10132_s16 }
  0xfc   : > { %v10908_v23 = vpop.permute.xlu1 %1379 }
  0xfd   : > { %17374 = vst [vmem:[#allocation62_spill] sm:$0xff] %v10908_v23  ;;  %v10910_v31 = vpop.permute.xlu0 %1377 }
  0xfe   : > { %1575 = vrot.lane.b32.xlu1 %v1460_v1, %s10132_s16  ;;  %v17382_v1 = vld [vmem:[#allocation6_spill] sm:$0xff] }
  0xff   : > { %1573 = vrot.lane.b32.xlu0 %v1459_v12, %s10132_s16  ;;  %v1466_v12 = vrot.slane %v17382_v1, 1 }
 0x100   : > { %v10916_v61 = vpop.permute.xlu1 %1383 }
 0x101   : > { %17377 = vst [vmem:[#allocation2_spill] sm:$0xff] %v10916_v61  ;;  %v10918_v5 = vpop.permute.xlu0 %1381 }
 0x102   : > { %1579 = vrot.lane.b32.xlu1 %v1462_v41, %s10132_s16 }
 0x103   : > { %1577 = vrot.lane.b32.xlu0 %v1461_v48, %s10132_s16  ;;  %v17386_v48 = vld [vmem:[#allocation8_spill] sm:$0xff] }
 0x104   : > { %v10924_v37 = vpop.permute.xlu1 %1387  ;;  %v1468_v49 = vrot.slane %v17386_v48, 1 }
 0x105   : > { %17380 = vst [vmem:[#allocation3_spill] sm:$0xff] %v10924_v37  ;;  %v10926_v52 = vpop.permute.xlu0 %1385 }
 0x106   : > { %17381 = vst [vmem:[#allocation4_spill] sm:$0xff] %v10926_v52  ;;  %1583 = vrot.lane.b32.xlu1 %v1464_v62, %s10132_s16  ;;  %v1467_v52 = vrot.slane %v17387_v20, 1  ;;  %v17395_v20 = vld [vmem:[#allocation13_spill] sm:$0xff] }
 0x107   : > { %1581 = vrot.lane.b32.xlu0 %v1463_v30, %s10132_s16  ;;  %v17390_v30 = vld [vmem:[#allocation10_spill] sm:$0xff]  ;;  %v1471_v61 = vrot.slane %v17395_v20, 1  ;;  %v17403_v20 = vld [vmem:[#allocation17_spill] sm:$0xff] }
 0x108   : > { %v10932_v29 = vpop.permute.xlu1 %1391  ;;  %v1470_v1 = vrot.slane %v17390_v30, 1 }
 0x109   : > { %17384 = vst [vmem:[#allocation5_spill] sm:$0xff] %v10932_v29  ;;  %v10934_v41 = vpop.permute.xlu0 %1389 }
 0x10a   : > { %17385 = vst [vmem:[#allocation6_spill] sm:$0xff] %v10934_v41  ;;  %1587 = vrot.lane.b32.xlu1 %v1466_v12, %s10132_s16 }
 0x10b   : > { %1585 = vrot.lane.b32.xlu0 %v1465_v36, %s10132_s16  ;;  %v17394_v36 = vld [vmem:[#allocation12_spill] sm:$0xff] }
 0x10c   : > { %v10940_v39 = vpop.permute.xlu1 %1395  ;;  %v1472_v48 = vrot.slane %v17394_v36, 1 }
 0x10d   : > { %17388 = vst [vmem:[#allocation7_spill] sm:$0xff] %v10940_v39  ;;  %v10942_v62 = vpop.permute.xlu0 %1393 }
 0x10e   : > { %17389 = vst [vmem:[#allocation8_spill] sm:$0xff] %v10942_v62  ;;  %1591 = vrot.lane.b32.xlu1 %v1468_v49, %s10132_s16 }
 0x10f   : > { %1589 = vrot.lane.b32.xlu0 %v1467_v52, %s10132_s16  ;;  %v17398_v52 = vld [vmem:[#allocation14_spill] sm:$0xff] }
 0x110   : > { %v10948_v13 = vpop.permute.xlu1 %1399  ;;  %v1474_v30 = vrot.slane %v17398_v52, 1 }
 0x111   : > { %17392 = vst [vmem:[#allocation9_spill] sm:$0xff] %v10948_v13  ;;  %v10950_v12 = vpop.permute.xlu0 %1397 }
 0x112   : > { %17393 = vst [vmem:[#allocation10_spill] sm:$0xff] %v10950_v12  ;;  %1595 = vrot.lane.b32.xlu1 %v1470_v1, %s10132_s16 }
 0x113   : > { %1593 = vrot.lane.b32.xlu0 %v1469_v54, %s10132_s16  ;;  %v17402_v54 = vld [vmem:[#allocation16_spill] sm:$0xff] }
 0x114   : > { %v10956_v17 = vpop.permute.xlu1 %1403  ;;  %v1476_v36 = vrot.slane %v17402_v54, 1 }
 0x115   : > { %17396 = vst [vmem:[#allocation11_spill] sm:$0xff] %v10956_v17  ;;  %v10958_v49 = vpop.permute.xlu0 %1401  ;;  %v1475_v17 = vrot.slane %v17403_v20, 1  ;;  %v17411_v20 = vld [vmem:[#allocation21_spill] sm:$0xff] }
 0x116   : > { %17397 = vst [vmem:[#allocation12_spill] sm:$0xff] %v10958_v49  ;;  %1599 = vrot.lane.b32.xlu1 %v1472_v48, %s10132_s16 }
 0x117   : > { %1597 = vrot.lane.b32.xlu0 %v1471_v61, %s10132_s16  ;;  %v17406_v61 = vld [vmem:[#allocation18_spill] sm:$0xff] }
 0x118   : > { %v10964_v9 = vpop.permute.xlu1 %1407  ;;  %v1478_v52 = vrot.slane %v17406_v61, 1 }
 0x119   : > { %17400 = vst [vmem:[#allocation13_spill] sm:$0xff] %v10964_v9  ;;  %v10966_v1 = vpop.permute.xlu0 %1405 }
 0x11a   : > { %17401 = vst [vmem:[#allocation14_spill] sm:$0xff] %v10966_v1  ;;  %1603 = vrot.lane.b32.xlu1 %v1474_v30, %s10132_s16  ;;  %v1477_v1 = vrot.slane %v17407_v28, 1  ;;  %v17415_v28 = vld [vmem:[#allocation23_spill] sm:$0xff] }
 0x11b   : > { %1601 = vrot.lane.b32.xlu0 %v1473_v3, %s10132_s16  ;;  %v17410_v3 = vld [vmem:[#allocation20_spill] sm:$0xff] }
 0x11c   : > { %v10972_v46 = vpop.permute.xlu1 %1411  ;;  %v1480_v54 = vrot.slane %v17410_v3, 1 }
 0x11d   : > { %17404 = vst [vmem:[#allocation15_spill] sm:$0xff] %v10972_v46  ;;  %v10974_v48 = vpop.permute.xlu0 %1409  ;;  %v1479_v46 = vrot.slane %v17411_v20, 1  ;;  %v17419_v20 = vld [vmem:[#allocation25_spill] sm:$0xff] }
 0x11e   : > { %17405 = vst [vmem:[#allocation16_spill] sm:$0xff] %v10974_v48  ;;  %1607 = vrot.lane.b32.xlu1 %v1476_v36, %s10132_s16 }
 0x11f   : > { %1605 = vrot.lane.b32.xlu0 %v1475_v17, %s10132_s16  ;;  %v17414_v17 = vld [vmem:[#allocation22_spill] sm:$0xff] }
 0x120   : > { %v10980_v9 = vpop.permute.xlu1 %1415  ;;  %v1482_v61 = vrot.slane %v17414_v17, 1 }
 0x121   : > { %17408 = vst [vmem:[#allocation17_spill] sm:$0xff] %v10980_v9  ;;  %v10982_v30 = vpop.permute.xlu0 %1413  ;;  %v1481_v9 = vrot.slane %v17415_v28, 1  ;;  %v17422_v28 = vld [vmem:[#allocation27_spill] sm:$0xff] }
 0x122   : > { %17409 = vst [vmem:[#allocation18_spill] sm:$0xff] %v10982_v30  ;;  %1611 = vrot.lane.b32.xlu1 %v1478_v52, %s10132_s16 }
 0x123   : > { %1609 = vrot.lane.b32.xlu0 %v1477_v1, %s10132_s16  ;;  %v17418_v1 = vld [vmem:[#allocation24_spill] sm:$0xff] }
 0x124   : > { %v10988_v48 = vpop.permute.xlu1 %1419  ;;  %v1484_v3 = vrot.slane %v17418_v1, 1 }
 0x125   : > { %17412 = vst [vmem:[#allocation19_spill] sm:$0xff] %v10988_v48  ;;  %v10990_v36 = vpop.permute.xlu0 %1417  ;;  %v1483_v48 = vrot.slane %v17419_v20, 1  ;;  %v17424_v20 = vld [vmem:[#allocation29_spill] sm:$0xff] }
 0x126   : > { %17413 = vst [vmem:[#allocation20_spill] sm:$0xff] %v10990_v36  ;;  %1615 = vrot.lane.b32.xlu1 %v1480_v54, %s10132_s16 }
 0x127   : > { %1613 = vrot.lane.b32.xlu0 %v1479_v46, %s10132_s16  ;;  %v17421_v46 = vld [vmem:[#allocation26_spill] sm:$0xff] }
 0x128   : > { %v10996_v30 = vpop.permute.xlu1 %1423  ;;  %v1486_v17 = vrot.slane %v17421_v46, 1 }
 0x129   : > { %17416 = vst [vmem:[#allocation21_spill] sm:$0xff] %v10996_v30  ;;  %v10998_v52 = vpop.permute.xlu0 %1421  ;;  %v1485_v30 = vrot.slane %v17422_v28, 1  ;;  %v17426_v28 = vld [vmem:[#allocation31_spill] sm:$0xff] }
 0x12a   : > { %17417 = vst [vmem:[#allocation22_spill] sm:$0xff] %v10998_v52  ;;  %1619 = vrot.lane.b32.xlu1 %v1482_v61, %s10132_s16  ;;  %v1489_v49 = vrot.slane %v17426_v28, 1  ;;  %v1493_v28 = vrot.slane %v10650_v56, 1 }
 0x12b   : > { %1617 = vrot.lane.b32.xlu0 %v1481_v9, %s10132_s16  ;;  %v17423_v9 = vld [vmem:[#allocation28_spill] sm:$0xff] }
 0x12c   : > { %v11004_v36 = vpop.permute.xlu1 %1507  ;;  %v1488_v1 = vrot.slane %v17423_v9, 1 }
 0x12d   : > { %v11006_v54 = vpop.permute.xlu0 %1505 }
 0x12e   : > { %17420 = vst [vmem:[#allocation23_spill] sm:$0xff] %v11006_v54  ;;  %1623 = vrot.lane.b32.xlu1 %v1484_v3, %s10132_s16  ;;  %v1487_v54 = vrot.slane %v17424_v20, 1  ;;  %v17428_v20 = vld [vmem:[#allocation35_spill] sm:$0xff] }
 0x12f   : > { %1621 = vrot.lane.b32.xlu0 %v1483_v48, %s10132_s16  ;;  %v17425_v48 = vld [vmem:[#allocation30_spill] sm:$0xff]  ;;  %v1491_v12 = vrot.slane %v17428_v20, 1 }
 0x130   : > { %v11012_v52 = vpop.permute.xlu1 %1511  ;;  %v1490_v46 = vrot.slane %v17425_v48, 1  ;;  %v17433_v20 = vld [vmem:[#allocation42_spill] sm:$0xff] }
 0x131   : > { %v11014_v61 = vpop.permute.xlu0 %1509 }
 0x132   : > { %1627 = vrot.lane.b32.xlu1 %v1486_v17, %s10132_s16 }
 0x133   : > { %1625 = vrot.lane.b32.xlu0 %v1485_v30, %s10132_s16  ;;  %v17427_v30 = vld [vmem:[#allocation34_spill] sm:$0xff] }
 0x134   : > { %v11020_v13 = vpop.permute.xlu1 %1515  ;;  %v1492_v9 = vrot.slane %v17427_v30, 1 }
 0x135   : > { %v11022_v3 = vpop.permute.xlu0 %1513 }
 0x136   : > { %1631 = vrot.lane.b32.xlu1 %v1488_v1, %s10132_s16 }
 0x137   : > { %1629 = vrot.lane.b32.xlu0 %v1487_v54, %s10132_s16  ;;  %v17430_v54 = vld [vmem:[#allocation38_spill] sm:$0xff] }
 0x138   : > { %v11028_v39 = vpop.permute.xlu1 %1519  ;;  %v1494_v48 = vrot.slane %v17430_v54, 1  ;;  %v17435_v54 = vld [vmem:[#allocation46_spill] sm:$0xff] }
 0x139   : > { %v11030_v17 = vpop.permute.xlu0 %1517 }
 0x13a   : > { %1635 = vrot.lane.b32.xlu1 %v1490_v46, %s10132_s16 }
 0x13b   : > { %1633 = vrot.lane.b32.xlu0 %v1489_v49, %s10132_s16  ;;  %v17432_v49 = vld [vmem:[#allocation41_spill] sm:$0xff] }
 0x13c   : > { %v11036_v29 = vpop.permute.xlu1 %1523  ;;  %v1496_v30 = vrot.slane %v17432_v49, 1 }
 0x13d   : > { %17429 = vst [vmem:[#allocation24_spill] sm:$0xff] %v11036_v29  ;;  %v11038_v1 = vpop.permute.xlu0 %1521  ;;  %v1495_v29 = vrot.slane %v17433_v20, 1  ;;  %v1499_v20 = vrot.slane %v10702_v18, 1  ;;  %v1504_v18 = vrot.slane %v10734_v57, 1 }
 0x13e   : > { %1639 = vrot.lane.b32.xlu1 %v1492_v9, %s10132_s16 }
 0x13f   : > { %1637 = vrot.lane.b32.xlu0 %v1491_v12, %s10132_s16  ;;  %v17434_v12 = vld [vmem:[#allocation45_spill] sm:$0xff] }
 0x140   : > { %v11044_v62 = vpop.permute.xlu1 %1527  ;;  %v1498_v56 = vrot.slane %v17434_v12, 1  ;;  %v1501_v12 = vrot.slane %v10720_v40, 1  ;;  %v9883_v40 = vld [vmem:[%s10164_s14 + $0x10] sm:$0xf] }
 0x141   : > { %v11046_v46 = vpop.permute.xlu0 %1525 }
 0x142   : > { %17431 = vst [vmem:[#allocation25_spill] sm:$0xff] %v11046_v46  ;;  %1643 = vrot.lane.b32.xlu1 %v1494_v48, %s10132_s16  ;;  %v1497_v46 = vrot.slane %v17435_v54, 1 }
 0x143   : > { %1641 = vrot.lane.b32.xlu0 %v1493_v28, %s10132_s16  ;;  %v17436_v28 = vld [vmem:[#allocation49_spill] sm:$0xff] }
 0x144   : > { %v11052_v37 = vpop.permute.xlu1 %1531  ;;  %v1500_v49 = vrot.slane %v17436_v28, 1 }
 0x145   : > { %v11054_v9 = vpop.permute.xlu0 %1529 }
 0x146   : > { %1647 = vrot.lane.b32.xlu1 %v1496_v30, %s10132_s16 }
 0x147   : > { %1645 = vrot.lane.b32.xlu0 %v1495_v29, %s10132_s16  ;;  %v1502_v29 = vrot.slane %v10716_v27, 1 }
 0x148   : > { %v11060_v41 = vpop.permute.xlu1 %1535 }
 0x149   : > { %v11062_v48 = vpop.permute.xlu0 %1533 }
 0x14a   : > { %1651 = vrot.lane.b32.xlu1 %v1498_v56, %s10132_s16 }
 0x14b   : > { %1649 = vrot.lane.b32.xlu0 %v1497_v46, %s10132_s16  ;;  %v1503_v46 = vrot.slane %v10738_v34, 1  ;;  %v17440_v34 = vld [vmem:[#allocation37_spill] sm:$0xff] }
 0x14c   : > { %v11068_v23 = vpop.permute.xlu1 %1539 }
 0x14d   : > { %v11070_v30 = vpop.permute.xlu0 %1537 }
 0x14e   : > { %1655 = vrot.lane.b32.xlu1 %v1500_v49, %s10132_s16  ;;  %v17439_v49 = vld [vmem:[#allocation32_spill] sm:$0xff] }
 0x14f   : > { %1653 = vrot.lane.b32.xlu0 %v1499_v20, %s10132_s16  ;;  %v1674_v57 = vsel %vm1665_vm0, %v9883_v40, %v17439_v49  ;;  %v9885_v40 = vld [vmem:[%s10164_s14 + $0x20] sm:$0xf]  ;;  %v17443_v49 = vld [vmem:[#allocation40_spill] sm:$0xff] }
 0x150   : > { %v11076_v56 = vpop.permute.xlu1 %1543 }
 0x151   : > { %17437 = vst [vmem:[#allocation26_spill] sm:$0xff] %v11076_v56  ;;  %v11078_v54 = vpop.permute.xlu0 %1541  ;;  %v11100_v56 = vsel %vm1906_vm1, %v1674_v57, %v11014_v61  ;;  %v1680_v61 = vsel %vm1665_vm0, %v9885_v40, %v17443_v49  ;;  %v9887_v40 = vld [vmem:[%s10164_s14 + $0x30] sm:$0xf] }
 0x152   : > { %1659 = vrot.lane.b32.xlu1 %v1502_v29, %s10132_s16  ;;  %v9884_v29 = vld [vmem:[%s10164_s14 + $0x8] sm:$0xf]  ;;  %17441 = vst [vmem:[#allocation28_spill] sm:$0xff] %v11100_v56  ;;  %v17447_v49 = vld [vmem:[#allocation44_spill] sm:$0xff] }
 0x153   : > { %1657 = vrot.lane.b32.xlu0 %v1501_v12, %s10132_s16  ;;  %v1671_v12 = vsel %vm1665_vm0, %v9884_v29, %v17440_v34  ;;  %v9886_v29 = vld [vmem:[%s10164_s14 + $0x18] sm:$0xf]  ;;  %v17444_v34 = vld [vmem:[#allocation36_spill] sm:$0xff] }
 0x154   : > { %v11084_v28 = vpop.permute.xlu1 %1547 }
 0x155   : > { %v11086_v27 = vpop.permute.xlu0 %1545 }
 0x156   : > { %17438 = vst [vmem:[#allocation27_spill] sm:$0xff] %v11086_v27  ;;  %1663 = vrot.lane.b32.xlu1 %v1504_v18, %s10132_s16  ;;  %v1677_v27 = vsel %vm1665_vm0, %v9886_v29, %v17444_v34  ;;  %v1686_v29 = vsel %vm1665_vm0, %v9887_v40, %v17447_v49  ;;  %v9889_v40 = vld [vmem:[%s10164_s14 + $0x40] sm:$0xf]  ;;  %v17451_v49 = vld [vmem:[#allocation48_spill] sm:$0xff] }
 0x157   : > { %1661 = vrot.lane.b32.xlu0 %v1503_v46, %s10132_s16  ;;  %v11106_v46 = vsel %vm1906_vm1, %v1671_v12, %v11004_v36  ;;  %v11122_v36 = vsel %vm1906_vm1, %v1680_v61, %v11022_v3  ;;  %v9888_v3 = vld [vmem:[%s10164_s14 + $0x28] sm:$0xf] }
 0x158   : > { %v11093_v20 = vpop.permute.xlu1 %1551  ;;  %17442 = vst [vmem:[#allocation29_spill] sm:$0xff] %v11106_v46  ;;  %17445 = vst [vmem:[#allocation30_spill] sm:$0xff] %v11122_v36  ;;  %v17448_v61 = vld [vmem:[#allocation39_spill] sm:$0xff] }
 0x159   : > { %v11102_v18 = vpop.permute.xlu0 %1549 }
 0x15a   : > { %2133 = vrot.lane.b32.xlu1 %v11100_v56, %s10133_s17  ;;  %v1683_v56 = vsel %vm1665_vm0, %v9888_v3, %v17448_v61  ;;  %v1692_v3 = vsel %vm1665_vm0, %v9889_v40, %v17451_v49  ;;  %v9891_v40 = vld [vmem:[%s10164_s14 + $0x60] sm:$0xf]  ;;  %v17456_v49 = vld [vmem:[#allocation53_spill] sm:$0xff] }
 0x15b   : > { %2131 = vrot.lane.b32.xlu0 %v11106_v46, %s10133_s17  ;;  %v11128_v46 = vsel %vm1906_vm1, %v1677_v27, %v11012_v52  ;;  %v11144_v52 = vsel %vm1906_vm1, %v1686_v29, %v11030_v17  ;;  %v9890_v17 = vld [vmem:[%s10164_s14 + $0x38] sm:$0xf]  ;;  %v17453_v29 = vld [vmem:[#allocation43_spill] sm:$0xff] }
 0x15c   : > { %v11115_v57 = vpop.permute.xlu1 %1555  ;;  %17446 = vst [vmem:[#allocation31_spill] sm:$0xff] %v11128_v46  ;;  %17449 = vst [vmem:[#allocation34_spill] sm:$0xff] %v11144_v52 }
 0x15d   : > { %v11124_v12 = vpop.permute.xlu0 %1553 }
 0x15e   : > { %2137 = vrot.lane.b32.xlu1 %v11122_v36, %s10133_s17  ;;  %v11150_v36 = vsel %vm1906_vm1, %v1683_v56, %v11020_v13  ;;  %v11166_v13 = vsel %vm1906_vm1, %v1692_v3, %v11038_v1  ;;  %v9892_v1 = vld [vmem:[%s10164_s14 + $0x58] sm:$0xf]  ;;  %v17457_v3 = vld [vmem:[#allocation50_spill] sm:$0xff] }
 0x15f   : > { %2135 = vrot.lane.b32.xlu0 %v11128_v46, %s10133_s17  ;;  %17450 = vst [vmem:[#allocation35_spill] sm:$0xff] %v11150_v36  ;;  %v1689_v46 = vsel %vm1665_vm0, %v9890_v17, %v17453_v29  ;;  %17454 = vst [vmem:[#allocation41_spill] sm:$0xff] %v11166_v13  ;;  %v1704_v17 = vsel %vm1665_vm0, %v9891_v40, %v17456_v49  ;;  %v9893_v40 = vld [vmem:[%s10164_s14 + $0x70] sm:$0xf] }
 0x160   : > { %v11137_v34 = vpop.permute.xlu1 %1559  ;;  %v1710_v49 = vsel %vm1665_vm0, %v9893_v40, %v10742_v60  ;;  %v9895_v60 = vld [vmem:[%s10164_s14 + $0x80] sm:$0xf] }
 0x161   : > { %v11146_v27 = vpop.permute.xlu0 %1557  ;;  %v1716_v40 = vsel %vm1665_vm0, %v9895_v60, %v10752_v47  ;;  %v9897_v47 = vld [vmem:[%s10164_s14 + $0x90] sm:$0xf] }
 0x162   : > { %2141 = vrot.lane.b32.xlu1 %v11144_v52, %s10133_s17  ;;  %v11172_v52 = vsel %vm1906_vm1, %v1689_v46, %v11028_v39  ;;  %v11188_v39 = vsel %vm1906_vm1, %v1704_v17, %v11054_v9  ;;  %v9894_v9 = vld [vmem:[%s10164_s14 + $0x68] sm:$0xf]  ;;  %v17461_v17 = vld [vmem:[#allocation52_spill] sm:$0xff] }
 0x163   : > { %2139 = vrot.lane.b32.xlu0 %v11150_v36, %s10133_s17  ;;  %17455 = vst [vmem:[#allocation42_spill] sm:$0xff] %v11172_v52  ;;  %17458 = vst [vmem:[#allocation45_spill] sm:$0xff] %v11188_v39 }
 0x164   : > { %v11159_v61 = vpop.permute.xlu1 %1563 }
 0x165   : > { %17452 = vst [vmem:[#allocation38_spill] sm:$0xff] %v11159_v61  ;;  %v11168_v56 = vpop.permute.xlu0 %1561  ;;  %v1701_v61 = vsel %vm1665_vm0, %v9892_v1, %v17457_v3  ;;  %v1707_v3 = vsel %vm1665_vm0, %v9894_v9, %v17461_v17 }
 0x166   : > { %2145 = vrot.lane.b32.xlu1 %v11166_v13, %s10133_s17  ;;  %v11194_v13 = vsel %vm1906_vm1, %v1701_v61, %v11044_v62  ;;  %v11210_v62 = vsel %vm1906_vm1, %v1710_v49, %v11062_v48  ;;  %v9896_v48 = vld [vmem:[%s10164_s14 + $0x78] sm:$0xf] }
 0x167   : > { %2143 = vrot.lane.b32.xlu0 %v11172_v52, %s10133_s17  ;;  %17460 = vst [vmem:[#allocation49_spill] sm:$0xff] %v11194_v13  ;;  %17462 = vst [vmem:[#allocation32_spill] sm:$0xff] %v11210_v62  ;;  %v1713_v49 = vsel %vm1665_vm0, %v9896_v48, %v10740_v42  ;;  %v1722_v42 = vsel %vm1665_vm0, %v9897_v47, %v10760_v22  ;;  %v9899_v22 = vld [vmem:[%s10164_s14 + $0xb0] sm:$0xf] }
 0x168   : > { %v11181_v29 = vpop.permute.xlu1 %1567 }
 0x169   : > { %v11190_v46 = vpop.permute.xlu0 %1565 }
 0x16a   : > { %17459 = vst [vmem:[#allocation46_spill] sm:$0xff] %v11190_v46  ;;  %2149 = vrot.lane.b32.xlu1 %v11188_v39, %s10133_s17 }
 0x16b   : > { %2147 = vrot.lane.b32.xlu0 %v11194_v13, %s10133_s17  ;;  %v11216_v13 = vsel %vm1906_vm1, %v1707_v3, %v11052_v37  ;;  %v11232_v37 = vsel %vm1906_vm1, %v1716_v40, %v11070_v30  ;;  %v11238_v3 = vsel %vm1906_vm1, %v1713_v49, %v11060_v41  ;;  %v9898_v30 = vld [vmem:[%s10164_s14 + $0x88] sm:$0xf]  ;;  %v11254_v41 = vsel %vm1906_vm1, %v1722_v42, %v11078_v54 }
 0x16c   : > { %v11203_v1 = vpop.permute.xlu1 %1571  ;;  %17463 = vst [vmem:[#allocation37_spill] sm:$0xff] %v11216_v13  ;;  %17464 = vst [vmem:[#allocation40_spill] sm:$0xff] %v11232_v37  ;;  %v1719_v40 = vsel %vm1665_vm0, %v9898_v30, %v10750_v6  ;;  %v1734_v6 = vsel %vm1665_vm0, %v9899_v22, %v10774_v16  ;;  %v9900_v54 = vld [vmem:[%s10164_s14 + $0xa8] sm:$0xf]  ;;  %v9901_v16 = vld [vmem:[%s10164_s14 + $0xc0] sm:$0xf] }
 0x16d   : > { %v11212_v61 = vpop.permute.xlu0 %1569  ;;  %17465 = vst [vmem:[#allocation36_spill] sm:$0xff] %v11238_v3  ;;  %v11260_v49 = vsel %vm1906_vm1, %v1719_v40, %v11068_v23  ;;  %v1731_v42 = vsel %vm1665_vm0, %v9900_v54, %v10764_v58  ;;  %v11276_v23 = vsel %vm1906_vm1, %v1734_v6, %v11102_v18  ;;  %v1740_v58 = vsel %vm1665_vm0, %v9901_v16, %v10782_v14  ;;  %v9902_v18 = vld [vmem:[%s10164_s14 + $0xb8] sm:$0xf]  ;;  %v9903_v14 = vld [vmem:[%s10164_s14 + $0xd0] sm:$0xf] }
 0x16e   : > { %2153 = vrot.lane.b32.xlu1 %v11210_v62, %s10133_s17  ;;  %17466 = vst [vmem:[#allocation44_spill] sm:$0xff] %v11260_v49  ;;  %17467 = vst [vmem:[#allocation39_spill] sm:$0xff] %v11276_v23  ;;  %v11282_v40 = vsel %vm1906_vm1, %v1731_v42, %v11084_v28  ;;  %v1737_v6 = vsel %vm1665_vm0, %v9902_v18, %v10772_v24  ;;  %v11298_v28 = vsel %vm1906_vm1, %v1740_v58, %v11124_v12  ;;  %v9904_v12 = vld [vmem:[%s10164_s14 + $0xc8] sm:$0xf] }
 0x16f   : > { %2151 = vrot.lane.b32.xlu0 %v11216_v13, %s10133_s17  ;;  %17468 = vst [vmem:[#allocation48_spill] sm:$0xff] %v11282_v40  ;;  %17469 = vst [vmem:[#allocation43_spill] sm:$0xff] %v11298_v28  ;;  %v11304_v42 = vsel %vm1906_vm1, %v1737_v6, %v11093_v20  ;;  %v1746_v24 = vsel %vm1665_vm0, %v9903_v14, %v10790_v35  ;;  %v1743_v58 = vsel %vm1665_vm0, %v9904_v12, %v10780_v32  ;;  %v9905_v35 = vld [vmem:[%s10164_s14 + $0xe0] sm:$0xf] }
 0x170   : > { %v11225_v9 = vpop.permute.xlu1 %1575  ;;  %17471 = vst [vmem:[#allocation50_spill] sm:$0xff] %v11304_v42  ;;  %v11320_v20 = vsel %vm1906_vm1, %v1746_v24, %v11146_v27  ;;  %v11324_v6 = vsel %vm1906_vm1, %v1743_v58, %v11115_v57  ;;  %v1752_v32 = vsel %vm1665_vm0, %v9905_v35, %v10798_v11  ;;  %v9906_v27 = vld [vmem:[%s10164_s14 + $0xd8] sm:$0xf]  ;;  %v9907_v11 = vld [vmem:[%s10164_s14 + $0x100] sm:$0xf] }
 0x171   : > { %v11234_v17 = vpop.permute.xlu0 %1573  ;;  %17472 = vst [vmem:[#allocation52_spill] sm:$0xff] %v11320_v20  ;;  %17473 = vst [vmem:[#allocation63_spill] sm:$0xff] %v11324_v6  ;;  %v1749_v24 = vsel %vm1665_vm0, %v9906_v27, %v10788_v53  ;;  %v11340_v57 = vsel %vm1906_vm1, %v1752_v32, %v11168_v56  ;;  %v1764_v53 = vsel %vm1665_vm0, %v9907_v11, %v10814_v15  ;;  %v9908_v56 = vld [vmem:[%s10164_s14 + $0xf8] sm:$0xf]  ;;  %v9909_v15 = vld [vmem:[%s10164_s14 + $0x110] sm:$0xf] }
 0x172   : > { %2157 = vrot.lane.b32.xlu1 %v11232_v37, %s10133_s17  ;;  %v11344_v58 = vsel %vm1906_vm1, %v1749_v24, %v11137_v34  ;;  %v1761_v32 = vsel %vm1665_vm0, %v9908_v56, %v10804_v38  ;;  %v11360_v34 = vsel %vm1906_vm1, %v1764_v53, %v11212_v61  ;;  %v1770_v38 = vsel %vm1665_vm0, %v9909_v15, %v10822_v26  ;;  %v9910_v61 = vld [vmem:[%s10164_s14 + $0x108] sm:$0xf]  ;;  %v9911_v26 = vld [vmem:[%s10164_s14 + $0x120] sm:$0xf] }
 0x173   : > { %2155 = vrot.lane.b32.xlu0 %v11238_v3, %s10133_s17  ;;  %17474 = vst [vmem:[#allocation64_spill] sm:$0xff] %v11344_v58  ;;  %17475 = vst [vmem:[#allocation65_spill] sm:$0xff] %v11360_v34  ;;  %v11364_v24 = vsel %vm1906_vm1, %v1761_v32, %v11181_v29  ;;  %v1767_v53 = vsel %vm1665_vm0, %v9910_v61, %v10812_v0  ;;  %v11380_v29 = vsel %vm1906_vm1, %v1770_v38, %v11234_v17  ;;  %v9912_v17 = vld [vmem:[%s10164_s14 + $0x118] sm:$0xf] }
 0x174   : > { %v11247_v60 = vpop.permute.xlu1 %1579  ;;  %17476 = vst [vmem:[#allocation66_spill] sm:$0xff] %v11364_v24  ;;  %17477 = vst [vmem:[#allocation67_spill] sm:$0xff] %v11380_v29  ;;  %v11384_v32 = vsel %vm1906_vm1, %v1767_v53, %v11203_v1  ;;  %v1776_v0 = vsel %vm1665_vm0, %v9911_v26, %v10830_v59  ;;  %v1773_v38 = vsel %vm1665_vm0, %v9912_v17, %v10820_v19  ;;  %v9913_v59 = vld [vmem:[%s10164_s14 + $0x130] sm:$0xf] }
 0x175   : > { %v11256_v48 = vpop.permute.xlu0 %1577  ;;  %17478 = vst [vmem:[#allocation68_spill] sm:$0xff] %v11384_v32  ;;  %v11406_v53 = vsel %vm1906_vm1, %v1773_v38, %v11225_v9  ;;  %v1782_v19 = vsel %vm1665_vm0, %v9913_v59, %v10838_v8  ;;  %v9915_v8 = vld [vmem:[%s10164_s14 + $0x150] sm:$0xf] }
 0x176   : > { %2161 = vrot.lane.b32.xlu1 %v11254_v41, %s10133_s17  ;;  %v11400_v1 = vsel %vm1906_vm1, %v1776_v0, %v11256_v48  ;;  %17481 = vst [vmem:[#allocation71_spill] sm:$0xff] %v11406_v53  ;;  %v9914_v48 = vld [vmem:[%s10164_s14 + $0x128] sm:$0xf] }
 0x177   : > { %2159 = vrot.lane.b32.xlu0 %v11260_v49, %s10133_s17  ;;  %17479 = vst [vmem:[#allocation69_spill] sm:$0xff] %v11400_v1  ;;  %v1779_v0 = vsel %vm1665_vm0, %v9914_v48, %v10828_v7  ;;  %v1794_v7 = vsel %vm1665_vm0, %v9915_v8, %v10854_v45  ;;  %v9917_v45 = vld [vmem:[%s10164_s14 + $0x160] sm:$0xf] }
 0x178   : > { %v11269_v47 = vpop.permute.xlu1 %1583  ;;  %v11426_v38 = vsel %vm1906_vm1, %v1779_v0, %v11247_v60 }
 0x179   : > { %v11278_v30 = vpop.permute.xlu0 %1581  ;;  %17482 = vst [vmem:[#allocation72_spill] sm:$0xff] %v11426_v38 }
 0x17a   : > { %2165 = vrot.lane.b32.xlu1 %v11276_v23, %s10133_s17  ;;  %v11422_v9 = vsel %vm1906_vm1, %v1782_v19, %v11278_v30  ;;  %v9916_v30 = vld [vmem:[%s10164_s14 + $0x148] sm:$0xf] }
 0x17b   : > { %2163 = vrot.lane.b32.xlu0 %v11282_v40, %s10133_s17  ;;  %v1791_v19 = vsel %vm1665_vm0, %v9916_v30, %v10844_v25  ;;  %v1800_v25 = vsel %vm1665_vm0, %v9917_v45, %v10862_v51  ;;  %v9919_v51 = vld [vmem:[%s10164_s14 + $0x170] sm:$0xf] }
 0x17c   : > { %v11291_v22 = vpop.permute.xlu1 %1587 }
 0x17d   : > { %v11300_v54 = vpop.permute.xlu0 %1585  ;;  %v11445_v0 = vsel %vm1906_vm1, %v1791_v19, %v11291_v22 }
 0x17e   : > { %17470 = vst [vmem:[#allocation53_spill] sm:$0xff] %v11300_v54  ;;  %2169 = vrot.lane.b32.xlu1 %v11298_v28, %s10133_s17  ;;  %17484 = vst [vmem:[#allocation74_spill] sm:$0xff] %v11445_v0  ;;  %v9932_v54 = vld [vmem:[%s10164_s14 + $0x1e8] sm:$0xf] }
 0x17f   : > { %2167 = vrot.lane.b32.xlu0 %v11304_v42, %s10133_s17 }
 0x180   : > { %v11313_v16 = vpop.permute.xlu1 %1591 }
 0x181   : > { %v1590_v18 = vpop.permute.xlu0 %1589 }
 0x182   : > { %2173 = vrot.lane.b32.xlu1 %v11320_v20, %s10133_s17  ;;  %v11441_v60 = vsel %vm1906_vm1, %v1794_v7, %v1590_v18  ;;  %v9918_v18 = vld [vmem:[%s10164_s14 + $0x158] sm:$0xf] }
 0x183   : > { %2171 = vrot.lane.b32.xlu0 %v11324_v6, %s10133_s17  ;;  %17483 = vst [vmem:[#allocation73_spill] sm:$0xff] %v11441_v60  ;;  %v1797_v7 = vsel %vm1665_vm0, %v9918_v18, %v10852_v44  ;;  %v1806_v44 = vsel %vm1665_vm0, %v9919_v51, %v10870_v4  ;;  %v9921_v4 = vld [vmem:[%s10164_s14 + $0x180] sm:$0xf] }
 0x184   : > { %v11333_v14 = vpop.permute.xlu1 %1595  ;;  %v11464_v19 = vsel %vm1906_vm1, %v1797_v7, %v11313_v16 }
 0x185   : > { %v1594_v12 = vpop.permute.xlu0 %1593  ;;  %17486 = vst [vmem:[#allocation76_spill] sm:$0xff] %v11464_v19 }
 0x186   : > { %2177 = vrot.lane.b32.xlu1 %v11340_v57, %s10133_s17  ;;  %v11460_v22 = vsel %vm1906_vm1, %v1800_v25, %v1594_v12  ;;  %v9920_v12 = vld [vmem:[%s10164_s14 + $0x168] sm:$0xf] }
 0x187   : > { %2175 = vrot.lane.b32.xlu0 %v11344_v58, %s10133_s17  ;;  %17485 = vst [vmem:[#allocation75_spill] sm:$0xff] %v11460_v22  ;;  %v1803_v25 = vsel %vm1665_vm0, %v9920_v12, %v10860_v50  ;;  %v1812_v50 = vsel %vm1665_vm0, %v9921_v4, %v10878_v21  ;;  %v9922_v12 = vld [vmem:[%s10164_s14 + $0x178] sm:$0xf]  ;;  %v9923_v21 = vld [vmem:[%s10164_s14 + $0x1a0] sm:$0xf] }
 0x188   : > { %v11353_v35 = vpop.permute.xlu1 %1599  ;;  %v11483_v7 = vsel %vm1906_vm1, %v1803_v25, %v11333_v14 }
 0x189   : > { %v1598_v27 = vpop.permute.xlu0 %1597  ;;  %17488 = vst [vmem:[#allocation78_spill] sm:$0xff] %v11483_v7 }
 0x18a   : > { %2181 = vrot.lane.b32.xlu1 %v11360_v34, %s10133_s17  ;;  %v11479_v16 = vsel %vm1906_vm1, %v1806_v44, %v1598_v27  ;;  %v1809_v27 = vsel %vm1665_vm0, %v9922_v12, %v10868_v63  ;;  %v1824_v63 = vsel %vm1665_vm0, %v9923_v21, %v10894_v55  ;;  %v9925_v55 = vld [vmem:[%s10164_s14 + $0x1b0] sm:$0xf] }
 0x18b   : > { %2179 = vrot.lane.b32.xlu0 %v11364_v24, %s10133_s17  ;;  %17487 = vst [vmem:[#allocation77_spill] sm:$0xff] %v11479_v16  ;;  %v11502_v25 = vsel %vm1906_vm1, %v1809_v27, %v11353_v35  ;;  %v17513_v24 = vld [vmem:[#allocation9_spill] sm:$0xff] }
 0x18c   : > { %v11373_v11 = vpop.permute.xlu1 %1603  ;;  %17490 = vst [vmem:[#allocation80_spill] sm:$0xff] %v11502_v25 }
 0x18d   : > { %v1602_v56 = vpop.permute.xlu0 %1601 }
 0x18e   : > { %2185 = vrot.lane.b32.xlu1 %v11380_v29, %s10133_s17  ;;  %v11496_v14 = vsel %vm1906_vm1, %v1812_v50, %v1602_v56  ;;  %v9924_v56 = vld [vmem:[%s10164_s14 + $0x198] sm:$0xf] }
 0x18f   : > { %2183 = vrot.lane.b32.xlu0 %v11384_v32, %s10133_s17  ;;  %v1821_v50 = vsel %vm1665_vm0, %v9924_v56, %v10884_v33  ;;  %v1830_v33 = vsel %vm1665_vm0, %v9925_v55, %v10902_v10  ;;  %v9926_v56 = vld [vmem:[%s10164_s14 + $0x1a8] sm:$0xf]  ;;  %v9927_v10 = vld [vmem:[%s10164_s14 + $0x1c0] sm:$0xf] }
 0x190   : > { %v11393_v15 = vpop.permute.xlu1 %1607 }
 0x191   : > { %v11402_v61 = vpop.permute.xlu0 %1605  ;;  %v11519_v27 = vsel %vm1906_vm1, %v1821_v50, %v11393_v15 }
 0x192   : > { %17480 = vst [vmem:[#allocation70_spill] sm:$0xff] %v11402_v61  ;;  %2189 = vrot.lane.b32.xlu1 %v11400_v1, %s10133_s17  ;;  %17492 = vst [vmem:[#allocation82_spill] sm:$0xff] %v11519_v27 }
 0x193   : > { %2187 = vrot.lane.b32.xlu0 %v11406_v53, %s10133_s17 }
 0x194   : > { %v11415_v26 = vpop.permute.xlu1 %1611 }
 0x195   : > { %v1610_v17 = vpop.permute.xlu0 %1609 }
 0x196   : > { %2193 = vrot.lane.b32.xlu1 %v11422_v9, %s10133_s17  ;;  %v11515_v35 = vsel %vm1906_vm1, %v1824_v63, %v1610_v17  ;;  %v1827_v17 = vsel %vm1665_vm0, %v9926_v56, %v10892_v43  ;;  %v1836_v43 = vsel %vm1665_vm0, %v9927_v10, %v10910_v31  ;;  %v9928_v56 = vld [vmem:[%s10164_s14 + $0x1b8] sm:$0xf]  ;;  %v9929_v31 = vld [vmem:[%s10164_s14 + $0x1d0] sm:$0xf] }
 0x197   : > { %2191 = vrot.lane.b32.xlu0 %v11426_v38, %s10133_s17  ;;  %17491 = vst [vmem:[#allocation81_spill] sm:$0xff] %v11515_v35  ;;  %v11536_v50 = vsel %vm1906_vm1, %v1827_v17, %v11415_v26 }
 0x198   : > { %v11435_v59 = vpop.permute.xlu1 %1615  ;;  %17494 = vst [vmem:[#allocation84_spill] sm:$0xff] %v11536_v50 }
 0x199   : > { %v1614_v48 = vpop.permute.xlu0 %1613 }
 0x19a   : > { %2197 = vrot.lane.b32.xlu1 %v11441_v60, %s10133_s17  ;;  %v11532_v15 = vsel %vm1906_vm1, %v1830_v33, %v1614_v48  ;;  %v1833_v48 = vsel %vm1665_vm0, %v9928_v56, %v10900_v2  ;;  %v1842_v2 = vsel %vm1665_vm0, %v9929_v31, %v10918_v5  ;;  %v9931_v5 = vld [vmem:[%s10164_s14 + $0x1f0] sm:$0xf]  ;;  %v17499_v31 = vld [vmem:[#allocation6_spill] sm:$0xff] }
 0x19b   : > { %2195 = vrot.lane.b32.xlu0 %v11445_v0, %s10133_s17  ;;  %17493 = vst [vmem:[#allocation83_spill] sm:$0xff] %v11532_v15  ;;  %v11553_v17 = vsel %vm1906_vm1, %v1833_v48, %v11435_v59 }
 0x19c   : > { %v11454_v8 = vpop.permute.xlu1 %1619  ;;  %17496 = vst [vmem:[#allocation86_spill] sm:$0xff] %v11553_v17 }
 0x19d   : > { %v1618_v30 = vpop.permute.xlu0 %1617 }
 0x19e   : > { %2201 = vrot.lane.b32.xlu1 %v11460_v22, %s10133_s17  ;;  %v11549_v26 = vsel %vm1906_vm1, %v1836_v43, %v1618_v30  ;;  %v9930_v30 = vld [vmem:[%s10164_s14 + $0x1c8] sm:$0xf]  ;;  %v17497_v43 = vld [vmem:[#allocation62_spill] sm:$0xff] }
 0x19f   : > { %2199 = vrot.lane.b32.xlu0 %v11464_v19, %s10133_s17  ;;  %17495 = vst [vmem:[#allocation85_spill] sm:$0xff] %v11549_v26  ;;  %v1839_v56 = vsel %vm1665_vm0, %v9930_v30, %v17497_v43  ;;  %v1854_v30 = vsel %vm1665_vm0, %v9931_v5, %v17499_v31  ;;  %v9933_v5 = vld [vmem:[%s10164_s14 + $0x200] sm:$0xf]  ;;  %v17504_v31 = vld [vmem:[#allocation8_spill] sm:$0xff] }
 0x1a0   : > { %v11473_v45 = vpop.permute.xlu1 %1623  ;;  %v11572_v0 = vsel %vm1906_vm1, %v1839_v56, %v11454_v8 }
 0x1a1   : > { %v1622_v18 = vpop.permute.xlu0 %1621  ;;  %17498 = vst [vmem:[#allocation62_spill] sm:$0xff] %v11572_v0 }
 0x1a2   : > { %2205 = vrot.lane.b32.xlu1 %v11479_v16, %s10133_s17  ;;  %v11568_v59 = vsel %vm1906_vm1, %v1842_v2, %v1622_v18  ;;  %v17500_v18 = vld [vmem:[#allocation3_spill] sm:$0xff] }
 0x1a3   : > { %2203 = vrot.lane.b32.xlu0 %v11483_v7, %s10133_s17  ;;  %v1851_v2 = vsel %vm1665_vm0, %v9932_v54, %v17500_v18  ;;  %v1860_v54 = vsel %vm1665_vm0, %v9933_v5, %v17504_v31  ;;  %v9935_v5 = vld [vmem:[%s10164_s14 + $0x210] sm:$0xf]  ;;  %v17508_v31 = vld [vmem:[#allocation10_spill] sm:$0xff] }
 0x1a4   : > { %v1628_v51 = vpop.permute.xlu1 %1627 }
 0x1a5   : > { %v11498_v44 = vpop.permute.xlu0 %1625 }
 0x1a6   : > { %17489 = vst [vmem:[#allocation79_spill] sm:$0xff] %v11498_v44  ;;  %2209 = vrot.lane.b32.xlu1 %v11496_v14, %s10133_s17  ;;  %v11590_v44 = vsel %vm1906_vm1, %v1851_v2, %v1628_v51 }
 0x1a7   : > { %2207 = vrot.lane.b32.xlu0 %v11502_v25, %s10133_s17  ;;  %17503 = vst [vmem:[#allocation87_spill] sm:$0xff] %v11590_v44 }
 0x1a8   : > { %v1632_v4 = vpop.permute.xlu1 %1631 }
 0x1a9   : > { %v1630_v12 = vpop.permute.xlu0 %1629 }
 0x1aa   : > { %2213 = vrot.lane.b32.xlu1 %v11515_v35, %s10133_s17  ;;  %v11585_v8 = vsel %vm1906_vm1, %v1854_v30, %v1630_v12  ;;  %v17505_v12 = vld [vmem:[#allocation5_spill] sm:$0xff] }
 0x1ab   : > { %2211 = vrot.lane.b32.xlu0 %v11519_v27, %s10133_s17  ;;  %17501 = vst [vmem:[#allocation6_spill] sm:$0xff] %v11585_v8  ;;  %v9934_v27 = vld [vmem:[%s10164_s14 + $0x1f8] sm:$0xf] }
 0x1ac   : > { %v1636_v21 = vpop.permute.xlu1 %1635  ;;  %v1857_v30 = vsel %vm1665_vm0, %v9934_v27, %v17505_v12  ;;  %v9936_v12 = vld [vmem:[%s10164_s14 + $0x208] sm:$0xf] }
 0x1ad   : > { %v1634_v63 = vpop.permute.xlu0 %1633  ;;  %v11606_v61 = vsel %vm1906_vm1, %v1857_v30, %v1632_v4 }
 0x1ae   : > { %2217 = vrot.lane.b32.xlu1 %v11532_v15, %s10133_s17  ;;  %v11603_v51 = vsel %vm1906_vm1, %v1860_v54, %v1634_v63  ;;  %17507 = vst [vmem:[#allocation5_spill] sm:$0xff] %v11606_v61 }
 0x1af   : > { %2215 = vrot.lane.b32.xlu0 %v11536_v50, %s10133_s17  ;;  %17506 = vst [vmem:[#allocation8_spill] sm:$0xff] %v11603_v51 }
 0x1b0   : > { %v1640_v55 = vpop.permute.xlu1 %1639 }
 0x1b1   : > { %v1638_v33 = vpop.permute.xlu0 %1637 }
 0x1b2   : > { %2221 = vrot.lane.b32.xlu1 %v11549_v26, %s10133_s17 }
 0x1b3   : > { %2219 = vrot.lane.b32.xlu0 %v11553_v17, %s10133_s17 }
 0x1b4   : > { %v11562_v10 = vpop.permute.xlu1 %1643 }
 0x1b5   : > { %v1642_v48 = vpop.permute.xlu0 %1641 }
 0x1b6   : > { %2225 = vrot.lane.b32.xlu1 %v11568_v59, %s10133_s17 }
 0x1b7   : > { %2223 = vrot.lane.b32.xlu0 %v11572_v0, %s10133_s17 }
 0x1b8   : > { %v1648_v43 = vpop.permute.xlu1 %1647 }
 0x1b9   : > { %v11587_v56 = vpop.permute.xlu0 %1645 }
 0x1ba   : > { %17502 = vst [vmem:[#allocation3_spill] sm:$0xff] %v11587_v56  ;;  %2229 = vrot.lane.b32.xlu1 %v11585_v8, %s10133_s17  ;;  %v17509_v56 = vld [vmem:[#allocation7_spill] sm:$0xff] }
 0x1bb   : > { %2227 = vrot.lane.b32.xlu0 %v11590_v44, %s10133_s17  ;;  %v1866_v44 = vsel %vm1665_vm0, %v9935_v5, %v17508_v31  ;;  %v1863_v63 = vsel %vm1665_vm0, %v9936_v12, %v17509_v56  ;;  %v9937_v5 = vld [vmem:[%s10164_s14 + $0x220] sm:$0xf]  ;;  %v17512_v31 = vld [vmem:[#allocation12_spill] sm:$0xff]  ;;  %v9938_v12 = vld [vmem:[%s10164_s14 + $0x218] sm:$0xf] }
 0x1bc   : > { %v1652_v18 = vpop.permute.xlu1 %1651  ;;  %v11619_v4 = vsel %vm1906_vm1, %v1866_v44, %v1638_v33  ;;  %v11622_v30 = vsel %vm1906_vm1, %v1863_v63, %v1636_v21  ;;  %v1872_v40 = vsel %vm1665_vm0, %v9937_v5, %v17512_v31  ;;  %v1869_v44 = vsel %vm1665_vm0, %v9938_v12, %v17513_v24  ;;  %v9939_v5 = vld [vmem:[%s10164_s14 + $0x240] sm:$0xf]  ;;  %v17516_v31 = vld [vmem:[#allocation16_spill] sm:$0xff]  ;;  %v9940_v12 = vld [vmem:[%s10164_s14 + $0x238] sm:$0xf] }
 0x1bd   : > { %v1650_v2 = vpop.permute.xlu0 %1649  ;;  %17510 = vst [vmem:[#allocation10_spill] sm:$0xff] %v11619_v4  ;;  %17511 = vst [vmem:[#allocation7_spill] sm:$0xff] %v11622_v30  ;;  %v11635_v21 = vsel %vm1906_vm1, %v1872_v40, %v1642_v48  ;;  %v11638_v63 = vsel %vm1906_vm1, %v1869_v44, %v1640_v55  ;;  %v1884_v46 = vsel %vm1665_vm0, %v9939_v5, %v17516_v31  ;;  %v17518_v40 = vld [vmem:[#allocation13_spill] sm:$0xff]  ;;  %v9941_v5 = vld [vmem:[%s10164_s14 + $0x250] sm:$0xf] }
 0x1be   : > { %2233 = vrot.lane.b32.xlu1 %v11603_v51, %s10133_s17  ;;  %17514 = vst [vmem:[#allocation12_spill] sm:$0xff] %v11635_v21  ;;  %17515 = vst [vmem:[#allocation9_spill] sm:$0xff] %v11638_v63  ;;  %v1881_v48 = vsel %vm1665_vm0, %v9940_v12, %v17518_v40  ;;  %v11653_v55 = vsel %vm1906_vm1, %v1884_v46, %v1650_v2  ;;  %v17521_v31 = vld [vmem:[#allocation18_spill] sm:$0xff]  ;;  %v9942_v40 = vld [vmem:[%s10164_s14 + $0x248] sm:$0xf] }
 0x1bf   : > { %2231 = vrot.lane.b32.xlu0 %v11606_v61, %s10133_s17  ;;  %17519 = vst [vmem:[#allocation13_spill] sm:$0xff] %v11653_v55  ;;  %v17523_v46 = vld [vmem:[#allocation15_spill] sm:$0xff] }
 0x1c0   : > { %v1656_v27 = vpop.permute.xlu1 %1655  ;;  %v1887_v2 = vsel %vm1665_vm0, %v9942_v40, %v17523_v46 }
 0x1c1   : > { %v1654_v54 = vpop.permute.xlu0 %1653 }
 0x1c2   : > { %2237 = vrot.lane.b32.xlu1 %v11619_v4, %s10133_s17 }
 0x1c3   : > { %2235 = vrot.lane.b32.xlu0 %v11622_v30, %s10133_s17 }
 0x1c4   : > { %v1660_v56 = vpop.permute.xlu1 %1659 }
 0x1c5   : > { %v1658_v33 = vpop.permute.xlu0 %1657 }
 0x1c6   : > { %2241 = vrot.lane.b32.xlu1 %v11635_v21, %s10133_s17  ;;  %v11656_v21 = vsel %vm1906_vm1, %v1881_v48, %v1648_v43 }
 0x1c7   : > { %2239 = vrot.lane.b32.xlu0 %v11638_v63, %s10133_s17  ;;  %17520 = vst [vmem:[#allocation88_spill] sm:$0xff] %v11656_v21 }
 0x1c8   : > { %v11647_v24 = vpop.permute.xlu1 %1663 }
 0x1c9   : > { %17517 = vst [vmem:[#allocation16_spill] sm:$0xff] %v11647_v24  ;;  %v1662_v44 = vpop.permute.xlu0 %1661  ;;  %v1890_v24 = vsel %vm1665_vm0, %v9941_v5, %v17521_v31  ;;  %v9943_v5 = vld [vmem:[%s10164_s14 + $0x260] sm:$0xf]  ;;  %v17527_v31 = vld [vmem:[#allocation20_spill] sm:$0xff] }
 0x1ca   : > { %2245 = vrot.lane.b32.xlu1 %v11653_v55, %s10133_s17  ;;  %v11671_v43 = vsel %vm1906_vm1, %v1890_v24, %v1654_v54  ;;  %v11676_v55 = vsel %vm1906_vm1, %v1887_v2, %v1652_v18  ;;  %v1896_v40 = vsel %vm1665_vm0, %v9943_v5, %v17527_v31  ;;  %v9944_v54 = vld [vmem:[%s10164_s14 + $0x258] sm:$0xf]  ;;  %v9945_v5 = vld [vmem:[%s10164_s14 + $0x270] sm:$0xf]  ;;  %v17533_v31 = vld [vmem:[#allocation22_spill] sm:$0xff] }
 0x1cb   : > { %2243 = vrot.lane.b32.xlu0 %v11656_v21, %s10133_s17  ;;  %17524 = vst [vmem:[#allocation15_spill] sm:$0xff] %v11671_v43  ;;  %17526 = vst [vmem:[#allocation90_spill] sm:$0xff] %v11676_v55  ;;  %v17529_v24 = vld [vmem:[#allocation17_spill] sm:$0xff]  ;;  %v11691_v18 = vsel %vm1906_vm1, %v1896_v40, %v1658_v33  ;;  %v17535_v33 = vld [vmem:[#allocation19_spill] sm:$0xff] }
 0x1cc   : > { %v11665_v12 = vpop.permute.xlu1 %2133  ;;  %v1893_v21 = vsel %vm1665_vm0, %v9944_v54, %v17529_v24  ;;  %17530 = vst [vmem:[#allocation17_spill] sm:$0xff] %v11691_v18  ;;  %v9946_v54 = vld [vmem:[%s10164_s14 + $0x268] sm:$0xf] }
 0x1cd   : > { %17522 = vst [vmem:[#allocation18_spill] sm:$0xff] %v11665_v12  ;;  %v11673_v48 = vpop.permute.xlu0 %2131  ;;  %v1902_v12 = vsel %vm1665_vm0, %v9945_v5, %v17533_v31  ;;  %v1899_v40 = vsel %vm1665_vm0, %v9946_v54, %v17535_v33  ;;  %v17544_v33 = vld [vmem:[#allocation30_spill] sm:$0xff] }
 0x1ce   : > { %17525 = vst [vmem:[#allocation89_spill] sm:$0xff] %v11673_v48  ;;  %2249 = vrot.lane.b32.xlu1 %v11671_v43, %s10133_s17  ;;  %v11696_v48 = vsel %vm1906_vm1, %v1893_v21, %v1656_v27  ;;  %v11711_v24 = vsel %vm1906_vm1, %v1902_v12, %v1662_v44  ;;  %v11716_v21 = vsel %vm1906_vm1, %v1899_v40, %v1660_v56  ;;  %v17540_v44 = vld [vmem:[#allocation31_spill] sm:$0xff]  ;;  %v17541_v12 = vld [vmem:[#allocation28_spill] sm:$0xff] }
 0x1cf   : > { %2247 = vrot.lane.b32.xlu0 %v11676_v55, %s10133_s17  ;;  %17532 = vst [vmem:[#allocation92_spill] sm:$0xff] %v11696_v48  ;;  %17537 = vst [vmem:[#allocation93_spill] sm:$0xff] %v11716_v21 }
 0x1d0   : > { %v11685_v46 = vpop.permute.xlu1 %2137 }
 0x1d1   : > { %17528 = vst [vmem:[#allocation20_spill] sm:$0xff] %v11685_v46  ;;  %v11693_v2 = vpop.permute.xlu0 %2135 }
 0x1d2   : > { %17531 = vst [vmem:[#allocation91_spill] sm:$0xff] %v11693_v2  ;;  %2253 = vrot.lane.b32.xlu1 %v11691_v18, %s10133_s17 }
 0x1d3   : > { %2251 = vrot.lane.b32.xlu0 %v11696_v48, %s10133_s17 }
 0x1d4   : > { %v11705_v46 = vpop.permute.xlu1 %2141 }
 0x1d5   : > { %17534 = vst [vmem:[#allocation22_spill] sm:$0xff] %v11705_v46  ;;  %v11713_v27 = vpop.permute.xlu0 %2139 }
 0x1d6   : > { %17536 = vst [vmem:[#allocation19_spill] sm:$0xff] %v11713_v27  ;;  %2257 = vrot.lane.b32.xlu1 %v11711_v24, %s10133_s17 }
 0x1d7   : > { %2255 = vrot.lane.b32.xlu0 %v11716_v21, %s10133_s17 }
 0x1d8   : > { %v11722_v5 = vpop.permute.xlu1 %2145 }
 0x1d9   : > { %17538 = vst [vmem:[#allocation94_spill] sm:$0xff] %v11722_v5  ;;  %v11724_v31 = vpop.permute.xlu0 %2143  ;;  %v17550_v5 = vld [vmem:[#allocation24_spill] sm:$0xff] }
 0x1da   : > { %17539 = vst [vmem:[#allocation95_spill] sm:$0xff] %v11724_v31  ;;  %2269 = vrot.lane.b32.xlu1 %v17540_v44, %s10134_s18  ;;  %v17547_v44 = vld [vmem:[#allocation34_spill] sm:$0xff] }
 0x1db   : > { %2267 = vrot.lane.b32.xlu0 %v17541_v12, %s10134_s18  ;;  %v9947_v12 = vld [vmem:[%s10164_s14 + $0x48] sm:$0xf] }
 0x1dc   : > { %v11730_v56 = vpop.permute.xlu1 %2149 }
 0x1dd   : > { %17542 = vst [vmem:[#allocation96_spill] sm:$0xff] %v11730_v56  ;;  %v11732_v54 = vpop.permute.xlu0 %2147  ;;  %v17548_v56 = vld [vmem:[#allocation47_spill] sm:$0xff] }
 0x1de   : > { %17543 = vst [vmem:[#allocation97_spill] sm:$0xff] %v11732_v54  ;;  %2273 = vrot.lane.b32.xlu1 %v11150_v36, %s10134_s18  ;;  %v1695_v54 = vsel %vm1665_vm0, %v9947_v12, %v17548_v56  ;;  %v9948_v56 = vld [vmem:[%s10164_s14 + $0x98] sm:$0xf] }
 0x1df   : > { %2271 = vrot.lane.b32.xlu0 %v17544_v33, %s10134_s18  ;;  %v1926_v27 = vsel %vm1906_vm1, %v1695_v54, %v17550_v5  ;;  %v17559_v54 = vld [vmem:[#allocation54_spill] sm:$0xff]  ;;  %v8965_v36 = vld [vmem:[%s10164_s14 + $0x1b8] sm:$0xf] }
 0x1e0   : > { %v11738_v40 = vpop.permute.xlu1 %2153 }
 0x1e1   : > { %17545 = vst [vmem:[#allocation98_spill] sm:$0xff] %v11738_v40  ;;  %v11740_v2 = vpop.permute.xlu0 %2151 }
 0x1e2   : > { %17546 = vst [vmem:[#allocation99_spill] sm:$0xff] %v11740_v2  ;;  %2277 = vrot.lane.b32.xlu1 %v11172_v52, %s10134_s18  ;;  %v17552_v2 = vld [vmem:[#allocation41_spill] sm:$0xff] }
 0x1e3   : > { %2275 = vrot.lane.b32.xlu0 %v17547_v44, %s10134_s18 }
 0x1e4   : > { %v11749_v31 = vpop.permute.xlu1 %2157 }
 0x1e5   : > { %17549 = vst [vmem:[#allocation47_spill] sm:$0xff] %v11749_v31  ;;  %v11753_v33 = vpop.permute.xlu0 %2155  ;;  %v8951_v31 = vld [vmem:[%s10164_s14 + $0x180] sm:$0xf] }
 0x1e6   : > { %17551 = vst [vmem:[#allocation24_spill] sm:$0xff] %v11753_v33  ;;  %2281 = vrot.lane.b32.xlu1 %v1926_v27, %s10134_s18  ;;  %v8949_v33 = vld [vmem:[%s10164_s14 + $0x178] sm:$0xf] }
 0x1e7   : > { %2279 = vrot.lane.b32.xlu0 %v17552_v2, %s10134_s18 }
 0x1e8   : > { %v11758_v40 = vpop.permute.xlu1 %2161 }
 0x1e9   : > { %17553 = vst [vmem:[#allocation41_spill] sm:$0xff] %v11758_v40  ;;  %v11760_v44 = vpop.permute.xlu0 %2159 }
 0x1ea   : > { %17554 = vst [vmem:[#allocation100_spill] sm:$0xff] %v11760_v44  ;;  %2285 = vrot.lane.b32.xlu1 %v11216_v13, %s10134_s18  ;;  %v17561_v44 = vld [vmem:[#allocation26_spill] sm:$0xff] }
 0x1eb   : > { %2283 = vrot.lane.b32.xlu0 %v11188_v39, %s10134_s18 }
 0x1ec   : > { %v11766_v12 = vpop.permute.xlu1 %2165 }
 0x1ed   : > { %17555 = vst [vmem:[#allocation101_spill] sm:$0xff] %v11766_v12  ;;  %v11768_v5 = vpop.permute.xlu0 %2163 }
 0x1ee   : > { %17556 = vst [vmem:[#allocation102_spill] sm:$0xff] %v11768_v5  ;;  %2289 = vrot.lane.b32.xlu1 %v11238_v3, %s10134_s18  ;;  %v1725_v5 = vsel %vm1665_vm0, %v9948_v56, %v17559_v54  ;;  %v17569_v54 = vld [vmem:[#allocation56_spill] sm:$0xff]  ;;  %v8950_v3 = vld [vmem:[%s10164_s14 + $0x17c] sm:$0x1] }
 0x1ef   : > { %2287 = vrot.lane.b32.xlu0 %v11210_v62, %s10134_s18  ;;  %v1946_v40 = vsel %vm1906_vm1, %v1725_v5, %v17561_v44  ;;  %v9949_v5 = vld [vmem:[%s10164_s14 + $0xe8] sm:$0xf] }
 0x1f0   : > { %v11774_v2 = vpop.permute.xlu1 %2169 }
 0x1f1   : > { %17557 = vst [vmem:[#allocation103_spill] sm:$0xff] %v11774_v2  ;;  %v11776_v27 = vpop.permute.xlu0 %2167 }
 0x1f2   : > { %17558 = vst [vmem:[#allocation104_spill] sm:$0xff] %v11776_v27  ;;  %2293 = vrot.lane.b32.xlu1 %v11260_v49, %s10134_s18 }
 0x1f3   : > { %2291 = vrot.lane.b32.xlu0 %v11232_v37, %s10134_s18 }
 0x1f4   : > { %v11785_v12 = vpop.permute.xlu1 %2173 }
 0x1f5   : > { %17560 = vst [vmem:[#allocation54_spill] sm:$0xff] %v11785_v12  ;;  %v11789_v62 = vpop.permute.xlu0 %2171  ;;  %v8946_v12 = vld [vmem:[%s10164_s14 + $0x16c] sm:$0x1] }
 0x1f6   : > { %17562 = vst [vmem:[#allocation26_spill] sm:$0xff] %v11789_v62  ;;  %2297 = vrot.lane.b32.xlu1 %v1946_v40, %s10134_s18 }
 0x1f7   : > { %2295 = vrot.lane.b32.xlu0 %v11254_v41, %s10134_s18 }
 0x1f8   : > { %v11794_v27 = vpop.permute.xlu1 %2177 }
 0x1f9   : > { %17563 = vst [vmem:[#allocation105_spill] sm:$0xff] %v11794_v27  ;;  %v11796_v2 = vpop.permute.xlu0 %2175 }
 0x1fa   : > { %17564 = vst [vmem:[#allocation106_spill] sm:$0xff] %v11796_v2  ;;  %2301 = vrot.lane.b32.xlu1 %v11304_v42, %s10134_s18 }
 0x1fb   : > { %2299 = vrot.lane.b32.xlu0 %v11276_v23, %s10134_s18  ;;  %v1755_v23 = vsel %vm1665_vm0, %v9949_v5, %v17569_v54  ;;  %v17579_v54 = vld [vmem:[#allocation58_spill] sm:$0xff] }
 0x1fc   : > { %v11802_v56 = vpop.permute.xlu1 %2181 }
 0x1fd   : > { %17565 = vst [vmem:[#allocation107_spill] sm:$0xff] %v11802_v56  ;;  %v11804_v44 = vpop.permute.xlu0 %2179 }
 0x1fe   : > { %17566 = vst [vmem:[#allocation108_spill] sm:$0xff] %v11804_v44  ;;  %2305 = vrot.lane.b32.xlu1 %v11324_v6, %s10134_s18  ;;  %v17571_v44 = vld [vmem:[#allocation38_spill] sm:$0xff] }
 0x1ff   : > { %2303 = vrot.lane.b32.xlu0 %v11298_v28, %s10134_s18  ;;  %v1966_v56 = vsel %vm1906_vm1, %v1755_v23, %v17571_v44  ;;  %v9950_v44 = vld [vmem:[%s10164_s14 + $0x138] sm:$0xf] }
 0x200   : > { %v11810_v41 = vpop.permute.xlu1 %2185 }
 0x201   : > { %17567 = vst [vmem:[#allocation109_spill] sm:$0xff] %v11810_v41  ;;  %v11812_v40 = vpop.permute.xlu0 %2183 }
 0x202   : > { %17568 = vst [vmem:[#allocation110_spill] sm:$0xff] %v11812_v40  ;;  %2309 = vrot.lane.b32.xlu1 %v11344_v58, %s10134_s18  ;;  %v8937_v58 = vld [vmem:[%s10164_s14 + $0x148] sm:$0xf] }
 0x203   : > { %2307 = vrot.lane.b32.xlu0 %v11320_v20, %s10134_s18 }
 0x204   : > { %v11821_v42 = vpop.permute.xlu1 %2189 }
 0x205   : > { %17570 = vst [vmem:[#allocation56_spill] sm:$0xff] %v11821_v42  ;;  %v11825_v2 = vpop.permute.xlu0 %2187  ;;  %v8923_v42 = vld [vmem:[%s10164_s14 + $0x110] sm:$0xf] }
 0x206   : > { %17572 = vst [vmem:[#allocation38_spill] sm:$0xff] %v11825_v2  ;;  %2313 = vrot.lane.b32.xlu1 %v1966_v56, %s10134_s18  ;;  %v8921_v2 = vld [vmem:[%s10164_s14 + $0x108] sm:$0xf] }
 0x207   : > { %2311 = vrot.lane.b32.xlu0 %v11340_v57, %s10134_s18 }
 0x208   : > { %v11830_v40 = vpop.permute.xlu1 %2193 }
 0x209   : > { %17573 = vst [vmem:[#allocation111_spill] sm:$0xff] %v11830_v40  ;;  %v11832_v41 = vpop.permute.xlu0 %2191 }
 0x20a   : > { %17574 = vst [vmem:[#allocation112_spill] sm:$0xff] %v11832_v41  ;;  %2317 = vrot.lane.b32.xlu1 %v11384_v32, %s10134_s18 }
 0x20b   : > { %2315 = vrot.lane.b32.xlu0 %v11360_v34, %s10134_s18 }
 0x20c   : > { %v11838_v5 = vpop.permute.xlu1 %2197 }
 0x20d   : > { %17575 = vst [vmem:[#allocation113_spill] sm:$0xff] %v11838_v5  ;;  %v11840_v23 = vpop.permute.xlu0 %2195 }
 0x20e   : > { %17576 = vst [vmem:[#allocation114_spill] sm:$0xff] %v11840_v23  ;;  %2321 = vrot.lane.b32.xlu1 %v11406_v53, %s10134_s18  ;;  %v1785_v23 = vsel %vm1665_vm0, %v9950_v44, %v17579_v54  ;;  %v17588_v54 = vld [vmem:[#allocation60_spill] sm:$0xff]  ;;  %v8922_v53 = vld [vmem:[%s10164_s14 + $0x10c] sm:$0x1] }
 0x20f   : > { %2319 = vrot.lane.b32.xlu0 %v11380_v29, %s10134_s18  ;;  %v1986_v41 = vsel %vm1906_vm1, %v1785_v23, %v11269_v47  ;;  %v9951_v23 = vld [vmem:[%s10164_s14 + $0x188] sm:$0xf] }
 0x210   : > { %v11846_v57 = vpop.permute.xlu1 %2201 }
 0x211   : > { %17577 = vst [vmem:[#allocation115_spill] sm:$0xff] %v11846_v57  ;;  %v11848_v56 = vpop.permute.xlu0 %2199 }
 0x212   : > { %17578 = vst [vmem:[#allocation116_spill] sm:$0xff] %v11848_v56  ;;  %2325 = vrot.lane.b32.xlu1 %v11426_v38, %s10134_s18 }
 0x213   : > { %2323 = vrot.lane.b32.xlu0 %v11400_v1, %s10134_s18 }
 0x214   : > { %v11857_v5 = vpop.permute.xlu1 %2205 }
 0x215   : > { %17580 = vst [vmem:[#allocation58_spill] sm:$0xff] %v11857_v5  ;;  %v11861_v40 = vpop.permute.xlu0 %2203 }
 0x216   : > { %17581 = vst [vmem:[#allocation117_spill] sm:$0xff] %v11861_v40  ;;  %2329 = vrot.lane.b32.xlu1 %v1986_v41, %s10134_s18 }
 0x217   : > { %2327 = vrot.lane.b32.xlu0 %v11422_v9, %s10134_s18 }
 0x218   : > { %v11866_v56 = vpop.permute.xlu1 %2209 }
 0x219   : > { %17582 = vst [vmem:[#allocation118_spill] sm:$0xff] %v11866_v56  ;;  %v11868_v57 = vpop.permute.xlu0 %2207 }
 0x21a   : > { %17583 = vst [vmem:[#allocation119_spill] sm:$0xff] %v11868_v57  ;;  %2333 = vrot.lane.b32.xlu1 %v11464_v19, %s10134_s18 }
 0x21b   : > { %2331 = vrot.lane.b32.xlu0 %v11441_v60, %s10134_s18  ;;  %v1815_v60 = vsel %vm1665_vm0, %v9951_v23, %v17588_v54  ;;  %v17597_v54 = vld [vmem:[#allocation2_spill] sm:$0xff] }
 0x21c   : > { %v11874_v44 = vpop.permute.xlu1 %2213  ;;  %v2006_v40 = vsel %vm1906_vm1, %v1815_v60, %v11373_v11 }
 0x21d   : > { %17584 = vst [vmem:[#allocation120_spill] sm:$0xff] %v11874_v44  ;;  %v11876_v47 = vpop.permute.xlu0 %2211 }
 0x21e   : > { %17585 = vst [vmem:[#allocation121_spill] sm:$0xff] %v11876_v47  ;;  %2337 = vrot.lane.b32.xlu1 %v11483_v7, %s10134_s18  ;;  %v8880_v47 = vld [vmem:[%s10164_s14 + $0x64] sm:$0x1] }
 0x21f   : > { %2335 = vrot.lane.b32.xlu0 %v11460_v22, %s10134_s18 }
 0x220   : > { %v11882_v9 = vpop.permute.xlu1 %2217 }
 0x221   : > { %17586 = vst [vmem:[#allocation122_spill] sm:$0xff] %v11882_v9  ;;  %v11884_v41 = vpop.permute.xlu0 %2215 }
 0x222   : > { %17587 = vst [vmem:[#allocation123_spill] sm:$0xff] %v11884_v41  ;;  %2341 = vrot.lane.b32.xlu1 %v11502_v25, %s10134_s18  ;;  %v8878_v25 = vld [vmem:[%s10164_s14 + $0x5c] sm:$0x1] }
 0x223   : > { %2339 = vrot.lane.b32.xlu0 %v11479_v16, %s10134_s18 }
 0x224   : > { %v11893_v19 = vpop.permute.xlu1 %2221 }
 0x225   : > { %17589 = vst [vmem:[#allocation60_spill] sm:$0xff] %v11893_v19  ;;  %v11897_v22 = vpop.permute.xlu0 %2219  ;;  %v17617_v19 = vld [vmem:[#allocation21_spill] sm:$0xff] }
 0x226   : > { %17590 = vst [vmem:[#allocation124_spill] sm:$0xff] %v11897_v22  ;;  %2345 = vrot.lane.b32.xlu1 %v2006_v40, %s10134_s18  ;;  %v9952_v40 = vld [vmem:[%s10164_s14 + $0x1d8] sm:$0xf] }
 0x227   : > { %2343 = vrot.lane.b32.xlu0 %v11496_v14, %s10134_s18 }
 0x228   : > { %v11902_v7 = vpop.permute.xlu1 %2225 }
 0x229   : > { %17591 = vst [vmem:[#allocation125_spill] sm:$0xff] %v11902_v7  ;;  %v11904_v5 = vpop.permute.xlu0 %2223  ;;  %v8893_v7 = vld [vmem:[%s10164_s14 + $0x98] sm:$0xf] }
 0x22a   : > { %17592 = vst [vmem:[#allocation126_spill] sm:$0xff] %v11904_v5  ;;  %2349 = vrot.lane.b32.xlu1 %v11536_v50, %s10134_s18 }
 0x22b   : > { %2347 = vrot.lane.b32.xlu0 %v11515_v35, %s10134_s18 }
 0x22c   : > { %v11910_v23 = vpop.permute.xlu1 %2229 }
 0x22d   : > { %17593 = vst [vmem:[#allocation127_spill] sm:$0xff] %v11910_v23  ;;  %v11912_v11 = vpop.permute.xlu0 %2227 }
 0x22e   : > { %17594 = vst [vmem:[#allocation128_spill] sm:$0xff] %v11912_v11  ;;  %2353 = vrot.lane.b32.xlu1 %v11553_v17, %s10134_s18  ;;  %v1845_v11 = vsel %vm1665_vm0, %v9952_v40, %v17597_v54  ;;  %v9953_v40 = vld [vmem:[%s10164_s14 + $0x228] sm:$0xf]  ;;  %v9954_v17 = vld [vmem:[%s10164_s14 + $0x278] sm:$0xf] }
 0x22f   : > { %2351 = vrot.lane.b32.xlu0 %v11532_v15, %s10134_s18  ;;  %v2026_v16 = vsel %vm1906_vm1, %v1845_v11, %v11473_v45  ;;  %v17606_v54 = vld [vmem:[#allocation11_spill] sm:$0xff] }
 0x230   : > { %v11918_v60 = vpop.permute.xlu1 %2233 }
 0x231   : > { %17595 = vst [vmem:[#allocation129_spill] sm:$0xff] %v11918_v60  ;;  %v11920_v14 = vpop.permute.xlu0 %2231 }
 0x232   : > { %17596 = vst [vmem:[#allocation130_spill] sm:$0xff] %v11920_v14  ;;  %2357 = vrot.lane.b32.xlu1 %v11572_v0, %s10134_s18 }
 0x233   : > { %2355 = vrot.lane.b32.xlu0 %v11549_v26, %s10134_s18 }
 0x234   : > { %v11929_v23 = vpop.permute.xlu1 %2237 }
 0x235   : > { %17598 = vst [vmem:[#allocation2_spill] sm:$0xff] %v11929_v23  ;;  %v11933_v57 = vpop.permute.xlu0 %2235  ;;  %v8877_v23 = vld [vmem:[%s10164_s14 + $0x58] sm:$0xf] }
 0x236   : > { %17599 = vst [vmem:[#allocation131_spill] sm:$0xff] %v11933_v57  ;;  %2361 = vrot.lane.b32.xlu1 %v2026_v16, %s10134_s18 }
 0x237   : > { %2359 = vrot.lane.b32.xlu0 %v11568_v59, %s10134_s18 }
 0x238   : > { %v11938_v14 = vpop.permute.xlu1 %2241 }
 0x239   : > { %17600 = vst [vmem:[#allocation132_spill] sm:$0xff] %v11938_v14  ;;  %v11940_v60 = vpop.permute.xlu0 %2239  ;;  %v8879_v14 = vld [vmem:[%s10164_s14 + $0x60] sm:$0xf] }
 0x23a   : > { %17601 = vst [vmem:[#allocation133_spill] sm:$0xff] %v11940_v60  ;;  %2365 = vrot.lane.b32.xlu1 %v11606_v61, %s10134_s18  ;;  %v17612_v60 = vld [vmem:[#allocation13_spill] sm:$0xff] }
 0x23b   : > { %2363 = vrot.lane.b32.xlu0 %v11585_v8, %s10134_s18  ;;  %v1875_v8 = vsel %vm1665_vm0, %v9953_v40, %v17606_v54  ;;  %v8876_v40 = vld [vmem:[%s10164_s14 + $0x54] sm:$0x1] }
 0x23c   : > { %v11946_v45 = vpop.permute.xlu1 %2245 }
 0x23d   : > { %17602 = vst [vmem:[#allocation134_spill] sm:$0xff] %v11946_v45  ;;  %v11948_v11 = vpop.permute.xlu0 %2243  ;;  %v8886_v45 = vld [vmem:[%s10164_s14 + $0x7c] sm:$0x1] }
 0x23e   : > { %17603 = vst [vmem:[#allocation135_spill] sm:$0xff] %v11948_v11  ;;  %2369 = vrot.lane.b32.xlu1 %v11622_v30, %s10134_s18  ;;  %v17609_v30 = vld [vmem:[#allocation12_spill] sm:$0xff] }
 0x23f   : > { %2367 = vrot.lane.b32.xlu0 %v11603_v51, %s10134_s18  ;;  %v2046_v51 = vsel %vm1906_vm1, %v1875_v8, %v11562_v10  ;;  %v11984_v10 = vcombine.low %v8877_v23, %v8878_v25  ;;  %v8881_v8 = vld [vmem:[%s10164_s14 + $0x68] sm:$0xf]  ;;  %v12006_v23 = vcombine.low %v8879_v14, %v8880_v47 }
 0x240   : > { %v11954_v16 = vpop.permute.xlu1 %2249 }
 0x241   : > { %17604 = vst [vmem:[#allocation136_spill] sm:$0xff] %v11954_v16  ;;  %v11956_v59 = vpop.permute.xlu0 %2247  ;;  %v3225_v25 = vshll.u32 %v11984_v10, 16  ;;  %v3223_v9 = vshrl.u32 %v11984_v10, 16  ;;  %v3232_v15 = vshll.u32 %v12006_v23, 16 }
 0x242   : > { %17605 = vst [vmem:[#allocation137_spill] sm:$0xff] %v11956_v59  ;;  %2373 = vrot.lane.b32.xlu1 %v11638_v63, %s10134_s18  ;;  %v8890_v59 = vld [vmem:[%s10164_s14 + $0x8c] sm:$0x1] }
 0x243   : > { %2371 = vrot.lane.b32.xlu0 %v11619_v4, %s10134_s18  ;;  %v8875_v4 = vld [vmem:[%s10164_s14 + $0x50] sm:$0xf]  ;;  %v3227_v47 = vrot.slane %v3225_v25, 1  ;;  %v8888_v25 = vld [vmem:[%s10164_s14 + $0x84] sm:$0x1] }
 0x244   : > { %v11965_v61 = vpop.permute.xlu1 %2253 }
 0x245   : > { %17607 = vst [vmem:[#allocation11_spill] sm:$0xff] %v11965_v61  ;;  %v11969_v57 = vpop.permute.xlu0 %2251 }
 0x246   : > { %17608 = vst [vmem:[#allocation138_spill] sm:$0xff] %v11969_v57  ;;  %2377 = vrot.lane.b32.xlu1 %v2046_v51, %s10134_s18  ;;  %v8882_v51 = vld [vmem:[%s10164_s14 + $0x6c] sm:$0x1] }
 0x247   : > { %2375 = vrot.lane.b32.xlu0 %v17609_v30, %s10134_s18  ;;  %v11990_v30 = vcombine.low %v8875_v4, %v8876_v40  ;;  %v11998_v11 = vcombine.low %v8881_v8, %v8882_v51  ;;  %v8885_v40 = vld [vmem:[%s10164_s14 + $0x78] sm:$0xf]  ;;  %v8883_v8 = vld [vmem:[%s10164_s14 + $0x70] sm:$0xf]  ;;  %v8884_v51 = vld [vmem:[%s10164_s14 + $0x74] sm:$0x1] }
 0x248   : > { %v11976_v56 = vpop.permute.xlu1 %2257  ;;  %v12020_v14 = vcombine.low %v8885_v40, %v8886_v45  ;;  %v12028_v22 = vcombine.low %v8883_v8, %v8884_v51  ;;  %v8887_v45 = vld [vmem:[%s10164_s14 + $0x80] sm:$0xf]  ;;  %v17619_v40 = vld [vmem:[#allocation16_spill] sm:$0xff] }
 0x249   : > { %17610 = vst [vmem:[#allocation12_spill] sm:$0xff] %v11976_v56  ;;  %v11980_v54 = vpop.permute.xlu0 %2255  ;;  %v3218_v4 = vshll.u32 %v11990_v30, 16  ;;  %v3239_v50 = vshll.u32 %v11998_v11, 16  ;;  %v12050_v0 = vcombine.low %v8887_v45, %v8888_v25  ;;  %v8895_v56 = vld [vmem:[%s10164_s14 + $0xa0] sm:$0xf] }
 0x24a   : > { %17611 = vst [vmem:[#allocation139_spill] sm:$0xff] %v11980_v54  ;;  %2381 = vrot.lane.b32.xlu1 %v11676_v55, %s10134_s18  ;;  %v3216_v55 = vshrl.u32 %v11990_v30, 16  ;;  %v3253_v26 = vshll.u32 %v12020_v14, 16  ;;  %v3246_v5 = vshll.u32 %v12028_v22, 16 }
 0x24b   : > { %2379 = vrot.lane.b32.xlu0 %v17612_v60, %s10134_s18  ;;  %v8889_v60 = vld [vmem:[%s10164_s14 + $0x88] sm:$0xf]  ;;  %v3220_v16 = vrot.slane %v3218_v4, 1  ;;  %v3237_v4 = vshrl.u32 %v11998_v11, 16  ;;  %v3241_v8 = vrot.slane %v3239_v50, 1  ;;  %v3260_v54 = vshll.u32 %v12050_v0, 16 }
 0x24c   : > { %v11992_v63 = vpop.permute.xlu1 %2269  ;;  %v12042_v51 = vcombine.low %v8889_v60, %v8890_v59  ;;  %v8894_v50 = vld [vmem:[%s10164_s14 + $0x9c] sm:$0x1] }
 0x24d   : > { %17613 = vst [vmem:[#allocation140_spill] sm:$0xff] %v11992_v63  ;;  %v11996_v44 = vpop.permute.xlu0 %2267  ;;  %v12064_v45 = vcombine.low %v8893_v7, %v8894_v50 }
 0x24e   : > { %17614 = vst [vmem:[#allocation141_spill] sm:$0xff] %v11996_v44  ;;  %2385 = vrot.lane.b32.xlu1 %v11696_v48, %s10134_s18  ;;  %v3265_v7 = vshrl.u32 %v12042_v51, 16 }
 0x24f   : > { %2383 = vrot.lane.b32.xlu0 %v11671_v43, %s10134_s18  ;;  %v1905_v43 = vsel %vm1665_vm0, %v9954_v17, %v17617_v19  ;;  %v3228_v19 = vor.u32 %v3227_v47, %v3223_v9  ;;  %v3230_v17 = vshrl.u32 %v12006_v23, 16  ;;  %v8892_v9 = vld [vmem:[%s10164_s14 + $0x94] sm:$0x1]  ;;  %v3242_v47 = vor.u32 %v3241_v8, %v3237_v4  ;;  %v8897_v8 = vld [vmem:[%s10164_s14 + $0xa8] sm:$0xf] }
 0x250   : > { %v12010_v35 = vpop.permute.xlu1 %2273  ;;  %v2066_v48 = vsel %vm1906_vm1, %v1905_v43, %v17619_v40  ;;  %v3221_v43 = vor.u32 %v3220_v16, %v3216_v55  ;;  %v3234_v40 = vrot.slane %v3232_v15, 1  ;;  %v3267_v55 = vshll.u32 %v12042_v51, 16 }
 0x251   : > { %17615 = vst [vmem:[#allocation142_spill] sm:$0xff] %v12010_v35  ;;  %v12014_v41 = vpop.permute.xlu0 %2271  ;;  %v3251_v15 = vshrl.u32 %v12020_v14, 16  ;;  %v3244_v16 = vshrl.u32 %v12028_v22, 16 }
 0x252   : > { %17616 = vst [vmem:[#allocation143_spill] sm:$0xff] %v12014_v41  ;;  %2389 = vrot.lane.b32.xlu1 %v11716_v21, %s10134_s18  ;;  %v3235_v25 = vor.u32 %v3234_v40, %v3230_v17  ;;  %v8898_v21 = vld [vmem:[%s10164_s14 + $0xac] sm:$0x1]  ;;  %v3269_v17 = vrot.slane %v3267_v55, 1  ;;  %v3281_v40 = vshll.u32 %v12064_v45, 16  ;;  %v3262_v41 = vrot.slane %v3260_v54, 1 }
 0x253   : > { %2387 = vrot.lane.b32.xlu0 %v11691_v18, %s10134_s18  ;;  %v3248_v18 = vrot.slane %v3246_v5, 1  ;;  %v12082_v50 = vcombine.low %v8897_v8, %v8898_v21  ;;  %v8899_v55 = vld [vmem:[%s10164_s14 + $0xb0] sm:$0xf]  ;;  %v3279_v8 = vshrl.u32 %v12064_v45, 16 }
 0x254   : > { %v12033_v57 = vpop.permute.xlu1 %2277  ;;  %v3270_v21 = vor.u32 %v3269_v17, %v3265_v7  ;;  %v8905_v17 = vld [vmem:[%s10164_s14 + $0xc8] sm:$0xf] }
 0x255   : > { %17618 = vst [vmem:[#allocation21_spill] sm:$0xff] %v12033_v57  ;;  %v12039_v61 = vpop.permute.xlu0 %2275  ;;  %v3249_v63 = vor.u32 %v3248_v18, %v3244_v16  ;;  %v3283_v18 = vrot.slane %v3281_v40, 1  ;;  %v3295_v54 = vshll.u32 %v12082_v50, 16  ;;  %v8904_v40 = vld [vmem:[%s10164_s14 + $0xc4] sm:$0x1] }
 0x256   : > { %17620 = vst [vmem:[#allocation16_spill] sm:$0xff] %v12039_v61  ;;  %2393 = vrot.lane.b32.xlu1 %v2066_v48, %s10134_s18  ;;  %v8891_v48 = vld [vmem:[%s10164_s14 + $0x90] sm:$0xf] }
 0x257   : > { %2391 = vrot.lane.b32.xlu0 %v11711_v24, %s10134_s18  ;;  %v3255_v24 = vrot.slane %v3253_v26, 1  ;;  %v12068_v4 = vcombine.low %v8891_v48, %v8892_v9  ;;  %v8896_v26 = vld [vmem:[%s10164_s14 + $0xa4] sm:$0x1]  ;;  %v8901_v48 = vld [vmem:[%s10164_s14 + $0xb8] sm:$0xf] }
 0x258   : > { %v12054_v60 = vpop.permute.xlu1 %2281  ;;  %v8902_v9 = vld [vmem:[%s10164_s14 + $0xbc] sm:$0x1]  ;;  %v12088_v61 = vcombine.low %v8895_v56, %v8896_v26 }
 0x259   : > { %17621 = vst [vmem:[#allocation144_spill] sm:$0xff] %v12054_v60  ;;  %v12058_v59 = vpop.permute.xlu0 %2279  ;;  %v3256_v5 = vor.u32 %v3255_v24, %v3251_v15  ;;  %v3274_v35 = vshll.u32 %v12068_v4, 16  ;;  %v3272_v56 = vshrl.u32 %v12068_v4, 16  ;;  %v8918_v60 = vld [vmem:[%s10164_s14 + $0xfc] sm:$0x1] }
 0x25a   : > { %17622 = vst [vmem:[#allocation145_spill] sm:$0xff] %v12058_v59  ;;  %3777 = vrot.lane.b32.xlu1 %v3228_v19, %s10131_s15  ;;  %v3288_v7 = vshll.u32 %v12088_v61, 16 }
 0x25b   : > { %3775 = vrot.lane.b32.xlu0 %v3221_v43, %s10131_s15  ;;  %v3258_v43 = vshrl.u32 %v12050_v0, 16  ;;  %v3276_v57 = vrot.slane %v3274_v35, 1  ;;  %v3284_v35 = vor.u32 %v3283_v18, %v3279_v8  ;;  %v8908_v8 = vld [vmem:[%s10164_s14 + $0xd4] sm:$0x1] }
 0x25c   : > { %v12072_v19 = vpop.permute.xlu1 %2285 }
 0x25d   : > { %17623 = vst [vmem:[#allocation146_spill] sm:$0xff] %v12072_v19  ;;  %v12076_v44 = vpop.permute.xlu0 %2283  ;;  %v3263_v26 = vor.u32 %v3262_v41, %v3258_v43  ;;  %v3297_v41 = vrot.slane %v3295_v54, 1 }
 0x25e   : > { %17624 = vst [vmem:[#allocation147_spill] sm:$0xff] %v12076_v44  ;;  %3781 = vrot.lane.b32.xlu1 %v3242_v47, %s10131_s15  ;;  %v8900_v47 = vld [vmem:[%s10164_s14 + $0xb4] sm:$0x1]  ;;  %v3290_v44 = vrot.slane %v3288_v7, 1 }
 0x25f   : > { %3779 = vrot.lane.b32.xlu0 %v3235_v25, %s10131_s15  ;;  %v12097_v25 = vcombine.low %v8901_v48, %v8902_v9  ;;  %v12102_v16 = vcombine.low %v8899_v55, %v8900_v47  ;;  %v8906_v48 = vld [vmem:[%s10164_s14 + $0xcc] sm:$0x1]  ;;  %v3293_v55 = vshrl.u32 %v12082_v50, 16 }
 0x260   : > { %v12092_v15 = vpop.permute.xlu1 %2289  ;;  %v12118_v47 = vcombine.low %v8905_v17, %v8906_v48 }
 0x261   : > { %17625 = vst [vmem:[#allocation148_spill] sm:$0xff] %v12092_v15  ;;  %v12094_v24 = vpop.permute.xlu0 %2287  ;;  %v3302_v43 = vshll.u32 %v12102_v16, 16  ;;  %v3277_v15 = vor.u32 %v3276_v57, %v3272_v56  ;;  %v3307_v54 = vshrl.u32 %v12097_v25, 16  ;;  %v3298_v57 = vor.u32 %v3297_v41, %v3293_v55  ;;  %v8912_v55 = vld [vmem:[%s10164_s14 + $0xe4] sm:$0x1] }
 0x262   : > { %17626 = vst [vmem:[#allocation149_spill] sm:$0xff] %v12094_v24  ;;  %3785 = vrot.lane.b32.xlu1 %v3256_v5, %s10131_s15  ;;  %v8903_v5 = vld [vmem:[%s10164_s14 + $0xc0] sm:$0xf]  ;;  %v8909_v24 = vld [vmem:[%s10164_s14 + $0xd8] sm:$0xf]  ;;  %v3300_v56 = vshrl.u32 %v12102_v16, 16 }
 0x263   : > { %3783 = vrot.lane.b32.xlu0 %v3249_v63, %s10131_s15  ;;  %v3309_v63 = vshll.u32 %v12097_v25, 16  ;;  %v12124_v19 = vcombine.low %v8903_v5, %v8904_v40  ;;  %v3304_v7 = vrot.slane %v3302_v43, 1  ;;  %v3323_v48 = vshll.u32 %v12118_v47, 16 }
 0x264   : > { %v12108_v9 = vpop.permute.xlu1 %2293 }
 0x265   : > { %17627 = vst [vmem:[#allocation150_spill] sm:$0xff] %v12108_v9  ;;  %v12112_v1 = vpop.permute.xlu0 %2291  ;;  %v8910_v9 = vld [vmem:[%s10164_s14 + $0xdc] sm:$0x1]  ;;  %v3311_v17 = vrot.slane %v3309_v63, 1  ;;  %v3316_v40 = vshll.u32 %v12124_v19, 16 }
 0x266   : > { %17628 = vst [vmem:[#allocation151_spill] sm:$0xff] %v12112_v1  ;;  %3789 = vrot.lane.b32.xlu1 %v3270_v21, %s10131_s15  ;;  %v3286_v1 = vshrl.u32 %v12088_v61, 16  ;;  %v8907_v21 = vld [vmem:[%s10164_s14 + $0xd0] sm:$0xf]  ;;  %v8913_v63 = vld [vmem:[%s10164_s14 + $0xe8] sm:$0xf] }
 0x267   : > { %3787 = vrot.lane.b32.xlu0 %v3263_v26, %s10131_s15  ;;  %v12133_v26 = vcombine.low %v8909_v24, %v8910_v9  ;;  %v8914_v24 = vld [vmem:[%s10164_s14 + $0xec] sm:$0x1]  ;;  %v3312_v43 = vor.u32 %v3311_v17, %v3307_v54 }
 0x268   : > { %v12126_v59 = vpop.permute.xlu1 %2297  ;;  %v3291_v5 = vor.u32 %v3290_v44, %v3286_v1  ;;  %v3305_v1 = vor.u32 %v3304_v7, %v3300_v56  ;;  %v3321_v44 = vshrl.u32 %v12118_v47, 16  ;;  %v8916_v56 = vld [vmem:[%s10164_s14 + $0xf4] sm:$0x1] }
 0x269   : > { %17629 = vst [vmem:[#allocation152_spill] sm:$0xff] %v12126_v59  ;;  %v12130_v18 = vpop.permute.xlu0 %2295  ;;  %v8917_v59 = vld [vmem:[%s10164_s14 + $0xf8] sm:$0xf] }
 0x26a   : > { %17630 = vst [vmem:[#allocation153_spill] sm:$0xff] %v12130_v18  ;;  %3793 = vrot.lane.b32.xlu1 %v3284_v35, %s10131_s15  ;;  %v12140_v18 = vcombine.low %v8907_v21, %v8908_v8  ;;  %v8911_v35 = vld [vmem:[%s10164_s14 + $0xe0] sm:$0xf]  ;;  %v3325_v21 = vrot.slane %v3323_v48, 1  ;;  %v12153_v8 = vcombine.low %v8913_v63, %v8914_v24  ;;  %v3335_v48 = vshrl.u32 %v12133_v26, 16 }
 0x26b   : > { %3791 = vrot.lane.b32.xlu0 %v3277_v15, %s10131_s15  ;;  %v3337_v15 = vshll.u32 %v12133_v26, 16  ;;  %v12160_v17 = vcombine.low %v8911_v35, %v8912_v55  ;;  %v12169_v63 = vcombine.low %v8917_v59, %v8918_v60  ;;  %v8919_v60 = vld [vmem:[%s10164_s14 + $0x100] sm:$0xf]  ;;  %v8920_v59 = vld [vmem:[%s10164_s14 + $0x104] sm:$0x1] }
 0x26c   : > { %v12144_v9 = vpop.permute.xlu1 %2301  ;;  %v3330_v54 = vshll.u32 %v12140_v18, 16  ;;  %v3328_v24 = vshrl.u32 %v12140_v18, 16  ;;  %v3351_v35 = vshll.u32 %v12153_v8, 16 }
 0x26d   : > { %17631 = vst [vmem:[#allocation154_spill] sm:$0xff] %v12144_v9  ;;  %v12148_v41 = vpop.permute.xlu0 %2299  ;;  %v3314_v9 = vshrl.u32 %v12124_v19, 16 }
 0x26e   : > { %17632 = vst [vmem:[#allocation155_spill] sm:$0xff] %v12148_v41  ;;  %3797 = vrot.lane.b32.xlu1 %v3298_v57, %s10131_s15  ;;  %v3318_v41 = vrot.slane %v3316_v40, 1  ;;  %v8915_v57 = vld [vmem:[%s10164_s14 + $0xf0] sm:$0xf]  ;;  %v3326_v40 = vor.u32 %v3325_v21, %v3321_v44  ;;  %v3342_v21 = vshrl.u32 %v12160_v17, 16 }
 0x26f   : > { %3795 = vrot.lane.b32.xlu0 %v3291_v5, %s10131_s15  ;;  %v3339_v5 = vrot.slane %v3337_v15, 1  ;;  %v12176_v29 = vcombine.low %v8915_v57, %v8916_v56 }
 0x270   : > { %v12162_v38 = vpop.permute.xlu1 %2305  ;;  %v3319_v55 = vor.u32 %v3318_v41, %v3314_v9  ;;  %v3365_v9 = vshll.u32 %v12169_v63, 16  ;;  %v3349_v41 = vshrl.u32 %v12153_v8, 16 }
 0x271   : > { %17633 = vst [vmem:[#allocation156_spill] sm:$0xff] %v12162_v38  ;;  %v12166_v7 = vpop.permute.xlu0 %2303  ;;  %v3332_v38 = vrot.slane %v3330_v54, 1  ;;  %v3340_v44 = vor.u32 %v3339_v5, %v3335_v48  ;;  %v12190_v54 = vcombine.low %v8921_v2, %v8922_v53  ;;  %v12194_v48 = vcombine.low %v8919_v60, %v8920_v59  ;;  %v8925_v5 = vld [vmem:[%s10164_s14 + $0x118] sm:$0xf]  ;;  %v8929_v60 = vld [vmem:[%s10164_s14 + $0x128] sm:$0xf] }
 0x272   : > { %17634 = vst [vmem:[#allocation157_spill] sm:$0xff] %v12166_v7  ;;  %3801 = vrot.lane.b32.xlu1 %v3312_v43, %s10131_s15  ;;  %v3344_v7 = vshll.u32 %v12160_v17, 16  ;;  %v3363_v53 = vshrl.u32 %v12169_v63, 16  ;;  %v8930_v59 = vld [vmem:[%s10164_s14 + $0x12c] sm:$0x1] }
 0x273   : > { %3799 = vrot.lane.b32.xlu0 %v3305_v1, %s10131_s15  ;;  %v3353_v1 = vrot.slane %v3351_v35, 1  ;;  %v3333_v57 = vor.u32 %v3332_v38, %v3328_v24  ;;  %v8924_v35 = vld [vmem:[%s10164_s14 + $0x114] sm:$0x1]  ;;  %v3367_v38 = vrot.slane %v3365_v9, 1  ;;  %v3379_v24 = vshll.u32 %v12190_v54, 16 }
 0x274   : > { %v12180_v15 = vpop.permute.xlu1 %2309  ;;  %v3346_v56 = vrot.slane %v3344_v7, 1  ;;  %v3356_v7 = vshrl.u32 %v12176_v29, 16  ;;  %v12214_v20 = vcombine.low %v8923_v42, %v8924_v35  ;;  %v8927_v9 = vld [vmem:[%s10164_s14 + $0x120] sm:$0xf]  ;;  %v3370_v42 = vshrl.u32 %v12194_v48, 16 }
 0x275   : > { %17635 = vst [vmem:[#allocation158_spill] sm:$0xff] %v12180_v15  ;;  %v12184_v43 = vpop.permute.xlu0 %2307  ;;  %v8926_v15 = vld [vmem:[%s10164_s14 + $0x11c] sm:$0x1]  ;;  %v3354_v2 = vor.u32 %v3353_v1, %v3349_v41 }
 0x276   : > { %17636 = vst [vmem:[#allocation159_spill] sm:$0xff] %v12184_v43  ;;  %3805 = vrot.lane.b32.xlu1 %v3326_v40, %s10131_s15  ;;  %v3358_v43 = vshll.u32 %v12176_v29, 16 }
 0x277   : > { %3803 = vrot.lane.b32.xlu0 %v3319_v55, %s10131_s15  ;;  %v12208_v55 = vcombine.low %v8925_v5, %v8926_v15  ;;  %v3368_v15 = vor.u32 %v3367_v38, %v3363_v53  ;;  %v3377_v5 = vshrl.u32 %v12190_v54, 16  ;;  %v3386_v53 = vshll.u32 %v12214_v20, 16  ;;  %v8933_v38 = vld [vmem:[%s10164_s14 + $0x138] sm:$0xf] }
 0x278   : > { %v12198_v40 = vpop.permute.xlu1 %2313  ;;  %v3360_v32 = vrot.slane %v3358_v43, 1  ;;  %v3381_v43 = vrot.slane %v3379_v24, 1  ;;  %v8932_v24 = vld [vmem:[%s10164_s14 + $0x134] sm:$0x1] }
 0x279   : > { %17637 = vst [vmem:[#allocation160_spill] sm:$0xff] %v12198_v40  ;;  %v12202_v34 = vpop.permute.xlu0 %2311  ;;  %v3347_v40 = vor.u32 %v3346_v56, %v3342_v21  ;;  %v3393_v21 = vshll.u32 %v12208_v55, 16  ;;  %v3388_v28 = vrot.slane %v3386_v53, 1 }
 0x27a   : > { %17638 = vst [vmem:[#allocation161_spill] sm:$0xff] %v12202_v34  ;;  %3809 = vrot.lane.b32.xlu1 %v3340_v44, %s10131_s15  ;;  %v3372_v34 = vshll.u32 %v12194_v48, 16  ;;  %v8928_v44 = vld [vmem:[%s10164_s14 + $0x124] sm:$0x1]  ;;  %v3361_v35 = vor.u32 %v3360_v32, %v3356_v7 }
 0x27b   : > { %3807 = vrot.lane.b32.xlu0 %v3333_v57, %s10131_s15  ;;  %v12223_v57 = vcombine.low %v8929_v60, %v8930_v59  ;;  %v12228_v56 = vcombine.low %v8927_v9, %v8928_v44  ;;  %v8934_v60 = vld [vmem:[%s10164_s14 + $0x13c] sm:$0x1]  ;;  %v3391_v9 = vshrl.u32 %v12208_v55, 16  ;;  %v3395_v32 = vrot.slane %v3393_v21, 1 }
 0x27c   : > { %v12218_v41 = vpop.permute.xlu1 %2317  ;;  %v12244_v44 = vcombine.low %v8933_v38, %v8934_v60 }
 0x27d   : > { %17639 = vst [vmem:[#allocation162_spill] sm:$0xff] %v12218_v41  ;;  %v12220_v1 = vpop.permute.xlu0 %2315  ;;  %v3400_v7 = vshll.u32 %v12228_v56, 16  ;;  %v3405_v21 = vshrl.u32 %v12223_v57, 16 }
 0x27e   : > { %17640 = vst [vmem:[#allocation163_spill] sm:$0xff] %v12220_v1  ;;  %3813 = vrot.lane.b32.xlu1 %v3354_v2, %s10131_s15  ;;  %v3374_v1 = vrot.slane %v3372_v34, 1  ;;  %v8931_v2 = vld [vmem:[%s10164_s14 + $0x130] sm:$0xf]  ;;  %v3382_v34 = vor.u32 %v3381_v43, %v3377_v5  ;;  %v8936_v5 = vld [vmem:[%s10164_s14 + $0x144] sm:$0x1] }
 0x27f   : > { %3811 = vrot.lane.b32.xlu0 %v3347_v40, %s10131_s15  ;;  %v3407_v40 = vshll.u32 %v12223_v57, 16  ;;  %v12250_v62 = vcombine.low %v8931_v2, %v8932_v24  ;;  %v3402_v53 = vrot.slane %v3400_v7, 1  ;;  %v3421_v60 = vshll.u32 %v12244_v44, 16 }
 0x280   : > { %v12234_v59 = vpop.permute.xlu1 %2321  ;;  %v3375_v27 = vor.u32 %v3374_v1, %v3370_v42  ;;  %v3396_v1 = vor.u32 %v3395_v32, %v3391_v9  ;;  %v3398_v42 = vshrl.u32 %v12228_v56, 16  ;;  %v8940_v9 = vld [vmem:[%s10164_s14 + $0x154] sm:$0x1] }
 0x281   : > { %17641 = vst [vmem:[#allocation164_spill] sm:$0xff] %v12234_v59  ;;  %v12238_v41 = vpop.permute.xlu0 %2319  ;;  %v8938_v59 = vld [vmem:[%s10164_s14 + $0x14c] sm:$0x1]  ;;  %v3409_v38 = vrot.slane %v3407_v40, 1  ;;  %v3414_v24 = vshll.u32 %v12250_v62, 16 }
 0x282   : > { %17642 = vst [vmem:[#allocation165_spill] sm:$0xff] %v12238_v41  ;;  %3817 = vrot.lane.b32.xlu1 %v3368_v15, %s10131_s15  ;;  %v3384_v41 = vshrl.u32 %v12214_v20, 16  ;;  %v8935_v15 = vld [vmem:[%s10164_s14 + $0x140] sm:$0xf]  ;;  %v8941_v40 = vld [vmem:[%s10164_s14 + $0x158] sm:$0xf] }
 0x283   : > { %3815 = vrot.lane.b32.xlu0 %v3361_v35, %s10131_s15  ;;  %v12259_v35 = vcombine.low %v8937_v58, %v8938_v59  ;;  %v8942_v58 = vld [vmem:[%s10164_s14 + $0x15c] sm:$0x1]  ;;  %v3410_v7 = vor.u32 %v3409_v38, %v3405_v21 }
 0x284   : > { %v12252_v6 = vpop.permute.xlu1 %2325  ;;  %v3389_v2 = vor.u32 %v3388_v28, %v3384_v41  ;;  %v3403_v28 = vor.u32 %v3402_v53, %v3398_v42  ;;  %v3419_v41 = vshrl.u32 %v12244_v44, 16  ;;  %v8944_v42 = vld [vmem:[%s10164_s14 + $0x164] sm:$0x1] }
 0x285   : > { %17643 = vst [vmem:[#allocation166_spill] sm:$0xff] %v12252_v6  ;;  %v12256_v43 = vpop.permute.xlu0 %2323  ;;  %v8945_v6 = vld [vmem:[%s10164_s14 + $0x168] sm:$0xf] }
 0x286   : > { %17644 = vst [vmem:[#allocation167_spill] sm:$0xff] %v12256_v43  ;;  %3821 = vrot.lane.b32.xlu1 %v3382_v34, %s10131_s15  ;;  %v12266_v43 = vcombine.low %v8935_v15, %v8936_v5  ;;  %v8939_v34 = vld [vmem:[%s10164_s14 + $0x150] sm:$0xf]  ;;  %v3423_v15 = vrot.slane %v3421_v60, 1  ;;  %v12279_v5 = vcombine.low %v8941_v40, %v8942_v58  ;;  %v3433_v60 = vshrl.u32 %v12259_v35, 16 }
 0x287   : > { %3819 = vrot.lane.b32.xlu0 %v3375_v27, %s10131_s15  ;;  %v3435_v27 = vshll.u32 %v12259_v35, 16  ;;  %v12286_v38 = vcombine.low %v8939_v34, %v8940_v9  ;;  %v12295_v40 = vcombine.low %v8945_v6, %v8946_v12  ;;  %v8947_v6 = vld [vmem:[%s10164_s14 + $0x170] sm:$0xf]  ;;  %v8948_v12 = vld [vmem:[%s10164_s14 + $0x174] sm:$0x1] }
 0x288   : > { %v12270_v59 = vpop.permute.xlu1 %2329  ;;  %v3428_v21 = vshll.u32 %v12266_v43, 16  ;;  %v3426_v58 = vshrl.u32 %v12266_v43, 16  ;;  %v3449_v34 = vshll.u32 %v12279_v5, 16 }
 0x289   : > { %17645 = vst [vmem:[#allocation168_spill] sm:$0xff] %v12270_v59  ;;  %v12274_v32 = vpop.permute.xlu0 %2327  ;;  %v3412_v59 = vshrl.u32 %v12250_v62, 16 }
 0x28a   : > { %17646 = vst [vmem:[#allocation169_spill] sm:$0xff] %v12274_v32  ;;  %3825 = vrot.lane.b32.xlu1 %v3396_v1, %s10131_s15  ;;  %v3416_v32 = vrot.slane %v3414_v24, 1  ;;  %v8943_v1 = vld [vmem:[%s10164_s14 + $0x160] sm:$0xf]  ;;  %v3424_v24 = vor.u32 %v3423_v15, %v3419_v41  ;;  %v3440_v15 = vshrl.u32 %v12286_v38, 16 }
 0x28b   : > { %3823 = vrot.lane.b32.xlu0 %v3389_v2, %s10131_s15  ;;  %v3437_v2 = vrot.slane %v3435_v27, 1  ;;  %v12302_v49 = vcombine.low %v8943_v1, %v8944_v42 }
 0x28c   : > { %v12288_v37 = vpop.permute.xlu1 %2333  ;;  %v3417_v9 = vor.u32 %v3416_v32, %v3412_v59  ;;  %v3463_v59 = vshll.u32 %v12295_v40, 16  ;;  %v3447_v32 = vshrl.u32 %v12279_v5, 16 }
 0x28d   : > { %17647 = vst [vmem:[#allocation170_spill] sm:$0xff] %v12288_v37  ;;  %v12292_v53 = vpop.permute.xlu0 %2331  ;;  %v3430_v37 = vrot.slane %v3428_v21, 1  ;;  %v3438_v41 = vor.u32 %v3437_v2, %v3433_v60  ;;  %v12316_v21 = vcombine.low %v8949_v33, %v8950_v3  ;;  %v12320_v60 = vcombine.low %v8947_v6, %v8948_v12  ;;  %v8953_v2 = vld [vmem:[%s10164_s14 + $0x188] sm:$0xf]  ;;  %v8957_v6 = vld [vmem:[%s10164_s14 + $0x198] sm:$0xf] }
 0x28e   : > { %17648 = vst [vmem:[#allocation171_spill] sm:$0xff] %v12292_v53  ;;  %3829 = vrot.lane.b32.xlu1 %v3410_v7, %s10131_s15  ;;  %v3442_v53 = vshll.u32 %v12286_v38, 16  ;;  %v3461_v3 = vshrl.u32 %v12295_v40, 16  ;;  %v8958_v12 = vld [vmem:[%s10164_s14 + $0x19c] sm:$0x1] }
 0x28f   : > { %3827 = vrot.lane.b32.xlu0 %v3403_v28, %s10131_s15  ;;  %v3451_v28 = vrot.slane %v3449_v34, 1  ;;  %17651 = vst [vmem:[#allocation174_spill] sm:$0xff] %v12316_v21  ;;  %v3431_v1 = vor.u32 %v3430_v37, %v3426_v58  ;;  %17652 = vst [vmem:[#allocation175_spill] sm:$0xff] %v12320_v60  ;;  %v8952_v34 = vld [vmem:[%s10164_s14 + $0x184] sm:$0x1]  ;;  %v3465_v37 = vrot.slane %v3463_v59, 1 }
 0x290   : > { %v12306_v27 = vpop.permute.xlu1 %2337  ;;  %v3444_v42 = vrot.slane %v3442_v53, 1  ;;  %v3454_v53 = vshrl.u32 %v12302_v49, 16  ;;  %v3477_v58 = vshll.u32 %v12316_v21, 16  ;;  %v12340_v52 = vcombine.low %v8951_v31, %v8952_v34  ;;  %v8955_v59 = vld [vmem:[%s10164_s14 + $0x190] sm:$0xf] }
 0x291   : > { %17649 = vst [vmem:[#allocation172_spill] sm:$0xff] %v12306_v27  ;;  %v12310_v7 = vpop.permute.xlu0 %2335  ;;  %v8954_v27 = vld [vmem:[%s10164_s14 + $0x18c] sm:$0x1]  ;;  %v3452_v33 = vor.u32 %v3451_v28, %v3447_v32  ;;  %v3468_v31 = vshrl.u32 %v12320_v60, 16 }
 0x292   : > { %17650 = vst [vmem:[#allocation173_spill] sm:$0xff] %v12310_v7  ;;  %3833 = vrot.lane.b32.xlu1 %v3424_v24, %s10131_s15  ;;  %v3456_v7 = vshll.u32 %v12302_v49, 16  ;;  %17656 = vst [vmem:[#allocation179_spill] sm:$0xff] %v12340_v52 }
 0x293   : > { %3831 = vrot.lane.b32.xlu0 %v3417_v9, %s10131_s15  ;;  %v12334_v9 = vcombine.low %v8953_v2, %v8954_v27  ;;  %v3466_v27 = vor.u32 %v3465_v37, %v3461_v3  ;;  %v3475_v2 = vshrl.u32 %v12316_v21, 16  ;;  %v3484_v3 = vshll.u32 %v12340_v52, 16  ;;  %v8961_v37 = vld [vmem:[%s10164_s14 + $0x1a8] sm:$0xf] }
 0x294   : > { %v12324_v24 = vpop.permute.xlu1 %2341  ;;  %v3458_v13 = vrot.slane %v3456_v7, 1  ;;  %v3479_v7 = vrot.slane %v3477_v58, 1  ;;  %v8960_v58 = vld [vmem:[%s10164_s14 + $0x1a4] sm:$0x1] }
 0x295   : > { %17653 = vst [vmem:[#allocation176_spill] sm:$0xff] %v12324_v24  ;;  %v12328_v39 = vpop.permute.xlu0 %2339  ;;  %17655 = vst [vmem:[#allocation178_spill] sm:$0xff] %v12334_v9  ;;  %v3445_v24 = vor.u32 %v3444_v42, %v3440_v15  ;;  %v3491_v15 = vshll.u32 %v12334_v9, 16 }
 0x296   : > { %17654 = vst [vmem:[#allocation177_spill] sm:$0xff] %v12328_v39  ;;  %3837 = vrot.lane.b32.xlu1 %v3438_v41, %s10131_s15  ;;  %v3470_v39 = vshll.u32 %v12320_v60, 16  ;;  %v8956_v41 = vld [vmem:[%s10164_s14 + $0x194] sm:$0x1]  ;;  %v3459_v34 = vor.u32 %v3458_v13, %v3454_v53  ;;  %v3480_v13 = vor.u32 %v3479_v7, %v3475_v2  ;;  %v3486_v60 = vrot.slane %v3484_v3, 1 }
 0x297   : > { %3835 = vrot.lane.b32.xlu0 %v3431_v1, %s10131_s15  ;;  %v12349_v1 = vcombine.low %v8957_v6, %v8958_v12  ;;  %v12354_v42 = vcombine.low %v8955_v59, %v8956_v41  ;;  %v8962_v6 = vld [vmem:[%s10164_s14 + $0x1ac] sm:$0x1]  ;;  %v3489_v59 = vshrl.u32 %v12334_v9, 16  ;;  %v8964_v2 = vld [vmem:[%s10164_s14 + $0x1b4] sm:$0x1] }
 0x298   : > { %v12344_v32 = vpop.permute.xlu1 %2345  ;;  %v12370_v41 = vcombine.low %v8961_v37, %v8962_v6 }
 0x299   : > { %17657 = vst [vmem:[#allocation180_spill] sm:$0xff] %v12344_v32  ;;  %v12346_v28 = vpop.permute.xlu0 %2343  ;;  %17659 = vst [vmem:[#allocation182_spill] sm:$0xff] %v12349_v1  ;;  %v3498_v53 = vshll.u32 %v12354_v42, 16 }
 0x29a   : > { %17658 = vst [vmem:[#allocation181_spill] sm:$0xff] %v12346_v28  ;;  %3841 = vrot.lane.b32.xlu1 %v3452_v33, %s10131_s15  ;;  %17660 = vst [vmem:[#allocation183_spill] sm:$0xff] %v12354_v42  ;;  %v3472_v28 = vrot.slane %v3470_v39, 1  ;;  %v8959_v33 = vld [vmem:[%s10164_s14 + $0x1a0] sm:$0xf]  ;;  %v3493_v39 = vrot.slane %v3491_v15, 1 }
 0x29b   : > { %3839 = vrot.lane.b32.xlu0 %v3445_v24, %s10131_s15  ;;  %v3505_v24 = vshll.u32 %v12349_v1, 16  ;;  %17663 = vst [vmem:[#allocation186_spill] sm:$0xff] %v12370_v41  ;;  %v12376_v9 = vcombine.low %v8959_v33, %v8960_v58  ;;  %v3503_v15 = vshrl.u32 %v12349_v1, 16  ;;  %v3500_v3 = vrot.slane %v3498_v53, 1 }
 0x29c   : > { %v12360_v12 = vpop.permute.xlu1 %2349  ;;  %v3473_v46 = vor.u32 %v3472_v28, %v3468_v31  ;;  %v3494_v28 = vor.u32 %v3493_v39, %v3489_v59  ;;  %v3496_v31 = vshrl.u32 %v12354_v42, 16  ;;  %v3519_v6 = vshll.u32 %v12370_v41, 16  ;;  %v8968_v59 = vld [vmem:[%s10164_s14 + $0x1c4] sm:$0x1]  ;;  %v8973_v42 = vld [vmem:[%s10164_s14 + $0x1d8] sm:$0xf] }
 0x29d   : > { %17661 = vst [vmem:[#allocation184_spill] sm:$0xff] %v12360_v12  ;;  %v12364_v32 = vpop.permute.xlu0 %2347  ;;  %v8966_v12 = vld [vmem:[%s10164_s14 + $0x1bc] sm:$0x1]  ;;  %17664 = vst [vmem:[#allocation187_spill] sm:$0xff] %v12376_v9  ;;  %v3507_v37 = vrot.slane %v3505_v24, 1  ;;  %v3512_v58 = vshll.u32 %v12376_v9, 16 }
 0x29e   : > { %17662 = vst [vmem:[#allocation185_spill] sm:$0xff] %v12364_v32  ;;  %3845 = vrot.lane.b32.xlu1 %v3466_v27, %s10131_s15  ;;  %v3482_v32 = vshrl.u32 %v12340_v52, 16  ;;  %v8963_v27 = vld [vmem:[%s10164_s14 + $0x1b0] sm:$0xf]  ;;  %v8969_v24 = vld [vmem:[%s10164_s14 + $0x1c8] sm:$0xf] }
 0x29f   : > { %3843 = vrot.lane.b32.xlu0 %v3459_v34, %s10131_s15  ;;  %v12385_v34 = vcombine.low %v8965_v36, %v8966_v12  ;;  %v8970_v36 = vld [vmem:[%s10164_s14 + $0x1cc] sm:$0x1] }
 0x2a0   : > { %v12378_v21 = vpop.permute.xlu1 %2353  ;;  %v3487_v33 = vor.u32 %v3486_v60, %v3482_v32  ;;  %v3501_v60 = vor.u32 %v3500_v3, %v3496_v31  ;;  %v3517_v32 = vshrl.u32 %v12370_v41, 16  ;;  %v8971_v31 = vld [vmem:[%s10164_s14 + $0x1d0] sm:$0xf]  ;;  %v8972_v3 = vld [vmem:[%s10164_s14 + $0x1d4] sm:$0x1] }
 0x2a1   : > { %17665 = vst [vmem:[#allocation188_spill] sm:$0xff] %v12378_v21  ;;  %v12382_v7 = vpop.permute.xlu0 %2351  ;;  %17667 = vst [vmem:[#allocation190_spill] sm:$0xff] %v12385_v34  ;;  %v3508_v21 = vor.u32 %v3507_v37, %v3503_v15  ;;  %v3533_v53 = vshll.u32 %v12385_v34, 16  ;;  %v3514_v15 = vrot.slane %v3512_v58, 1 }
 0x2a2   : > { %17666 = vst [vmem:[#allocation189_spill] sm:$0xff] %v12382_v7  ;;  %3849 = vrot.lane.b32.xlu1 %v3480_v13, %s10131_s15  ;;  %v12392_v7 = vcombine.low %v8963_v27, %v8964_v2  ;;  %v8967_v13 = vld [vmem:[%s10164_s14 + $0x1c0] sm:$0xf]  ;;  %v3521_v27 = vrot.slane %v3519_v6, 1  ;;  %v12407_v2 = vcombine.low %v8969_v24, %v8970_v36 }
 0x2a3   : > { %3847 = vrot.lane.b32.xlu0 %v3473_v46, %s10131_s15  ;;  %v8974_v46 = vld [vmem:[%s10164_s14 + $0x1dc] sm:$0x1]  ;;  %v3535_v24 = vrot.slane %v3533_v53, 1  ;;  %v8975_v53 = vld [vmem:[%s10164_s14 + $0x1e0] sm:$0xf] }
 0x2a4   : > { %17668 = vst [vmem:[#allocation191_spill] sm:$0xff] %v12392_v7  ;;  %v12396_v12 = vpop.permute.xlu1 %2357  ;;  %17671 = vst [vmem:[#allocation194_spill] sm:$0xff] %v12407_v2  ;;  %v3526_v37 = vshll.u32 %v12392_v7, 16  ;;  %v3522_v58 = vor.u32 %v3521_v27, %v3517_v32  ;;  %v3524_v36 = vshrl.u32 %v12392_v7, 16  ;;  %v8981_v7 = vld [vmem:[%s10164_s14 + $0x1f8] sm:$0xf] }
 0x2a5   : > { %17669 = vst [vmem:[#allocation192_spill] sm:$0xff] %v12396_v12  ;;  %v12400_v39 = vpop.permute.xlu0 %2355  ;;  %v12412_v12 = vcombine.low %v8967_v13, %v8968_v59  ;;  %v3547_v13 = vshll.u32 %v12407_v2, 16  ;;  %v8977_v59 = vld [vmem:[%s10164_s14 + $0x1e8] sm:$0xf] }
 0x2a6   : > { %17670 = vst [vmem:[#allocation193_spill] sm:$0xff] %v12400_v39  ;;  %3853 = vrot.lane.b32.xlu1 %v3494_v28, %s10131_s15  ;;  %v3510_v39 = vshrl.u32 %v12376_v9, 16  ;;  %v12416_v28 = vcombine.low %v8973_v42, %v8974_v46  ;;  %v3528_v46 = vrot.slane %v3526_v37, 1  ;;  %v12430_v9 = vcombine.low %v8971_v31, %v8972_v3 }
 0x2a7   : > { %3851 = vrot.lane.b32.xlu0 %v3487_v33, %s10131_s15  ;;  %17672 = vst [vmem:[#allocation195_spill] sm:$0xff] %v12412_v12  ;;  %v3531_v33 = vshrl.u32 %v12385_v34, 16  ;;  %v8976_v34 = vld [vmem:[%s10164_s14 + $0x1e4] sm:$0x1]  ;;  %v3549_v37 = vrot.slane %v3547_v13, 1  ;;  %v3538_v31 = vshrl.u32 %v12412_v12, 16 }
 0x2a8   : > { %v12414_v1 = vpop.permute.xlu1 %2361  ;;  %17674 = vst [vmem:[#allocation197_spill] sm:$0xff] %v12416_v28  ;;  %v3515_v42 = vor.u32 %v3514_v15, %v3510_v39  ;;  %17676 = vst [vmem:[#allocation199_spill] sm:$0xff] %v12430_v9  ;;  %v3561_v32 = vshll.u32 %v12416_v28, 16  ;;  %v12444_v3 = vcombine.low %v8975_v53, %v8976_v34  ;;  %v3529_v41 = vor.u32 %v3528_v46, %v3524_v36  ;;  %v8985_v46 = vld [vmem:[%s10164_s14 + $0x208] sm:$0xf] }
 0x2a9   : > { %17673 = vst [vmem:[#allocation196_spill] sm:$0xff] %v12414_v1  ;;  %v12420_v6 = vpop.permute.xlu0 %2359  ;;  %v8978_v1 = vld [vmem:[%s10164_s14 + $0x1ec] sm:$0x1]  ;;  %v3536_v15 = vor.u32 %v3535_v24, %v3531_v33  ;;  %v3559_v33 = vshrl.u32 %v12416_v28, 16  ;;  %v8983_v28 = vld [vmem:[%s10164_s14 + $0x200] sm:$0xf] }
 0x2aa   : > { %17675 = vst [vmem:[#allocation198_spill] sm:$0xff] %v12420_v6  ;;  %3857 = vrot.lane.b32.xlu1 %v3508_v21, %s10131_s15  ;;  %v3540_v6 = vshll.u32 %v12412_v12, 16  ;;  %v12440_v39 = vcombine.low %v8977_v59, %v8978_v1  ;;  %17680 = vst [vmem:[#allocation203_spill] sm:$0xff] %v12444_v3  ;;  %v8979_v1 = vld [vmem:[%s10164_s14 + $0x1f0] sm:$0xf]  ;;  %v3563_v34 = vrot.slane %v3561_v32, 1 }
 0x2ab   : > { %3855 = vrot.lane.b32.xlu0 %v3501_v60, %s10131_s15  ;;  %v3545_v60 = vshrl.u32 %v12407_v2, 16  ;;  %v3554_v2 = vshll.u32 %v12430_v9, 16  ;;  %v8980_v59 = vld [vmem:[%s10164_s14 + $0x1f4] sm:$0x1]  ;;  %v3568_v36 = vshll.u32 %v12444_v3, 16  ;;  %v3552_v32 = vshrl.u32 %v12430_v9, 16 }
 0x2ac   : > { %v12434_v21 = vpop.permute.xlu1 %2365  ;;  %17679 = vst [vmem:[#allocation202_spill] sm:$0xff] %v12440_v39  ;;  %v8986_v53 = vld [vmem:[%s10164_s14 + $0x20c] sm:$0x1]  ;;  %v8984_v12 = vld [vmem:[%s10164_s14 + $0x204] sm:$0x1] }
 0x2ad   : > { %17677 = vst [vmem:[#allocation200_spill] sm:$0xff] %v12434_v21  ;;  %v12437_v27 = vpop.permute.xlu0 %2363  ;;  %v8982_v21 = vld [vmem:[%s10164_s14 + $0x1fc] sm:$0x1]  ;;  %v8991_v9 = vld [vmem:[%s10164_s14 + $0x220] sm:$0xf] }
 0x2ae   : > { %17678 = vst [vmem:[#allocation201_spill] sm:$0xff] %v12437_v27  ;;  %3861 = vrot.lane.b32.xlu1 %v3522_v58, %s10131_s15  ;;  %v3542_v27 = vrot.slane %v3540_v6, 1  ;;  %v3575_v58 = vshll.u32 %v12440_v39, 16  ;;  %v12458_v13 = vcombine.low %v8981_v7, %v8982_v21  ;;  %v3550_v6 = vor.u32 %v3549_v37, %v3545_v60 }
 0x2af   : > { %3859 = vrot.lane.b32.xlu0 %v3515_v42, %s10131_s15  ;;  %v12462_v42 = vcombine.low %v8979_v1, %v8980_v59  ;;  %v3564_v21 = vor.u32 %v3563_v34, %v3559_v33  ;;  %v12481_v59 = vcombine.low %v8983_v28, %v8984_v12  ;;  %v8989_v33 = vld [vmem:[%s10164_s14 + $0x218] sm:$0xf] }
 0x2b0   : > { %v12452_v52 = vpop.permute.xlu1 %2369  ;;  %17683 = vst [vmem:[#allocation206_spill] sm:$0xff] %v12458_v13  ;;  %v3577_v37 = vrot.slane %v3575_v58, 1  ;;  %v8990_v58 = vld [vmem:[%s10164_s14 + $0x21c] sm:$0x1] }
 0x2b1   : > { %17681 = vst [vmem:[#allocation204_spill] sm:$0xff] %v12452_v52  ;;  %v12455_v24 = vpop.permute.xlu0 %2367  ;;  %17684 = vst [vmem:[#allocation207_spill] sm:$0xff] %v12462_v42  ;;  %v3543_v52 = vor.u32 %v3542_v27, %v3538_v31  ;;  %v12476_v27 = vcombine.low %v8985_v46, %v8986_v53  ;;  %v3570_v31 = vrot.slane %v3568_v36, 1  ;;  %v3582_v1 = vshll.u32 %v12462_v42, 16 }
 0x2b2   : > { %17682 = vst [vmem:[#allocation205_spill] sm:$0xff] %v12455_v24  ;;  %3865 = vrot.lane.b32.xlu1 %v3536_v15, %s10131_s15  ;;  %v3556_v24 = vrot.slane %v3554_v2, 1  ;;  %v3573_v15 = vshrl.u32 %v12440_v39, 16  ;;  %v3566_v2 = vshrl.u32 %v12444_v3, 16  ;;  %17688 = vst [vmem:[#allocation211_spill] sm:$0xff] %v12481_v59 }
 0x2b3   : > { %3863 = vrot.lane.b32.xlu0 %v3529_v41, %s10131_s15  ;;  %v3589_v41 = vshll.u32 %v12458_v13, 16  ;;  %17687 = vst [vmem:[#allocation210_spill] sm:$0xff] %v12476_v27  ;;  %v3603_v12 = vshll.u32 %v12476_v27, 16  ;;  %v8993_v3 = vld [vmem:[%s10164_s14 + $0x228] sm:$0xf] }
 0x2b4   : > { %v12470_v7 = vpop.permute.xlu1 %2373  ;;  %v3557_v34 = vor.u32 %v3556_v24, %v3552_v32  ;;  %v3578_v28 = vor.u32 %v3577_v37, %v3573_v15  ;;  %v12496_v24 = vcombine.low %v8989_v33, %v8990_v58  ;;  %v8997_v58 = vld [vmem:[%s10164_s14 + $0x238] sm:$0xf] }
 0x2b5   : > { %17685 = vst [vmem:[#allocation208_spill] sm:$0xff] %v12470_v7  ;;  %v12472_v60 = vpop.permute.xlu0 %2371  ;;  %v8988_v7 = vld [vmem:[%s10164_s14 + $0x214] sm:$0x1]  ;;  %v3591_v36 = vrot.slane %v3589_v41, 1  ;;  %v3584_v41 = vrot.slane %v3582_v1, 1  ;;  %v3605_v37 = vrot.slane %v3603_v12, 1 }
 0x2b6   : > { %17686 = vst [vmem:[#allocation209_spill] sm:$0xff] %v12472_v60  ;;  %3869 = vrot.lane.b32.xlu1 %v3550_v6, %s10131_s15  ;;  %v8987_v60 = vld [vmem:[%s10164_s14 + $0x210] sm:$0xf]  ;;  %v3587_v6 = vshrl.u32 %v12458_v13, 16  ;;  %17691 = vst [vmem:[#allocation214_spill] sm:$0xff] %v12496_v24  ;;  %v3580_v13 = vshrl.u32 %v12462_v42, 16 }
 0x2b7   : > { %3867 = vrot.lane.b32.xlu0 %v3543_v52, %s10131_s15  ;;  %v3596_v52 = vshll.u32 %v12481_v59, 16  ;;  %v12498_v32 = vcombine.low %v8987_v60, %v8988_v7  ;;  %v3601_v60 = vshrl.u32 %v12476_v27, 16  ;;  %v3617_v1 = vshll.u32 %v12496_v24, 16  ;;  %v8998_v12 = vld [vmem:[%s10164_s14 + $0x23c] sm:$0x1] }
 0x2b8   : > { %v12488_v46 = vpop.permute.xlu1 %2377  ;;  %v3592_v7 = vor.u32 %v3591_v36, %v3587_v6  ;;  %v3585_v6 = vor.u32 %v3584_v41, %v3580_v13  ;;  %v12531_v13 = vcombine.low %v8997_v58, %v8998_v12  ;;  %v9001_v41 = vld [vmem:[%s10164_s14 + $0x248] sm:$0xf] }
 0x2b9   : > { %17689 = vst [vmem:[#allocation212_spill] sm:$0xff] %v12488_v46  ;;  %v12490_v53 = vpop.permute.xlu0 %2375  ;;  %17692 = vst [vmem:[#allocation215_spill] sm:$0xff] %v12498_v32  ;;  %v8994_v46 = vld [vmem:[%s10164_s14 + $0x22c] sm:$0x1] }
 0x2ba   : > { %17690 = vst [vmem:[#allocation213_spill] sm:$0xff] %v12490_v53  ;;  %3873 = vrot.lane.b32.xlu1 %v3564_v21, %s10131_s15  ;;  %v3571_v53 = vor.u32 %v3570_v31, %v3566_v2  ;;  %v8992_v21 = vld [vmem:[%s10164_s14 + $0x224] sm:$0x1]  ;;  %v12511_v33 = vcombine.low %v8993_v3, %v8994_v46  ;;  %v3594_v2 = vshrl.u32 %v12481_v59, 16  ;;  %v3598_v31 = vrot.slane %v3596_v52, 1  ;;  %17699 = vst [vmem:[#allocation222_spill] sm:$0xff] %v12531_v13 }
 0x2bb   : > { %3871 = vrot.lane.b32.xlu0 %v3557_v34, %s10131_s15  ;;  %v3610_v34 = vshll.u32 %v12498_v32, 16  ;;  %v12519_v36 = vcombine.low %v8991_v9, %v8992_v21  ;;  %v8995_v3 = vld [vmem:[%s10164_s14 + $0x230] sm:$0xf]  ;;  %v8996_v46 = vld [vmem:[%s10164_s14 + $0x234] sm:$0x1]  ;;  %v3606_v52 = vor.u32 %v3605_v37, %v3601_v60  ;;  %v3619_v59 = vrot.slane %v3617_v1, 1 }
 0x2bc   : > { %v12504_v39 = vpop.permute.xlu1 %2381  ;;  %17695 = vst [vmem:[#allocation218_spill] sm:$0xff] %v12511_v33  ;;  %v12533_v9 = vcombine.low %v8995_v3, %v8996_v46  ;;  %v9002_v21 = vld [vmem:[%s10164_s14 + $0x24c] sm:$0x1]  ;;  %v9000_v1 = vld [vmem:[%s10164_s14 + $0x244] sm:$0x1]  ;;  %v3629_v12 = vshrl.u32 %v12511_v33, 16 }
 0x2bd   : > { %17693 = vst [vmem:[#allocation216_spill] sm:$0xff] %v12504_v39  ;;  %v12508_v15 = vpop.permute.xlu0 %2379  ;;  %17696 = vst [vmem:[#allocation219_spill] sm:$0xff] %v12519_v36  ;;  %v3631_v39 = vshll.u32 %v12511_v33, 16  ;;  %v3612_v60 = vrot.slane %v3610_v34, 1  ;;  %v3624_v37 = vshll.u32 %v12519_v36, 16 }
 0x2be   : > { %17694 = vst [vmem:[#allocation217_spill] sm:$0xff] %v12508_v15  ;;  %3877 = vrot.lane.b32.xlu1 %v3578_v28, %s10131_s15  ;;  %17700 = vst [vmem:[#allocation223_spill] sm:$0xff] %v12533_v9  ;;  %v3638_v34 = vshll.u32 %v12533_v9, 16  ;;  %v9005_v33 = vld [vmem:[%s10164_s14 + $0x258] sm:$0xf] }
 0x2bf   : > { %3875 = vrot.lane.b32.xlu0 %v3571_v53, %s10131_s15  ;;  %v3615_v53 = vshrl.u32 %v12496_v24, 16  ;;  %v3633_v3 = vrot.slane %v3631_v39, 1  ;;  %v9006_v24 = vld [vmem:[%s10164_s14 + $0x25c] sm:$0x1] }
 0x2c0   : > { %v12524_v15 = vpop.permute.xlu1 %2385 }
 0x2c1   : > { %17697 = vst [vmem:[#allocation220_spill] sm:$0xff] %v12524_v15  ;;  %v12526_v28 = vpop.permute.xlu0 %2383  ;;  %v3599_v15 = vor.u32 %v3598_v31, %v3594_v2  ;;  %v3620_v2 = vor.u32 %v3619_v59, %v3615_v53  ;;  %v3645_v31 = vshll.u32 %v12531_v13, 16  ;;  %v9004_v59 = vld [vmem:[%s10164_s14 + $0x254] sm:$0x1]  ;;  %v3634_v53 = vor.u32 %v3633_v3, %v3629_v12  ;;  %v9009_v3 = vld [vmem:[%s10164_s14 + $0x268] sm:$0xf] }
 0x2c2   : > { %17698 = vst [vmem:[#allocation221_spill] sm:$0xff] %v12526_v28  ;;  %3881 = vrot.lane.b32.xlu1 %v3592_v7, %s10131_s15  ;;  %v3608_v28 = vshrl.u32 %v12498_v32, 16  ;;  %v8999_v7 = vld [vmem:[%s10164_s14 + $0x240] sm:$0xf] }
 0x2c3   : > { %3879 = vrot.lane.b32.xlu0 %v3585_v6, %s10131_s15  ;;  %v12547_v6 = vcombine.low %v9001_v41, %v9002_v21  ;;  %v12554_v32 = vcombine.low %v8999_v7, %v9000_v1  ;;  %v9003_v41 = vld [vmem:[%s10164_s14 + $0x250] sm:$0xf]  ;;  %v3647_v21 = vrot.slane %v3645_v31, 1  ;;  %v12568_v7 = vcombine.low %v9005_v33, %v9006_v24  ;;  %v9008_v31 = vld [vmem:[%s10164_s14 + $0x264] sm:$0x1] }
 0x2c4   : > { %v12540_v27 = vpop.permute.xlu1 %2389  ;;  %v3613_v46 = vor.u32 %v3612_v60, %v3608_v28  ;;  %v3636_v60 = vshrl.u32 %v12533_v9, 16  ;;  %v12572_v12 = vcombine.low %v9003_v41, %v9004_v59  ;;  %v9013_v41 = vld [vmem:[%s10164_s14 + $0x278] sm:$0xf]  ;;  %v9014_v59 = vld [vmem:[%s10164_s14 + $0x27c] sm:$0x1] }
 0x2c5   : > { %17701 = vst [vmem:[#allocation224_spill] sm:$0xff] %v12540_v27  ;;  %v12544_v58 = vpop.permute.xlu0 %2387  ;;  %17703 = vst [vmem:[#allocation226_spill] sm:$0xff] %v12547_v6  ;;  %v3622_v27 = vshrl.u32 %v12519_v36, 16  ;;  %v3659_v28 = vshll.u32 %v12547_v6, 16  ;;  %v3657_v24 = vshrl.u32 %v12547_v6, 16 }
 0x2c6   : > { %17702 = vst [vmem:[#allocation225_spill] sm:$0xff] %v12544_v58  ;;  %3885 = vrot.lane.b32.xlu1 %v3606_v52, %s10131_s15  ;;  %v3626_v58 = vrot.slane %v3624_v37, 1  ;;  %17704 = vst [vmem:[#allocation227_spill] sm:$0xff] %v12554_v32  ;;  %v3640_v37 = vrot.slane %v3638_v34, 1  ;;  %v3673_v34 = vshll.u32 %v12568_v7, 16  ;;  %v3666_v9 = vshll.u32 %v12572_v12, 16 }
 0x2c7   : > { %3883 = vrot.lane.b32.xlu0 %v3599_v15, %s10131_s15  ;;  %v3643_v15 = vshrl.u32 %v12531_v13, 16  ;;  %17707 = vst [vmem:[#allocation230_spill] sm:$0xff] %v12568_v7  ;;  %17708 = vst [vmem:[#allocation231_spill] sm:$0xff] %v12572_v12  ;;  %v3661_v33 = vrot.slane %v3659_v28, 1 }
 0x2c8   : > { %v12558_v39 = vpop.permute.xlu1 %2393  ;;  %v3627_v1 = vor.u32 %v3626_v58, %v3622_v27  ;;  %v3641_v58 = vor.u32 %v3640_v37, %v3636_v60  ;;  %v12600_v60 = vcombine.low %v9013_v41, %v9014_v59  ;;  %v3675_v37 = vrot.slane %v3673_v34, 1  ;;  %v9018_v41 = vld [vmem:[%s10164_s14 + $0x28c] sm:$0x1]  ;;  %v9015_v59 = vld [vmem:[%s10164_s14 + $0x280] sm:$0xf] }
 0x2c9   : > { %17705 = vst [vmem:[#allocation228_spill] sm:$0xff] %v12558_v39  ;;  %v12562_v52 = vpop.permute.xlu0 %2391  ;;  %v9010_v39 = vld [vmem:[%s10164_s14 + $0x26c] sm:$0x1]  ;;  %v3648_v27 = vor.u32 %v3647_v21, %v3643_v15  ;;  %v9012_v15 = vld [vmem:[%s10164_s14 + $0x274] sm:$0x1] }
 0x2ca   : > { %17706 = vst [vmem:[#allocation229_spill] sm:$0xff] %v12562_v52  ;;  %3889 = vrot.lane.b32.xlu1 %v3620_v2, %s10131_s15  ;;  %v3652_v52 = vshll.u32 %v12554_v32, 16  ;;  %v9007_v2 = vld [vmem:[%s10164_s14 + $0x260] sm:$0xf]  ;;  %17714 = vst [vmem:[#allocation237_spill] sm:$0xff] %v12600_v60 }
 0x2cb   : > { %3887 = vrot.lane.b32.xlu0 %v3613_v46, %s10131_s15  ;;  %v12585_v46 = vcombine.low %v9009_v3, %v9010_v39  ;;  %v12592_v6 = vcombine.low %v9007_v2, %v9008_v31  ;;  %v3662_v39 = vor.u32 %v3661_v33, %v3657_v24  ;;  %v3668_v31 = vrot.slane %v3666_v9, 1  ;;  %v9017_v33 = vld [vmem:[%s10164_s14 + $0x288] sm:$0xf]  ;;  %v9016_v34 = vld [vmem:[%s10164_s14 + $0x284] sm:$0x1] }
 0x2cc   : > { %v12576_v13 = vpop.permute.xlu1 %3777 }
 0x2cd   : > { %17709 = vst [vmem:[#allocation232_spill] sm:$0xff] %v12576_v13  ;;  %v12580_v36 = vpop.permute.xlu0 %3775  ;;  %17711 = vst [vmem:[#allocation234_spill] sm:$0xff] %v12585_v46  ;;  %v3650_v13 = vshrl.u32 %v12554_v32, 16  ;;  %v3687_v3 = vshll.u32 %v12585_v46, 16 }
 0x2ce   : > { %17710 = vst [vmem:[#allocation233_spill] sm:$0xff] %v12580_v36  ;;  %3893 = vrot.lane.b32.xlu1 %v3634_v53, %s10131_s15  ;;  %v3654_v36 = vrot.slane %v3652_v52, 1  ;;  %v9011_v53 = vld [vmem:[%s10164_s14 + $0x270] sm:$0xf]  ;;  %v3671_v52 = vshrl.u32 %v12568_v7, 16 }
 0x2cf   : > { %3891 = vrot.lane.b32.xlu0 %v3627_v1, %s10131_s15  ;;  %v3664_v1 = vshrl.u32 %v12572_v12, 16  ;;  %v12608_v24 = vcombine.low %v9011_v53, %v9012_v15  ;;  %v3685_v12 = vshrl.u32 %v12585_v46, 16  ;;  %v3689_v9 = vrot.slane %v3687_v3, 1  ;;  %v9021_v15 = vld [vmem:[%s10164_s14 + $0x298] sm:$0xf] }
 0x2d0   : > { %v12594_v28 = vpop.permute.xlu1 %3781  ;;  %v3655_v2 = vor.u32 %v3654_v36, %v3650_v13  ;;  %v3701_v36 = vshll.u32 %v12600_v60, 16  ;;  %v3676_v13 = vor.u32 %v3675_v37, %v3671_v52  ;;  %v12622_v53 = vcombine.low %v9017_v33, %v9018_v41  ;;  %v9020_v52 = vld [vmem:[%s10164_s14 + $0x294] sm:$0x1] }
 0x2d1   : > { %17712 = vst [vmem:[#allocation235_spill] sm:$0xff] %v12594_v28  ;;  %v12598_v21 = vpop.permute.xlu0 %3779  ;;  %v3680_v28 = vshll.u32 %v12592_v6, 16  ;;  %17715 = vst [vmem:[#allocation238_spill] sm:$0xff] %v12608_v24  ;;  %v3669_v7 = vor.u32 %v3668_v31, %v3664_v1  ;;  %v3694_v32 = vshll.u32 %v12608_v24, 16  ;;  %v12628_v46 = vcombine.low %v9015_v59, %v9016_v34 }
 0x2d2   : > { %17713 = vst [vmem:[#allocation236_spill] sm:$0xff] %v12598_v21  ;;  %3897 = vrot.lane.b32.xlu1 %v3648_v27, %s10131_s15  ;;  %17718 = vst [vmem:[#allocation241_spill] sm:$0xff] %v12622_v53  ;;  %v3699_v3 = vshrl.u32 %v12600_v60, 16  ;;  %v3703_v33 = vrot.slane %v3701_v36, 1  ;;  %v3692_v1 = vshrl.u32 %v12608_v24, 16  ;;  %v3715_v31 = vshll.u32 %v12622_v53, 16 }
 0x2d3   : > { %3895 = vrot.lane.b32.xlu0 %v3641_v58, %s10131_s15  ;;  %v3678_v58 = vshrl.u32 %v12592_v6, 16  ;;  %17719 = vst [vmem:[#allocation242_spill] sm:$0xff] %v12628_v46  ;;  %v3696_v59 = vrot.slane %v3694_v32, 1  ;;  %v3708_v34 = vshll.u32 %v12628_v46, 16  ;;  %v9026_v60 = vld [vmem:[%s10164_s14 + $0x2ac] sm:$0x1] }
 0x2d4   : > { %v12612_v27 = vpop.permute.xlu1 %3785  ;;  %v3713_v32 = vshrl.u32 %v12622_v53, 16 }
 0x2d5   : > { %17716 = vst [vmem:[#allocation239_spill] sm:$0xff] %v12612_v27  ;;  %v12616_v21 = vpop.permute.xlu0 %3783  ;;  %v9022_v27 = vld [vmem:[%s10164_s14 + $0x29c] sm:$0x1] }
 0x2d6   : > { %17717 = vst [vmem:[#allocation240_spill] sm:$0xff] %v12616_v21  ;;  %3901 = vrot.lane.b32.xlu1 %v3662_v39, %s10131_s15  ;;  %v3682_v21 = vrot.slane %v3680_v28, 1  ;;  %v9019_v39 = vld [vmem:[%s10164_s14 + $0x290] sm:$0xf]  ;;  %v3690_v28 = vor.u32 %v3689_v9, %v3685_v12  ;;  %v9024_v12 = vld [vmem:[%s10164_s14 + $0x2a4] sm:$0x1]  ;;  %v3704_v9 = vor.u32 %v3703_v33, %v3699_v3 }
 0x2d7   : > { %3899 = vrot.lane.b32.xlu0 %v3655_v2, %s10131_s15  ;;  %v12637_v2 = vcombine.low %v9021_v15, %v9022_v27  ;;  %v9023_v27 = vld [vmem:[%s10164_s14 + $0x2a0] sm:$0xf]  ;;  %v9029_v3 = vld [vmem:[%s10164_s14 + $0x2b8] sm:$0xf]  ;;  %v9030_v33 = vld [vmem:[%s10164_s14 + $0x2bc] sm:$0x1] }
 0x2d8   : > { %v12630_v42 = vpop.permute.xlu1 %3789  ;;  %v3683_v41 = vor.u32 %v3682_v21, %v3678_v58  ;;  %v3717_v21 = vrot.slane %v3715_v31, 1  ;;  %v3706_v58 = vshrl.u32 %v12628_v46, 16  ;;  %v9028_v31 = vld [vmem:[%s10164_s14 + $0x2b4] sm:$0x1]  ;;  %v9034_v46 = vld [vmem:[%s10164_s14 + $0x2cc] sm:$0x1] }
 0x2d9   : > { %17720 = vst [vmem:[#allocation243_spill] sm:$0xff] %v12630_v42  ;;  %v12634_v37 = vpop.permute.xlu0 %3787  ;;  %17722 = vst [vmem:[#allocation245_spill] sm:$0xff] %v12637_v2  ;;  %v12644_v42 = vcombine.low %v9019_v39, %v9020_v52  ;;  %v3697_v39 = vor.u32 %v3696_v59, %v3692_v1  ;;  %v3710_v52 = vrot.slane %v3708_v34, 1  ;;  %v12676_v34 = vcombine.low %v9029_v3, %v9030_v33 }
 0x2da   : > { %17721 = vst [vmem:[#allocation244_spill] sm:$0xff] %v12634_v37  ;;  %3905 = vrot.lane.b32.xlu1 %v3676_v13, %s10131_s15  ;;  %v9025_v37 = vld [vmem:[%s10164_s14 + $0x2a8] sm:$0xf]  ;;  %v3718_v1 = vor.u32 %v3717_v21, %v3713_v32  ;;  %v9032_v32 = vld [vmem:[%s10164_s14 + $0x2c4] sm:$0x1] }
 0x2db   : > { %3903 = vrot.lane.b32.xlu0 %v3669_v7, %s10131_s15  ;;  %17723 = vst [vmem:[#allocation246_spill] sm:$0xff] %v12644_v42  ;;  %v3729_v7 = vshll.u32 %v12637_v2, 16  ;;  %v12658_v15 = vcombine.low %v9025_v37, %v9026_v60  ;;  %v3727_v60 = vshrl.u32 %v12637_v2, 16  ;;  %v9033_v2 = vld [vmem:[%s10164_s14 + $0x2c8] sm:$0xf] }
 0x2dc   : > { %v12648_v36 = vpop.permute.xlu1 %3793 }
 0x2dd   : > { %17724 = vst [vmem:[#allocation247_spill] sm:$0xff] %v12648_v36  ;;  %v12652_v13 = vpop.permute.xlu0 %3791  ;;  %v3722_v36 = vshll.u32 %v12644_v42, 16  ;;  %v3731_v37 = vrot.slane %v3729_v7, 1  ;;  %v3743_v59 = vshll.u32 %v12658_v15, 16  ;;  %v3741_v3 = vshrl.u32 %v12658_v15, 16 }
 0x2de   : > { %17725 = vst [vmem:[#allocation248_spill] sm:$0xff] %v12652_v13  ;;  %3909 = vrot.lane.b32.xlu1 %v3690_v28, %s10131_s15  ;;  %v12662_v13 = vcombine.low %v9023_v27, %v9024_v12  ;;  %v9027_v28 = vld [vmem:[%s10164_s14 + $0x2b0] sm:$0xf]  ;;  %v3711_v27 = vor.u32 %v3710_v52, %v3706_v58  ;;  %v3757_v58 = vshll.u32 %v12676_v34, 16  ;;  %v12694_v52 = vcombine.low %v9033_v2, %v9034_v46 }
 0x2df   : > { %3907 = vrot.lane.b32.xlu0 %v3683_v41, %s10131_s15  ;;  %v3720_v41 = vshrl.u32 %v12644_v42, 16  ;;  %v3724_v12 = vrot.slane %v3722_v36, 1  ;;  %v3732_v42 = vor.u32 %v3731_v37, %v3727_v60 }
 0x2e0   : > { %v12666_v24 = vpop.permute.xlu1 %3797  ;;  %v3734_v36 = vshrl.u32 %v12662_v13, 16  ;;  %v3771_v46 = vshll.u32 %v12694_v52, 16 }
 0x2e1   : > { %17726 = vst [vmem:[#allocation249_spill] sm:$0xff] %v12666_v24  ;;  %v12670_v53 = vpop.permute.xlu0 %3795  ;;  %v12680_v24 = vcombine.low %v9027_v28, %v9028_v31  ;;  %v3725_v33 = vor.u32 %v3724_v12, %v3720_v41 }
 0x2e2   : > { %17727 = vst [vmem:[#allocation250_spill] sm:$0xff] %v12670_v53  ;;  %3913 = vrot.lane.b32.xlu1 %v3704_v9, %s10131_s15  ;;  %v3736_v53 = vshll.u32 %v12662_v13, 16  ;;  %v9031_v9 = vld [vmem:[%s10164_s14 + $0x2c0] sm:$0xf] }
 0x2e3   : > { %3911 = vrot.lane.b32.xlu0 %v3697_v39, %s10131_s15  ;;  %v3745_v39 = vrot.slane %v3743_v59, 1  ;;  %v3750_v31 = vshll.u32 %v12680_v24, 16  ;;  %v3755_v59 = vshrl.u32 %v12676_v34, 16 }
 0x2e4   : > { %v12684_v7 = vpop.permute.xlu1 %3801  ;;  %v3738_v28 = vrot.slane %v3736_v53, 1  ;;  %v3748_v53 = vshrl.u32 %v12680_v24, 16 }
 0x2e5   : > { %17728 = vst [vmem:[#allocation251_spill] sm:$0xff] %v12684_v7  ;;  %v12688_v21 = vpop.permute.xlu0 %3799  ;;  %v12698_v7 = vcombine.low %v9031_v9, %v9032_v32  ;;  %v3752_v41 = vrot.slane %v3750_v31, 1  ;;  %v3769_v32 = vshrl.u32 %v12694_v52, 16 }
 0x2e6   : > { %17729 = vst [vmem:[#allocation252_spill] sm:$0xff] %v12688_v21  ;;  %3917 = vrot.lane.b32.xlu1 %v3718_v1, %s10131_s15  ;;  %v3746_v1 = vor.u32 %v3745_v39, %v3741_v3  ;;  %v3759_v21 = vrot.slane %v3757_v58, 1  ;;  %v3739_v2 = vor.u32 %v3738_v28, %v3734_v36  ;;  %v3773_v3 = vrot.slane %v3771_v46, 1 }
 0x2e7   : > { %3915 = vrot.lane.b32.xlu0 %v3711_v27, %s10131_s15  ;;  %v3764_v27 = vshll.u32 %v12698_v7, 16  ;;  %v3753_v39 = vor.u32 %v3752_v41, %v3748_v53  ;;  %v3762_v36 = vshrl.u32 %v12698_v7, 16  ;;  %v3936_v46 = vrot.slane %v11984_v10, 1 }
 0x2e8   : > { %v12700_v60 = vpop.permute.xlu1 %3805  ;;  %v3774_v31 = vor.u32 %v3773_v3, %v3769_v32  ;;  %v3940_v10 = vrot.slane %v12020_v14, 1  ;;  %v3943_v14 = vrot.slane %v12068_v4, 1  ;;  %v3947_v4 = vrot.slane %v12102_v16, 1 }
 0x2e9   : > { %v12702_v37 = vpop.permute.xlu0 %3803  ;;  %v3766_v58 = vrot.slane %v3764_v27, 1  ;;  %v3938_v27 = vrot.slane %v11998_v11, 1  ;;  %v3942_v11 = vrot.slane %v12042_v51, 1  ;;  %v3945_v51 = vrot.slane %v12088_v61, 1 }
 0x2ea   : > { %3921 = vrot.lane.b32.xlu1 %v3732_v42, %s10131_s15  ;;  %v3760_v42 = vor.u32 %v3759_v21, %v3755_v59  ;;  %v3950_v61 = vrot.slane %v12118_v47, 1  ;;  %v3951_v16 = vrot.slane %v12140_v18, 1  ;;  %v3953_v47 = vrot.slane %v12160_v17, 1 }
 0x2eb   : > { %3919 = vrot.lane.b32.xlu0 %v3725_v33, %s10131_s15  ;;  %v3956_v18 = vrot.slane %v12169_v63, 1  ;;  %v3957_v17 = vrot.slane %v12194_v48, 1  ;;  %v3959_v63 = vrot.slane %v12214_v20, 1  ;;  %v3961_v48 = vrot.slane %v12228_v56, 1 }
 0x2ec   : > { %v12710_v12 = vpop.permute.xlu1 %3809  ;;  %v3964_v20 = vrot.slane %v12244_v44, 1  ;;  %v3965_v56 = vrot.slane %v12266_v43, 1  ;;  %v3967_v44 = vrot.slane %v12286_v38, 1  ;;  %v3970_v43 = vrot.slane %v12295_v40, 1  ;;  %v17742_v40 = vld [vmem:[#allocation178_spill] sm:$0xff] }
 0x2ed   : > { %v12712_v9 = vpop.permute.xlu0 %3807 }
 0x2ee   : > { %3925 = vrot.lane.b32.xlu1 %v3746_v1, %s10131_s15  ;;  %v3767_v1 = vor.u32 %v3766_v58, %v3762_v36 }
 0x2ef   : > { %3923 = vrot.lane.b32.xlu0 %v3739_v2, %s10131_s15  ;;  %v3935_v2 = vrot.slane %v11990_v30, 1  ;;  %v3939_v30 = vrot.slane %v12028_v22, 1  ;;  %v3944_v22 = vrot.slane %v12064_v45, 1  ;;  %v3948_v45 = vrot.slane %v12097_v25, 1 }
 0x2f0   : > { %v12718_v33 = vpop.permute.xlu1 %3813  ;;  %v3952_v25 = vrot.slane %v12133_v26, 1  ;;  %v3955_v26 = vrot.slane %v12176_v29, 1  ;;  %v3960_v29 = vrot.slane %v12208_v55, 1  ;;  %v3963_v55 = vrot.slane %v12250_v62, 1 }
 0x2f1   : > { %17730 = vst [vmem:[#allocation253_spill] sm:$0xff] %v12718_v33  ;;  %v12720_v28 = vpop.permute.xlu0 %3811  ;;  %v3968_v62 = vrot.slane %v12279_v5, 1  ;;  %v17739_v5 = vld [vmem:[#allocation174_spill] sm:$0xff] }
 0x2f2   : > { %3929 = vrot.lane.b32.xlu1 %v3760_v42, %s10131_s15  ;;  %v3937_v42 = vrot.slane %v12006_v23, 1  ;;  %v3941_v23 = vrot.slane %v12050_v0, 1  ;;  %v3946_v0 = vrot.slane %v12082_v50, 1  ;;  %v3949_v50 = vrot.slane %v12124_v19, 1 }
 0x2f3   : > { %3927 = vrot.lane.b32.xlu0 %v3753_v39, %s10131_s15  ;;  %v3954_v19 = vrot.slane %v12153_v8, 1  ;;  %v3958_v8 = vrot.slane %v12190_v54, 1  ;;  %v3962_v54 = vrot.slane %v12223_v57, 1  ;;  %v3966_v57 = vrot.slane %v12259_v35, 1 }
 0x2f4   : > { %v12724_v21 = vpop.permute.xlu1 %3817  ;;  %v3969_v35 = vrot.slane %v12302_v49, 1  ;;  %v3972_v38 = vrot.slane %v17739_v5, 1  ;;  %v3974_v49 = vrot.slane %v17742_v40, 1 }
 0x2f5   : > { %v12726_v59 = vpop.permute.xlu0 %3815 }
 0x2f6   : > { %17731 = vst [vmem:[#allocation254_spill] sm:$0xff] %v12726_v59  ;;  %3933 = vrot.lane.b32.xlu1 %v3774_v31, %s10131_s15 }
 0x2f7   : > { %3931 = vrot.lane.b32.xlu0 %v3767_v1, %s10131_s15 }
 0x2f8   : > { %v12732_v53 = vpop.permute.xlu1 %3821 }
 0x2f9   : > { %v12734_v41 = vpop.permute.xlu0 %3819 }
 0x2fa   : > { %4017 = vrot.lane.b32.xlu1 %v3936_v46, %s10132_s16 }
 0x2fb   : > { %4015 = vrot.lane.b32.xlu0 %v3935_v2, %s10132_s16 }
 0x2fc   : > { %v12740_v32 = vpop.permute.xlu1 %3825 }
 0x2fd   : > { %v12742_v3 = vpop.permute.xlu0 %3823 }
 0x2fe   : > { %4021 = vrot.lane.b32.xlu1 %v3938_v27, %s10132_s16 }
 0x2ff   : > { %4019 = vrot.lane.b32.xlu0 %v3937_v42, %s10132_s16 }
 0x300   : > { %v12748_v39 = vpop.permute.xlu1 %3829 }
 0x301   : > { %v12750_v36 = vpop.permute.xlu0 %3827 }
 0x302   : > { %4025 = vrot.lane.b32.xlu1 %v3940_v10, %s10132_s16 }
 0x303   : > { %4023 = vrot.lane.b32.xlu0 %v3939_v30, %s10132_s16 }
 0x304   : > { %v12756_v58 = vpop.permute.xlu1 %3833 }
 0x305   : > { %17732 = vst [vmem:[#allocation255_spill] sm:$0xff] %v12756_v58  ;;  %v12758_v31 = vpop.permute.xlu0 %3831 }
 0x306   : > { %4029 = vrot.lane.b32.xlu1 %v3942_v11, %s10132_s16 }
 0x307   : > { %4027 = vrot.lane.b32.xlu0 %v3941_v23, %s10132_s16 }
 0x308   : > { %v12764_v1 = vpop.permute.xlu1 %3837 }
 0x309   : > { %v12766_v46 = vpop.permute.xlu0 %3835 }
 0x30a   : > { %17733 = vst [vmem:[#allocation256_spill] sm:$0xff] %v12766_v46  ;;  %4033 = vrot.lane.b32.xlu1 %v3944_v22, %s10132_s16 }
 0x30b   : > { %4031 = vrot.lane.b32.xlu0 %v3943_v14, %s10132_s16 }
 0x30c   : > { %v12772_v2 = vpop.permute.xlu1 %3841 }
 0x30d   : > { %v12774_v27 = vpop.permute.xlu0 %3839 }
 0x30e   : > { %4037 = vrot.lane.b32.xlu1 %v3946_v0, %s10132_s16 }
 0x30f   : > { %4035 = vrot.lane.b32.xlu0 %v3945_v51, %s10132_s16 }
 0x310   : > { %v12780_v42 = vpop.permute.xlu1 %3845 }
 0x311   : > { %v12782_v10 = vpop.permute.xlu0 %3843 }
 0x312   : > { %4041 = vrot.lane.b32.xlu1 %v3948_v45, %s10132_s16 }
 0x313   : > { %4039 = vrot.lane.b32.xlu0 %v3947_v4, %s10132_s16 }
 0x314   : > { %v12788_v30 = vpop.permute.xlu1 %3849 }
 0x315   : > { %v12790_v11 = vpop.permute.xlu0 %3847 }
 0x316   : > { %4045 = vrot.lane.b32.xlu1 %v3950_v61, %s10132_s16 }
 0x317   : > { %4043 = vrot.lane.b32.xlu0 %v3949_v50, %s10132_s16 }
 0x318   : > { %v12796_v23 = vpop.permute.xlu1 %3853 }
 0x319   : > { %17734 = vst [vmem:[#allocation257_spill] sm:$0xff] %v12796_v23  ;;  %v12798_v22 = vpop.permute.xlu0 %3851 }
 0x31a   : > { %4049 = vrot.lane.b32.xlu1 %v3952_v25, %s10132_s16 }
 0x31b   : > { %4047 = vrot.lane.b32.xlu0 %v3951_v16, %s10132_s16 }
 0x31c   : > { %v12804_v14 = vpop.permute.xlu1 %3857 }
 0x31d   : > { %v12806_v0 = vpop.permute.xlu0 %3855 }
 0x31e   : > { %17735 = vst [vmem:[#allocation258_spill] sm:$0xff] %v12806_v0  ;;  %4053 = vrot.lane.b32.xlu1 %v3954_v19, %s10132_s16 }
 0x31f   : > { %4051 = vrot.lane.b32.xlu0 %v3953_v47, %s10132_s16 }
 0x320   : > { %v12812_v51 = vpop.permute.xlu1 %3861 }
 0x321   : > { %v12814_v45 = vpop.permute.xlu0 %3859 }
 0x322   : > { %4057 = vrot.lane.b32.xlu1 %v3956_v18, %s10132_s16 }
 0x323   : > { %4055 = vrot.lane.b32.xlu0 %v3955_v26, %s10132_s16 }
 0x324   : > { %v12820_v4 = vpop.permute.xlu1 %3865 }
 0x325   : > { %v12822_v61 = vpop.permute.xlu0 %3863 }
 0x326   : > { %4061 = vrot.lane.b32.xlu1 %v3958_v8, %s10132_s16 }
 0x327   : > { %4059 = vrot.lane.b32.xlu0 %v3957_v17, %s10132_s16 }
 0x328   : > { %v12828_v50 = vpop.permute.xlu1 %3869 }
 0x329   : > { %v12830_v25 = vpop.permute.xlu0 %3867 }
 0x32a   : > { %4065 = vrot.lane.b32.xlu1 %v3960_v29, %s10132_s16 }
 0x32b   : > { %4063 = vrot.lane.b32.xlu0 %v3959_v63, %s10132_s16 }
 0x32c   : > { %v12836_v16 = vpop.permute.xlu1 %3873 }
 0x32d   : > { %17736 = vst [vmem:[#allocation259_spill] sm:$0xff] %v12836_v16  ;;  %v12838_v19 = vpop.permute.xlu0 %3871 }
 0x32e   : > { %4069 = vrot.lane.b32.xlu1 %v3962_v54, %s10132_s16 }
 0x32f   : > { %4067 = vrot.lane.b32.xlu0 %v3961_v48, %s10132_s16  ;;  %v17740_v48 = vld [vmem:[#allocation175_spill] sm:$0xff] }
 0x330   : > { %v12844_v47 = vpop.permute.xlu1 %3877 }
 0x331   : > { %v12846_v18 = vpop.permute.xlu0 %3875 }
 0x332   : > { %17737 = vst [vmem:[#allocation260_spill] sm:$0xff] %v12846_v18  ;;  %4073 = vrot.lane.b32.xlu1 %v3964_v20, %s10132_s16  ;;  %v3971_v20 = vrot.slane %v17740_v48, 1  ;;  %v17747_v48 = vld [vmem:[#allocation183_spill] sm:$0xff] }
 0x333   : > { %4071 = vrot.lane.b32.xlu0 %v3963_v55, %s10132_s16  ;;  %v3975_v0 = vrot.slane %v17747_v48, 1  ;;  %v17755_v48 = vld [vmem:[#allocation191_spill] sm:$0xff] }
 0x334   : > { %v12852_v26 = vpop.permute.xlu1 %3881  ;;  %v3979_v46 = vrot.slane %v17755_v48, 1  ;;  %v17763_v48 = vld [vmem:[#allocation199_spill] sm:$0xff] }
 0x335   : > { %v12854_v8 = vpop.permute.xlu0 %3879  ;;  %v3983_v58 = vrot.slane %v17763_v48, 1  ;;  %v17771_v48 = vld [vmem:[#allocation207_spill] sm:$0xff] }
 0x336   : > { %4077 = vrot.lane.b32.xlu1 %v3966_v57, %s10132_s16 }
 0x337   : > { %4075 = vrot.lane.b32.xlu0 %v3965_v56, %s10132_s16  ;;  %v17743_v56 = vld [vmem:[#allocation179_spill] sm:$0xff] }
 0x338   : > { %v12860_v17 = vpop.permute.xlu1 %3885 }
 0x339   : > { %v12862_v29 = vpop.permute.xlu0 %3883 }
 0x33a   : > { %4081 = vrot.lane.b32.xlu1 %v3968_v62, %s10132_s16  ;;  %v3973_v62 = vrot.slane %v17743_v56, 1  ;;  %v17751_v56 = vld [vmem:[#allocation187_spill] sm:$0xff] }
 0x33b   : > { %4079 = vrot.lane.b32.xlu0 %v3967_v44, %s10132_s16 }
 0x33c   : > { %v12868_v63 = vpop.permute.xlu1 %3889 }
 0x33d   : > { %17738 = vst [vmem:[#allocation261_spill] sm:$0xff] %v12868_v63  ;;  %v12870_v54 = vpop.permute.xlu0 %3887 }
 0x33e   : > { %4085 = vrot.lane.b32.xlu1 %v3970_v43, %s10132_s16 }
 0x33f   : > { %4083 = vrot.lane.b32.xlu0 %v3969_v35, %s10132_s16  ;;  %v17746_v35 = vld [vmem:[#allocation182_spill] sm:$0xff] }
 0x340   : > { %v12876_v55 = vpop.permute.xlu1 %3893  ;;  %v3976_v5 = vrot.slane %v17746_v35, 1 }
 0x341   : > { %17741 = vst [vmem:[#allocation174_spill] sm:$0xff] %v12876_v55  ;;  %v12878_v57 = vpop.permute.xlu0 %3891 }
 0x342   : > { %4089 = vrot.lane.b32.xlu1 %v3972_v38, %s10132_s16 }
 0x343   : > { %4087 = vrot.lane.b32.xlu0 %v3971_v20, %s10132_s16  ;;  %v17750_v20 = vld [vmem:[#allocation186_spill] sm:$0xff] }
 0x344   : > { %v12884_v44 = vpop.permute.xlu1 %3897  ;;  %v3978_v40 = vrot.slane %v17750_v20, 1 }
 0x345   : > { %17744 = vst [vmem:[#allocation175_spill] sm:$0xff] %v12884_v44  ;;  %v12886_v43 = vpop.permute.xlu0 %3895 }
 0x346   : > { %17745 = vst [vmem:[#allocation178_spill] sm:$0xff] %v12886_v43  ;;  %4093 = vrot.lane.b32.xlu1 %v3974_v49, %s10132_s16  ;;  %v3977_v43 = vrot.slane %v17751_v56, 1  ;;  %v17759_v56 = vld [vmem:[#allocation195_spill] sm:$0xff] }
 0x347   : > { %4091 = vrot.lane.b32.xlu0 %v3973_v62, %s10132_s16  ;;  %v17754_v62 = vld [vmem:[#allocation190_spill] sm:$0xff]  ;;  %v3981_v16 = vrot.slane %v17759_v56, 1  ;;  %v17767_v56 = vld [vmem:[#allocation203_spill] sm:$0xff] }
 0x348   : > { %v12892_v18 = vpop.permute.xlu1 %3901  ;;  %v3980_v35 = vrot.slane %v17754_v62, 1 }
 0x349   : > { %17748 = vst [vmem:[#allocation179_spill] sm:$0xff] %v12892_v18  ;;  %v12894_v38 = vpop.permute.xlu0 %3899 }
 0x34a   : > { %17749 = vst [vmem:[#allocation182_spill] sm:$0xff] %v12894_v38  ;;  %4097 = vrot.lane.b32.xlu1 %v3976_v5, %s10132_s16 }
 0x34b   : > { %4095 = vrot.lane.b32.xlu0 %v3975_v0, %s10132_s16  ;;  %v17758_v0 = vld [vmem:[#allocation194_spill] sm:$0xff] }
 0x34c   : > { %v12900_v59 = vpop.permute.xlu1 %3905  ;;  %v3982_v20 = vrot.slane %v17758_v0, 1 }
 0x34d   : > { %17752 = vst [vmem:[#allocation183_spill] sm:$0xff] %v12900_v59  ;;  %v12902_v49 = vpop.permute.xlu0 %3903 }
 0x34e   : > { %17753 = vst [vmem:[#allocation186_spill] sm:$0xff] %v12902_v49  ;;  %4101 = vrot.lane.b32.xlu1 %v3978_v40, %s10132_s16 }
 0x34f   : > { %4099 = vrot.lane.b32.xlu0 %v3977_v43, %s10132_s16  ;;  %v17762_v43 = vld [vmem:[#allocation197_spill] sm:$0xff] }
 0x350   : > { %v12908_v55 = vpop.permute.xlu1 %3909  ;;  %v3984_v62 = vrot.slane %v17762_v43, 1 }
 0x351   : > { %17756 = vst [vmem:[#allocation187_spill] sm:$0xff] %v12908_v55  ;;  %v12910_v5 = vpop.permute.xlu0 %3907 }
 0x352   : > { %17757 = vst [vmem:[#allocation190_spill] sm:$0xff] %v12910_v5  ;;  %4105 = vrot.lane.b32.xlu1 %v3980_v35, %s10132_s16 }
 0x353   : > { %4103 = vrot.lane.b32.xlu0 %v3979_v46, %s10132_s16  ;;  %v17766_v46 = vld [vmem:[#allocation202_spill] sm:$0xff] }
 0x354   : > { %v12916_v23 = vpop.permute.xlu1 %3913  ;;  %v3986_v0 = vrot.slane %v17766_v46, 1 }
 0x355   : > { %17760 = vst [vmem:[#allocation191_spill] sm:$0xff] %v12916_v23  ;;  %v12918_v40 = vpop.permute.xlu0 %3911  ;;  %v3985_v23 = vrot.slane %v17767_v56, 1  ;;  %v17775_v56 = vld [vmem:[#allocation211_spill] sm:$0xff] }
 0x356   : > { %17761 = vst [vmem:[#allocation194_spill] sm:$0xff] %v12918_v40  ;;  %4109 = vrot.lane.b32.xlu1 %v3982_v20, %s10132_s16 }
 0x357   : > { %4107 = vrot.lane.b32.xlu0 %v3981_v16, %s10132_s16  ;;  %v17770_v16 = vld [vmem:[#allocation206_spill] sm:$0xff] }
 0x358   : > { %v12924_v33 = vpop.permute.xlu1 %3917  ;;  %v3988_v43 = vrot.slane %v17770_v16, 1 }
 0x359   : > { %17764 = vst [vmem:[#allocation195_spill] sm:$0xff] %v12924_v33  ;;  %v12926_v35 = vpop.permute.xlu0 %3915 }
 0x35a   : > { %17765 = vst [vmem:[#allocation197_spill] sm:$0xff] %v12926_v35  ;;  %4113 = vrot.lane.b32.xlu1 %v3984_v62, %s10132_s16  ;;  %v3987_v35 = vrot.slane %v17771_v48, 1  ;;  %v17779_v48 = vld [vmem:[#allocation215_spill] sm:$0xff] }
 0x35b   : > { %4111 = vrot.lane.b32.xlu0 %v3983_v58, %s10132_s16  ;;  %v17774_v58 = vld [vmem:[#allocation210_spill] sm:$0xff] }
 0x35c   : > { %v12932_v55 = vpop.permute.xlu1 %3921  ;;  %v3990_v46 = vrot.slane %v17774_v58, 1 }
 0x35d   : > { %17768 = vst [vmem:[#allocation199_spill] sm:$0xff] %v12932_v55  ;;  %v12934_v20 = vpop.permute.xlu0 %3919  ;;  %v3989_v55 = vrot.slane %v17775_v56, 1  ;;  %v17783_v56 = vld [vmem:[#allocation219_spill] sm:$0xff] }
 0x35e   : > { %17769 = vst [vmem:[#allocation202_spill] sm:$0xff] %v12934_v20  ;;  %4117 = vrot.lane.b32.xlu1 %v3986_v0, %s10132_s16 }
 0x35f   : > { %4115 = vrot.lane.b32.xlu0 %v3985_v23, %s10132_s16  ;;  %v17778_v23 = vld [vmem:[#allocation214_spill] sm:$0xff] }
 0x360   : > { %v12940_v33 = vpop.permute.xlu1 %3925  ;;  %v3992_v16 = vrot.slane %v17778_v23, 1 }
 0x361   : > { %17772 = vst [vmem:[#allocation203_spill] sm:$0xff] %v12940_v33  ;;  %v12942_v62 = vpop.permute.xlu0 %3923  ;;  %v3991_v33 = vrot.slane %v17779_v48, 1  ;;  %v17786_v48 = vld [vmem:[#allocation223_spill] sm:$0xff] }
 0x362   : > { %17773 = vst [vmem:[#allocation206_spill] sm:$0xff] %v12942_v62  ;;  %4121 = vrot.lane.b32.xlu1 %v3988_v43, %s10132_s16 }
 0x363   : > { %4119 = vrot.lane.b32.xlu0 %v3987_v35, %s10132_s16  ;;  %v17782_v35 = vld [vmem:[#allocation218_spill] sm:$0xff] }
 0x364   : > { %v12948_v20 = vpop.permute.xlu1 %3929  ;;  %v3994_v58 = vrot.slane %v17782_v35, 1 }
 0x365   : > { %17776 = vst [vmem:[#allocation207_spill] sm:$0xff] %v12948_v20  ;;  %v12950_v0 = vpop.permute.xlu0 %3927  ;;  %v3993_v20 = vrot.slane %v17783_v56, 1  ;;  %v17788_v56 = vld [vmem:[#allocation227_spill] sm:$0xff] }
 0x366   : > { %17777 = vst [vmem:[#allocation210_spill] sm:$0xff] %v12950_v0  ;;  %4125 = vrot.lane.b32.xlu1 %v3990_v46, %s10132_s16 }
 0x367   : > { %4123 = vrot.lane.b32.xlu0 %v3989_v55, %s10132_s16  ;;  %v17785_v55 = vld [vmem:[#allocation222_spill] sm:$0xff] }
 0x368   : > { %v12956_v62 = vpop.permute.xlu1 %3933  ;;  %v3996_v23 = vrot.slane %v17785_v55, 1 }
 0x369   : > { %17780 = vst [vmem:[#allocation211_spill] sm:$0xff] %v12956_v62  ;;  %v12958_v43 = vpop.permute.xlu0 %3931  ;;  %v3995_v62 = vrot.slane %v17786_v48, 1  ;;  %v17790_v48 = vld [vmem:[#allocation231_spill] sm:$0xff] }
 0x36a   : > { %17781 = vst [vmem:[#allocation214_spill] sm:$0xff] %v12958_v43  ;;  %4129 = vrot.lane.b32.xlu1 %v3992_v16, %s10132_s16  ;;  %v3999_v59 = vrot.slane %v17790_v48, 1  ;;  %v17794_v48 = vld [vmem:[#allocation238_spill] sm:$0xff] }
 0x36b   : > { %4127 = vrot.lane.b32.xlu0 %v3991_v33, %s10132_s16  ;;  %v17787_v33 = vld [vmem:[#allocation226_spill] sm:$0xff]  ;;  %v4003_v49 = vrot.slane %v17794_v48, 1 }
 0x36c   : > { %v12964_v0 = vpop.permute.xlu1 %4017  ;;  %v3998_v35 = vrot.slane %v17787_v33, 1  ;;  %v17799_v48 = vld [vmem:[#allocation246_spill] sm:$0xff] }
 0x36d   : > { %v12966_v46 = vpop.permute.xlu0 %4015 }
 0x36e   : > { %17784 = vst [vmem:[#allocation215_spill] sm:$0xff] %v12966_v46  ;;  %4133 = vrot.lane.b32.xlu1 %v3994_v58, %s10132_s16  ;;  %v3997_v46 = vrot.slane %v17788_v56, 1  ;;  %v4001_v56 = vrot.slane %v12592_v6, 1 }
 0x36f   : > { %4131 = vrot.lane.b32.xlu0 %v3993_v20, %s10132_s16  ;;  %v17789_v20 = vld [vmem:[#allocation230_spill] sm:$0xff] }
 0x370   : > { %v12972_v43 = vpop.permute.xlu1 %4021  ;;  %v4000_v55 = vrot.slane %v17789_v20, 1 }
 0x371   : > { %v12974_v16 = vpop.permute.xlu0 %4019 }
 0x372   : > { %4137 = vrot.lane.b32.xlu1 %v3996_v23, %s10132_s16 }
 0x373   : > { %4135 = vrot.lane.b32.xlu0 %v3995_v62, %s10132_s16  ;;  %v17791_v62 = vld [vmem:[#allocation234_spill] sm:$0xff] }
 0x374   : > { %v12980_v40 = vpop.permute.xlu1 %4025  ;;  %v4002_v33 = vrot.slane %v17791_v62, 1  ;;  %v17797_v62 = vld [vmem:[#allocation242_spill] sm:$0xff] }
 0x375   : > { %v12982_v58 = vpop.permute.xlu0 %4023 }
 0x376   : > { %4141 = vrot.lane.b32.xlu1 %v3998_v35, %s10132_s16 }
 0x377   : > { %4139 = vrot.lane.b32.xlu0 %v3997_v46, %s10132_s16  ;;  %v17793_v46 = vld [vmem:[#allocation237_spill] sm:$0xff] }
 0x378   : > { %v12988_v5 = vpop.permute.xlu1 %4029  ;;  %v4004_v20 = vrot.slane %v17793_v46, 1 }
 0x379   : > { %v12990_v23 = vpop.permute.xlu0 %4027 }
 0x37a   : > { %4145 = vrot.lane.b32.xlu1 %v4000_v55, %s10132_s16 }
 0x37b   : > { %4143 = vrot.lane.b32.xlu0 %v3999_v59, %s10132_s16  ;;  %v17796_v59 = vld [vmem:[#allocation241_spill] sm:$0xff] }
 0x37c   : > { %v12996_v18 = vpop.permute.xlu1 %4033  ;;  %v4006_v6 = vrot.slane %v17796_v59, 1  ;;  %v4009_v59 = vrot.slane %v12662_v13, 1  ;;  %v4014_v13 = vrot.slane %v12694_v52, 1  ;;  %v9956_v52 = vld [vmem:[%s10164_s14 + $0x58] sm:$0xf] }
 0x37d   : > { %17792 = vst [vmem:[#allocation218_spill] sm:$0xff] %v12996_v18  ;;  %v12998_v35 = vpop.permute.xlu0 %4031  ;;  %v4005_v18 = vrot.slane %v17797_v62, 1 }
 0x37e   : > { %4149 = vrot.lane.b32.xlu1 %v4002_v33, %s10132_s16 }
 0x37f   : > { %4147 = vrot.lane.b32.xlu0 %v4001_v56, %s10132_s16  ;;  %v17798_v56 = vld [vmem:[#allocation245_spill] sm:$0xff] }
 0x380   : > { %v13004_v44 = vpop.permute.xlu1 %4037  ;;  %v4008_v46 = vrot.slane %v17798_v56, 1  ;;  %v4011_v56 = vrot.slane %v12680_v24, 1  ;;  %v9955_v24 = vld [vmem:[%s10164_s14 + $0x60] sm:$0xf] }
 0x381   : > { %v13006_v55 = vpop.permute.xlu0 %4035 }
 0x382   : > { %17795 = vst [vmem:[#allocation219_spill] sm:$0xff] %v13006_v55  ;;  %4153 = vrot.lane.b32.xlu1 %v4004_v20, %s10132_s16  ;;  %v4007_v55 = vrot.slane %v17799_v48, 1 }
 0x383   : > { %4151 = vrot.lane.b32.xlu0 %v4003_v49, %s10132_s16  ;;  %v4010_v49 = vrot.slane %v12658_v15, 1 }
 0x384   : > { %v13012_v38 = vpop.permute.xlu1 %4041 }
 0x385   : > { %v13014_v33 = vpop.permute.xlu0 %4039 }
 0x386   : > { %4157 = vrot.lane.b32.xlu1 %v4006_v6, %s10132_s16 }
 0x387   : > { %4155 = vrot.lane.b32.xlu0 %v4005_v18, %s10132_s16  ;;  %v4012_v18 = vrot.slane %v12676_v34, 1 }
 0x388   : > { %v13020_v63 = vpop.permute.xlu1 %4045 }
 0x389   : > { %v13022_v20 = vpop.permute.xlu0 %4043 }
 0x38a   : > { %4161 = vrot.lane.b32.xlu1 %v4008_v46, %s10132_s16 }
 0x38b   : > { %4159 = vrot.lane.b32.xlu0 %v4007_v55, %s10132_s16  ;;  %v4013_v55 = vrot.slane %v12698_v7, 1 }
 0x38c   : > { %v13028_v62 = vpop.permute.xlu1 %4049 }
 0x38d   : > { %v13030_v6 = vpop.permute.xlu0 %4047 }
 0x38e   : > { %4165 = vrot.lane.b32.xlu1 %v4010_v49, %s10132_s16  ;;  %v17802_v49 = vld [vmem:[#allocation236_spill] sm:$0xff] }
 0x38f   : > { %4163 = vrot.lane.b32.xlu0 %v4009_v59, %s10132_s16  ;;  %v4183_v59 = vsel %vm1665_vm0, %v9955_v24, %v17802_v49  ;;  %v17806_v24 = vld [vmem:[#allocation240_spill] sm:$0xff] }
 0x390   : > { %v13036_v46 = vpop.permute.xlu1 %4053  ;;  %v13060_v7 = vsel %vm1906_vm1, %v4183_v59, %v12974_v16  ;;  %v9958_v16 = vld [vmem:[%s10164_s14 + $0x68] sm:$0xf] }
 0x391   : > { %17800 = vst [vmem:[#allocation222_spill] sm:$0xff] %v13036_v46  ;;  %v13038_v15 = vpop.permute.xlu0 %4051  ;;  %17804 = vst [vmem:[#allocation226_spill] sm:$0xff] %v13060_v7  ;;  %v17807_v59 = vld [vmem:[#allocation235_spill] sm:$0xff] }
 0x392   : > { %4169 = vrot.lane.b32.xlu1 %v4012_v18, %s10132_s16 }
 0x393   : > { %4167 = vrot.lane.b32.xlu0 %v4011_v56, %s10132_s16  ;;  %v17803_v56 = vld [vmem:[#allocation232_spill] sm:$0xff] }
 0x394   : > { %v13044_v48 = vpop.permute.xlu1 %4057  ;;  %v4180_v46 = vsel %vm1665_vm0, %v9956_v52, %v17803_v56  ;;  %v4186_v56 = vsel %vm1665_vm0, %v9958_v16, %v17807_v59 }
 0x395   : > { %v13046_v34 = vpop.permute.xlu0 %4055 }
 0x396   : > { %17801 = vst [vmem:[#allocation223_spill] sm:$0xff] %v13046_v34  ;;  %4173 = vrot.lane.b32.xlu1 %v4014_v13, %s10132_s16  ;;  %v13066_v13 = vsel %vm1906_vm1, %v4180_v46, %v12964_v0 }
 0x397   : > { %4171 = vrot.lane.b32.xlu0 %v4013_v55, %s10132_s16  ;;  %17805 = vst [vmem:[#allocation227_spill] sm:$0xff] %v13066_v13  ;;  %v9957_v55 = vld [vmem:[%s10164_s14 + $0x70] sm:$0xf] }
 0x398   : > { %v13053_v18 = vpop.permute.xlu1 %4061  ;;  %v4189_v49 = vsel %vm1665_vm0, %v9957_v55, %v17806_v24  ;;  %v9959_v55 = vld [vmem:[%s10164_s14 + $0x80] sm:$0xf]  ;;  %v17810_v24 = vld [vmem:[#allocation244_spill] sm:$0xff] }
 0x399   : > { %v13062_v34 = vpop.permute.xlu0 %4059  ;;  %v13082_v0 = vsel %vm1906_vm1, %v4189_v49, %v12982_v58  ;;  %v4195_v16 = vsel %vm1665_vm0, %v9959_v55, %v17810_v24  ;;  %v9960_v58 = vld [vmem:[%s10164_s14 + $0x78] sm:$0xf]  ;;  %v17811_v49 = vld [vmem:[#allocation239_spill] sm:$0xff]  ;;  %v9961_v55 = vld [vmem:[%s10164_s14 + $0x90] sm:$0xf] }
 0x39a   : > { %4641 = vrot.lane.b32.xlu1 %v13060_v7, %s10133_s17  ;;  %17808 = vst [vmem:[#allocation230_spill] sm:$0xff] %v13082_v0  ;;  %v4192_v7 = vsel %vm1665_vm0, %v9960_v58, %v17811_v49  ;;  %v17814_v24 = vld [vmem:[#allocation248_spill] sm:$0xff] }
 0x39b   : > { %4639 = vrot.lane.b32.xlu0 %v13066_v13, %s10133_s17  ;;  %v13088_v13 = vsel %vm1906_vm1, %v4186_v56, %v12972_v43  ;;  %v13104_v43 = vsel %vm1906_vm1, %v4195_v16, %v12990_v23  ;;  %v4201_v58 = vsel %vm1665_vm0, %v9961_v55, %v17814_v24  ;;  %v9962_v23 = vld [vmem:[%s10164_s14 + $0x88] sm:$0xf]  ;;  %v9963_v55 = vld [vmem:[%s10164_s14 + $0xb0] sm:$0xf] }
 0x39c   : > { %v13075_v52 = vpop.permute.xlu1 %4065  ;;  %17809 = vst [vmem:[#allocation231_spill] sm:$0xff] %v13088_v13  ;;  %17812 = vst [vmem:[#allocation234_spill] sm:$0xff] %v13104_v43  ;;  %v17816_v16 = vld [vmem:[#allocation243_spill] sm:$0xff]  ;;  %v17819_v24 = vld [vmem:[#allocation252_spill] sm:$0xff] }
 0x39d   : > { %v13084_v46 = vpop.permute.xlu0 %4063 }
 0x39e   : > { %4645 = vrot.lane.b32.xlu1 %v13082_v0, %s10133_s17  ;;  %v13110_v0 = vsel %vm1906_vm1, %v4192_v7, %v12980_v40  ;;  %v13126_v40 = vsel %vm1906_vm1, %v4201_v58, %v12998_v35  ;;  %v9964_v35 = vld [vmem:[%s10164_s14 + $0xa8] sm:$0xf]  ;;  %v17820_v58 = vld [vmem:[#allocation249_spill] sm:$0xff] }
 0x39f   : > { %4643 = vrot.lane.b32.xlu0 %v13088_v13, %s10133_s17  ;;  %17813 = vst [vmem:[#allocation237_spill] sm:$0xff] %v13110_v0  ;;  %v4198_v13 = vsel %vm1665_vm0, %v9962_v23, %v17816_v16  ;;  %17817 = vst [vmem:[#allocation241_spill] sm:$0xff] %v13126_v40  ;;  %v4213_v23 = vsel %vm1665_vm0, %v9963_v55, %v17819_v24  ;;  %v9965_v55 = vld [vmem:[%s10164_s14 + $0xc0] sm:$0xf] }
 0x3a0   : > { %v13097_v59 = vpop.permute.xlu1 %4069  ;;  %v4219_v24 = vsel %vm1665_vm0, %v9965_v55, %v12702_v37  ;;  %v9967_v37 = vld [vmem:[%s10164_s14 + $0xd0] sm:$0xf] }
 0x3a1   : > { %v13106_v56 = vpop.permute.xlu0 %4067  ;;  %v4225_v55 = vsel %vm1665_vm0, %v9967_v37, %v12712_v9  ;;  %v9969_v9 = vld [vmem:[%s10164_s14 + $0xe0] sm:$0xf] }
 0x3a2   : > { %4649 = vrot.lane.b32.xlu1 %v13104_v43, %s10133_s17  ;;  %v13132_v43 = vsel %vm1906_vm1, %v4198_v13, %v12988_v5  ;;  %v13148_v5 = vsel %vm1906_vm1, %v4213_v23, %v13014_v33  ;;  %v9966_v33 = vld [vmem:[%s10164_s14 + $0xb8] sm:$0xf]  ;;  %v17824_v23 = vld [vmem:[#allocation251_spill] sm:$0xff] }
 0x3a3   : > { %4647 = vrot.lane.b32.xlu0 %v13110_v0, %s10133_s17  ;;  %17818 = vst [vmem:[#allocation242_spill] sm:$0xff] %v13132_v43  ;;  %17821 = vst [vmem:[#allocation245_spill] sm:$0xff] %v13148_v5 }
 0x3a4   : > { %v13119_v49 = vpop.permute.xlu1 %4073 }
 0x3a5   : > { %17815 = vst [vmem:[#allocation238_spill] sm:$0xff] %v13119_v49  ;;  %v13128_v7 = vpop.permute.xlu0 %4071  ;;  %v4210_v49 = vsel %vm1665_vm0, %v9964_v35, %v17820_v58  ;;  %v4216_v58 = vsel %vm1665_vm0, %v9966_v33, %v17824_v23 }
 0x3a6   : > { %4653 = vrot.lane.b32.xlu1 %v13126_v40, %s10133_s17  ;;  %v13154_v40 = vsel %vm1906_vm1, %v4210_v49, %v13004_v44  ;;  %v13170_v44 = vsel %vm1906_vm1, %v4219_v24, %v13022_v20  ;;  %v9968_v20 = vld [vmem:[%s10164_s14 + $0xc8] sm:$0xf] }
 0x3a7   : > { %4651 = vrot.lane.b32.xlu0 %v13132_v43, %s10133_s17  ;;  %17823 = vst [vmem:[#allocation236_spill] sm:$0xff] %v13154_v40  ;;  %v4222_v24 = vsel %vm1665_vm0, %v9968_v20, %v12700_v60  ;;  %v4231_v60 = vsel %vm1665_vm0, %v9969_v9, %v12720_v28  ;;  %v9971_v28 = vld [vmem:[%s10164_s14 + $0x100] sm:$0xf] }
 0x3a8   : > { %v13141_v16 = vpop.permute.xlu1 %4077 }
 0x3a9   : > { %v13150_v13 = vpop.permute.xlu0 %4075 }
 0x3aa   : > { %17822 = vst [vmem:[#allocation246_spill] sm:$0xff] %v13150_v13  ;;  %4657 = vrot.lane.b32.xlu1 %v13148_v5, %s10133_s17 }
 0x3ab   : > { %4655 = vrot.lane.b32.xlu0 %v13154_v40, %s10133_s17  ;;  %v13176_v40 = vsel %vm1906_vm1, %v4216_v58, %v13012_v38  ;;  %v13192_v38 = vsel %vm1906_vm1, %v4225_v55, %v13030_v6  ;;  %v13198_v58 = vsel %vm1906_vm1, %v4222_v24, %v13020_v63  ;;  %v9970_v6 = vld [vmem:[%s10164_s14 + $0xd8] sm:$0xf]  ;;  %v13214_v63 = vsel %vm1906_vm1, %v4231_v60, %v13038_v15 }
 0x3ac   : > { %v13163_v35 = vpop.permute.xlu1 %4081  ;;  %17825 = vst [vmem:[#allocation232_spill] sm:$0xff] %v13176_v40  ;;  %v4228_v55 = vsel %vm1665_vm0, %v9970_v6, %v12710_v12  ;;  %v4243_v12 = vsel %vm1665_vm0, %v9971_v28, %v12734_v41  ;;  %v9972_v15 = vld [vmem:[%s10164_s14 + $0xf8] sm:$0xf]  ;;  %v9973_v41 = vld [vmem:[%s10164_s14 + $0x110] sm:$0xf] }
 0x3ad   : > { %v13172_v49 = vpop.permute.xlu0 %4079  ;;  %v13220_v24 = vsel %vm1906_vm1, %v4228_v55, %v13028_v62  ;;  %v4240_v60 = vsel %vm1665_vm0, %v9972_v15, %v12724_v21  ;;  %v13236_v62 = vsel %vm1906_vm1, %v4243_v12, %v13062_v34  ;;  %v4249_v21 = vsel %vm1665_vm0, %v9973_v41, %v12742_v3  ;;  %v9974_v34 = vld [vmem:[%s10164_s14 + $0x108] sm:$0xf]  ;;  %v9975_v3 = vld [vmem:[%s10164_s14 + $0x120] sm:$0xf] }
 0x3ae   : > { %4661 = vrot.lane.b32.xlu1 %v13170_v44, %s10133_s17  ;;  %17826 = vst [vmem:[#allocation240_spill] sm:$0xff] %v13236_v62  ;;  %v13242_v55 = vsel %vm1906_vm1, %v4240_v60, %v13044_v48  ;;  %v4246_v12 = vsel %vm1665_vm0, %v9974_v34, %v12732_v53  ;;  %v13258_v48 = vsel %vm1906_vm1, %v4249_v21, %v13084_v46  ;;  %v9976_v46 = vld [vmem:[%s10164_s14 + $0x118] sm:$0xf] }
 0x3af   : > { %4659 = vrot.lane.b32.xlu0 %v13176_v40, %s10133_s17  ;;  %17827 = vst [vmem:[#allocation235_spill] sm:$0xff] %v13242_v55  ;;  %17828 = vst [vmem:[#allocation244_spill] sm:$0xff] %v13258_v48  ;;  %v13264_v60 = vsel %vm1906_vm1, %v4246_v12, %v13053_v18  ;;  %v4255_v53 = vsel %vm1665_vm0, %v9975_v3, %v12750_v36  ;;  %v4252_v21 = vsel %vm1665_vm0, %v9976_v46, %v12740_v32  ;;  %v9977_v36 = vld [vmem:[%s10164_s14 + $0x130] sm:$0xf] }
 0x3b0   : > { %v13185_v33 = vpop.permute.xlu1 %4085  ;;  %17830 = vst [vmem:[#allocation248_spill] sm:$0xff] %v13264_v60  ;;  %v13280_v18 = vsel %vm1906_vm1, %v4255_v53, %v13106_v56  ;;  %v13284_v12 = vsel %vm1906_vm1, %v4252_v21, %v13075_v52  ;;  %v4261_v32 = vsel %vm1665_vm0, %v9977_v36, %v12758_v31  ;;  %v9978_v56 = vld [vmem:[%s10164_s14 + $0x128] sm:$0xf]  ;;  %v9979_v31 = vld [vmem:[%s10164_s14 + $0x150] sm:$0xf] }
 0x3b1   : > { %v13194_v23 = vpop.permute.xlu0 %4083  ;;  %17831 = vst [vmem:[#allocation243_spill] sm:$0xff] %v13280_v18  ;;  %17832 = vst [vmem:[#allocation252_spill] sm:$0xff] %v13284_v12  ;;  %v4258_v53 = vsel %vm1665_vm0, %v9978_v56, %v12748_v39  ;;  %v13300_v52 = vsel %vm1906_vm1, %v4261_v32, %v13128_v7  ;;  %v4273_v39 = vsel %vm1665_vm0, %v9979_v31, %v12774_v27  ;;  %v9980_v7 = vld [vmem:[%s10164_s14 + $0x148] sm:$0xf]  ;;  %v9981_v27 = vld [vmem:[%s10164_s14 + $0x160] sm:$0xf] }
 0x3b2   : > { %4665 = vrot.lane.b32.xlu1 %v13192_v38, %s10133_s17  ;;  %v13304_v21 = vsel %vm1906_vm1, %v4258_v53, %v13097_v59  ;;  %v4270_v32 = vsel %vm1665_vm0, %v9980_v7, %v12764_v1  ;;  %v13320_v59 = vsel %vm1906_vm1, %v4273_v39, %v13172_v49  ;;  %v4279_v1 = vsel %vm1665_vm0, %v9981_v27, %v12782_v10  ;;  %v9982_v49 = vld [vmem:[%s10164_s14 + $0x158] sm:$0xf]  ;;  %v9983_v10 = vld [vmem:[%s10164_s14 + $0x170] sm:$0xf] }
 0x3b3   : > { %4663 = vrot.lane.b32.xlu0 %v13198_v58, %s10133_s17  ;;  %17833 = vst [vmem:[#allocation249_spill] sm:$0xff] %v13304_v21  ;;  %17834 = vst [vmem:[#allocation251_spill] sm:$0xff] %v13320_v59  ;;  %v13324_v53 = vsel %vm1906_vm1, %v4270_v32, %v13141_v16  ;;  %v4276_v39 = vsel %vm1665_vm0, %v9982_v49, %v12772_v2  ;;  %v13340_v16 = vsel %vm1906_vm1, %v4279_v1, %v13194_v23  ;;  %v9984_v23 = vld [vmem:[%s10164_s14 + $0x168] sm:$0xf] }
 0x3b4   : > { %v13207_v37 = vpop.permute.xlu1 %4089  ;;  %17835 = vst [vmem:[#allocation262_spill] sm:$0xff] %v13324_v53  ;;  %v13344_v32 = vsel %vm1906_vm1, %v4276_v39, %v13163_v35  ;;  %v4285_v2 = vsel %vm1665_vm0, %v9983_v10, %v12790_v11  ;;  %v4282_v1 = vsel %vm1665_vm0, %v9984_v23, %v12780_v42  ;;  %v9985_v11 = vld [vmem:[%s10164_s14 + $0x180] sm:$0xf] }
 0x3b5   : > { %v13216_v20 = vpop.permute.xlu0 %4087  ;;  %17836 = vst [vmem:[#allocation263_spill] sm:$0xff] %v13344_v32  ;;  %v13366_v39 = vsel %vm1906_vm1, %v4282_v1, %v13185_v33  ;;  %v4291_v42 = vsel %vm1665_vm0, %v9985_v11, %v12798_v22  ;;  %v9987_v22 = vld [vmem:[%s10164_s14 + $0x1a0] sm:$0xf] }
 0x3b6   : > { %4669 = vrot.lane.b32.xlu1 %v13214_v63, %s10133_s17  ;;  %v13360_v35 = vsel %vm1906_vm1, %v4285_v2, %v13216_v20  ;;  %v9986_v20 = vld [vmem:[%s10164_s14 + $0x178] sm:$0xf] }
 0x3b7   : > { %4667 = vrot.lane.b32.xlu0 %v13220_v24, %s10133_s17  ;;  %v4288_v2 = vsel %vm1665_vm0, %v9986_v20, %v12788_v30  ;;  %v4303_v30 = vsel %vm1665_vm0, %v9987_v22, %v12814_v45  ;;  %v9989_v45 = vld [vmem:[%s10164_s14 + $0x1b0] sm:$0xf] }
 0x3b8   : > { %v13229_v9 = vpop.permute.xlu1 %4093  ;;  %v13386_v1 = vsel %vm1906_vm1, %v4288_v2, %v13207_v37 }
 0x3b9   : > { %v13238_v6 = vpop.permute.xlu0 %4091 }
 0x3ba   : > { %4673 = vrot.lane.b32.xlu1 %v13236_v62, %s10133_s17  ;;  %v13382_v33 = vsel %vm1906_vm1, %v4291_v42, %v13238_v6  ;;  %v9988_v6 = vld [vmem:[%s10164_s14 + $0x198] sm:$0xf] }
 0x3bb   : > { %4671 = vrot.lane.b32.xlu0 %v13242_v55, %s10133_s17  ;;  %v4300_v42 = vsel %vm1665_vm0, %v9988_v6, %v12804_v14  ;;  %v4309_v14 = vsel %vm1665_vm0, %v9989_v45, %v12822_v61  ;;  %v9991_v61 = vld [vmem:[%s10164_s14 + $0x1c0] sm:$0xf] }
 0x3bc   : > { %v13251_v28 = vpop.permute.xlu1 %4097 }
 0x3bd   : > { %v13260_v15 = vpop.permute.xlu0 %4095  ;;  %v13405_v2 = vsel %vm1906_vm1, %v4300_v42, %v13251_v28 }
 0x3be   : > { %17829 = vst [vmem:[#allocation239_spill] sm:$0xff] %v13260_v15  ;;  %4677 = vrot.lane.b32.xlu1 %v13258_v48, %s10133_s17  ;;  %17839 = vst [vmem:[#allocation266_spill] sm:$0xff] %v13405_v2  ;;  %v10004_v15 = vld [vmem:[%s10164_s14 + $0x238] sm:$0xf] }
 0x3bf   : > { %4675 = vrot.lane.b32.xlu0 %v13264_v60, %s10133_s17 }
 0x3c0   : > { %v13273_v41 = vpop.permute.xlu1 %4101 }
 0x3c1   : > { %v4100_v34 = vpop.permute.xlu0 %4099 }
 0x3c2   : > { %4681 = vrot.lane.b32.xlu1 %v13280_v18, %s10133_s17  ;;  %v13401_v37 = vsel %vm1906_vm1, %v4303_v30, %v4100_v34  ;;  %v9990_v34 = vld [vmem:[%s10164_s14 + $0x1a8] sm:$0xf] }
 0x3c3   : > { %4679 = vrot.lane.b32.xlu0 %v13284_v12, %s10133_s17  ;;  %17838 = vst [vmem:[#allocation265_spill] sm:$0xff] %v13401_v37  ;;  %v4306_v30 = vsel %vm1665_vm0, %v9990_v34, %v12812_v51  ;;  %v4315_v51 = vsel %vm1665_vm0, %v9991_v61, %v12830_v25  ;;  %v9993_v25 = vld [vmem:[%s10164_s14 + $0x1d0] sm:$0xf] }
 0x3c4   : > { %v13293_v3 = vpop.permute.xlu1 %4105  ;;  %v13424_v42 = vsel %vm1906_vm1, %v4306_v30, %v13273_v41 }
 0x3c5   : > { %v4104_v46 = vpop.permute.xlu0 %4103  ;;  %17841 = vst [vmem:[#allocation268_spill] sm:$0xff] %v13424_v42 }
 0x3c6   : > { %4685 = vrot.lane.b32.xlu1 %v13300_v52, %s10133_s17  ;;  %v13420_v28 = vsel %vm1906_vm1, %v4309_v14, %v4104_v46  ;;  %v9992_v46 = vld [vmem:[%s10164_s14 + $0x1b8] sm:$0xf] }
 0x3c7   : > { %4683 = vrot.lane.b32.xlu0 %v13304_v21, %s10133_s17  ;;  %17840 = vst [vmem:[#allocation267_spill] sm:$0xff] %v13420_v28  ;;  %v4312_v14 = vsel %vm1665_vm0, %v9992_v46, %v12820_v4  ;;  %v4321_v4 = vsel %vm1665_vm0, %v9993_v25, %v12838_v19  ;;  %v9994_v46 = vld [vmem:[%s10164_s14 + $0x1c8] sm:$0xf]  ;;  %v9995_v19 = vld [vmem:[%s10164_s14 + $0x1f0] sm:$0xf] }
 0x3c8   : > { %v13313_v36 = vpop.permute.xlu1 %4109  ;;  %v13443_v30 = vsel %vm1906_vm1, %v4312_v14, %v13293_v3 }
 0x3c9   : > { %v4108_v56 = vpop.permute.xlu0 %4107  ;;  %17843 = vst [vmem:[#allocation270_spill] sm:$0xff] %v13443_v30 }
 0x3ca   : > { %4689 = vrot.lane.b32.xlu1 %v13320_v59, %s10133_s17  ;;  %v13439_v41 = vsel %vm1906_vm1, %v4315_v51, %v4108_v56  ;;  %v4318_v56 = vsel %vm1665_vm0, %v9994_v46, %v12828_v50  ;;  %v4333_v50 = vsel %vm1665_vm0, %v9995_v19, %v12854_v8  ;;  %v9997_v8 = vld [vmem:[%s10164_s14 + $0x200] sm:$0xf] }
 0x3cb   : > { %4687 = vrot.lane.b32.xlu0 %v13324_v53, %s10133_s17  ;;  %17842 = vst [vmem:[#allocation269_spill] sm:$0xff] %v13439_v41  ;;  %v13462_v14 = vsel %vm1906_vm1, %v4318_v56, %v13313_v36  ;;  %v17868_v53 = vld [vmem:[#allocation187_spill] sm:$0xff] }
 0x3cc   : > { %v13333_v31 = vpop.permute.xlu1 %4113  ;;  %17845 = vst [vmem:[#allocation272_spill] sm:$0xff] %v13462_v14 }
 0x3cd   : > { %v4112_v7 = vpop.permute.xlu0 %4111 }
 0x3ce   : > { %4693 = vrot.lane.b32.xlu1 %v13340_v16, %s10133_s17  ;;  %v13456_v3 = vsel %vm1906_vm1, %v4321_v4, %v4112_v7  ;;  %v9996_v7 = vld [vmem:[%s10164_s14 + $0x1e8] sm:$0xf] }
 0x3cf   : > { %4691 = vrot.lane.b32.xlu0 %v13344_v32, %s10133_s17  ;;  %v4330_v4 = vsel %vm1665_vm0, %v9996_v7, %v12844_v47  ;;  %v4339_v47 = vsel %vm1665_vm0, %v9997_v8, %v12862_v29  ;;  %v9998_v7 = vld [vmem:[%s10164_s14 + $0x1f8] sm:$0xf]  ;;  %v9999_v29 = vld [vmem:[%s10164_s14 + $0x210] sm:$0xf] }
 0x3d0   : > { %v13353_v27 = vpop.permute.xlu1 %4117 }
 0x3d1   : > { %v13362_v49 = vpop.permute.xlu0 %4115  ;;  %v13479_v56 = vsel %vm1906_vm1, %v4330_v4, %v13353_v27 }
 0x3d2   : > { %17837 = vst [vmem:[#allocation264_spill] sm:$0xff] %v13362_v49  ;;  %4697 = vrot.lane.b32.xlu1 %v13360_v35, %s10133_s17  ;;  %17847 = vst [vmem:[#allocation274_spill] sm:$0xff] %v13479_v56  ;;  %v17864_v49 = vld [vmem:[#allocation183_spill] sm:$0xff] }
 0x3d3   : > { %4695 = vrot.lane.b32.xlu0 %v13366_v39, %s10133_s17 }
 0x3d4   : > { %v13375_v10 = vpop.permute.xlu1 %4121 }
 0x3d5   : > { %v4120_v23 = vpop.permute.xlu0 %4119 }
 0x3d6   : > { %4701 = vrot.lane.b32.xlu1 %v13382_v33, %s10133_s17  ;;  %v13475_v36 = vsel %vm1906_vm1, %v4333_v50, %v4120_v23  ;;  %v4336_v23 = vsel %vm1665_vm0, %v9998_v7, %v12852_v26  ;;  %v4345_v26 = vsel %vm1665_vm0, %v9999_v29, %v12870_v54  ;;  %v10000_v7 = vld [vmem:[%s10164_s14 + $0x208] sm:$0xf]  ;;  %v10001_v54 = vld [vmem:[%s10164_s14 + $0x220] sm:$0xf] }
 0x3d7   : > { %4699 = vrot.lane.b32.xlu0 %v13386_v1, %s10133_s17  ;;  %17846 = vst [vmem:[#allocation273_spill] sm:$0xff] %v13475_v36  ;;  %v13496_v4 = vsel %vm1906_vm1, %v4336_v23, %v13375_v10 }
 0x3d8   : > { %v13395_v11 = vpop.permute.xlu1 %4125  ;;  %17849 = vst [vmem:[#allocation276_spill] sm:$0xff] %v13496_v4 }
 0x3d9   : > { %v4124_v20 = vpop.permute.xlu0 %4123 }
 0x3da   : > { %4705 = vrot.lane.b32.xlu1 %v13401_v37, %s10133_s17  ;;  %v13492_v27 = vsel %vm1906_vm1, %v4339_v47, %v4124_v20  ;;  %v4342_v20 = vsel %vm1665_vm0, %v10000_v7, %v12860_v17  ;;  %v4351_v17 = vsel %vm1665_vm0, %v10001_v54, %v12878_v57  ;;  %v10003_v57 = vld [vmem:[%s10164_s14 + $0x240] sm:$0xf] }
 0x3db   : > { %4703 = vrot.lane.b32.xlu0 %v13405_v2, %s10133_s17  ;;  %17848 = vst [vmem:[#allocation275_spill] sm:$0xff] %v13492_v27  ;;  %v13513_v23 = vsel %vm1906_vm1, %v4342_v20, %v13395_v11  ;;  %v17854_v54 = vld [vmem:[#allocation182_spill] sm:$0xff] }
 0x3dc   : > { %v13414_v22 = vpop.permute.xlu1 %4129  ;;  %17851 = vst [vmem:[#allocation278_spill] sm:$0xff] %v13513_v23 }
 0x3dd   : > { %v4128_v6 = vpop.permute.xlu0 %4127 }
 0x3de   : > { %4709 = vrot.lane.b32.xlu1 %v13420_v28, %s10133_s17  ;;  %v13509_v10 = vsel %vm1906_vm1, %v4345_v26, %v4128_v6  ;;  %v10002_v6 = vld [vmem:[%s10164_s14 + $0x218] sm:$0xf] }
 0x3df   : > { %4707 = vrot.lane.b32.xlu0 %v13424_v42, %s10133_s17  ;;  %17850 = vst [vmem:[#allocation277_spill] sm:$0xff] %v13509_v10  ;;  %v17852_v26 = vld [vmem:[#allocation261_spill] sm:$0xff] }
 0x3e0   : > { %v13433_v45 = vpop.permute.xlu1 %4133  ;;  %v4348_v7 = vsel %vm1665_vm0, %v10002_v6, %v17852_v26  ;;  %v4363_v6 = vsel %vm1665_vm0, %v10003_v57, %v17854_v54  ;;  %v10005_v57 = vld [vmem:[%s10164_s14 + $0x250] sm:$0xf]  ;;  %v17859_v54 = vld [vmem:[#allocation186_spill] sm:$0xff] }
 0x3e1   : > { %v4132_v34 = vpop.permute.xlu0 %4131  ;;  %v13532_v2 = vsel %vm1906_vm1, %v4348_v7, %v13414_v22 }
 0x3e2   : > { %4713 = vrot.lane.b32.xlu1 %v13439_v41, %s10133_s17  ;;  %v13528_v11 = vsel %vm1906_vm1, %v4351_v17, %v4132_v34  ;;  %17853 = vst [vmem:[#allocation261_spill] sm:$0xff] %v13532_v2  ;;  %v17855_v34 = vld [vmem:[#allocation175_spill] sm:$0xff] }
 0x3e3   : > { %4711 = vrot.lane.b32.xlu0 %v13443_v30, %s10133_s17  ;;  %v4360_v17 = vsel %vm1665_vm0, %v10004_v15, %v17855_v34  ;;  %v4369_v15 = vsel %vm1665_vm0, %v10005_v57, %v17859_v54  ;;  %v10007_v57 = vld [vmem:[%s10164_s14 + $0x260] sm:$0xf] }
 0x3e4   : > { %v4138_v61 = vpop.permute.xlu1 %4137  ;;  %v17863_v54 = vld [vmem:[#allocation190_spill] sm:$0xff] }
 0x3e5   : > { %v13458_v51 = vpop.permute.xlu0 %4135 }
 0x3e6   : > { %17844 = vst [vmem:[#allocation271_spill] sm:$0xff] %v13458_v51  ;;  %4717 = vrot.lane.b32.xlu1 %v13456_v3, %s10133_s17  ;;  %v13550_v51 = vsel %vm1906_vm1, %v4360_v17, %v4138_v61 }
 0x3e7   : > { %4715 = vrot.lane.b32.xlu0 %v13462_v14, %s10133_s17  ;;  %17858 = vst [vmem:[#allocation279_spill] sm:$0xff] %v13550_v51 }
 0x3e8   : > { %v4142_v25 = vpop.permute.xlu1 %4141 }
 0x3e9   : > { %v4140_v46 = vpop.permute.xlu0 %4139 }
 0x3ea   : > { %4721 = vrot.lane.b32.xlu1 %v13475_v36, %s10133_s17  ;;  %v13545_v22 = vsel %vm1906_vm1, %v4363_v6, %v4140_v46  ;;  %v17860_v46 = vld [vmem:[#allocation179_spill] sm:$0xff] }
 0x3eb   : > { %4719 = vrot.lane.b32.xlu0 %v13479_v56, %s10133_s17  ;;  %17856 = vst [vmem:[#allocation182_spill] sm:$0xff] %v13545_v22  ;;  %v10006_v56 = vld [vmem:[%s10164_s14 + $0x248] sm:$0xf] }
 0x3ec   : > { %v4146_v19 = vpop.permute.xlu1 %4145  ;;  %v4366_v6 = vsel %vm1665_vm0, %v10006_v56, %v17860_v46  ;;  %v10008_v46 = vld [vmem:[%s10164_s14 + $0x258] sm:$0xf] }
 0x3ed   : > { %v4144_v50 = vpop.permute.xlu0 %4143 }
 0x3ee   : > { %4725 = vrot.lane.b32.xlu1 %v13492_v27, %s10133_s17  ;;  %v13563_v61 = vsel %vm1906_vm1, %v4369_v15, %v4144_v50  ;;  %v4372_v50 = vsel %vm1665_vm0, %v10008_v46, %v17864_v49  ;;  %v10010_v46 = vld [vmem:[%s10164_s14 + $0x268] sm:$0xf] }
 0x3ef   : > { %4723 = vrot.lane.b32.xlu0 %v13496_v4, %s10133_s17  ;;  %17861 = vst [vmem:[#allocation186_spill] sm:$0xff] %v13563_v61 }
 0x3f0   : > { %v4150_v8 = vpop.permute.xlu1 %4149 }
 0x3f1   : > { %v4148_v47 = vpop.permute.xlu0 %4147 }
 0x3f2   : > { %4729 = vrot.lane.b32.xlu1 %v13509_v10, %s10133_s17 }
 0x3f3   : > { %4727 = vrot.lane.b32.xlu0 %v13513_v23, %s10133_s17 }
 0x3f4   : > { %v13522_v29 = vpop.permute.xlu1 %4153 }
 0x3f5   : > { %v4152_v20 = vpop.permute.xlu0 %4151 }
 0x3f6   : > { %4733 = vrot.lane.b32.xlu1 %v13528_v11, %s10133_s17 }
 0x3f7   : > { %4731 = vrot.lane.b32.xlu0 %v13532_v2, %s10133_s17 }
 0x3f8   : > { %v4158_v26 = vpop.permute.xlu1 %4157 }
 0x3f9   : > { %v13547_v7 = vpop.permute.xlu0 %4155 }
 0x3fa   : > { %17857 = vst [vmem:[#allocation175_spill] sm:$0xff] %v13547_v7  ;;  %4737 = vrot.lane.b32.xlu1 %v13545_v22, %s10133_s17  ;;  %v13566_v7 = vsel %vm1906_vm1, %v4366_v6, %v4142_v25  ;;  %v13582_v6 = vsel %vm1906_vm1, %v4372_v50, %v4146_v19 }
 0x3fb   : > { %4735 = vrot.lane.b32.xlu0 %v13550_v51, %s10133_s17  ;;  %17862 = vst [vmem:[#allocation179_spill] sm:$0xff] %v13566_v7  ;;  %v4375_v51 = vsel %vm1665_vm0, %v10007_v57, %v17863_v54  ;;  %17866 = vst [vmem:[#allocation183_spill] sm:$0xff] %v13582_v6  ;;  %v10009_v57 = vld [vmem:[%s10164_s14 + $0x270] sm:$0xf]  ;;  %v17867_v54 = vld [vmem:[#allocation194_spill] sm:$0xff] }
 0x3fc   : > { %v4162_v34 = vpop.permute.xlu1 %4161  ;;  %v13579_v25 = vsel %vm1906_vm1, %v4375_v51, %v4148_v47  ;;  %v4381_v55 = vsel %vm1665_vm0, %v10009_v57, %v17867_v54  ;;  %v4378_v51 = vsel %vm1665_vm0, %v10010_v46, %v17868_v53  ;;  %v10011_v57 = vld [vmem:[%s10164_s14 + $0x290] sm:$0xf]  ;;  %v17871_v54 = vld [vmem:[#allocation202_spill] sm:$0xff]  ;;  %v10012_v46 = vld [vmem:[%s10164_s14 + $0x288] sm:$0xf] }
 0x3fd   : > { %v4160_v17 = vpop.permute.xlu0 %4159  ;;  %17865 = vst [vmem:[#allocation190_spill] sm:$0xff] %v13579_v25  ;;  %v13595_v19 = vsel %vm1906_vm1, %v4381_v55, %v4152_v20  ;;  %v13598_v50 = vsel %vm1906_vm1, %v4378_v51, %v4150_v8  ;;  %v4393_v13 = vsel %vm1665_vm0, %v10011_v57, %v17871_v54  ;;  %v17873_v55 = vld [vmem:[#allocation195_spill] sm:$0xff]  ;;  %v10013_v57 = vld [vmem:[%s10164_s14 + $0x2a0] sm:$0xf] }
 0x3fe   : > { %4741 = vrot.lane.b32.xlu1 %v13563_v61, %s10133_s17  ;;  %17869 = vst [vmem:[#allocation194_spill] sm:$0xff] %v13595_v19  ;;  %17870 = vst [vmem:[#allocation187_spill] sm:$0xff] %v13598_v50  ;;  %v4390_v20 = vsel %vm1665_vm0, %v10012_v46, %v17873_v55  ;;  %v13613_v8 = vsel %vm1906_vm1, %v4393_v13, %v4160_v17  ;;  %v17876_v54 = vld [vmem:[#allocation206_spill] sm:$0xff]  ;;  %v10014_v55 = vld [vmem:[%s10164_s14 + $0x298] sm:$0xf] }
 0x3ff   : > { %4739 = vrot.lane.b32.xlu0 %v13566_v7, %s10133_s17  ;;  %17874 = vst [vmem:[#allocation195_spill] sm:$0xff] %v13613_v8  ;;  %v17878_v13 = vld [vmem:[#allocation199_spill] sm:$0xff] }
 0x400   : > { %v4166_v56 = vpop.permute.xlu1 %4165  ;;  %v4396_v17 = vsel %vm1665_vm0, %v10014_v55, %v17878_v13 }
 0x401   : > { %v4164_v15 = vpop.permute.xlu0 %4163 }
 0x402   : > { %4745 = vrot.lane.b32.xlu1 %v13579_v25, %s10133_s17 }
 0x403   : > { %4743 = vrot.lane.b32.xlu0 %v13582_v6, %s10133_s17 }
 0x404   : > { %v4170_v49 = vpop.permute.xlu1 %4169 }
 0x405   : > { %v4168_v47 = vpop.permute.xlu0 %4167 }
 0x406   : > { %4749 = vrot.lane.b32.xlu1 %v13595_v19, %s10133_s17  ;;  %v13616_v19 = vsel %vm1906_vm1, %v4390_v20, %v4158_v26 }
 0x407   : > { %4747 = vrot.lane.b32.xlu0 %v13598_v50, %s10133_s17  ;;  %17875 = vst [vmem:[#allocation280_spill] sm:$0xff] %v13616_v19 }
 0x408   : > { %v13607_v53 = vpop.permute.xlu1 %4173 }
 0x409   : > { %17872 = vst [vmem:[#allocation202_spill] sm:$0xff] %v13607_v53  ;;  %v4172_v51 = vpop.permute.xlu0 %4171  ;;  %v4399_v53 = vsel %vm1665_vm0, %v10013_v57, %v17876_v54  ;;  %v10015_v57 = vld [vmem:[%s10164_s14 + $0x2b0] sm:$0xf]  ;;  %v17882_v54 = vld [vmem:[#allocation210_spill] sm:$0xff] }
 0x40a   : > { %4753 = vrot.lane.b32.xlu1 %v13613_v8, %s10133_s17  ;;  %v13631_v26 = vsel %vm1906_vm1, %v4399_v53, %v4164_v15  ;;  %v13636_v8 = vsel %vm1906_vm1, %v4396_v17, %v4162_v34  ;;  %v4405_v55 = vsel %vm1665_vm0, %v10015_v57, %v17882_v54  ;;  %v10016_v15 = vld [vmem:[%s10164_s14 + $0x2a8] sm:$0xf]  ;;  %v10017_v57 = vld [vmem:[%s10164_s14 + $0x2c0] sm:$0xf] }
 0x40b   : > { %4751 = vrot.lane.b32.xlu0 %v13616_v19, %s10133_s17  ;;  %17879 = vst [vmem:[#allocation199_spill] sm:$0xff] %v13631_v26  ;;  %17881 = vst [vmem:[#allocation282_spill] sm:$0xff] %v13636_v8  ;;  %v17884_v53 = vld [vmem:[#allocation203_spill] sm:$0xff]  ;;  %v13651_v34 = vsel %vm1906_vm1, %v4405_v55, %v4168_v47  ;;  %v17888_v54 = vld [vmem:[#allocation214_spill] sm:$0xff] }
 0x40c   : > { %v13625_v46 = vpop.permute.xlu1 %4641  ;;  %v4402_v19 = vsel %vm1665_vm0, %v10016_v15, %v17884_v53  ;;  %17885 = vst [vmem:[#allocation203_spill] sm:$0xff] %v13651_v34  ;;  %v10018_v15 = vld [vmem:[%s10164_s14 + $0x2b8] sm:$0xf]  ;;  %v17890_v47 = vld [vmem:[#allocation207_spill] sm:$0xff] }
 0x40d   : > { %17877 = vst [vmem:[#allocation206_spill] sm:$0xff] %v13625_v46  ;;  %v13633_v20 = vpop.permute.xlu0 %4639  ;;  %v4411_v46 = vsel %vm1665_vm0, %v10017_v57, %v17888_v54  ;;  %v4408_v55 = vsel %vm1665_vm0, %v10018_v15, %v17890_v47  ;;  %v17895_v15 = vld [vmem:[#allocation231_spill] sm:$0xff]  ;;  %v17899_v47 = vld [vmem:[#allocation230_spill] sm:$0xff] }
 0x40e   : > { %17880 = vst [vmem:[#allocation281_spill] sm:$0xff] %v13633_v20  ;;  %4757 = vrot.lane.b32.xlu1 %v13631_v26, %s10133_s17  ;;  %v13656_v20 = vsel %vm1906_vm1, %v4402_v19, %v4166_v56  ;;  %v13671_v53 = vsel %vm1906_vm1, %v4411_v46, %v4172_v51  ;;  %v13676_v19 = vsel %vm1906_vm1, %v4408_v55, %v4170_v49  ;;  %v17896_v51 = vld [vmem:[#allocation226_spill] sm:$0xff] }
 0x40f   : > { %4755 = vrot.lane.b32.xlu0 %v13636_v8, %s10133_s17  ;;  %17887 = vst [vmem:[#allocation284_spill] sm:$0xff] %v13656_v20  ;;  %17892 = vst [vmem:[#allocation285_spill] sm:$0xff] %v13676_v19 }
 0x410   : > { %v13645_v13 = vpop.permute.xlu1 %4645 }
 0x411   : > { %17883 = vst [vmem:[#allocation210_spill] sm:$0xff] %v13645_v13  ;;  %v13653_v17 = vpop.permute.xlu0 %4643 }
 0x412   : > { %17886 = vst [vmem:[#allocation283_spill] sm:$0xff] %v13653_v17  ;;  %4761 = vrot.lane.b32.xlu1 %v13651_v34, %s10133_s17 }
 0x413   : > { %4759 = vrot.lane.b32.xlu0 %v13656_v20, %s10133_s17 }
 0x414   : > { %v13665_v13 = vpop.permute.xlu1 %4649 }
 0x415   : > { %17889 = vst [vmem:[#allocation214_spill] sm:$0xff] %v13665_v13  ;;  %v13673_v56 = vpop.permute.xlu0 %4647  ;;  %v17903_v13 = vld [vmem:[#allocation247_spill] sm:$0xff] }
 0x416   : > { %17891 = vst [vmem:[#allocation207_spill] sm:$0xff] %v13673_v56  ;;  %4765 = vrot.lane.b32.xlu1 %v13671_v53, %s10133_s17  ;;  %v17902_v56 = vld [vmem:[#allocation234_spill] sm:$0xff] }
 0x417   : > { %4763 = vrot.lane.b32.xlu0 %v13676_v19, %s10133_s17 }
 0x418   : > { %v13682_v57 = vpop.permute.xlu1 %4653 }
 0x419   : > { %17893 = vst [vmem:[#allocation286_spill] sm:$0xff] %v13682_v57  ;;  %v13684_v54 = vpop.permute.xlu0 %4651 }
 0x41a   : > { %17894 = vst [vmem:[#allocation287_spill] sm:$0xff] %v13684_v54  ;;  %4777 = vrot.lane.b32.xlu1 %v17895_v15, %s10134_s18 }
 0x41b   : > { %4775 = vrot.lane.b32.xlu0 %v17896_v51, %s10134_s18  ;;  %v10019_v51 = vld [vmem:[%s10164_s14 + $0x98] sm:$0xf] }
 0x41c   : > { %v13690_v46 = vpop.permute.xlu1 %4657  ;;  %v4204_v15 = vsel %vm1665_vm0, %v10019_v51, %v17903_v13  ;;  %v10020_v51 = vld [vmem:[%s10164_s14 + $0xe8] sm:$0xf] }
 0x41d   : > { %17897 = vst [vmem:[#allocation288_spill] sm:$0xff] %v13690_v46  ;;  %v13692_v49 = vpop.permute.xlu0 %4655  ;;  %v17912_v46 = vld [vmem:[#allocation222_spill] sm:$0xff] }
 0x41e   : > { %17898 = vst [vmem:[#allocation289_spill] sm:$0xff] %v13692_v49  ;;  %4781 = vrot.lane.b32.xlu1 %v13110_v0, %s10134_s18  ;;  %v17904_v0 = vld [vmem:[#allocation218_spill] sm:$0xff]  ;;  %v17905_v49 = vld [vmem:[#allocation241_spill] sm:$0xff] }
 0x41f   : > { %4779 = vrot.lane.b32.xlu0 %v17899_v47, %s10134_s18  ;;  %v4434_v57 = vsel %vm1906_vm1, %v4204_v15, %v17904_v0 }
 0x420   : > { %v13698_v55 = vpop.permute.xlu1 %4661 }
 0x421   : > { %17900 = vst [vmem:[#allocation290_spill] sm:$0xff] %v13698_v55  ;;  %v13700_v17 = vpop.permute.xlu0 %4659  ;;  %v9222_v55 = vld [vmem:[%s10164_s14 + $0x138] sm:$0xf] }
 0x422   : > { %17901 = vst [vmem:[#allocation291_spill] sm:$0xff] %v13700_v17  ;;  %4785 = vrot.lane.b32.xlu1 %v13132_v43, %s10134_s18 }
 0x423   : > { %4783 = vrot.lane.b32.xlu0 %v17902_v56, %s10134_s18 }
 0x424   : > { %v13709_v54 = vpop.permute.xlu1 %4665 }
 0x425   : > { %v13713_v47 = vpop.permute.xlu0 %4663 }
 0x426   : > { %4789 = vrot.lane.b32.xlu1 %v4434_v57, %s10134_s18 }
 0x427   : > { %4787 = vrot.lane.b32.xlu0 %v17905_v49, %s10134_s18  ;;  %v17910_v49 = vld [vmem:[#allocation253_spill] sm:$0xff] }
 0x428   : > { %v13718_v43 = vpop.permute.xlu1 %4669 }
 0x429   : > { %v13720_v56 = vpop.permute.xlu0 %4667 }
 0x42a   : > { %4793 = vrot.lane.b32.xlu1 %v13176_v40, %s10134_s18 }
 0x42b   : > { %4791 = vrot.lane.b32.xlu0 %v13148_v5, %s10134_s18 }
 0x42c   : > { %v13726_v13 = vpop.permute.xlu1 %4673 }
 0x42d   : > { %17906 = vst [vmem:[#allocation247_spill] sm:$0xff] %v13726_v13  ;;  %v13728_v0 = vpop.permute.xlu0 %4671 }
 0x42e   : > { %17907 = vst [vmem:[#allocation218_spill] sm:$0xff] %v13728_v0  ;;  %4797 = vrot.lane.b32.xlu1 %v13198_v58, %s10134_s18  ;;  %v4234_v0 = vsel %vm1665_vm0, %v10020_v51, %v17910_v49  ;;  %v17920_v49 = vld [vmem:[#allocation255_spill] sm:$0xff] }
 0x42f   : > { %4795 = vrot.lane.b32.xlu0 %v13170_v44, %s10134_s18  ;;  %v4454_v5 = vsel %vm1906_vm1, %v4234_v0, %v17912_v46  ;;  %v10021_v0 = vld [vmem:[%s10164_s14 + $0x138] sm:$0xf] }
 0x430   : > { %v13734_v57 = vpop.permute.xlu1 %4677 }
 0x431   : > { %17908 = vst [vmem:[#allocation241_spill] sm:$0xff] %v13734_v57  ;;  %v13736_v15 = vpop.permute.xlu0 %4675 }
 0x432   : > { %17909 = vst [vmem:[#allocation292_spill] sm:$0xff] %v13736_v15  ;;  %4801 = vrot.lane.b32.xlu1 %v13220_v24, %s10134_s18 }
 0x433   : > { %4799 = vrot.lane.b32.xlu0 %v13192_v38, %s10134_s18 }
 0x434   : > { %v13745_v13 = vpop.permute.xlu1 %4681 }
 0x435   : > { %17911 = vst [vmem:[#allocation253_spill] sm:$0xff] %v13745_v13  ;;  %v13749_v17 = vpop.permute.xlu0 %4679 }
 0x436   : > { %17913 = vst [vmem:[#allocation222_spill] sm:$0xff] %v13749_v17  ;;  %4805 = vrot.lane.b32.xlu1 %v4454_v5, %s10134_s18  ;;  %v17921_v17 = vld [vmem:[#allocation238_spill] sm:$0xff] }
 0x437   : > { %4803 = vrot.lane.b32.xlu0 %v13214_v63, %s10134_s18 }
 0x438   : > { %v13754_v15 = vpop.permute.xlu1 %4685 }
 0x439   : > { %17914 = vst [vmem:[#allocation293_spill] sm:$0xff] %v13754_v15  ;;  %v13756_v57 = vpop.permute.xlu0 %4683 }
 0x43a   : > { %17915 = vst [vmem:[#allocation294_spill] sm:$0xff] %v13756_v57  ;;  %4809 = vrot.lane.b32.xlu1 %v13264_v60, %s10134_s18 }
 0x43b   : > { %4807 = vrot.lane.b32.xlu0 %v13236_v62, %s10134_s18  ;;  %v4264_v62 = vsel %vm1665_vm0, %v10021_v0, %v17920_v49  ;;  %v17926_v49 = vld [vmem:[#allocation257_spill] sm:$0xff] }
 0x43c   : > { %v13762_v51 = vpop.permute.xlu1 %4689 }
 0x43d   : > { %17916 = vst [vmem:[#allocation295_spill] sm:$0xff] %v13762_v51  ;;  %v13764_v46 = vpop.permute.xlu0 %4687 }
 0x43e   : > { %17917 = vst [vmem:[#allocation296_spill] sm:$0xff] %v13764_v46  ;;  %4813 = vrot.lane.b32.xlu1 %v13284_v12, %s10134_s18  ;;  %v4474_v12 = vsel %vm1906_vm1, %v4264_v62, %v17921_v17  ;;  %v10022_v17 = vld [vmem:[%s10164_s14 + $0x188] sm:$0xf] }
 0x43f   : > { %4811 = vrot.lane.b32.xlu0 %v13258_v48, %s10134_s18  ;;  %v18023_v46 = vld [vmem:[#allocation43_spill] sm:$0xff] }
 0x440   : > { %v13770_v5 = vpop.permute.xlu1 %4693 }
 0x441   : > { %17918 = vst [vmem:[#allocation297_spill] sm:$0xff] %v13770_v5  ;;  %v13772_v63 = vpop.permute.xlu0 %4691 }
 0x442   : > { %17919 = vst [vmem:[#allocation298_spill] sm:$0xff] %v13772_v63  ;;  %4817 = vrot.lane.b32.xlu1 %v13304_v21, %s10134_s18  ;;  %v18046_v63 = vld [vmem:[#allocation111_spill] sm:$0xff] }
 0x443   : > { %4815 = vrot.lane.b32.xlu0 %v13280_v18, %s10134_s18 }
 0x444   : > { %v13781_v60 = vpop.permute.xlu1 %4697 }
 0x445   : > { %v13785_v48 = vpop.permute.xlu0 %4695 }
 0x446   : > { %4821 = vrot.lane.b32.xlu1 %v4474_v12, %s10134_s18 }
 0x447   : > { %4819 = vrot.lane.b32.xlu0 %v13300_v52, %s10134_s18 }
 0x448   : > { %v13790_v13 = vpop.permute.xlu1 %4701 }
 0x449   : > { %v13792_v18 = vpop.permute.xlu0 %4699 }
 0x44a   : > { %4825 = vrot.lane.b32.xlu1 %v13344_v32, %s10134_s18  ;;  %v18047_v32 = vld [vmem:[#allocation72_spill] sm:$0xff] }
 0x44b   : > { %4823 = vrot.lane.b32.xlu0 %v13320_v59, %s10134_s18  ;;  %v18043_v59 = vld [vmem:[#allocation71_spill] sm:$0xff] }
 0x44c   : > { %v13798_v0 = vpop.permute.xlu1 %4705 }
 0x44d   : > { %17922 = vst [vmem:[#allocation255_spill] sm:$0xff] %v13798_v0  ;;  %v13800_v62 = vpop.permute.xlu0 %4703 }
 0x44e   : > { %17923 = vst [vmem:[#allocation238_spill] sm:$0xff] %v13800_v62  ;;  %4829 = vrot.lane.b32.xlu1 %v13366_v39, %s10134_s18  ;;  %v4294_v62 = vsel %vm1665_vm0, %v10022_v17, %v17926_v49  ;;  %v17935_v49 = vld [vmem:[#allocation259_spill] sm:$0xff] }
 0x44f   : > { %4827 = vrot.lane.b32.xlu0 %v13340_v16, %s10134_s18  ;;  %v4494_v57 = vsel %vm1906_vm1, %v4294_v62, %v13229_v9  ;;  %v10023_v62 = vld [vmem:[%s10164_s14 + $0x1d8] sm:$0xf] }
 0x450   : > { %v13806_v12 = vpop.permute.xlu1 %4709 }
 0x451   : > { %17924 = vst [vmem:[#allocation299_spill] sm:$0xff] %v13806_v12  ;;  %v13808_v52 = vpop.permute.xlu0 %4707 }
 0x452   : > { %17925 = vst [vmem:[#allocation300_spill] sm:$0xff] %v13808_v52  ;;  %4833 = vrot.lane.b32.xlu1 %v13386_v1, %s10134_s18 }
 0x453   : > { %4831 = vrot.lane.b32.xlu0 %v13360_v35, %s10134_s18 }
 0x454   : > { %v13817_v0 = vpop.permute.xlu1 %4713 }
 0x455   : > { %17927 = vst [vmem:[#allocation257_spill] sm:$0xff] %v13817_v0  ;;  %v13821_v21 = vpop.permute.xlu0 %4711 }
 0x456   : > { %17928 = vst [vmem:[#allocation301_spill] sm:$0xff] %v13821_v21  ;;  %4837 = vrot.lane.b32.xlu1 %v4494_v57, %s10134_s18 }
 0x457   : > { %4835 = vrot.lane.b32.xlu0 %v13382_v33, %s10134_s18 }
 0x458   : > { %v13826_v52 = vpop.permute.xlu1 %4717 }
 0x459   : > { %17929 = vst [vmem:[#allocation302_spill] sm:$0xff] %v13826_v52  ;;  %v13828_v12 = vpop.permute.xlu0 %4715 }
 0x45a   : > { %17930 = vst [vmem:[#allocation303_spill] sm:$0xff] %v13828_v12  ;;  %4841 = vrot.lane.b32.xlu1 %v13424_v42, %s10134_s18 }
 0x45b   : > { %4839 = vrot.lane.b32.xlu0 %v13401_v37, %s10134_s18  ;;  %v4324_v37 = vsel %vm1665_vm0, %v10023_v62, %v17935_v49  ;;  %v17944_v49 = vld [vmem:[#allocation174_spill] sm:$0xff] }
 0x45c   : > { %v13834_v17 = vpop.permute.xlu1 %4721  ;;  %v4514_v21 = vsel %vm1906_vm1, %v4324_v37, %v13333_v31 }
 0x45d   : > { %17931 = vst [vmem:[#allocation304_spill] sm:$0xff] %v13834_v17  ;;  %v13836_v9 = vpop.permute.xlu0 %4719  ;;  %v9194_v17 = vld [vmem:[%s10164_s14 + $0xc8] sm:$0xf] }
 0x45e   : > { %17932 = vst [vmem:[#allocation305_spill] sm:$0xff] %v13836_v9  ;;  %4845 = vrot.lane.b32.xlu1 %v13443_v30, %s10134_s18 }
 0x45f   : > { %4843 = vrot.lane.b32.xlu0 %v13420_v28, %s10134_s18 }
 0x460   : > { %v13842_v33 = vpop.permute.xlu1 %4725 }
 0x461   : > { %17933 = vst [vmem:[#allocation306_spill] sm:$0xff] %v13842_v33  ;;  %v13844_v57 = vpop.permute.xlu0 %4723 }
 0x462   : > { %17934 = vst [vmem:[#allocation307_spill] sm:$0xff] %v13844_v57  ;;  %4849 = vrot.lane.b32.xlu1 %v13462_v14, %s10134_s18  ;;  %v9187_v14 = vld [vmem:[%s10164_s14 + $0xac] sm:$0x1] }
 0x463   : > { %4847 = vrot.lane.b32.xlu0 %v13439_v41, %s10134_s18 }
 0x464   : > { %v13853_v42 = vpop.permute.xlu1 %4729 }
 0x465   : > { %17936 = vst [vmem:[#allocation259_spill] sm:$0xff] %v13853_v42  ;;  %v13857_v28 = vpop.permute.xlu0 %4727  ;;  %v17970_v42 = vld [vmem:[#allocation211_spill] sm:$0xff] }
 0x466   : > { %17937 = vst [vmem:[#allocation308_spill] sm:$0xff] %v13857_v28  ;;  %4853 = vrot.lane.b32.xlu1 %v4514_v21, %s10134_s18  ;;  %v9199_v28 = vld [vmem:[%s10164_s14 + $0xdc] sm:$0x1] }
 0x467   : > { %4851 = vrot.lane.b32.xlu0 %v13456_v3, %s10134_s18  ;;  %v10024_v3 = vld [vmem:[%s10164_s14 + $0x228] sm:$0xf] }
 0x468   : > { %v13862_v30 = vpop.permute.xlu1 %4733 }
 0x469   : > { %17938 = vst [vmem:[#allocation309_spill] sm:$0xff] %v13862_v30  ;;  %v13864_v0 = vpop.permute.xlu0 %4731  ;;  %v17998_v30 = vld [vmem:[#allocation49_spill] sm:$0xff] }
 0x46a   : > { %17939 = vst [vmem:[#allocation310_spill] sm:$0xff] %v13864_v0  ;;  %4857 = vrot.lane.b32.xlu1 %v13496_v4, %s10134_s18 }
 0x46b   : > { %4855 = vrot.lane.b32.xlu0 %v13475_v36, %s10134_s18  ;;  %v9195_v36 = vld [vmem:[%s10164_s14 + $0xcc] sm:$0x1] }
 0x46c   : > { %v13870_v62 = vpop.permute.xlu1 %4737 }
 0x46d   : > { %17940 = vst [vmem:[#allocation311_spill] sm:$0xff] %v13870_v62  ;;  %v13872_v31 = vpop.permute.xlu0 %4735 }
 0x46e   : > { %17941 = vst [vmem:[#allocation312_spill] sm:$0xff] %v13872_v31  ;;  %4861 = vrot.lane.b32.xlu1 %v13513_v23, %s10134_s18  ;;  %v4354_v31 = vsel %vm1665_vm0, %v10024_v3, %v17944_v49  ;;  %v10025_v3 = vld [vmem:[%s10164_s14 + $0x278] sm:$0xf]  ;;  %v17953_v49 = vld [vmem:[#allocation191_spill] sm:$0xff] }
 0x46f   : > { %4859 = vrot.lane.b32.xlu0 %v13492_v27, %s10134_s18  ;;  %v4534_v41 = vsel %vm1906_vm1, %v4354_v31, %v13433_v45  ;;  %v9198_v27 = vld [vmem:[%s10164_s14 + $0xd8] sm:$0xf]  ;;  %v10026_v23 = vld [vmem:[%s10164_s14 + $0x2c8] sm:$0xf] }
 0x470   : > { %v13878_v21 = vpop.permute.xlu1 %4741 }
 0x471   : > { %17942 = vst [vmem:[#allocation313_spill] sm:$0xff] %v13878_v21  ;;  %v13880_v37 = vpop.permute.xlu0 %4739 }
 0x472   : > { %17943 = vst [vmem:[#allocation314_spill] sm:$0xff] %v13880_v37  ;;  %4865 = vrot.lane.b32.xlu1 %v13532_v2, %s10134_s18  ;;  %v17997_v2 = vld [vmem:[#allocation96_spill] sm:$0xff] }
 0x473   : > { %4863 = vrot.lane.b32.xlu0 %v13509_v10, %s10134_s18  ;;  %v10030_v10 = vld [vmem:[%s10164_s14 + $0xf0] sm:$0xf] }
 0x474   : > { %v13889_v62 = vpop.permute.xlu1 %4745 }
 0x475   : > { %17945 = vst [vmem:[#allocation174_spill] sm:$0xff] %v13889_v62  ;;  %v13893_v12 = vpop.permute.xlu0 %4743  ;;  %v9186_v62 = vld [vmem:[%s10164_s14 + $0xa8] sm:$0xf] }
 0x476   : > { %17946 = vst [vmem:[#allocation315_spill] sm:$0xff] %v13893_v12  ;;  %4869 = vrot.lane.b32.xlu1 %v4534_v41, %s10134_s18 }
 0x477   : > { %4867 = vrot.lane.b32.xlu0 %v13528_v11, %s10134_s18 }
 0x478   : > { %v13898_v37 = vpop.permute.xlu1 %4749 }
 0x479   : > { %17947 = vst [vmem:[#allocation316_spill] sm:$0xff] %v13898_v37  ;;  %v13900_v21 = vpop.permute.xlu0 %4747 }
 0x47a   : > { %17948 = vst [vmem:[#allocation317_spill] sm:$0xff] %v13900_v21  ;;  %4873 = vrot.lane.b32.xlu1 %v13566_v7, %s10134_s18  ;;  %v17960_v21 = vld [vmem:[#allocation195_spill] sm:$0xff] }
 0x47b   : > { %4871 = vrot.lane.b32.xlu0 %v13545_v22, %s10134_s18  ;;  %v4384_v22 = vsel %vm1665_vm0, %v10025_v3, %v17953_v49  ;;  %v9185_v3 = vld [vmem:[%s10164_s14 + $0xa4] sm:$0x1] }
 0x47c   : > { %v13906_v45 = vpop.permute.xlu1 %4753 }
 0x47d   : > { %17949 = vst [vmem:[#allocation318_spill] sm:$0xff] %v13906_v45  ;;  %v13908_v31 = vpop.permute.xlu0 %4751 }
 0x47e   : > { %17950 = vst [vmem:[#allocation319_spill] sm:$0xff] %v13908_v31  ;;  %4877 = vrot.lane.b32.xlu1 %v13582_v6, %s10134_s18  ;;  %v17956_v6 = vld [vmem:[#allocation194_spill] sm:$0xff] }
 0x47f   : > { %4875 = vrot.lane.b32.xlu0 %v13563_v61, %s10134_s18  ;;  %v4554_v61 = vsel %vm1906_vm1, %v4384_v22, %v13522_v29  ;;  %v13944_v29 = vcombine.low %v9186_v62, %v9187_v14  ;;  %v9190_v22 = vld [vmem:[%s10164_s14 + $0xb8] sm:$0xf]  ;;  %v9188_v14 = vld [vmem:[%s10164_s14 + $0xb0] sm:$0xf]  ;;  %v9189_v62 = vld [vmem:[%s10164_s14 + $0xb4] sm:$0x1] }
 0x480   : > { %v13914_v41 = vpop.permute.xlu1 %4757  ;;  %v13971_v45 = vcombine.low %v9188_v14, %v9189_v62 }
 0x481   : > { %17951 = vst [vmem:[#allocation320_spill] sm:$0xff] %v13914_v41  ;;  %v13916_v11 = vpop.permute.xlu0 %4755  ;;  %17959 = vst [vmem:[#allocation324_spill] sm:$0xff] %v13944_v29  ;;  %v6413_v14 = vshrl.u32 %v13944_v29, 16 }
 0x482   : > { %17952 = vst [vmem:[#allocation321_spill] sm:$0xff] %v13916_v11  ;;  %4881 = vrot.lane.b32.xlu1 %v13598_v50, %s10134_s18  ;;  %v9115_v50 = vld [vmem:[%s17049_s1 + $0x4] sm:$0xf]  ;;  %17965 = vst [vmem:[#allocation329_spill] sm:$0xff] %v13971_v45 }
 0x483   : > { %4879 = vrot.lane.b32.xlu0 %v13579_v25, %s10134_s18  ;;  %v9184_v25 = vld [vmem:[%s10164_s14 + $0xa0] sm:$0xf]  ;;  %9482 = vmatprep.mubr.msk.bf16.mxu0 %vm5321_vm2, %v9115_v50 }
 0x484   : > { %v13925_v7 = vpop.permute.xlu1 %4761  ;;  %9500 = vmatprep.mubr.msk.bf16.mxu1 %vm5321_vm2, %v9115_v50 }
 0x485   : > { %17954 = vst [vmem:[#allocation191_spill] sm:$0xff] %v13925_v7  ;;  %v13929_v12 = vpop.permute.xlu0 %4759 }
 0x486   : > { %17955 = vst [vmem:[#allocation322_spill] sm:$0xff] %v13929_v12  ;;  %4885 = vrot.lane.b32.xlu1 %v4554_v61, %s10134_s18  ;;  %v9191_v61 = vld [vmem:[%s10164_s14 + $0xbc] sm:$0x1] }
 0x487   : > { %4883 = vrot.lane.b32.xlu0 %v17956_v6, %s10134_s18  ;;  %v13950_v6 = vcombine.low %v9184_v25, %v9185_v3  ;;  %v13963_v25 = vcombine.low %v9190_v22, %v9191_v61  ;;  %v6415_v3 = vshll.u32 %v13944_v29, 16  ;;  %v9192_v22 = vld [vmem:[%s10164_s14 + $0xc0] sm:$0xf]  ;;  %v9193_v61 = vld [vmem:[%s10164_s14 + $0xc4] sm:$0x1]  ;;  %v4414_v29 = vsel %vm1665_vm0, %v10026_v23, %v17970_v42 }
 0x488   : > { %v13936_v52 = vpop.permute.xlu1 %4765  ;;  %v13991_v41 = vcombine.low %v9192_v22, %v9193_v61 }
 0x489   : > { %17957 = vst [vmem:[#allocation194_spill] sm:$0xff] %v13936_v52  ;;  %v13940_v49 = vpop.permute.xlu0 %4763  ;;  %17961 = vst [vmem:[#allocation325_spill] sm:$0xff] %v13950_v6  ;;  %v6408_v31 = vshll.u32 %v13950_v6, 16  ;;  %v6429_v4 = vshll.u32 %v13963_v25, 16  ;;  %v6417_v62 = vrot.slane %v6415_v3, 1  ;;  %v6406_v33 = vshrl.u32 %v13950_v6, 16 }
 0x48a   : > { %17958 = vst [vmem:[#allocation323_spill] sm:$0xff] %v13940_v49  ;;  %4889 = vrot.lane.b32.xlu1 %v13636_v8, %s10134_s18  ;;  %17964 = vst [vmem:[#allocation328_spill] sm:$0xff] %v13963_v25  ;;  %v6422_v8 = vshll.u32 %v13971_v45, 16  ;;  %v10027_v6 = vld [vmem:[%s10164_s14 + $0x50] sm:$0xf]  ;;  %v17972_v49 = vld [vmem:[#allocation51_spill] sm:$0xff] }
 0x48b   : > { %4887 = vrot.lane.b32.xlu0 %v17960_v21, %s10134_s18  ;;  %v13986_v21 = vcombine.low %v9194_v17, %v9195_v36  ;;  %v6410_v11 = vrot.slane %v6408_v31, 1  ;;  %17969 = vst [vmem:[#allocation333_spill] sm:$0xff] %v13991_v41  ;;  %v9196_v36 = vld [vmem:[%s10164_s14 + $0xd0] sm:$0xf]  ;;  %v9197_v17 = vld [vmem:[%s10164_s14 + $0xd4] sm:$0x1]  ;;  %v1698_v31 = vsel %vm1665_vm0, %v10027_v6, %v17972_v49  ;;  %v6418_v23 = vor.u32 %v6417_v62, %v6413_v14 }
 0x48c   : > { %v13955_v37 = vpop.permute.xlu1 %4777  ;;  %v6431_v42 = vrot.slane %v6429_v4, 1  ;;  %v6420_v52 = vshrl.u32 %v13971_v45, 16  ;;  %v14013_v6 = vcombine.low %v9198_v27, %v9199_v28  ;;  %v6436_v4 = vshll.u32 %v13991_v41, 16  ;;  %v9201_v14 = vld [vmem:[%s10164_s14 + $0xe4] sm:$0x1]  ;;  %v17977_v45 = vld [vmem:[#allocation33_spill] sm:$0xff] }
 0x48d   : > { %17962 = vst [vmem:[#allocation326_spill] sm:$0xff] %v13955_v37  ;;  %v13961_v9 = vpop.permute.xlu0 %4775  ;;  %17968 = vst [vmem:[#allocation332_spill] sm:$0xff] %v13986_v21  ;;  %v6443_v49 = vshll.u32 %v13986_v21, 16  ;;  %v14020_v12 = vcombine.low %v9196_v36, %v9197_v17  ;;  %v10028_v62 = vld [vmem:[%s10164_s14] sm:$0xf]  ;;  %v17979_v27 = vld [vmem:[#allocation55_spill] sm:$0xff] }
 0x48e   : > { %17963 = vst [vmem:[#allocation327_spill] sm:$0xff] %v13961_v9  ;;  %4893 = vrot.lane.b32.xlu1 %v13656_v20, %s10134_s18  ;;  %v14027_v20 = vsel %vm1665_vm0, %v10028_v62, %v17977_v45  ;;  %v10029_v28 = vld [vmem:[%s10164_s14 + $0xa0] sm:$0xf]  ;;  %v6441_v62 = vshrl.u32 %v13986_v21, 16  ;;  %v17989_v21 = vld [vmem:[#allocation35_spill] sm:$0xff] }
 0x48f   : > { %4891 = vrot.lane.b32.xlu0 %v13631_v26, %s10134_s18  ;;  %v6411_v26 = vor.u32 %v6410_v11, %v6406_v33  ;;  %17976 = vst [vmem:[#allocation334_spill] sm:$0xff] %v14020_v12  ;;  %17978 = vst [vmem:[#allocation33_spill] sm:$0xff] %v14027_v20  ;;  %v14032_v7 = vsel %vm1665_vm0, %v10029_v28, %v17979_v27  ;;  %v17982_v33 = vld [vmem:[#allocation25_spill] sm:$0xff]  ;;  %v6445_v28 = vrot.slane %v6443_v49, 1 }
 0x490   : > { %v13975_v50 = vpop.permute.xlu1 %4781  ;;  %17980 = vst [vmem:[#allocation55_spill] sm:$0xff] %v14032_v7  ;;  %v1928_v11 = vsel %vm1906_vm1, %v1698_v31, %v17982_v33  ;;  %v6457_v31 = vshll.u32 %v14013_v6, 16  ;;  %v9207_v49 = vld [vmem:[%s10164_s14 + $0xfc] sm:$0x1]  ;;  %v17990_v7 = vld [vmem:[#allocation19_spill] sm:$0xff] }
 0x491   : > { %17966 = vst [vmem:[#allocation330_spill] sm:$0xff] %v13975_v50  ;;  %v13979_v57 = vpop.permute.xlu0 %4779  ;;  %v9211_v50 = vld [vmem:[%s10164_s14 + $0x10c] sm:$0x1] }
 0x492   : > { %17967 = vst [vmem:[#allocation331_spill] sm:$0xff] %v13979_v57  ;;  %4897 = vrot.lane.b32.xlu1 %v13676_v19, %s10134_s18  ;;  %v6427_v19 = vshrl.u32 %v13963_v25, 16  ;;  %v6424_v25 = vrot.slane %v6422_v8, 1  ;;  %v6459_v37 = vrot.slane %v6457_v31, 1  ;;  %v18006_v31 = vld [vmem:[#allocation45_spill] sm:$0xff] }
 0x493   : > { %4895 = vrot.lane.b32.xlu0 %v13651_v34, %s10134_s18  ;;  %v17973_v34 = vld [vmem:[#allocation202_spill] sm:$0xff] }
 0x494   : > { %v13998_v3 = vpop.permute.xlu1 %4785  ;;  %v4574_v22 = vsel %vm1906_vm1, %v4414_v29, %v17973_v34  ;;  %17975 = vst [vmem:[#allocation202_spill] sm:$0xff] %v14013_v6  ;;  %v9202_v34 = vld [vmem:[%s10164_s14 + $0xe8] sm:$0xf]  ;;  %v9203_v29 = vld [vmem:[%s10164_s14 + $0xec] sm:$0x1]  ;;  %v6432_v45 = vor.u32 %v6431_v42, %v6427_v19  ;;  %v6425_v19 = vor.u32 %v6424_v25, %v6420_v52  ;;  %v6438_v42 = vrot.slane %v6436_v4, 1 }
 0x495   : > { %17971 = vst [vmem:[#allocation211_spill] sm:$0xff] %v13998_v3  ;;  %v14007_v61 = vpop.permute.xlu0 %4783  ;;  %v14044_v20 = vcombine.low %v9202_v34, %v9203_v29  ;;  %v6450_v34 = vshll.u32 %v14020_v12, 16  ;;  %v17988_v29 = vld [vmem:[#allocation22_spill] sm:$0xff]  ;;  %v17994_v52 = vld [vmem:[#allocation95_spill] sm:$0xff] }
 0x496   : > { %17974 = vst [vmem:[#allocation51_spill] sm:$0xff] %v14007_v61  ;;  %4901 = vrot.lane.b32.xlu1 %v4574_v22, %s10134_s18  ;;  %v9200_v22 = vld [vmem:[%s10164_s14 + $0xe0] sm:$0xf] }
 0x497   : > { %4899 = vrot.lane.b32.xlu0 %v13671_v53, %s10134_s18  ;;  %v17981_v53 = vld [vmem:[#allocation57_spill] sm:$0xff]  ;;  %17985 = vst [vmem:[#allocation335_spill] sm:$0xff] %v14044_v20  ;;  %v14049_v27 = vcombine.low %v9200_v22, %v9201_v14  ;;  %v17991_v22 = vld [vmem:[#allocation30_spill] sm:$0xff] }
 0x498   : > { %v1758_v8 = vsel %vm1665_vm0, %v10030_v10, %v17981_v53  ;;  %v14039_v36 = vpop.permute.xlu1 %4789  ;;  %v6434_v10 = vshrl.u32 %v13991_v41, 16  ;;  %v17987_v53 = vld [vmem:[#allocation46_spill] sm:$0xff]  ;;  %v14062_v41 = vsel %vm2395_vm3, %v17989_v21, %v17988_v29  ;;  %v14067_v14 = vsel %vm2395_vm3, %v17991_v22, %v17990_v7  ;;  %v9204_v21 = vld [vmem:[%s10164_s14 + $0xf0] sm:$0xf]  ;;  %v9205_v29 = vld [vmem:[%s10164_s14 + $0xf4] sm:$0x1] }
 0x499   : > { %17983 = vst [vmem:[#allocation57_spill] sm:$0xff] %v14039_v36  ;;  %v14041_v17 = vpop.permute.xlu0 %4787  ;;  %17986 = vst [vmem:[#allocation336_spill] sm:$0xff] %v14049_v27  ;;  %v14053_v33 = vsel %vm1906_vm1, %v1758_v8, %v17987_v53  ;;  %v17992_v8 = vld [vmem:[#allocation94_spill] sm:$0xff]  ;;  %v14086_v7 = vsel %vm2395_vm3, %v17998_v30, %v17997_v2  ;;  %v17999_v22 = vld [vmem:[#allocation97_spill] sm:$0xff]  ;;  %v6464_v57 = vshll.u32 %v14049_v27, 16  ;;  %v14104_v61 = vcombine.low %v9204_v21, %v9205_v29 }
 0x49a   : > { %17984 = vst [vmem:[#allocation25_spill] sm:$0xff] %v14041_v17  ;;  %6967 = vrot.lane.b32.xlu1 %v6418_v23, %s10131_s15  ;;  %v9206_v23 = vld [vmem:[%s10164_s14 + $0xf8] sm:$0xf]  ;;  %v17993_v53 = vld [vmem:[#allocation42_spill] sm:$0xff]  ;;  %v14090_v9 = vsel %vm2395_vm3, %v1928_v11, %v17999_v22  ;;  %v9210_v30 = vld [vmem:[%s10164_s14 + $0x108] sm:$0xf]  ;;  %v6439_v11 = vor.u32 %v6438_v42, %v6434_v10 }
 0x49b   : > { %6965 = vrot.lane.b32.xlu0 %v6411_v26, %s10131_s15  ;;  %v14072_v26 = vsel %vm2395_vm3, %v17993_v53, %v17992_v8  ;;  %v17995_v25 = vld [vmem:[#allocation34_spill] sm:$0xff]  ;;  %v6455_v53 = vshrl.u32 %v14013_v6, 16  ;;  %v14098_v2 = vcombine.low %v9206_v23, %v9207_v49  ;;  %v6448_v22 = vshrl.u32 %v14020_v12, 16  ;;  %18002 = vst [vmem:[#allocation19_spill] sm:$0xff] %v14104_v61  ;;  %v18007_v49 = vld [vmem:[#allocation47_spill] sm:$0xff]  ;;  %v18008_v17 = vld [vmem:[#allocation36_spill] sm:$0xff] }
 0x49c   : > { %v14077_v4 = vsel %vm2395_vm3, %v17995_v25, %v17994_v52  ;;  %v14079_v0 = vpop.permute.xlu1 %4793  ;;  %v6471_v52 = vshll.u32 %v14044_v20, 16  ;;  %v6446_v25 = vor.u32 %v6445_v28, %v6441_v62  ;;  %v6452_v6 = vrot.slane %v6450_v34, 1  ;;  %v18003_v3 = vld [vmem:[#allocation98_spill] sm:$0xff]  ;;  %v18005_v28 = vld [vmem:[#allocation99_spill] sm:$0xff]  ;;  %v18009_v10 = vld [vmem:[#allocation24_spill] sm:$0xff] }
 0x49d   : > { %17996 = vst [vmem:[#allocation46_spill] sm:$0xff] %v14079_v0  ;;  %v14092_v8 = vpop.permute.xlu0 %4791  ;;  %18001 = vst [vmem:[#allocation35_spill] sm:$0xff] %v14098_v2  ;;  %v14114_v23 = vsel %vm2395_vm3, %v18006_v31, %v18005_v28  ;;  %v18010_v42 = vld [vmem:[#allocation32_spill] sm:$0xff]  ;;  %v9208_v29 = vld [vmem:[%s10164_s14 + $0x100] sm:$0xf]  ;;  %v6466_v15 = vrot.slane %v6464_v57, 1 }
 0x49e   : > { %18000 = vst [vmem:[#allocation22_spill] sm:$0xff] %v14092_v8  ;;  %6971 = vrot.lane.b32.xlu1 %v6432_v45, %s10131_s15  ;;  %v18004_v45 = vld [vmem:[#allocation37_spill] sm:$0xff]  ;;  %v14124_v34 = vsel %vm2395_vm3, %v18010_v42, %v18009_v10  ;;  %v18013_v12 = vld [vmem:[#allocation44_spill] sm:$0xff]  ;;  %v6473_v31 = vrot.slane %v6471_v52, 1  ;;  %v6460_v10 = vor.u32 %v6459_v37, %v6455_v53  ;;  %v6462_v42 = vshrl.u32 %v14049_v27, 16  ;;  %v18022_v27 = vld [vmem:[#allocation26_spill] sm:$0xff] }
 0x49f   : > { %6969 = vrot.lane.b32.xlu0 %v6425_v19, %s10131_s15  ;;  %v14109_v62 = vsel %vm2395_vm3, %v18004_v45, %v18003_v3  ;;  %v14119_v19 = vsel %vm2395_vm3, %v18008_v17, %v18007_v49  ;;  %v9209_v3 = vld [vmem:[%s10164_s14 + $0x104] sm:$0x1]  ;;  %v18012_v45 = vld [vmem:[#allocation41_spill] sm:$0xff]  ;;  %v6469_v17 = vshrl.u32 %v14044_v20, 16  ;;  %v14138_v49 = vcombine.low %v9210_v30, %v9211_v50  ;;  %v18017_v8 = vld [vmem:[#allocation40_spill] sm:$0xff] }
 0x4a0   : > { %v14126_v21 = vpop.permute.xlu1 %4797  ;;  %v14133_v36 = vsel %vm2395_vm3, %v18013_v12, %v18012_v45  ;;  %v6485_v12 = vshll.u32 %v14098_v2, 16  ;;  %v18016_v45 = vld [vmem:[#allocation100_spill] sm:$0xff]  ;;  %v6453_v52 = vor.u32 %v6452_v6, %v6448_v22  ;;  %v6478_v50 = vshll.u32 %v14104_v61, 16  ;;  %v9214_v37 = vld [vmem:[%s10164_s14 + $0x118] sm:$0xf]  ;;  %v18020_v20 = vld [vmem:[#allocation63_spill] sm:$0xff] }
 0x4a1   : > { %18011 = vst [vmem:[#allocation30_spill] sm:$0xff] %v14126_v21  ;;  %v14135_v28 = vpop.permute.xlu0 %4795  ;;  %18015 = vst [vmem:[#allocation42_spill] sm:$0xff] %v14138_v49  ;;  %v14146_v0 = vsel %vm2395_vm3, %v18017_v8, %v18016_v45  ;;  %v14150_v30 = vcombine.low %v9208_v29, %v9209_v3  ;;  %v9215_v53 = vld [vmem:[%s10164_s14 + $0x11c] sm:$0x1]  ;;  %v14162_v51 = vsel %vm2395_vm3, %v18023_v46, %v18022_v27  ;;  %v18026_v45 = vld [vmem:[#allocation64_spill] sm:$0xff] }
 0x4a2   : > { %18014 = vst [vmem:[#allocation94_spill] sm:$0xff] %v14135_v28  ;;  %6975 = vrot.lane.b32.xlu1 %v6446_v25, %s10131_s15  ;;  %v18019_v25 = vld [vmem:[#allocation54_spill] sm:$0xff]  ;;  %18024 = vst [vmem:[#allocation96_spill] sm:$0xff] %v14162_v51  ;;  %v18025_v8 = vld [vmem:[#allocation105_spill] sm:$0xff]  ;;  %v6474_v51 = vor.u32 %v6473_v31, %v6469_v17 }
 0x4a3   : > { %6973 = vrot.lane.b32.xlu0 %v6439_v11, %s10131_s15  ;;  %18018 = vst [vmem:[#allocation95_spill] sm:$0xff] %v14150_v30  ;;  %v14157_v57 = vsel %vm2395_vm3, %v18020_v20, %v18019_v25  ;;  %v14167_v6 = vsel %vm2395_vm3, %v18026_v45, %v18025_v8  ;;  %v18028_v11 = vld [vmem:[#allocation106_spill] sm:$0xff]  ;;  %v18029_v22 = vld [vmem:[#allocation52_spill] sm:$0xff]  ;;  %v9219_v21 = vld [vmem:[%s10164_s14 + $0x12c] sm:$0x1]  ;;  %v6492_v17 = vshll.u32 %v14150_v30, 16 }
 0x4a4   : > { %18021 = vst [vmem:[#allocation34_spill] sm:$0xff] %v14157_v57  ;;  %18027 = vst [vmem:[#allocation49_spill] sm:$0xff] %v14167_v6  ;;  %v14172_v29 = vsel %vm2395_vm3, %v18029_v22, %v18028_v11  ;;  %v14174_v3 = vpop.permute.xlu1 %4801  ;;  %v9212_v20 = vld [vmem:[%s10164_s14 + $0x110] sm:$0xf]  ;;  %v9213_v25 = vld [vmem:[%s10164_s14 + $0x114] sm:$0x1]  ;;  %v6467_v22 = vor.u32 %v6466_v15, %v6462_v42 }
 0x4a5   : > { %18030 = vst [vmem:[#allocation97_spill] sm:$0xff] %v14172_v29  ;;  %18031 = vst [vmem:[#allocation98_spill] sm:$0xff] %v14174_v3  ;;  %v18032_v57 = vld [vmem:[#allocation107_spill] sm:$0xff]  ;;  %v18033_v28 = vld [vmem:[#allocation66_spill] sm:$0xff]  ;;  %v14188_v45 = vpop.permute.xlu0 %4799  ;;  %v6499_v11 = vshll.u32 %v14138_v49, 16  ;;  %v6483_v29 = vshrl.u32 %v14098_v2, 16  ;;  %v14200_v31 = vcombine.low %v9212_v20, %v9213_v25 }
 0x4a6   : > { %v14181_v46 = vsel %vm2395_vm3, %v18033_v28, %v18032_v57  ;;  %v18034_v27 = vld [vmem:[#allocation108_spill] sm:$0xff]  ;;  %18035 = vst [vmem:[#allocation37_spill] sm:$0xff] %v14188_v45  ;;  %6979 = vrot.lane.b32.xlu1 %v6460_v10, %s10131_s15  ;;  %v6487_v6 = vrot.slane %v6485_v12, 1  ;;  %v14193_v28 = vcombine.low %v9214_v37, %v9215_v53  ;;  %v9218_v57 = vld [vmem:[%s10164_s14 + $0x128] sm:$0xf]  ;;  %v18038_v10 = vld [vmem:[#allocation109_spill] sm:$0xff] }
 0x4a7   : > { %v14186_v8 = vsel %vm2395_vm3, %v14053_v33, %v18034_v27  ;;  %6977 = vrot.lane.b32.xlu0 %v6453_v52, %s10131_s15  ;;  %v6476_v33 = vshrl.u32 %v14104_v61, 16  ;;  %v6480_v27 = vrot.slane %v6478_v50, 1  ;;  %18037 = vst [vmem:[#allocation45_spill] sm:$0xff] %v14200_v31  ;;  %v18039_v15 = vld [vmem:[#allocation68_spill] sm:$0xff]  ;;  %v18040_v2 = vld [vmem:[#allocation110_spill] sm:$0xff]  ;;  %v18041_v12 = vld [vmem:[#allocation65_spill] sm:$0xff]  ;;  %v14234_v5 = vcombine.low %v9218_v57, %v9219_v21 }
 0x4a8   : > { %18036 = vst [vmem:[#allocation99_spill] sm:$0xff] %v14193_v28  ;;  %v14205_v42 = vsel %vm2395_vm3, %v18039_v15, %v18038_v10  ;;  %v14210_v37 = vsel %vm2395_vm3, %v18041_v12, %v18040_v2  ;;  %v18042_v53 = vld [vmem:[#allocation56_spill] sm:$0xff]  ;;  %v18044_v50 = vld [vmem:[#allocation38_spill] sm:$0xff]  ;;  %v18045_v61 = vld [vmem:[#allocation67_spill] sm:$0xff]  ;;  %v14222_v25 = vpop.permute.xlu1 %4805  ;;  %v14229_v2 = vsel %vm2395_vm3, %v18047_v32, %v18046_v63  ;;  %v6488_v40 = vor.u32 %v6487_v6, %v6483_v29 }
 0x4a9   : > { %v14215_v52 = vsel %vm2395_vm3, %v18043_v59, %v18042_v53  ;;  %v14220_v20 = vsel %vm2395_vm3, %v18045_v61, %v18044_v50  ;;  %v9216_v10 = vld [vmem:[%s10164_s14 + $0x120] sm:$0xf]  ;;  %v9217_v15 = vld [vmem:[%s10164_s14 + $0x124] sm:$0x1]  ;;  %v14231_v12 = vpop.permute.xlu0 %4803  ;;  %v6497_v59 = vshrl.u32 %v14138_v49, 16  ;;  %v6501_v53 = vrot.slane %v6499_v11, 1 }
 0x4aa   : > { %18048 = vst [vmem:[#allocation47_spill] sm:$0xff] %v14234_v5  ;;  %v18049_v61 = vld [vmem:[#allocation144_spill] sm:$0xff]  ;;  %6983 = vrot.lane.b32.xlu1 %v6474_v51, %s10131_s15  ;;  %v6490_v32 = vshrl.u32 %v14150_v30, 16  ;;  %v6513_v63 = vshll.u32 %v14193_v28, 16  ;;  %v9223_v45 = vld [vmem:[%s10164_s14 + $0x13c] sm:$0x1]  ;;  %v6481_v49 = vor.u32 %v6480_v27, %v6476_v33  ;;  %v14248_v57 = vcombine.low %v9216_v10, %v9217_v15 }
 0x4ab   : > { %v14239_v50 = vsel %vm2524_vm4, %v14072_v26, %v18049_v61  ;;  %6981 = vrot.lane.b32.xlu0 %v6467_v22, %s10131_s15  ;;  %v6494_v11 = vrot.slane %v6492_v17, 1  ;;  %v6506_v21 = vshll.u32 %v14200_v31, 16  ;;  %v9220_v3 = vld [vmem:[%s10164_s14 + $0x130] sm:$0xf]  ;;  %v9221_v26 = vld [vmem:[%s10164_s14 + $0x134] sm:$0x1]  ;;  %v6502_v15 = vor.u32 %v6501_v53, %v6497_v59 }
 0x4ac   : > { %18050 = vst [vmem:[#allocation36_spill] sm:$0xff] %v14239_v50  ;;  %18051 = vst [vmem:[#allocation24_spill] sm:$0xff] %v14248_v57  ;;  %v18052_v61 = vld [vmem:[#allocation145_spill] sm:$0xff]  ;;  %v18054_v6 = vld [vmem:[#allocation146_spill] sm:$0xff]  ;;  %v14272_v17 = vpop.permute.xlu1 %4809 }
 0x4ad   : > { %v14255_v51 = vsel %vm2524_vm4, %v14077_v4, %v18052_v61  ;;  %v14260_v29 = vsel %vm2524_vm4, %v14086_v7, %v18054_v6  ;;  %v18055_v30 = vld [vmem:[#allocation147_spill] sm:$0xff]  ;;  %v18056_v33 = vld [vmem:[#allocation148_spill] sm:$0xff]  ;;  %v18057_v10 = vld [vmem:[#allocation149_spill] sm:$0xff]  ;;  %v14279_v7 = vpop.permute.xlu0 %4807  ;;  %v6515_v61 = vrot.slane %v6513_v63, 1  ;;  %v6504_v6 = vshrl.u32 %v14200_v31, 16 }
 0x4ae   : > { %18053 = vst [vmem:[#allocation32_spill] sm:$0xff] %v14255_v51  ;;  %v14265_v22 = vsel %vm2524_vm4, %v14090_v9, %v18055_v30  ;;  %v14270_v27 = vsel %vm2524_vm4, %v14109_v62, %v18056_v33  ;;  %v14277_v4 = vsel %vm2524_vm4, %v14114_v23, %v18057_v10  ;;  %18058 = vst [vmem:[#allocation41_spill] sm:$0xff] %v14279_v7  ;;  %v6527_v9 = vshll.u32 %v14234_v5, 16  ;;  %v18061_v23 = vld [vmem:[#allocation112_spill] sm:$0xff]  ;;  %v18062_v10 = vld [vmem:[#allocation69_spill] sm:$0xff] }
 0x4af   : > { %v14282_v30 = vcombine.low %v9222_v55, %v9223_v45  ;;  %6987 = vrot.lane.b32.xlu1 %v6488_v40, %s10131_s15  ;;  %v6511_v62 = vshrl.u32 %v14193_v28, 16  ;;  %v14287_v33 = vcombine.low %v9220_v3, %v9221_v26  ;;  %v14292_v7 = vsel %vm2395_vm3, %v18062_v10, %v18061_v23  ;;  %6985 = vrot.lane.b32.xlu0 %v6481_v49, %s10131_s15  ;;  %v9226_v59 = vld [vmem:[%s10164_s14 + $0x148] sm:$0xf]  ;;  %v9227_v53 = vld [vmem:[%s10164_s14 + $0x14c] sm:$0x1]  ;;  %v18063_v28 = vld [vmem:[#allocation21_spill] sm:$0xff] }
 0x4b0   : > { %v6495_v55 = vor.u32 %v6494_v11, %v6490_v32  ;;  %v6508_v45 = vrot.slane %v6506_v21, 1  ;;  %v6520_v40 = vshll.u32 %v14248_v57, 16  ;;  %v14301_v63 = vsel %vm2524_vm4, %v14062_v41, %v18063_v28  ;;  %v18065_v3 = vld [vmem:[#allocation16_spill] sm:$0xff]  ;;  %v14312_v32 = vpop.permute.xlu1 %4813  ;;  %v9224_v11 = vld [vmem:[%s10164_s14 + $0x140] sm:$0xf] }
 0x4b1   : > { %18059 = vst [vmem:[#allocation44_spill] sm:$0xff] %v14282_v30  ;;  %18060 = vst [vmem:[#allocation100_spill] sm:$0xff] %v14287_v33  ;;  %v14306_v26 = vsel %vm2524_vm4, %v14067_v14, %v18065_v3  ;;  %v9154_v49 = vcombine.low %v14265_v22, %v14260_v29  ;;  %v9225_v21 = vld [vmem:[%s10164_s14 + $0x144] sm:$0x1]  ;;  %v9155_v41 = vcombine.low %v14277_v4, %v14270_v27  ;;  %v14318_v28 = vpop.permute.xlu0 %4811  ;;  %v6525_v14 = vshrl.u32 %v14234_v5, 16 }
 0x4b2   : > { %18064 = vst [vmem:[#allocation40_spill] sm:$0xff] %v14301_v63  ;;  %18066 = vst [vmem:[#allocation54_spill] sm:$0xff] %v14306_v26  ;;  %v6529_v10 = vrot.slane %v6527_v9, 1  ;;  %v6541_v3 = vshll.u32 %v14282_v30, 16  ;;  %v18067_v23 = vld [vmem:[#allocation150_spill] sm:$0xff]  ;;  %v6516_v22 = vor.u32 %v6515_v61, %v6511_v62  ;;  %v6534_v27 = vshll.u32 %v14287_v33, 16 }
 0x4b3   : > { %v14325_v29 = vsel %vm2524_vm4, %v14119_v19, %v18067_v23  ;;  %6991 = vrot.lane.b32.xlu1 %v6502_v15, %s10131_s15  ;;  %v14329_v4 = vcombine.low %v9226_v59, %v9227_v53  ;;  %6989 = vrot.lane.b32.xlu0 %v6495_v55, %s10131_s15  ;;  %v6509_v31 = vor.u32 %v6508_v45, %v6504_v6  ;;  %v6518_v9 = vshrl.u32 %v14248_v57, 16  ;;  %v9230_v63 = vld [vmem:[%s10164_s14 + $0x158] sm:$0xf]  ;;  %v9231_v19 = vld [vmem:[%s10164_s14 + $0x15c] sm:$0x1]  ;;  %v18071_v23 = vld [vmem:[#allocation151_spill] sm:$0xff] }
 0x4b4   : > { %18068 = vst [vmem:[#allocation63_spill] sm:$0xff] %v14325_v29  ;;  %v6522_v5 = vrot.slane %v6520_v40, 1  ;;  %v14333_v26 = vcombine.low %v9224_v11, %v9225_v21  ;;  %v14340_v15 = vsel %vm2524_vm4, %v14124_v34, %v18071_v23  ;;  %v18073_v62 = vld [vmem:[#allocation152_spill] sm:$0xff]  ;;  %v18074_v59 = vld [vmem:[#allocation153_spill] sm:$0xff]  ;;  %v18075_v55 = vld [vmem:[#allocation162_spill] sm:$0xff]  ;;  %v14357_v40 = vpop.permute.xlu1 %4817  ;;  %v6539_v23 = vshrl.u32 %v14282_v30, 16 }
 0x4b5   : > { %18069 = vst [vmem:[#allocation26_spill] sm:$0xff] %v14329_v4  ;;  %18072 = vst [vmem:[#allocation105_spill] sm:$0xff] %v14340_v15  ;;  %v14345_v61 = vsel %vm2524_vm4, %v14133_v36, %v18073_v62  ;;  %v14350_v6 = vsel %vm2524_vm4, %v14146_v0, %v18074_v59  ;;  %v14355_v45 = vsel %vm2524_vm4, %v14181_v46, %v18075_v55  ;;  %v9228_v53 = vld [vmem:[%s10164_s14 + $0x150] sm:$0xf]  ;;  %v9229_v34 = vld [vmem:[%s10164_s14 + $0x154] sm:$0x1]  ;;  %v14366_v21 = vpop.permute.xlu0 %4815 }
 0x4b6   : > { %18070 = vst [vmem:[#allocation43_spill] sm:$0xff] %v14333_v26  ;;  %18076 = vst [vmem:[#allocation64_spill] sm:$0xff] %v14355_v45  ;;  %v18077_v11 = vld [vmem:[#allocation163_spill] sm:$0xff]  ;;  %v6530_v0 = vor.u32 %v6529_v10, %v6525_v14  ;;  %v6543_v62 = vrot.slane %v6541_v3, 1  ;;  %v6532_v46 = vshrl.u32 %v14287_v33, 16  ;;  %v6536_v59 = vrot.slane %v6534_v27, 1 }
 0x4b7   : > { %v14364_v36 = vsel %vm2524_vm4, %v14186_v8, %v18077_v11  ;;  %6995 = vrot.lane.b32.xlu1 %v6516_v22, %s10131_s15  ;;  %v6555_v55 = vshll.u32 %v14329_v4, 16  ;;  %v14372_v57 = vcombine.low %v9230_v63, %v9231_v19  ;;  %6993 = vrot.lane.b32.xlu0 %v6509_v31, %s10131_s15  ;;  %v6523_v8 = vor.u32 %v6522_v5, %v6518_v9  ;;  %v9234_v10 = vld [vmem:[%s10164_s14 + $0x168] sm:$0xf]  ;;  %v9235_v3 = vld [vmem:[%s10164_s14 + $0x16c] sm:$0x1]  ;;  %v18085_v27 = vld [vmem:[#allocation165_spill] sm:$0xff] }
 0x4b8   : > { %18078 = vst [vmem:[#allocation106_spill] sm:$0xff] %v14364_v36  ;;  %v6548_v11 = vshll.u32 %v14333_v26, 16  ;;  %v14376_v14 = vcombine.low %v9228_v53, %v9229_v34  ;;  %v14381_v22 = vsel %vm5321_vm2, %v9154_v49, 0  ;;  %v14389_v31 = vpop.permute.xlu1 %4821  ;;  %v9232_v9 = vld [vmem:[%s10164_s14 + $0x160] sm:$0xf]  ;;  %v14394_v53 = vsel %vm5321_vm2, %v9155_v41, 0 }
 0x4b9   : > { %18079 = vst [vmem:[#allocation52_spill] sm:$0xff] %v14372_v57  ;;  %18081 = vst [vmem:[#allocation66_spill] sm:$0xff] %v14381_v22  ;;  %v9233_v19 = vld [vmem:[%s10164_s14 + $0x164] sm:$0x1]  ;;  %v18083_v49 = vld [vmem:[#allocation164_spill] sm:$0xff]  ;;  %v14404_v63 = vsel %vm2524_vm4, %v14210_v37, %v18085_v27  ;;  %v14406_v5 = vpop.permute.xlu0 %4819  ;;  %v6544_v30 = vor.u32 %v6543_v62, %v6539_v23  ;;  %v6553_v33 = vshrl.u32 %v14329_v4, 16  ;;  %v6537_v41 = vor.u32 %v6536_v59, %v6532_v46 }
 0x4ba   : > { %18080 = vst [vmem:[#allocation107_spill] sm:$0xff] %v14376_v14  ;;  %18082 = vst [vmem:[#allocation108_spill] sm:$0xff] %v14394_v53  ;;  %v14399_v34 = vsel %vm2524_vm4, %v14205_v42, %v18083_v49  ;;  %v9238_v50 = vld [vmem:[%s10164_s14 + $0x178] sm:$0xf]  ;;  %v9239_v51 = vld [vmem:[%s10164_s14 + $0x17c] sm:$0x1]  ;;  %v14413_v42 = vcombine.low %v9234_v10, %v9235_v3  ;;  %v14420_v27 = vcombine.low %v9232_v9, %v9233_v19 }
 0x4bb   : > { %18084 = vst [vmem:[#allocation109_spill] sm:$0xff] %v14399_v34  ;;  %18086 = vst [vmem:[#allocation68_spill] sm:$0xff] %v14404_v63  ;;  %6999 = vrot.lane.b32.xlu1 %v6530_v0, %s10131_s15  ;;  %v6557_v22 = vrot.slane %v6555_v55, 1  ;;  %v6569_v45 = vshll.u32 %v14372_v57, 16  ;;  %v9236_v49 = vld [vmem:[%s10164_s14 + $0x170] sm:$0xf]  ;;  %6997 = vrot.lane.b32.xlu0 %v6523_v8, %s10131_s15 }
 0x4bc   : > { %18087 = vst [vmem:[#allocation110_spill] sm:$0xff] %v14413_v42  ;;  %v9237_v36 = vld [vmem:[%s10164_s14 + $0x174] sm:$0x1]  ;;  %v6546_v37 = vshrl.u32 %v14333_v26, 16  ;;  %v6550_v23 = vrot.slane %v6548_v11, 1  ;;  %v6562_v62 = vshll.u32 %v14376_v14, 16  ;;  %v14434_v10 = vpop.permute.xlu1 %4825  ;;  %v14436_v11 = vcombine.low %v9238_v50, %v9239_v51 }
 0x4bd   : > { %18088 = vst [vmem:[#allocation65_spill] sm:$0xff] %v14420_v27  ;;  %v18089_v46 = vld [vmem:[#allocation166_spill] sm:$0xff]  ;;  %v18090_v55 = vld [vmem:[#allocation167_spill] sm:$0xff]  ;;  %v18092_v3 = vld [vmem:[#allocation168_spill] sm:$0xff]  ;;  %v14455_v50 = vcombine.low %v9236_v49, %v9237_v36  ;;  %v6576_v36 = vshll.u32 %v14420_v27, 16 }
 0x4be   : > { %v14427_v59 = vsel %vm2524_vm4, %v14215_v52, %v18089_v46  ;;  %v14432_v8 = vsel %vm2524_vm4, %v14220_v20, %v18090_v55  ;;  %18091 = vst [vmem:[#allocation56_spill] sm:$0xff] %v14436_v11  ;;  %v14441_v9 = vsel %vm2524_vm4, %v14229_v2, %v18092_v3  ;;  %v18093_v19 = vld [vmem:[#allocation169_spill] sm:$0xff]  ;;  %v10031_v52 = vld [vmem:[%s10164_s14 + $0x50] sm:$0xf]  ;;  %v14453_v55 = vpop.permute.xlu0 %4823  ;;  %v9242_v51 = vld [vmem:[%s10164_s14 + $0x188] sm:$0xf]  ;;  %v6558_v2 = vor.u32 %v6557_v22, %v6553_v33 }
 0x4bf   : > { %v14446_v0 = vsel %vm2524_vm4, %v14292_v7, %v18093_v19  ;;  %v18094_v46 = vld [vmem:[#allocation233_spill] sm:$0xff]  ;;  %18095 = vst [vmem:[#allocation71_spill] sm:$0xff] %v14455_v50  ;;  %v9243_v26 = vld [vmem:[%s10164_s14 + $0x18c] sm:$0x1]  ;;  %7003 = vrot.lane.b32.xlu1 %v6544_v30, %s10131_s15  ;;  %v6567_v7 = vshrl.u32 %v14372_v57, 16  ;;  %v6571_v3 = vrot.slane %v6569_v45, 1  ;;  %7001 = vrot.lane.b32.xlu0 %v6537_v41, %s10131_s15 }
 0x4c0   : > { %v14451_v20 = vsel %vm1665_vm0, %v10031_v52, %v18094_v46  ;;  %v6583_v19 = vshll.u32 %v14413_v42, 16  ;;  %v6551_v52 = vor.u32 %v6550_v23, %v6546_v37  ;;  %v6560_v46 = vshrl.u32 %v14376_v14, 16  ;;  %v10032_v49 = vld [vmem:[%s10164_s14 + $0xa0] sm:$0xf]  ;;  %v18097_v22 = vld [vmem:[#allocation256_spill] sm:$0xff]  ;;  %v14473_v45 = vpop.permute.xlu1 %4829  ;;  %v18099_v14 = vld [vmem:[#allocation219_spill] sm:$0xff] }
 0x4c1   : > { %v6564_v4 = vrot.slane %v6562_v62, 1  ;;  %v18096_v53 = vld [vmem:[#allocation250_spill] sm:$0xff]  ;;  %v6597_v41 = vshll.u32 %v14436_v11, 16  ;;  %v14476_v37 = vcombine.low %v9242_v51, %v9243_v26  ;;  %v6590_v26 = vshll.u32 %v14455_v50, 16  ;;  %v9244_v15 = vld [vmem:[%s10164_s14 + $0x190] sm:$0xf] }
 0x4c2   : > { %v4207_v30 = vsel %vm1665_vm0, %v10032_v49, %v18096_v53  ;;  %v10033_v33 = vld [vmem:[%s10164_s14 + $0x140] sm:$0xf]  ;;  %v9241_v62 = vld [vmem:[%s10164_s14 + $0x184] sm:$0x1]  ;;  %v14487_v53 = vsel %vm2395_vm3, %v13198_v58, %v13709_v54  ;;  %v4934_v49 = vsel %vm2395_vm3, %v13220_v24, %v13718_v43  ;;  %v6572_v51 = vor.u32 %v6571_v3, %v6567_v7 }
 0x4c3   : > { %v14471_v57 = vsel %vm1665_vm0, %v10033_v33, %v18097_v22  ;;  %18098 = vst [vmem:[#allocation38_spill] sm:$0xff] %v14476_v37  ;;  %v9240_v23 = vld [vmem:[%s10164_s14 + $0x180] sm:$0xf]  ;;  %v14482_v34 = vsel %vm1906_vm1, %v4207_v30, %v18099_v14  ;;  %v14492_v33 = vpop.permute.xlu0 %4827  ;;  %v4932_v14 = vsel %vm2395_vm3, %v13192_v38, %v13720_v56  ;;  %7007 = vrot.lane.b32.xlu1 %v6558_v2, %s10131_s15  ;;  %v6581_v58 = vshrl.u32 %v14413_v42, 16  ;;  %v9246_v30 = vld [vmem:[%s10164_s14 + $0x198] sm:$0xf] }
 0x4c4   : > { %v6585_v54 = vrot.slane %v6583_v19, 1  ;;  %v9247_v22 = vld [vmem:[%s10164_s14 + $0x19c] sm:$0x1]  ;;  %7005 = vrot.lane.b32.xlu0 %v6551_v52, %s10131_s15  ;;  %v6565_v43 = vor.u32 %v6564_v4, %v6560_v46  ;;  %v6574_v24 = vshrl.u32 %v14420_v27, 16  ;;  %v6578_v63 = vrot.slane %v6576_v36, 1  ;;  %v4834_v2 = vpop.permute.xlu1 %4833 }
 0x4c5   : > { %v14504_v29 = vcombine.low %v9240_v23, %v9241_v62  ;;  %v9245_v38 = vld [vmem:[%s10164_s14 + $0x194] sm:$0x1]  ;;  %v4962_v56 = vsel %vm2395_vm3, %v13366_v39, %v13781_v60  ;;  %v6595_v7 = vshrl.u32 %v14436_v11, 16  ;;  %v6599_v3 = vrot.slane %v6597_v41, 1  ;;  %v9250_v62 = vld [vmem:[%s10164_s14 + $0x1a8] sm:$0xf] }
 0x4c6   : > { %v6611_v19 = vshll.u32 %v14476_v37, 16  ;;  %v4960_v4 = vsel %vm2395_vm3, %v13340_v16, %v13785_v48  ;;  %v6588_v46 = vshrl.u32 %v14455_v50, 16  ;;  %v6592_v36 = vrot.slane %v6590_v26, 1  ;;  %v9251_v27 = vld [vmem:[%s10164_s14 + $0x1ac] sm:$0x1] }
 0x4c7   : > { %18100 = vst [vmem:[#allocation67_spill] sm:$0xff] %v14504_v29  ;;  %v4832_v52 = vpop.permute.xlu0 %4831  ;;  %v14517_v23 = vcombine.low %v9246_v30, %v9247_v22  ;;  %v5062_v60 = vsel %vm2524_vm4, %v4934_v49, %v14222_v25  ;;  %v5060_v39 = vsel %vm2524_vm4, %v4932_v14, %v14231_v12  ;;  %7011 = vrot.lane.b32.xlu1 %v6572_v51, %s10131_s15  ;;  %v6604_v49 = vshll.u32 %v14504_v29, 16 }
 0x4c8   : > { %v6586_v41 = vor.u32 %v6585_v54, %v6581_v58  ;;  %v14526_v48 = vcombine.low %v9244_v15, %v9245_v38  ;;  %v4966_v16 = vsel %vm2395_vm3, %v13386_v1, %v13790_v13  ;;  %v4964_v26 = vsel %vm2395_vm3, %v13360_v35, %v13792_v18  ;;  %7009 = vrot.lane.b32.xlu0 %v6565_v43, %s10131_s15  ;;  %v4838_v30 = vpop.permute.xlu1 %4837  ;;  %v9248_v58 = vld [vmem:[%s10164_s14 + $0x1a0] sm:$0xf]  ;;  %v9249_v1 = vld [vmem:[%s10164_s14 + $0x1a4] sm:$0x1]  ;;  %v9254_v38 = vld [vmem:[%s10164_s14 + $0x1b8] sm:$0xf] }
 0x4c9   : > { %18101 = vst [vmem:[#allocation111_spill] sm:$0xff] %v14517_v23  ;;  %v6579_v25 = vor.u32 %v6578_v63, %v6574_v24  ;;  %v6600_v12 = vor.u32 %v6599_v3, %v6595_v7  ;;  %v6609_v14 = vshrl.u32 %v14476_v37, 16  ;;  %v6613_v15 = vrot.slane %v6611_v19, 1  ;;  %v9255_v7 = vld [vmem:[%s10164_s14 + $0x1bc] sm:$0x1] }
 0x4ca   : > { %18102 = vst [vmem:[#allocation72_spill] sm:$0xff] %v14526_v48  ;;  %v14537_v51 = vcombine.low %v9250_v62, %v9251_v27  ;;  %v5094_v13 = vsel %vm2524_vm4, %v4966_v16, %v4838_v30  ;;  %v9123_v18 = vcombine.low %v5060_v39, %v5062_v60  ;;  %v6593_v35 = vor.u32 %v6592_v36, %v6588_v46  ;;  %v9252_v60 = vld [vmem:[%s10164_s14 + $0x1b0] sm:$0xf]  ;;  %v9253_v39 = vld [vmem:[%s10164_s14 + $0x1b4] sm:$0x1]  ;;  %v18109_v30 = vld [vmem:[#allocation37_spill] sm:$0xff] }
 0x4cb   : > { %v4836_v54 = vpop.permute.xlu0 %4835  ;;  %v6625_v63 = vshll.u32 %v14517_v23, 16  ;;  %v5090_v22 = vsel %vm2524_vm4, %v4962_v56, %v4834_v2  ;;  %v5088_v43 = vsel %vm2524_vm4, %v4960_v4, %v4832_v52  ;;  %7015 = vrot.lane.b32.xlu1 %v6586_v41, %s10131_s15  ;;  %v6618_v27 = vshll.u32 %v14526_v48, 16 }
 0x4cc   : > { %18103 = vst [vmem:[#allocation144_spill] sm:$0xff] %v14537_v51  ;;  %v5092_v24 = vsel %vm2524_vm4, %v4964_v26, %v4836_v54  ;;  %7013 = vrot.lane.b32.xlu0 %v6579_v25, %s10131_s15  ;;  %v6602_v19 = vshrl.u32 %v14504_v29, 16  ;;  %v6606_v46 = vrot.slane %v6604_v49, 1  ;;  %v14552_v36 = vcombine.low %v9248_v58, %v9249_v1  ;;  %v14557_v2 = vpop.permute.xlu1 %4841  ;;  %v18110_v1 = vld [vmem:[#allocation246_spill] sm:$0xff] }
 0x4cd   : > { %v9131_v3 = vcombine.low %v5092_v24, %v5094_v13  ;;  %v4928_v56 = vsel %vm2395_vm3, %v13170_v44, %v13713_v47  ;;  %18105 = vst [vmem:[#allocation146_spill] sm:$0xff] %v14557_v2  ;;  %v6614_v4 = vor.u32 %v6613_v15, %v6609_v14  ;;  %v6623_v52 = vshrl.u32 %v14517_v23, 16  ;;  %v18108_v47 = vld [vmem:[#allocation98_spill] sm:$0xff] }
 0x4ce   : > { %18104 = vst [vmem:[#allocation145_spill] sm:$0xff] %v14552_v36  ;;  %v6639_v62 = vshll.u32 %v14537_v51, 16  ;;  %v9130_v41 = vcombine.low %v5088_v43, %v5090_v22  ;;  %v5347_v26 = vsel %vm5321_vm2, %v9123_v18, 0  ;;  %v6627_v25 = vrot.slane %v6625_v63, 1  ;;  %v9259_v63 = vld [vmem:[%s10164_s14 + $0x1cc] sm:$0x1] }
 0x4cf   : > { %9574 = vmatprep.subr.msk.bf16.mxu0 %vm5321_vm2, %v9131_v3  ;;  %v14564_v16 = vpop.permute.xlu0 %4839  ;;  %v14567_v44 = vcombine.low %v9254_v38, %v9255_v7  ;;  %v5058_v49 = vsel %vm2524_vm4, %v14487_v53, %v18108_v47  ;;  %v5056_v14 = vsel %vm2524_vm4, %v4928_v56, %v18109_v30  ;;  %7019 = vrot.lane.b32.xlu1 %v6600_v12, %s10131_s15  ;;  %v6616_v15 = vshrl.u32 %v14526_v48, 16  ;;  %v9258_v12 = vld [vmem:[%s10164_s14 + $0x1c8] sm:$0xf]  ;;  %v18112_v22 = vld [vmem:[#allocation290_spill] sm:$0xff]  ;;  %v18113_v43 = vld [vmem:[#allocation232_spill] sm:$0xff] }
 0x4d0   : > { %18106 = vst [vmem:[#allocation147_spill] sm:$0xff] %v14564_v16  ;;  %9467 = vmatpush3.bf16.xpose.msra.mxu0 %v5347_v26  ;;  %v6620_v58 = vrot.slane %v6618_v27, 1  ;;  %v4476_v13 = vsel %vm1906_vm1, %v14471_v57, %v18110_v1  ;;  %7017 = vrot.lane.b32.xlu0 %v6593_v35, %s10131_s15  ;;  %v6607_v53 = vor.u32 %v6606_v46, %v6602_v19  ;;  %v6632_v54 = vshll.u32 %v14552_v36, 16  ;;  %v18114_v27 = vld [vmem:[#allocation297_spill] sm:$0xff]  ;;  %v18115_v38 = vld [vmem:[#allocation263_spill] sm:$0xff]  ;;  %v14592_v35 = vpop.permute.xlu1 %4845  ;;  %v18117_v56 = vld [vmem:[#allocation298_spill] sm:$0xff] }
 0x4d1   : > { %18107 = vst [vmem:[#allocation148_spill] sm:$0xff] %v14567_v44  ;;  %9575 = vmatprep.subr.msk.bf16.mxu0 %vm5321_vm2, %v9130_v41  ;;  %v14582_v18 = vcombine.low %v9252_v60, %v9253_v39  ;;  %v4926_v24 = vsel %vm2395_vm3, %v18113_v43, %v18112_v22  ;;  %v4958_v57 = vsel %vm2395_vm3, %v18115_v38, %v18114_v27  ;;  %18116 = vst [vmem:[#allocation112_spill] sm:$0xff] %v14592_v35  ;;  %v9256_v19 = vld [vmem:[%s10164_s14 + $0x1c0] sm:$0xf]  ;;  %v9257_v46 = vld [vmem:[%s10164_s14 + $0x1c4] sm:$0x1] }
 0x4d2   : > { %v6637_v7 = vshrl.u32 %v14537_v51, 16  ;;  %v6641_v3 = vrot.slane %v6639_v62, 1  ;;  %v18118_v60 = vld [vmem:[#allocation251_spill] sm:$0xff]  ;;  %v9122_v41 = vcombine.low %v5056_v14, %v5058_v49  ;;  %v6628_v47 = vor.u32 %v6627_v25, %v6623_v52  ;;  %v9262_v1 = vld [vmem:[%s10164_s14 + $0x1d8] sm:$0xf] }
 0x4d3   : > { %18111 = vst [vmem:[#allocation149_spill] sm:$0xff] %v14582_v18  ;;  %v4956_v39 = vsel %vm2395_vm3, %v18118_v60, %v18117_v56  ;;  %v14600_v26 = vpop.permute.xlu0 %4843  ;;  %v6653_v30 = vshll.u32 %v14567_v44, 16  ;;  %v9263_v22 = vld [vmem:[%s10164_s14 + $0x1dc] sm:$0x1]  ;;  %v5086_v43 = vsel %vm2524_vm4, %v4958_v57, %v14473_v45  ;;  %7023 = vrot.lane.b32.xlu1 %v6614_v4, %s10131_s15  ;;  %v6621_v27 = vor.u32 %v6620_v58, %v6616_v15  ;;  %v9260_v56 = vld [vmem:[%s10164_s14 + $0x1d0] sm:$0xf] }
 0x4d4   : > { %18119 = vst [vmem:[#allocation69_spill] sm:$0xff] %v14600_v26  ;;  %v5084_v62 = vsel %vm2524_vm4, %v4956_v39, %v14492_v33  ;;  %v14610_v38 = vcombine.low %v9258_v12, %v9259_v63  ;;  %v9261_v49 = vld [vmem:[%s10164_s14 + $0x1d4] sm:$0x1]  ;;  %7021 = vrot.lane.b32.xlu0 %v6607_v53, %s10131_s15  ;;  %v6630_v52 = vshrl.u32 %v14552_v36, 16  ;;  %v6634_v25 = vrot.slane %v6632_v54, 1  ;;  %v18122_v45 = vld [vmem:[#allocation291_spill] sm:$0xff]  ;;  %v14622_v39 = vpop.permute.xlu1 %4849 }
 0x4d5   : > { %v6646_v14 = vshll.u32 %v14582_v18, 16  ;;  %v14617_v60 = vcombine.low %v9256_v19, %v9257_v46  ;;  %v18123_v57 = vld [vmem:[#allocation245_spill] sm:$0xff]  ;;  %v6642_v4 = vor.u32 %v6641_v3, %v6637_v7  ;;  %v6651_v15 = vshrl.u32 %v14567_v44, 16  ;;  %v18126_v46 = vld [vmem:[#allocation30_spill] sm:$0xff]  ;;  %v9291_v44 = vld [vmem:[%s10164_s14 + $0x24c] sm:$0x1] }
 0x4d6   : > { %18120 = vst [vmem:[#allocation21_spill] sm:$0xff] %v14610_v38  ;;  %v4924_v33 = vsel %vm2395_vm3, %v18123_v57, %v18122_v45  ;;  %v14625_v58 = vcombine.low %v9262_v1, %v9263_v22  ;;  %v9129_v12 = vcombine.low %v5084_v62, %v5086_v43  ;;  %v5344_v54 = vsel %vm5321_vm2, %v9122_v41, 0  ;;  %v18127_v57 = vld [vmem:[#allocation94_spill] sm:$0xff]  ;;  %v18128_v41 = vld [vmem:[#allocation288_spill] sm:$0xff]  ;;  %v18153_v51 = vld [vmem:[#allocation57_spill] sm:$0xff] }
 0x4d7   : > { %18121 = vst [vmem:[#allocation16_spill] sm:$0xff] %v14617_v60  ;;  %v14627_v53 = vpop.permute.xlu0 %4847  ;;  %v6655_v63 = vrot.slane %v6653_v30, 1  ;;  %v14630_v19 = vcombine.low %v9260_v56, %v9261_v49  ;;  %v5054_v45 = vsel %vm2524_vm4, %v4926_v24, %v18126_v46  ;;  %v5052_v7 = vsel %vm2524_vm4, %v4924_v33, %v18127_v57  ;;  %7027 = vrot.lane.b32.xlu1 %v6628_v47, %s10131_s15  ;;  %v18129_v22 = vld [vmem:[#allocation236_spill] sm:$0xff]  ;;  %v9266_v47 = vld [vmem:[%s10164_s14 + $0x1e8] sm:$0xf]  ;;  %v18130_v49 = vld [vmem:[#allocation289_spill] sm:$0xff] }
 0x4d8   : > { %18124 = vst [vmem:[#allocation150_spill] sm:$0xff] %v14625_v58  ;;  %9469 = vmatpush3.bf16.xpose.msra.mxu0 %v5344_v54  ;;  %v6644_v3 = vshrl.u32 %v14582_v18, 16  ;;  %v6667_v1 = vshll.u32 %v14610_v38, 16  ;;  %v4922_v30 = vsel %vm2395_vm3, %v18129_v22, %v18128_v41  ;;  %7025 = vrot.lane.b32.xlu0 %v6621_v27, %s10131_s15  ;;  %v6635_v24 = vor.u32 %v6634_v25, %v6630_v52  ;;  %v9267_v56 = vld [vmem:[%s10164_s14 + $0x1ec] sm:$0x1]  ;;  %v18132_v46 = vld [vmem:[#allocation262_spill] sm:$0xff] }
 0x4d9   : > { %18125 = vst [vmem:[#allocation151_spill] sm:$0xff] %v14630_v19  ;;  %9576 = vmatprep.subr.msk.bf16.mxu0 %vm5321_vm2, %v9129_v12  ;;  %v6648_v43 = vrot.slane %v6646_v14, 1  ;;  %v6660_v62 = vshll.u32 %v14617_v60, 16  ;;  %v4920_v33 = vsel %vm2395_vm3, %v14482_v34, %v18130_v49  ;;  %v18131_v54 = vld [vmem:[#allocation295_spill] sm:$0xff]  ;;  %v18133_v41 = vld [vmem:[#allocation296_spill] sm:$0xff]  ;;  %v14655_v12 = vpop.permute.xlu1 %4853  ;;  %v6681_v52 = vshll.u32 %v14625_v58, 16 }
 0x4da   : > { %v4954_v57 = vsel %vm2395_vm3, %v18132_v46, %v18131_v54  ;;  %v4952_v27 = vsel %vm2395_vm3, %v4476_v13, %v18133_v41  ;;  %v9264_v25 = vld [vmem:[%s10164_s14 + $0x1e0] sm:$0xf]  ;;  %v9265_v14 = vld [vmem:[%s10164_s14 + $0x1e4] sm:$0x1]  ;;  %v9121_v22 = vcombine.low %v5052_v7, %v5054_v45  ;;  %v6656_v50 = vor.u32 %v6655_v63, %v6651_v15  ;;  %v9270_v54 = vld [vmem:[%s10164_s14 + $0x1f8] sm:$0xf] }
 0x4db   : > { %v14660_v48 = vpop.permute.xlu0 %4851  ;;  %v6665_v34 = vshrl.u32 %v14610_v38, 16  ;;  %v6674_v49 = vshll.u32 %v14630_v19, 16  ;;  %v9271_v46 = vld [vmem:[%s10164_s14 + $0x1fc] sm:$0x1]  ;;  %v5082_v13 = vsel %vm2524_vm4, %v4954_v57, %v14434_v10  ;;  %v5080_v41 = vsel %vm2524_vm4, %v4952_v27, %v14453_v55  ;;  %7031 = vrot.lane.b32.xlu1 %v6642_v4, %s10131_s15  ;;  %v9268_v45 = vld [vmem:[%s10164_s14 + $0x1f0] sm:$0xf] }
 0x4dc   : > { %v6669_v42 = vrot.slane %v6667_v1, 1  ;;  %v14671_v37 = vcombine.low %v9266_v47, %v9267_v56  ;;  %v9269_v7 = vld [vmem:[%s10164_s14 + $0x1f4] sm:$0x1]  ;;  %7029 = vrot.lane.b32.xlu0 %v6635_v24, %s10131_s15  ;;  %v6649_v15 = vor.u32 %v6648_v43, %v6644_v3  ;;  %v6658_v63 = vshrl.u32 %v14617_v60, 16  ;;  %v18139_v27 = vld [vmem:[#allocation22_spill] sm:$0xff] }
 0x4dd   : > { %v6662_v29 = vrot.slane %v6660_v62, 1  ;;  %v14677_v11 = vcombine.low %v9264_v25, %v9265_v14  ;;  %v14679_v36 = vpop.permute.xlu1 %4857  ;;  %v6679_v10 = vshrl.u32 %v14625_v58, 16  ;;  %v6683_v55 = vrot.slane %v6681_v52, 1  ;;  %v18138_v62 = vld [vmem:[#allocation46_spill] sm:$0xff]  ;;  %v9303_v16 = vld [vmem:[%s10164_s14 + $0x27c] sm:$0x1] }
 0x4de   : > { %18134 = vst [vmem:[#allocation152_spill] sm:$0xff] %v14671_v37  ;;  %v6672_v4 = vshrl.u32 %v14630_v19, 16  ;;  %v14683_v1 = vcombine.low %v9270_v54, %v9271_v46  ;;  %v9128_v47 = vcombine.low %v5080_v41, %v5082_v13  ;;  %v5341_v3 = vsel %vm5321_vm2, %v9121_v22, 0  ;;  %v10034_v22 = vld [vmem:[%s10164_s14 + $0xf0] sm:$0xf]  ;;  %v18140_v54 = vld [vmem:[#allocation254_spill] sm:$0xff] }
 0x4df   : > { %18135 = vst [vmem:[#allocation153_spill] sm:$0xff] %v14677_v11  ;;  %v14685_v56 = vpop.permute.xlu0 %4855  ;;  %v6676_v24 = vrot.slane %v6674_v49, 1  ;;  %v14688_v43 = vcombine.low %v9268_v45, %v9269_v7  ;;  %v5050_v57 = vsel %vm2524_vm4, %v4922_v30, %v18138_v62  ;;  %v5048_v52 = vsel %vm2524_vm4, %v4920_v33, %v18139_v27  ;;  %7035 = vrot.lane.b32.xlu1 %v6656_v50, %s10131_s15  ;;  %v18141_v46 = vld [vmem:[#allocation215_spill] sm:$0xff]  ;;  %v18142_v13 = vld [vmem:[#allocation293_spill] sm:$0xff]  ;;  %v18144_v7 = vld [vmem:[#allocation294_spill] sm:$0xff] }
 0x4e0   : > { %18136 = vst [vmem:[#allocation162_spill] sm:$0xff] %v14683_v1  ;;  %9471 = vmatpush3.bf16.xpose.msra.mxu0 %v5341_v3  ;;  %v6670_v25 = vor.u32 %v6669_v42, %v6665_v34  ;;  %v6695_v14 = vshll.u32 %v14671_v37, 16  ;;  %v14699_v49 = vsel %vm1665_vm0, %v10034_v22, %v18140_v54  ;;  %v14704_v30 = vsel %vm1906_vm1, %v14451_v20, %v18141_v46  ;;  %v9274_v33 = vld [vmem:[%s10164_s14 + $0x208] sm:$0xf]  ;;  %v9275_v34 = vld [vmem:[%s10164_s14 + $0x20c] sm:$0x1] }
 0x4e1   : > { %18137 = vst [vmem:[#allocation163_spill] sm:$0xff] %v14688_v43  ;;  %7033 = vrot.lane.b32.xlu0 %v6649_v15, %s10131_s15  ;;  %9577 = vmatprep.subr.msk.bf16.mxu0 %vm5321_vm2, %v9128_v47  ;;  %v6663_v50 = vor.u32 %v6662_v29, %v6658_v63  ;;  %v6688_v42 = vshll.u32 %v14677_v11, 16  ;;  %v18143_v41 = vld [vmem:[#allocation249_spill] sm:$0xff]  ;;  %v18145_v3 = vld [vmem:[#allocation243_spill] sm:$0xff]  ;;  %v14717_v20 = vpop.permute.xlu1 %4861  ;;  %v6684_v15 = vor.u32 %v6683_v55, %v6679_v10  ;;  %v6709_v47 = vshll.u32 %v14683_v1, 16 }
 0x4e2   : > { %v4950_v45 = vsel %vm2395_vm3, %v18143_v41, %v18142_v13  ;;  %v4948_v62 = vsel %vm2395_vm3, %v18145_v3, %v18144_v7  ;;  %v9272_v29 = vld [vmem:[%s10164_s14 + $0x200] sm:$0xf]  ;;  %v9273_v63 = vld [vmem:[%s10164_s14 + $0x204] sm:$0x1]  ;;  %v9120_v27 = vcombine.low %v5048_v52, %v5050_v57  ;;  %v6677_v54 = vor.u32 %v6676_v24, %v6672_v4  ;;  %v9278_v57 = vld [vmem:[%s10164_s14 + $0x218] sm:$0xf] }
 0x4e3   : > { %v14722_v22 = vpop.permute.xlu0 %4859  ;;  %v6693_v46 = vshrl.u32 %v14671_v37, 16  ;;  %v6702_v13 = vshll.u32 %v14688_v43, 16  ;;  %v5078_v41 = vsel %vm2524_vm4, %v4950_v45, %v14389_v31  ;;  %v5076_v7 = vsel %vm2524_vm4, %v4948_v62, %v14406_v5  ;;  %7039 = vrot.lane.b32.xlu1 %v6670_v25, %s10131_s15  ;;  %v9279_v52 = vld [vmem:[%s10164_s14 + $0x21c] sm:$0x1]  ;;  %v18148_v5 = vld [vmem:[#allocation286_spill] sm:$0xff] }
 0x4e4   : > { %v6697_v10 = vrot.slane %v6695_v14, 1  ;;  %v14731_v55 = vcombine.low %v9274_v33, %v9275_v34  ;;  %v6686_v4 = vshrl.u32 %v14677_v11, 16  ;;  %v6690_v24 = vrot.slane %v6688_v42, 1  ;;  %v18149_v3 = vld [vmem:[#allocation242_spill] sm:$0xff]  ;;  %v18150_v14 = vld [vmem:[#allocation287_spill] sm:$0xff] }
 0x4e5   : > { %7037 = vrot.lane.b32.xlu0 %v6663_v50, %s10131_s15  ;;  %v6707_v31 = vshrl.u32 %v14683_v1, 16  ;;  %v14738_v45 = vcombine.low %v9272_v29, %v9273_v63  ;;  %v4918_v25 = vsel %vm2395_vm3, %v18149_v3, %v18148_v5  ;;  %v18151_v33 = vld [vmem:[#allocation234_spill] sm:$0xff]  ;;  %v14746_v62 = vpop.permute.xlu1 %4865  ;;  %v6711_v50 = vrot.slane %v6709_v47, 1  ;;  %v9276_v37 = vld [vmem:[%s10164_s14 + $0x210] sm:$0xf] }
 0x4e6   : > { %18146 = vst [vmem:[#allocation164_spill] sm:$0xff] %v14731_v55  ;;  %v4916_v34 = vsel %vm2395_vm3, %v18151_v33, %v18150_v14  ;;  %v6700_v11 = vshrl.u32 %v14688_v43, 16  ;;  %v9277_v42 = vld [vmem:[%s10164_s14 + $0x214] sm:$0x1]  ;;  %v9127_v23 = vcombine.low %v5076_v7, %v5078_v41  ;;  %v5338_v29 = vsel %vm5321_vm2, %v9120_v27, 0  ;;  %v18154_v33 = vld [vmem:[#allocation25_spill] sm:$0xff] }
 0x4e7   : > { %18147 = vst [vmem:[#allocation165_spill] sm:$0xff] %v14738_v45  ;;  %v14751_v18 = vpop.permute.xlu0 %4863  ;;  %v6704_v63 = vrot.slane %v6702_v13, 1  ;;  %v14754_v1 = vcombine.low %v9278_v57, %v9279_v52  ;;  %v9282_v5 = vld [vmem:[%s10164_s14 + $0x228] sm:$0xf]  ;;  %v9283_v3 = vld [vmem:[%s10164_s14 + $0x22c] sm:$0x1]  ;;  %v5046_v14 = vsel %vm2524_vm4, %v4918_v25, %v18153_v51  ;;  %v5044_v47 = vsel %vm2524_vm4, %v4916_v34, %v18154_v33  ;;  %7043 = vrot.lane.b32.xlu1 %v6684_v15, %s10131_s15 }
 0x4e8   : > { %9473 = vmatpush3.bf16.xpose.msra.mxu0 %v5338_v29  ;;  %v6698_v41 = vor.u32 %v6697_v10, %v6693_v46  ;;  %v6723_v7 = vshll.u32 %v14731_v55, 16  ;;  %v18155_v27 = vld [vmem:[#allocation210_spill] sm:$0xff]  ;;  %v18156_v13 = vld [vmem:[#allocation231_spill] sm:$0xff]  ;;  %v6691_v51 = vor.u32 %v6690_v24, %v6686_v4  ;;  %v6716_v52 = vshll.u32 %v14738_v45, 16  ;;  %v18159_v46 = vld [vmem:[#allocation237_spill] sm:$0xff] }
 0x4e9   : > { %18152 = vst [vmem:[#allocation166_spill] sm:$0xff] %v14754_v1  ;;  %v14767_v57 = vsel %vm2395_vm3, %v18156_v13, %v18155_v27  ;;  %7041 = vrot.lane.b32.xlu0 %v6677_v54, %s10131_s15  ;;  %9578 = vmatprep.subr.msk.bf16.mxu0 %vm5321_vm2, %v9127_v23  ;;  %v14772_v25 = vcombine.low %v9276_v37, %v9277_v42  ;;  %v18158_v15 = vld [vmem:[#allocation214_spill] sm:$0xff]  ;;  %v18160_v34 = vld [vmem:[#allocation253_spill] sm:$0xff]  ;;  %v18161_v29 = vld [vmem:[#allocation252_spill] sm:$0xff]  ;;  %v14783_v23 = vpop.permute.xlu1 %4869  ;;  %v6737_v60 = vshll.u32 %v14754_v1, 16 }
 0x4ea   : > { %v4914_v10 = vsel %vm2395_vm3, %v18159_v46, %v18158_v15  ;;  %v4946_v33 = vsel %vm2395_vm3, %v18161_v29, %v18160_v34  ;;  %v18162_v27 = vld [vmem:[#allocation222_spill] sm:$0xff]  ;;  %v18163_v13 = vld [vmem:[#allocation244_spill] sm:$0xff]  ;;  %v14785_v4 = vcombine.low %v9282_v5, %v9283_v3  ;;  %v9119_v42 = vcombine.low %v5044_v47, %v5046_v14  ;;  %v9286_v34 = vld [vmem:[%s10164_s14 + $0x238] sm:$0xf] }
 0x4eb   : > { %18157 = vst [vmem:[#allocation167_spill] sm:$0xff] %v14772_v25  ;;  %v4944_v54 = vsel %vm2395_vm3, %v18163_v13, %v18162_v27  ;;  %v9280_v37 = vld [vmem:[%s10164_s14 + $0x220] sm:$0xf]  ;;  %v9281_v24 = vld [vmem:[%s10164_s14 + $0x224] sm:$0x1]  ;;  %v14789_v43 = vpop.permute.xlu0 %4867  ;;  %v6712_v15 = vor.u32 %v6711_v50, %v6707_v31  ;;  %v6705_v46 = vor.u32 %v6704_v63, %v6700_v11  ;;  %v5074_v27 = vsel %vm2524_vm4, %v4946_v33, %v14357_v40  ;;  %v18166_v47 = vld [vmem:[#allocation207_spill] sm:$0xff] }
 0x4ec   : > { %18164 = vst [vmem:[#allocation168_spill] sm:$0xff] %v14785_v4  ;;  %v9287_v29 = vld [vmem:[%s10164_s14 + $0x23c] sm:$0x1]  ;;  %v5072_v13 = vsel %vm2524_vm4, %v4944_v54, %v14366_v21  ;;  %7047 = vrot.lane.b32.xlu1 %v6698_v41, %s10131_s15  ;;  %v6721_v5 = vshrl.u32 %v14731_v55, 16  ;;  %v6725_v3 = vrot.slane %v6723_v7, 1  ;;  %v6714_v11 = vshrl.u32 %v14738_v45, 16 }
 0x4ed   : > { %v9284_v14 = vld [vmem:[%s10164_s14 + $0x230] sm:$0xf]  ;;  %v9285_v31 = vld [vmem:[%s10164_s14 + $0x234] sm:$0x1]  ;;  %7045 = vrot.lane.b32.xlu0 %v6691_v51, %s10131_s15  ;;  %v6718_v50 = vrot.slane %v6716_v52, 1  ;;  %v6730_v63 = vshll.u32 %v14772_v25, 16  ;;  %v14805_v40 = vcombine.low %v9280_v37, %v9281_v24  ;;  %v14810_v41 = vpop.permute.xlu1 %4873  ;;  %v14814_v55 = vcombine.low %v9286_v34, %v9287_v29 }
 0x4ee   : > { %v18167_v21 = vld [vmem:[#allocation230_spill] sm:$0xff]  ;;  %18168 = vst [vmem:[#allocation233_spill] sm:$0xff] %v14810_v41  ;;  %v6735_v54 = vshrl.u32 %v14754_v1, 16  ;;  %v6751_v7 = vshll.u32 %v14785_v4, 16  ;;  %v9290_v51 = vld [vmem:[%s10164_s14 + $0x248] sm:$0xf]  ;;  %v9126_v45 = vcombine.low %v5072_v13, %v5074_v27  ;;  %v14821_v58 = vcombine.low %v9284_v14, %v9285_v31 }
 0x4ef   : > { %18165 = vst [vmem:[#allocation169_spill] sm:$0xff] %v14805_v40  ;;  %v4912_v33 = vsel %vm2395_vm3, %v18167_v21, %v18166_v47  ;;  %18169 = vst [vmem:[#allocation250_spill] sm:$0xff] %v14814_v55  ;;  %v14818_v52 = vpop.permute.xlu0 %4871  ;;  %v5335_v37 = vsel %vm5321_vm2, %v9119_v42, 0  ;;  %v6739_v24 = vrot.slane %v6737_v60, 1  ;;  %v18172_v47 = vld [vmem:[#allocation211_spill] sm:$0xff]  ;;  %v6726_v34 = vor.u32 %v6725_v3, %v6721_v5  ;;  %v18175_v14 = vld [vmem:[#allocation241_spill] sm:$0xff] }
 0x4f0   : > { %18170 = vst [vmem:[#allocation256_spill] sm:$0xff] %v14818_v52  ;;  %18171 = vst [vmem:[#allocation219_spill] sm:$0xff] %v14821_v58  ;;  %v5042_v21 = vsel %vm2524_vm4, %v4914_v10, %v18172_v47  ;;  %v18173_v1 = vld [vmem:[#allocation51_spill] sm:$0xff]  ;;  %9475 = vmatpush3.bf16.xpose.msra.mxu0 %v5335_v37  ;;  %7051 = vrot.lane.b32.xlu1 %v6712_v15, %s10131_s15  ;;  %v6728_v29 = vshrl.u32 %v14772_v25, 16  ;;  %v6719_v42 = vor.u32 %v6718_v50, %v6714_v11  ;;  %v9288_v13 = vld [vmem:[%s10164_s14 + $0x240] sm:$0xf] }
 0x4f1   : > { %v5040_v19 = vsel %vm2524_vm4, %v4912_v33, %v18173_v1  ;;  %7049 = vrot.lane.b32.xlu0 %v6705_v46, %s10131_s15  ;;  %9579 = vmatprep.subr.msk.bf16.mxu0 %vm5321_vm2, %v9126_v45  ;;  %v6732_v60 = vrot.slane %v6730_v63, 1  ;;  %v6744_v27 = vshll.u32 %v14805_v40, 16  ;;  %v14832_v10 = vcombine.low %v9290_v51, %v9291_v44  ;;  %v9289_v1 = vld [vmem:[%s10164_s14 + $0x244] sm:$0x1]  ;;  %v18176_v31 = vld [vmem:[#allocation248_spill] sm:$0xff]  ;;  %v14839_v5 = vpop.permute.xlu1 %4877 }
 0x4f2   : > { %v4942_v15 = vsel %vm2395_vm3, %v18176_v31, %v18175_v14  ;;  %v6749_v46 = vshrl.u32 %v14785_v4, 16  ;;  %v6753_v3 = vrot.slane %v6751_v7, 1  ;;  %v6765_v45 = vshll.u32 %v14814_v55, 16  ;;  %v18177_v11 = vld [vmem:[#allocation292_spill] sm:$0xff]  ;;  %v9294_v47 = vld [vmem:[%s10164_s14 + $0x258] sm:$0xf] }
 0x4f3   : > { %18174 = vst [vmem:[#allocation98_spill] sm:$0xff] %v14832_v10  ;;  %v18178_v50 = vld [vmem:[#allocation240_spill] sm:$0xff]  ;;  %v9118_v33 = vcombine.low %v5040_v19, %v5042_v21  ;;  %v14846_v44 = vpop.permute.xlu0 %4875  ;;  %v6740_v51 = vor.u32 %v6739_v24, %v6735_v54  ;;  %v6758_v37 = vshll.u32 %v14821_v58, 16  ;;  %v9295_v14 = vld [vmem:[%s10164_s14 + $0x25c] sm:$0x1]  ;;  %v5070_v31 = vsel %vm2524_vm4, %v4942_v15, %v14312_v32  ;;  %v18181_v21 = vld [vmem:[#allocation283_spill] sm:$0xff] }
 0x4f4   : > { %v4940_v63 = vsel %vm2395_vm3, %v18178_v50, %v18177_v11  ;;  %18179 = vst [vmem:[#allocation37_spill] sm:$0xff] %v14846_v44  ;;  %7055 = vrot.lane.b32.xlu1 %v6726_v34, %s10131_s15  ;;  %v6742_v11 = vshrl.u32 %v14805_v40, 16  ;;  %v14857_v19 = vcombine.low %v9288_v13, %v9289_v1  ;;  %v18182_v50 = vld [vmem:[#allocation226_spill] sm:$0xff]  ;;  %v6733_v24 = vor.u32 %v6732_v60, %v6728_v29  ;;  %v9292_v32 = vld [vmem:[%s10164_s14 + $0x250] sm:$0xf] }
 0x4f5   : > { %v5068_v7 = vsel %vm2524_vm4, %v4940_v63, %v14318_v28  ;;  %v4908_v54 = vsel %vm2395_vm3, %v18182_v50, %v18181_v21  ;;  %7053 = vrot.lane.b32.xlu0 %v6719_v42, %s10131_s15  ;;  %v6746_v25 = vrot.slane %v6744_v27, 1  ;;  %v6779_v4 = vshll.u32 %v14832_v10, 16  ;;  %v9293_v15 = vld [vmem:[%s10164_s14 + $0x254] sm:$0x1]  ;;  %v14866_v38 = vpop.permute.xlu1 %4881  ;;  %v18184_v27 = vld [vmem:[#allocation330_spill] sm:$0xff] }
 0x4f6   : > { %18180 = vst [vmem:[#allocation246_spill] sm:$0xff] %v14857_v19  ;;  %v6754_v28 = vor.u32 %v6753_v3, %v6749_v46  ;;  %v6763_v34 = vshrl.u32 %v14814_v55, 16  ;;  %v6767_v13 = vrot.slane %v6765_v45, 1  ;;  %v14869_v1 = vcombine.low %v9294_v47, %v9295_v14  ;;  %v18185_v3 = vld [vmem:[#allocation331_spill] sm:$0xff] }
 0x4f7   : > { %v9125_v63 = vcombine.low %v5068_v7, %v5070_v31  ;;  %v14871_v21 = vpop.permute.xlu0 %4879  ;;  %v5332_v29 = vsel %vm5321_vm2, %v9118_v33, 0  ;;  %v6756_v42 = vshrl.u32 %v14821_v58, 16  ;;  %v6760_v60 = vrot.slane %v6758_v37, 1  ;;  %v9298_v33 = vld [vmem:[%s10164_s14 + $0x268] sm:$0xf]  ;;  %v18193_v58 = vld [vmem:[#allocation218_spill] sm:$0xff] }
 0x4f8   : > { %18183 = vst [vmem:[#allocation290_spill] sm:$0xff] %v14869_v1  ;;  %v5038_v46 = vsel %vm2524_vm4, %v14767_v57, %v18184_v27  ;;  %v5036_v50 = vsel %vm2524_vm4, %v4908_v54, %v18185_v3  ;;  %9477 = vmatpush3.bf16.xpose.msra.mxu0 %v5332_v29  ;;  %7059 = vrot.lane.b32.xlu1 %v6740_v51, %s10131_s15  ;;  %v6772_v45 = vshll.u32 %v14857_v19, 16  ;;  %v9299_v14 = vld [vmem:[%s10164_s14 + $0x26c] sm:$0x1]  ;;  %v6777_v7 = vshrl.u32 %v14832_v10, 16  ;;  %v18190_v3 = vld [vmem:[#allocation281_spill] sm:$0xff] }
 0x4f9   : > { %v14882_v47 = vcombine.low %v9292_v32, %v9293_v15  ;;  %v18187_v31 = vld [vmem:[#allocation223_spill] sm:$0xff]  ;;  %7057 = vrot.lane.b32.xlu0 %v6733_v24, %s10131_s15  ;;  %9580 = vmatprep.subr.msk.bf16.mxu0 %vm5321_vm2, %v9125_v63  ;;  %v6747_v57 = vor.u32 %v6746_v25, %v6742_v11  ;;  %v6781_v51 = vrot.slane %v6779_v4, 1  ;;  %v9296_v54 = vld [vmem:[%s10164_s14 + $0x260] sm:$0xf]  ;;  %v9297_v32 = vld [vmem:[%s10164_s14 + $0x264] sm:$0x1]  ;;  %v14903_v11 = vpop.permute.xlu1 %4885  ;;  %v9117_v55 = vcombine.low %v5036_v50, %v5038_v46 }
 0x4fa   : > { %v4456_v37 = vsel %vm1906_vm1, %v14699_v49, %v18187_v31  ;;  %v18188_v15 = vld [vmem:[#allocation206_spill] sm:$0xff]  ;;  %v18189_v29 = vld [vmem:[#allocation227_spill] sm:$0xff]  ;;  %v4904_v49 = vsel %vm2395_vm3, %v14704_v30, %v18190_v3  ;;  %v6793_v63 = vshll.u32 %v14869_v1, 16  ;;  %v9302_v4 = vld [vmem:[%s10164_s14 + $0x278] sm:$0xf]  ;;  %v6770_v46 = vshrl.u32 %v14857_v19, 16 }
 0x4fb   : > { %18186 = vst [vmem:[#allocation232_spill] sm:$0xff] %v14882_v47  ;;  %v4906_v27 = vsel %vm2395_vm3, %v18189_v29, %v18188_v15  ;;  %v18191_v24 = vld [vmem:[#allocation247_spill] sm:$0xff]  ;;  %v4936_v40 = vsel %vm2395_vm3, %v4456_v37, %v18193_v58  ;;  %v14909_v10 = vpop.permute.xlu0 %4883  ;;  %v6768_v15 = vor.u32 %v6767_v13, %v6763_v34  ;;  %v14911_v29 = vcombine.low %v9298_v33, %v9299_v14  ;;  %v9300_v30 = vld [vmem:[%s10164_s14 + $0x270] sm:$0xf]  ;;  %v9301_v3 = vld [vmem:[%s10164_s14 + $0x274] sm:$0x1] }
 0x4fc   : > { %v18192_v31 = vld [vmem:[#allocation235_spill] sm:$0xff]  ;;  %7063 = vrot.lane.b32.xlu1 %v6754_v28, %s10131_s15  ;;  %v6786_v52 = vshll.u32 %v14882_v47, 16  ;;  %v14922_v58 = vcombine.low %v9296_v54, %v9297_v32  ;;  %v6761_v34 = vor.u32 %v6760_v60, %v6756_v42  ;;  %v6782_v13 = vor.u32 %v6781_v51, %v6777_v7  ;;  %v18204_v19 = vld [vmem:[#allocation284_spill] sm:$0xff] }
 0x4fd   : > { %v4938_v25 = vsel %vm2395_vm3, %v18192_v31, %v18191_v24  ;;  %18194 = vst [vmem:[#allocation297_spill] sm:$0xff] %v14911_v29  ;;  %v18195_v31 = vld [vmem:[#allocation41_spill] sm:$0xff]  ;;  %7061 = vrot.lane.b32.xlu0 %v6747_v57, %s10131_s15  ;;  %v6774_v50 = vrot.slane %v6772_v45, 1  ;;  %v14926_v33 = vpop.permute.xlu1 %4889  ;;  %v6795_v14 = vrot.slane %v6793_v63, 1  ;;  %v14931_v28 = vcombine.low %v9300_v30, %v9301_v3  ;;  %v18196_v57 = vld [vmem:[#allocation326_spill] sm:$0xff]  ;;  %v18198_v30 = vld [vmem:[#allocation260_spill] sm:$0xff] }
 0x4fe   : > { %v5066_v24 = vsel %vm2524_vm4, %v4938_v25, %v14272_v17  ;;  %v5064_v2 = vsel %vm2524_vm4, %v4936_v40, %v18195_v31  ;;  %v6791_v17 = vshrl.u32 %v14869_v1, 16  ;;  %v14929_v40 = vcombine.low %v9302_v4, %v9303_v16  ;;  %v18197_v16 = vld [vmem:[#allocation327_spill] sm:$0xff]  ;;  %v9304_v4 = vld [vmem:[%s10164_s14 + $0x280] sm:$0xf]  ;;  %v18200_v31 = vld [vmem:[#allocation261_spill] sm:$0xff] }
 0x4ff   : > { %v9124_v37 = vcombine.low %v5064_v2, %v5066_v24  ;;  %v14933_v54 = vpop.permute.xlu0 %4887  ;;  %v5329_v42 = vsel %vm5321_vm2, %v9117_v55, 0  ;;  %v6784_v60 = vshrl.u32 %v14882_v47, 16  ;;  %v6807_v45 = vshll.u32 %v14911_v29, 16  ;;  %v9306_v55 = vld [vmem:[%s10164_s14 + $0x288] sm:$0xf]  ;;  %v18199_v24 = vld [vmem:[#allocation309_spill] sm:$0xff] }
 0x500   : > { %v5034_v7 = vsel %vm2524_vm4, %v4906_v27, %v18196_v57  ;;  %v5032_v51 = vsel %vm2524_vm4, %v4904_v49, %v18197_v16  ;;  %9479 = vmatpush3.bf16.xpose.msra.mxu0 %v5329_v42  ;;  %7067 = vrot.lane.b32.xlu1 %v6768_v15, %s10131_s15  ;;  %v6788_v2 = vrot.slane %v6786_v52, 1  ;;  %v6800_v32 = vshll.u32 %v14922_v58, 16  ;;  %v9307_v49 = vld [vmem:[%s10164_s14 + $0x28c] sm:$0x1]  ;;  %v9305_v15 = vld [vmem:[%s10164_s14 + $0x284] sm:$0x1] }
 0x501   : > { %v9165_v63 = vcombine.low %v14446_v0, %v14441_v9  ;;  %7065 = vrot.lane.b32.xlu0 %v6761_v34, %s10131_s15  ;;  %9581 = vmatprep.subr.msk.bf16.mxu0 %vm5321_vm2, %v9124_v37  ;;  %v6775_v27 = vor.u32 %v6774_v50, %v6770_v46  ;;  %v10035_v52 = vld [vmem:[%s10164_s14 + $0x1e0] sm:$0xf]  ;;  %v4998_v42 = vsel %vm2395_vm3, %v18200_v31, %v18199_v24  ;;  %v14962_v0 = vpop.permute.xlu1 %4893  ;;  %v6821_v9 = vshll.u32 %v14929_v40, 16  ;;  %v18202_v50 = vld [vmem:[#allocation277_spill] sm:$0xff]  ;;  %v18203_v31 = vld [vmem:[#allocation191_spill] sm:$0xff] }
 0x502   : > { %v14957_v3 = vsel %vm1665_vm0, %v10035_v52, %v18198_v30  ;;  %v6814_v34 = vshll.u32 %v14931_v28, 16  ;;  %v18201_v46 = vld [vmem:[#allocation310_spill] sm:$0xff]  ;;  %v9116_v57 = vcombine.low %v5032_v51, %v5034_v7  ;;  %v6805_v52 = vshrl.u32 %v14911_v29, 16  ;;  %v9310_v25 = vld [vmem:[%s10164_s14 + $0x298] sm:$0xf] }
 0x503   : > { %v4996_v37 = vsel %vm2395_vm3, %v18202_v50, %v18201_v46  ;;  %v14969_v16 = vpop.permute.xlu0 %4891  ;;  %v6809_v30 = vrot.slane %v6807_v45, 1  ;;  %v9311_v24 = vld [vmem:[%s10164_s14 + $0x29c] sm:$0x1]  ;;  %v5026_v47 = vsel %vm2395_vm3, %v18204_v19, %v18203_v31  ;;  %v6796_v1 = vor.u32 %v6795_v14, %v6791_v17  ;;  %v9308_v46 = vld [vmem:[%s10164_s14 + $0x290] sm:$0xf]  ;;  %v18206_v14 = vld [vmem:[#allocation322_spill] sm:$0xff] }
 0x504   : > { %7071 = vrot.lane.b32.xlu1 %v6782_v13, %s10131_s15  ;;  %v14978_v41 = vcombine.low %v9306_v55, %v9307_v49  ;;  %v14980_v26 = vcombine.low %v9304_v4, %v9305_v15  ;;  %v9309_v7 = vld [vmem:[%s10164_s14 + $0x294] sm:$0x1]  ;;  %v6789_v51 = vor.u32 %v6788_v2, %v6784_v60  ;;  %v6798_v45 = vshrl.u32 %v14922_v58, 16  ;;  %v18207_v55 = vld [vmem:[#allocation199_spill] sm:$0xff] }
 0x505   : > { %7069 = vrot.lane.b32.xlu0 %v6775_v27, %s10131_s15  ;;  %v6802_v50 = vrot.slane %v6800_v32, 1  ;;  %v6819_v29 = vshrl.u32 %v14929_v40, 16  ;;  %v4898_v35 = vpop.permute.xlu1 %4897  ;;  %v6823_v44 = vrot.slane %v6821_v9, 1  ;;  %v6812_v19 = vshrl.u32 %v14931_v28, 16  ;;  %v9315_v31 = vld [vmem:[%s10164_s14 + $0x2ac] sm:$0x1] }
 0x506   : > { %18205 = vst [vmem:[#allocation263_spill] sm:$0xff] %v14980_v26  ;;  %v6816_v13 = vrot.slane %v6814_v34, 1  ;;  %v14988_v17 = vcombine.low %v9310_v25, %v9311_v24  ;;  %v5024_v49 = vsel %vm2395_vm3, %v18207_v55, %v18206_v14  ;;  %v5326_v60 = vsel %vm5321_vm2, %v9116_v57, 0  ;;  %v18208_v34 = vld [vmem:[#allocation194_spill] sm:$0xff]  ;;  %v18209_v57 = vld [vmem:[#allocation285_spill] sm:$0xff]  ;;  %v18211_v24 = vld [vmem:[#allocation203_spill] sm:$0xff] }
 0x507   : > { %v4896_v4 = vpop.permute.xlu0 %4895  ;;  %v6810_v2 = vor.u32 %v6809_v30, %v6805_v52  ;;  %v14994_v32 = vcombine.low %v9308_v46, %v9309_v7  ;;  %v5126_v27 = vsel %vm2524_vm4, %v4998_v42, %v14783_v23  ;;  %v5124_v15 = vsel %vm2524_vm4, %v4996_v37, %v14789_v43  ;;  %v18210_v30 = vld [vmem:[#allocation323_spill] sm:$0xff] }
 0x508   : > { %9481 = vmatpush3.bf16.xpose.msra.mxu0 %v5326_v60  ;;  %7075 = vrot.lane.b32.xlu1 %v6796_v1, %s10131_s15  ;;  %v6835_v25 = vshll.u32 %v14978_v41, 16  ;;  %v6828_v9 = vshll.u32 %v14980_v26, 16  ;;  %v5030_v52 = vsel %vm2395_vm3, %v18209_v57, %v18208_v34  ;;  %v5028_v23 = vsel %vm2395_vm3, %v18211_v24, %v18210_v30  ;;  %v9314_v37 = vld [vmem:[%s10164_s14 + $0x2a8] sm:$0xf]  ;;  %v9313_v34 = vld [vmem:[%s10164_s14 + $0x2a4] sm:$0x1] }
 0x509   : > { %7073 = vrot.lane.b32.xlu0 %v6789_v51, %s10131_s15  ;;  %9590 = vmatprep.subr.msk.bf16.mxu0 %vm5321_vm2, %v9165_v63  ;;  %v6803_v43 = vor.u32 %v6802_v50, %v6798_v45  ;;  %v18212_v1 = vcombine.low %v14350_v6, %v14345_v61  ;;  %v4902_v46 = vpop.permute.xlu1 %4901  ;;  %v6824_v7 = vor.u32 %v6823_v44, %v6819_v29  ;;  %v6833_v55 = vshrl.u32 %v14978_v41, 16  ;;  %v9312_v51 = vld [vmem:[%s10164_s14 + $0x2a0] sm:$0xf]  ;;  %v9319_v30 = vld [vmem:[%s10164_s14 + $0x2bc] sm:$0x1] }
 0x50a   : > { %v6817_v14 = vor.u32 %v6816_v13, %v6812_v19  ;;  %v6849_v60 = vshll.u32 %v14988_v17, 16  ;;  %v5158_v63 = vsel %vm2524_vm4, %v5030_v52, %v4902_v46  ;;  %v9139_v50 = vcombine.low %v5124_v15, %v5126_v27  ;;  %v9318_v13 = vld [vmem:[%s10164_s14 + $0x2b8] sm:$0xf] }
 0x50b   : > { %v5688_v42 = vsel %vm5321_vm2, %v18212_v1, 0  ;;  %v4900_v45 = vpop.permute.xlu0 %4899  ;;  %v6826_v61 = vshrl.u32 %v14980_v26, 16  ;;  %v6842_v6 = vshll.u32 %v14994_v32, 16  ;;  %v6837_v44 = vrot.slane %v6835_v25, 1  ;;  %v18214_v1 = vld [vmem:[#allocation278_spill] sm:$0xff] }
 0x50c   : > { %v5156_v57 = vsel %vm2524_vm4, %v5028_v23, %v4900_v45  ;;  %7079 = vrot.lane.b32.xlu1 %v6810_v2, %s10131_s15  ;;  %v6830_v29 = vrot.slane %v6828_v9, 1  ;;  %v15026_v19 = vcombine.low %v9314_v37, %v9315_v31  ;;  %v5154_v24 = vsel %vm2524_vm4, %v5026_v47, %v4898_v35  ;;  %v18213_v23 = vld [vmem:[#allocation259_spill] sm:$0xff]  ;;  %v18216_v47 = vld [vmem:[#allocation308_spill] sm:$0xff]  ;;  %v15051_v31 = vld [vmem:[%s17049_s1 + $0x4] sm:$0xf] }
 0x50d   : > { %v5152_v52 = vsel %vm2524_vm4, %v5024_v49, %v4896_v4  ;;  %7077 = vrot.lane.b32.xlu0 %v6803_v43, %s10131_s15  ;;  %v9147_v27 = vcombine.low %v5156_v57, %v5158_v63  ;;  %v15033_v15 = vcombine.low %v9312_v51, %v9313_v34  ;;  %v4994_v2 = vsel %vm2395_vm3, %v18214_v1, %v18213_v23  ;;  %v15038_v25 = vpop.permute.xlu1 %6967  ;;  %v18217_v49 = vld [vmem:[#allocation275_spill] sm:$0xff]  ;;  %v9316_v34 = vld [vmem:[%s10164_s14 + $0x2b0] sm:$0xf]  ;;  %v9317_v63 = vld [vmem:[%s10164_s14 + $0x2b4] sm:$0x1] }
 0x50e   : > { %18215 = vst [vmem:[#allocation298_spill] sm:$0xff] %v15038_v25  ;;  %v6847_v9 = vshrl.u32 %v14988_v17, 16  ;;  %v6851_v37 = vrot.slane %v6849_v60, 1  ;;  %v6840_v35 = vshrl.u32 %v14994_v32, 16  ;;  %v4992_v4 = vsel %vm2395_vm3, %v18217_v49, %v18216_v47  ;;  %v10037_v1 = vld [vmem:[%s10164_s14 + $0x280] sm:$0xf] }
 0x50f   : > { %9582 = vmatprep.subr.msk.bf16.mxu1 %vm5321_vm2, %v9147_v27  ;;  %v15046_v43 = vpop.permute.xlu0 %6965  ;;  %9483 = vmatmul.mubr.msk.bf16.vlgmr.msra.gmra.mxu0 %vm5321_vm2, %v15051_v31  ;;  %v5395_v46 = vsel %vm5321_vm2, %v9139_v50, 0  ;;  %v6844_v60 = vrot.slane %v6842_v6, 1  ;;  %v15056_v51 = vcombine.low %v9318_v13, %v9319_v30  ;;  %v5122_v45 = vsel %vm2524_vm4, %v4994_v2, %v14746_v62  ;;  %v18219_v50 = vld [vmem:[#allocation197_spill] sm:$0xff]  ;;  %v18220_v30 = vld [vmem:[#allocation264_spill] sm:$0xff]  ;;  %v9322_v47 = vld [vmem:[%s10164_s14 + $0x2c8] sm:$0xf] }
 0x510   : > { %18218 = vst [vmem:[#allocation251_spill] sm:$0xff] %v15046_v43  ;;  %v5120_v57 = vsel %vm2524_vm4, %v4992_v4, %v14751_v18  ;;  %v9146_v27 = vcombine.low %v5152_v52, %v5154_v24  ;;  %9485 = vmatpush3.bf16.xpose.msra.mxu1 %v5395_v46  ;;  %9503 = vmatpush3.bf16.xpose.msra.mxu0 %v5688_v42  ;;  %v6863_v23 = vshll.u32 %v15026_v19, 16  ;;  %v6856_v18 = vshll.u32 %v15033_v15, 16  ;;  %v18221_v24 = vld [vmem:[#allocation320_spill] sm:$0xff]  ;;  %v18222_v52 = vld [vmem:[#allocation282_spill] sm:$0xff]  ;;  %v18228_v4 = vld [vmem:[#allocation321_spill] sm:$0xff] }
 0x511   : > { %v4387_v6 = vsel %vm1665_vm0, %v10037_v1, %v18219_v50  ;;  %7083 = vrot.lane.b32.xlu1 %v6824_v7, %s10131_s15  ;;  %7081 = vrot.lane.b32.xlu0 %v6817_v14, %s10131_s15  ;;  %v6838_v13 = vor.u32 %v6837_v44, %v6833_v55  ;;  %v6831_v62 = vor.u32 %v6830_v29, %v6826_v61  ;;  %v15084_v14 = vpop.permute.xlu1 %6971  ;;  %v18225_v55 = vld [vmem:[#allocation105_spill] sm:$0xff]  ;;  %v18226_v61 = vld [vmem:[#allocation63_spill] sm:$0xff]  ;;  %v6861_v1 = vshrl.u32 %v15026_v19, 16 }
 0x512   : > { %v15074_v42 = vsel %vm1906_vm1, %v14957_v3, %v18220_v30  ;;  %v5022_v2 = vsel %vm2395_vm3, %v18222_v52, %v18221_v24  ;;  %9583 = vmatprep.subr.msk.bf16.mxu1 %vm5321_vm2, %v9146_v27  ;;  %v18223_v7 = vcombine.low %v14432_v8, %v14427_v59  ;;  %18224 = vst [vmem:[#allocation291_spill] sm:$0xff] %v15084_v14  ;;  %v9323_v49 = vld [vmem:[%s10164_s14 + $0x2cc] sm:$0x1]  ;;  %v6854_v50 = vshrl.u32 %v15033_v15, 16  ;;  %v9320_v30 = vld [vmem:[%s10164_s14 + $0x2c0] sm:$0xf] }
 0x513   : > { %v18227_v44 = vcombine.low %v18225_v55, %v18226_v61  ;;  %v15090_v29 = vcombine.low %v9316_v34, %v9317_v63  ;;  %v18229_v46 = vld [vmem:[#allocation195_spill] sm:$0xff]  ;;  %v9138_v59 = vcombine.low %v5120_v57, %v5122_v45  ;;  %v15097_v8 = vpop.permute.xlu0 %6969  ;;  %v9321_v24 = vld [vmem:[%s10164_s14 + $0x2c4] sm:$0x1]  ;;  %v6852_v52 = vor.u32 %v6851_v37, %v6847_v9  ;;  %v9326_v63 = vld [vmem:[%s10164_s14 + $0x2d8] sm:$0xf] }
 0x514   : > { %9591 = vmatprep.subr.msk.bf16.mxu0 %vm5321_vm2, %v18223_v7  ;;  %v5020_v27 = vsel %vm2395_vm3, %v18229_v46, %v18228_v4  ;;  %18230 = vst [vmem:[#allocation245_spill] sm:$0xff] %v15097_v8  ;;  %v6845_v7 = vor.u32 %v6844_v60, %v6840_v35  ;;  %v6865_v55 = vrot.slane %v6863_v23, 1  ;;  %v6877_v34 = vshll.u32 %v15056_v51, 16  ;;  %v9327_v61 = vld [vmem:[%s10164_s14 + $0x2dc] sm:$0x1]  ;;  %v18231_v37 = vld [vmem:[#allocation175_spill] sm:$0xff] }
 0x515   : > { %v5685_v3 = vsel %vm5321_vm2, %v18227_v44, 0  ;;  %v5150_v44 = vsel %vm2524_vm4, %v5022_v2, %v14962_v0  ;;  %v5148_v45 = vsel %vm2524_vm4, %v5020_v27, %v14969_v16  ;;  %7087 = vrot.lane.b32.xlu1 %v6838_v13, %s10131_s15  ;;  %7085 = vrot.lane.b32.xlu0 %v6831_v62, %s10131_s15  ;;  %v6858_v57 = vrot.slane %v6856_v18, 1  ;;  %v18232_v60 = vld [vmem:[#allocation306_spill] sm:$0xff]  ;;  %v18233_v23 = vld [vmem:[#allocation276_spill] sm:$0xff]  ;;  %v15119_v0 = vpop.permute.xlu1 %6975  ;;  %v18235_v46 = vld [vmem:[#allocation307_spill] sm:$0xff] }
 0x516   : > { %v15112_v9 = vcombine.low %v9322_v47, %v9323_v49  ;;  %v4556_v35 = vsel %vm1906_vm1, %v4387_v6, %v18231_v37  ;;  %v4990_v4 = vsel %vm2395_vm3, %v18233_v23, %v18232_v60  ;;  %18234 = vst [vmem:[#allocation30_spill] sm:$0xff] %v15119_v0  ;;  %v6870_v2 = vshll.u32 %v15090_v29, 16  ;;  %v18236_v13 = vld [vmem:[#allocation273_spill] sm:$0xff]  ;;  %v9324_v27 = vld [vmem:[%s10164_s14 + $0x2d0] sm:$0xf] }
 0x517   : > { %v15122_v16 = vcombine.low %v9320_v30, %v9321_v24  ;;  %v4988_v62 = vsel %vm2395_vm3, %v18236_v13, %v18235_v46  ;;  %v15127_v18 = vpop.permute.xlu0 %6973  ;;  %v5392_v47 = vsel %vm5321_vm2, %v9138_v59, 0  ;;  %v6875_v6 = vshrl.u32 %v15056_v51, 16  ;;  %v9325_v37 = vld [vmem:[%s10164_s14 + $0x2d4] sm:$0x1]  ;;  %v9334_v25 = vld [vmem:[%s10164_s14 + $0x2f8] sm:$0xf] }
 0x518   : > { %18237 = vst [vmem:[#allocation94_spill] sm:$0xff] %v15127_v18  ;;  %v15131_v49 = vcombine.low %v9326_v63, %v9327_v61  ;;  %v5118_v30 = vsel %vm2524_vm4, %v4990_v4, %v14717_v20  ;;  %v5116_v24 = vsel %vm2524_vm4, %v4988_v62, %v14722_v22  ;;  %v9145_v60 = vcombine.low %v5148_v45, %v5150_v44  ;;  %v9330_v20 = vld [vmem:[%s10164_s14 + $0x2e8] sm:$0xf]  ;;  %v9331_v4 = vld [vmem:[%s10164_s14 + $0x2ec] sm:$0x1]  ;;  %v18238_v13 = vld [vmem:[#allocation304_spill] sm:$0xff] }
 0x519   : > { %9487 = vmatpush3.bf16.xpose.msra.mxu1 %v5392_v47  ;;  %9505 = vmatpush3.bf16.xpose.msra.mxu0 %v5685_v3  ;;  %v6879_v23 = vrot.slane %v6877_v34, 1  ;;  %v6866_v59 = vor.u32 %v6865_v55, %v6861_v1  ;;  %v6859_v63 = vor.u32 %v6858_v57, %v6854_v50  ;;  %v6868_v61 = vshrl.u32 %v15090_v29, 16  ;;  %v18239_v22 = vld [vmem:[#allocation274_spill] sm:$0xff]  ;;  %v18240_v3 = vld [vmem:[#allocation68_spill] sm:$0xff]  ;;  %v18241_v34 = vld [vmem:[#allocation109_spill] sm:$0xff]  ;;  %v15153_v1 = vpop.permute.xlu1 %6979 }
 0x51a   : > { %7091 = vrot.lane.b32.xlu1 %v6852_v52, %s10131_s15  ;;  %7089 = vrot.lane.b32.xlu0 %v6845_v7, %s10131_s15  ;;  %v6891_v46 = vshll.u32 %v15112_v9, 16  ;;  %v4986_v44 = vsel %vm2395_vm3, %v18239_v22, %v18238_v13  ;;  %v18242_v52 = vcombine.low %v18240_v3, %v18241_v34  ;;  %v6872_v50 = vrot.slane %v6870_v2, 1  ;;  %v9328_v45 = vld [vmem:[%s10164_s14 + $0x2e0] sm:$0xf]  ;;  %v9329_v57 = vld [vmem:[%s10164_s14 + $0x2e4] sm:$0x1] }
 0x51b   : > { %9584 = vmatprep.subr.msk.bf16.mxu1 %vm5321_vm2, %v9145_v60  ;;  %v6884_v7 = vshll.u32 %v15122_v16, 16  ;;  %v15156_v55 = vcombine.low %v9324_v27, %v9325_v37  ;;  %v18243_v62 = vld [vmem:[#allocation318_spill] sm:$0xff]  ;;  %v18244_v47 = vld [vmem:[#allocation280_spill] sm:$0xff]  ;;  %v18245_v13 = vld [vmem:[#allocation319_spill] sm:$0xff]  ;;  %v9137_v3 = vcombine.low %v5116_v24, %v5118_v30  ;;  %v15165_v34 = vpop.permute.xlu0 %6977  ;;  %v6880_v43 = vor.u32 %v6879_v23, %v6875_v6 }
 0x51c   : > { %9592 = vmatprep.subr.msk.bf16.mxu0 %vm5321_vm2, %v18242_v52  ;;  %v5018_v60 = vsel %vm2395_vm3, %v18244_v47, %v18243_v62  ;;  %v5016_v22 = vsel %vm2395_vm3, %v4556_v35, %v18245_v13  ;;  %18246 = vst [vmem:[#allocation288_spill] sm:$0xff] %v15165_v34  ;;  %v6905_v52 = vshll.u32 %v15131_v49, 16  ;;  %v6889_v2 = vshrl.u32 %v15112_v9, 16  ;;  %v9335_v8 = vld [vmem:[%s10164_s14 + $0x2fc] sm:$0x1]  ;;  %v18249_v13 = vld [vmem:[#allocation108_spill] sm:$0xff] }
 0x51d   : > { %v6882_v27 = vshrl.u32 %v15122_v16, 16  ;;  %v15170_v37 = vcombine.low %v9330_v20, %v9331_v4  ;;  %v5146_v62 = vsel %vm2524_vm4, %v5018_v60, %v14926_v33  ;;  %v5144_v35 = vsel %vm2524_vm4, %v5016_v22, %v14933_v54  ;;  %v15182_v24 = vpop.permute.xlu1 %6983  ;;  %v18248_v47 = vld [vmem:[#allocation305_spill] sm:$0xff]  ;;  %v18250_v22 = vld [vmem:[#allocation160_spill] sm:$0xff]  ;;  %v18277_v34 = vld [vmem:[#allocation186_spill] sm:$0xff] }
 0x51e   : > { %7095 = vrot.lane.b32.xlu1 %v6866_v59, %s10131_s15  ;;  %7093 = vrot.lane.b32.xlu0 %v6859_v63, %s10131_s15  ;;  %v6893_v6 = vrot.slane %v6891_v46, 1  ;;  %v15180_v30 = vcombine.low %v9328_v45, %v9329_v57  ;;  %18247 = vst [vmem:[#allocation236_spill] sm:$0xff] %v15182_v24  ;;  %v6873_v23 = vor.u32 %v6872_v50, %v6868_v61  ;;  %v6886_v20 = vrot.slane %v6884_v7, 1  ;;  %v9332_v45 = vld [vmem:[%s10164_s14 + $0x2f0] sm:$0xf] }
 0x51f   : > { %v6903_v4 = vshrl.u32 %v15131_v49, 16  ;;  %v6898_v33 = vshll.u32 %v15156_v55, 16  ;;  %v4984_v54 = vsel %vm2395_vm3, %v15074_v42, %v18248_v47  ;;  %v15189_v60 = vpop.permute.xlu0 %6981  ;;  %v5389_v59 = vsel %vm5321_vm2, %v9137_v3, 0  ;;  %v9333_v57 = vld [vmem:[%s10164_s14 + $0x2f4] sm:$0x1]  ;;  %v18251_v3 = vld [vmem:[#allocation49_spill] sm:$0xff] }
 0x520   : > { %v6907_v63 = vrot.slane %v6905_v52, 1  ;;  %v15192_v46 = vcombine.low %v9334_v25, %v9335_v8  ;;  %v5114_v61 = vsel %vm2524_vm4, %v4986_v44, %v14679_v36  ;;  %v5112_v50 = vsel %vm2524_vm4, %v4984_v54, %v14685_v56  ;;  %v18252_v8 = vld [vmem:[#allocation161_spill] sm:$0xff]  ;;  %v18254_v36 = vld [vmem:[#allocation106_spill] sm:$0xff]  ;;  %v18255_v56 = vld [vmem:[#allocation64_spill] sm:$0xff] }
 0x521   : > { %v9144_v7 = vcombine.low %v5144_v35, %v5146_v62  ;;  %9489 = vmatpush3.bf16.xpose.msra.mxu1 %v5389_v59  ;;  %9507 = vmatpush3.bf16.xpose.msra.mxu0 %v18249_v13  ;;  %v6919_v42 = vshll.u32 %v15170_v37, 16  ;;  %v2572_v25 = vsel %vm2524_vm4, %v18251_v3, %v18250_v22  ;;  %v18253_v52 = vld [vmem:[#allocation97_spill] sm:$0xff]  ;;  %v18256_v44 = vcombine.low %v18254_v36, %v18255_v56  ;;  %v15216_v54 = vpop.permute.xlu1 %6987  ;;  %v9338_v3 = vld [vmem:[%s10164_s14 + $0x308] sm:$0xf]  ;;  %v18260_v56 = vld [vmem:[#allocation190_spill] sm:$0xff] }
 0x522   : > { %v2570_v47 = vsel %vm2524_vm4, %v18253_v52, %v18252_v8  ;;  %7099 = vrot.lane.b32.xlu1 %v6880_v43, %s10131_s15  ;;  %v6894_v62 = vor.u32 %v6893_v6, %v6889_v2  ;;  %v6912_v35 = vshll.u32 %v15180_v30, 16  ;;  %7097 = vrot.lane.b32.xlu0 %v6873_v23, %s10131_s15  ;;  %v6887_v59 = vor.u32 %v6886_v20, %v6882_v27  ;;  %v9339_v8 = vld [vmem:[%s10164_s14 + $0x30c] sm:$0x1]  ;;  %v18257_v52 = vld [vmem:[#allocation316_spill] sm:$0xff]  ;;  %v18259_v36 = vld [vmem:[#allocation317_spill] sm:$0xff] }
 0x523   : > { %9593 = vmatprep.subr.msk.bf16.mxu0 %vm5321_vm2, %v18256_v44  ;;  %9585 = vmatprep.subr.msk.bf16.mxu1 %vm5321_vm2, %v9144_v7  ;;  %v6896_v13 = vshrl.u32 %v15156_v55, 16  ;;  %v6900_v43 = vrot.slane %v6898_v33, 1  ;;  %v15219_v22 = vcombine.low %v9332_v45, %v9333_v57  ;;  %v18258_v2 = vld [vmem:[#allocation187_spill] sm:$0xff]  ;;  %v5012_v23 = vsel %vm2395_vm3, %v18260_v56, %v18259_v36  ;;  %v15229_v7 = vpop.permute.xlu0 %6985  ;;  %v9336_v27 = vld [vmem:[%s10164_s14 + $0x300] sm:$0xf]  ;;  %v18299_v24 = vld [vmem:[#allocation28_spill] sm:$0xff] }
 0x524   : > { %v5014_v6 = vsel %vm2395_vm3, %v18258_v2, %v18257_v52  ;;  %v9136_v44 = vcombine.low %v5112_v50, %v5114_v61  ;;  %18261 = vst [vmem:[#allocation289_spill] sm:$0xff] %v15229_v7  ;;  %v6908_v26 = vor.u32 %v6907_v63, %v6903_v4  ;;  %v9337_v20 = vld [vmem:[%s10164_s14 + $0x304] sm:$0x1]  ;;  %v6917_v33 = vshrl.u32 %v15170_v37, 16  ;;  %v18265_v7 = vld [vmem:[#allocation269_spill] sm:$0xff] }
 0x525   : > { %v6921_v45 = vrot.slane %v6919_v42, 1  ;;  %v6910_v57 = vshrl.u32 %v15180_v30, 16  ;;  %v6933_v18 = vshll.u32 %v15192_v46, 16  ;;  %v5142_v52 = vsel %vm2524_vm4, %v5014_v6, %v14903_v11  ;;  %v15244_v42 = vpop.permute.xlu1 %6991  ;;  %v9342_v11 = vld [vmem:[%s10164_s14 + $0x318] sm:$0xf] }
 0x526   : > { %v5140_v61 = vsel %vm2524_vm4, %v5012_v23, %v14909_v10  ;;  %7103 = vrot.lane.b32.xlu1 %v6894_v62, %s10131_s15  ;;  %v6914_v4 = vrot.slane %v6912_v35, 1  ;;  %v15241_v63 = vcombine.low %v9338_v3, %v9339_v8  ;;  %v9161_v50 = vcombine.low %v2570_v47, %v2572_v25  ;;  %7101 = vrot.lane.b32.xlu0 %v6887_v59, %s10131_s15  ;;  %v9343_v6 = vld [vmem:[%s10164_s14 + $0x31c] sm:$0x1]  ;;  %v18262_v10 = vld [vmem:[#allocation302_spill] sm:$0xff]  ;;  %v18263_v23 = vld [vmem:[#allocation272_spill] sm:$0xff] }
 0x527   : > { %v6901_v2 = vor.u32 %v6900_v43, %v6896_v13  ;;  %v6926_v36 = vshll.u32 %v15219_v22, 16  ;;  %v15247_v56 = vcombine.low %v9336_v27, %v9337_v20  ;;  %v4982_v62 = vsel %vm2395_vm3, %v18263_v23, %v18262_v10  ;;  %v18264_v35 = vld [vmem:[#allocation303_spill] sm:$0xff]  ;;  %v15257_v25 = vpop.permute.xlu0 %6989  ;;  %v15262_v13 = vld [vmem:[%s10164_s14 + $0x310] sm:$0xf]  ;;  %v9341_v43 = vld [vmem:[%s10164_s14 + $0x314] sm:$0x1] }
 0x528   : > { %v4980_v3 = vsel %vm2395_vm3, %v18265_v7, %v18264_v35  ;;  %v5386_v47 = vsel %vm5321_vm2, %v9136_v44, 0  ;;  %v6931_v59 = vshrl.u32 %v15192_v46, 16  ;;  %v5110_v8 = vsel %vm2524_vm4, %v4982_v62, %v14655_v12  ;;  %v18266_v10 = vld [vmem:[#allocation66_spill] sm:$0xff]  ;;  %v18272_v62 = vld [vmem:[#allocation36_spill] sm:$0xff] }
 0x529   : > { %v5108_v27 = vsel %vm2524_vm4, %v4980_v3, %v14660_v48  ;;  %v9143_v20 = vcombine.low %v5140_v61, %v5142_v52  ;;  %9491 = vmatpush3.bf16.xpose.msra.mxu1 %v5386_v47  ;;  %9509 = vmatpush3.bf16.xpose.msra.mxu0 %v18266_v10  ;;  %v6935_v7 = vrot.slane %v6933_v18, 1  ;;  %v6922_v44 = vor.u32 %v6921_v45, %v6917_v33  ;;  %v15277_v48 = vpop.permute.xlu1 %6995  ;;  %v18267_v33 = vld [vmem:[#allocation158_spill] sm:$0xff]  ;;  %v18269_v61 = vld [vmem:[#allocation159_spill] sm:$0xff] }
 0x52a   : > { %7107 = vrot.lane.b32.xlu1 %v6908_v26, %s10131_s15  ;;  %9594 = vmatprep.subr.msk.bf16.mxu0 %vm5321_vm2, %v9161_v50  ;;  %v6915_v23 = vor.u32 %v6914_v4, %v6910_v57  ;;  %v6947_v35 = vshll.u32 %v15241_v63, 16  ;;  %v15273_v14 = vcombine.low %v9342_v11, %v9343_v6  ;;  %v6924_v12 = vshrl.u32 %v15219_v22, 16  ;;  %v18268_v45 = vld [vmem:[#allocation34_spill] sm:$0xff]  ;;  %v18270_v4 = vld [vmem:[#allocation96_spill] sm:$0xff]  ;;  %v18276_v10 = vld [vmem:[#allocation315_spill] sm:$0xff] }
 0x52b   : > { %7105 = vrot.lane.b32.xlu0 %v6901_v2, %s10131_s15  ;;  %9586 = vmatprep.subr.msk.bf16.mxu1 %vm5321_vm2, %v9143_v20  ;;  %v6928_v52 = vrot.slane %v6926_v36, 1  ;;  %v6940_v18 = vshll.u32 %v15247_v56, 16  ;;  %v15282_v26 = vcombine.low %v15262_v13, %v9341_v43  ;;  %v2568_v57 = vsel %vm2524_vm4, %v18268_v45, %v18267_v33  ;;  %v15290_v11 = vpop.permute.xlu0 %6993  ;;  %v18271_v6 = vld [vmem:[#allocation32_spill] sm:$0xff]  ;;  %v18274_v47 = vld [vmem:[#allocation174_spill] sm:$0xff]  ;;  %v18275_v20 = vld [vmem:[#allocation183_spill] sm:$0xff] }
 0x52c   : > { %v2566_v50 = vsel %vm2524_vm4, %v18270_v4, %v18269_v61  ;;  %v9135_v2 = vcombine.low %v5108_v27, %v5110_v8  ;;  %v18273_v3 = vcombine.low %v18271_v6, %v18272_v62  ;;  %v5010_v43 = vsel %vm2395_vm3, %v18275_v20, %v18274_v47  ;;  %v18279_v47 = vld [vmem:[#allocation270_spill] sm:$0xff]  ;;  %v18280_v20 = vld [vmem:[#allocation301_spill] sm:$0xff] }
 0x52d   : > { %v5008_v33 = vsel %vm2395_vm3, %v18277_v34, %v18276_v10  ;;  %v6936_v45 = vor.u32 %v6935_v7, %v6931_v59  ;;  %v6945_v0 = vshrl.u32 %v15241_v63, 16  ;;  %v5138_v8 = vsel %vm2524_vm4, %v5010_v43, %v14866_v38  ;;  %v15310_v6 = vpop.permute.xlu1 %6999  ;;  %v18278_v38 = vld [vmem:[#allocation257_spill] sm:$0xff] }
 0x52e   : > { %v5676_v36 = vsel %vm5321_vm2, %v18273_v3, 0  ;;  %v5136_v27 = vsel %vm2524_vm4, %v5008_v33, %v14871_v21  ;;  %7111 = vrot.lane.b32.xlu1 %v6922_v44, %s10131_s15  ;;  %v6949_v61 = vrot.slane %v6947_v35, 1  ;;  %v6961_v4 = vshll.u32 %v15273_v14, 16  ;;  %v18281_v44 = vld [vmem:[#allocation267_spill] sm:$0xff] }
 0x52f   : > { %7109 = vrot.lane.b32.xlu0 %v6915_v23, %s10131_s15  ;;  %v6929_v62 = vor.u32 %v6928_v52, %v6924_v12  ;;  %v6938_v34 = vshrl.u32 %v15247_v56, 16  ;;  %v6942_v59 = vrot.slane %v6940_v18, 1  ;;  %v6954_v7 = vshll.u32 %v15282_v26, 16  ;;  %v15320_v43 = vpop.permute.xlu0 %6997 }
 0x530   : > { %v9160_v3 = vcombine.low %v2566_v50, %v2568_v57  ;;  %v4978_v21 = vsel %vm2395_vm3, %v18279_v47, %v18278_v38  ;;  %v4976_v35 = vsel %vm2395_vm3, %v18281_v44, %v18280_v20  ;;  %v5383_v23 = vsel %vm5321_vm2, %v9135_v2, 0  ;;  %v18282_v57 = vld [vmem:[#allocation23_spill] sm:$0xff]  ;;  %v18283_v50 = vld [vmem:[#allocation33_spill] sm:$0xff]  ;;  %v18284_v47 = vld [vmem:[#allocation40_spill] sm:$0xff] }
 0x531   : > { %v5106_v12 = vsel %vm2524_vm4, %v4978_v21, %v14622_v39  ;;  %v5104_v52 = vsel %vm2524_vm4, %v4976_v35, %v14627_v53  ;;  %v9142_v18 = vcombine.low %v5136_v27, %v5138_v8  ;;  %9493 = vmatpush3.bf16.xpose.msra.mxu1 %v5383_v23  ;;  %9511 = vmatpush3.bf16.xpose.msra.mxu0 %v5676_v36  ;;  %v6959_v2 = vshrl.u32 %v15273_v14, 16  ;;  %v18285_v39 = vld [vmem:[#allocation54_spill] sm:$0xff]  ;;  %v15337_v53 = vpop.permute.xlu1 %7003  ;;  %v18287_v20 = vld [vmem:[#allocation31_spill] sm:$0xff]  ;;  %v18290_v44 = vld [vmem:[#allocation104_spill] sm:$0xff] }
 0x532   : > { %v1908_v10 = vsel %vm1906_vm1, %v18283_v50, %v18282_v57  ;;  %7115 = vrot.lane.b32.xlu1 %v6936_v45, %s10131_s15  ;;  %9595 = vmatprep.subr.msk.bf16.mxu0 %vm5321_vm2, %v9160_v3  ;;  %v6950_v33 = vor.u32 %v6949_v61, %v6945_v0  ;;  %v6963_v38 = vrot.slane %v6961_v4, 1  ;;  %v9152_v21 = vcombine.low %v18285_v39, %v18284_v47  ;;  %v18286_v45 = vld [vmem:[#allocation20_spill] sm:$0xff]  ;;  %v18288_v61 = vld [vmem:[#allocation103_spill] sm:$0xff]  ;;  %v18289_v3 = vld [vmem:[#allocation50_spill] sm:$0xff] }
 0x533   : > { %7113 = vrot.lane.b32.xlu0 %v6929_v62, %s10131_s15  ;;  %9587 = vmatprep.subr.msk.bf16.mxu1 %vm5321_vm2, %v9142_v18  ;;  %v6943_v36 = vor.u32 %v6942_v59, %v6938_v34  ;;  %v6952_v8 = vshrl.u32 %v15282_v26, 16  ;;  %v6956_v27 = vrot.slane %v6954_v7, 1  ;;  %v2403_v0 = vsel %vm2395_vm3, %v18287_v20, %v18286_v45  ;;  %v18291_v35 = vld [vmem:[#allocation39_spill] sm:$0xff]  ;;  %v15349_v18 = vpop.permute.xlu0 %7001  ;;  %v18292_v57 = vld [vmem:[#allocation156_spill] sm:$0xff]  ;;  %v18293_v59 = vld [vmem:[#allocation157_spill] sm:$0xff] }
 0x534   : > { %v2435_v4 = vsel %vm2395_vm3, %v18289_v3, %v18288_v61  ;;  %v2433_v62 = vsel %vm2395_vm3, %v18291_v35, %v18290_v44  ;;  %v9134_v23 = vcombine.low %v5104_v52, %v5106_v12  ;;  %v18294_v50 = vld [vmem:[#allocation313_spill] sm:$0xff]  ;;  %v18295_v47 = vld [vmem:[#allocation179_spill] sm:$0xff]  ;;  %v18296_v45 = vld [vmem:[#allocation314_spill] sm:$0xff]  ;;  %v6964_v35 = vor.u32 %v6963_v38, %v6959_v2 }
 0x535   : > { %v2564_v34 = vsel %vm2524_vm4, %v2435_v4, %v18292_v57  ;;  %v2562_v7 = vsel %vm2524_vm4, %v2433_v62, %v18293_v59  ;;  %v5006_v39 = vsel %vm2395_vm3, %v18295_v47, %v18294_v50  ;;  %v18297_v20 = vld [vmem:[#allocation182_spill] sm:$0xff]  ;;  %v18298_v3 = vld [vmem:[#allocation91_spill] sm:$0xff]  ;;  %v18300_v44 = vld [vmem:[#allocation37_spill] sm:$0xff]  ;;  %v15374_v47 = vpop.permute.xlu1 %7007 }
 0x536   : > { %v5004_v61 = vsel %vm2395_vm3, %v18297_v20, %v18296_v45  ;;  %v2401_v12 = vsel %vm2395_vm3, %v18299_v24, %v18298_v3  ;;  %v5134_v52 = vsel %vm2524_vm4, %v5006_v39, %v14839_v5  ;;  %7119 = vrot.lane.b32.xlu1 %v6950_v33, %s10131_s15  ;;  %v18301_v62 = vld [vmem:[#allocation142_spill] sm:$0xff]  ;;  %v18302_v59 = vld [vmem:[#allocation143_spill] sm:$0xff]  ;;  %18303 = vst [vmem:[#allocation295_spill] sm:$0xff] %v15374_v47  ;;  %v5673_v24 = vsel %vm5321_vm2, %v9152_v21, 0  ;;  %v18305_v20 = vld [vmem:[#allocation268_spill] sm:$0xff] }
 0x537   : > { %v5132_v4 = vsel %vm2524_vm4, %v5004_v61, %v18300_v44  ;;  %v2532_v57 = vsel %vm2524_vm4, %v2403_v0, %v18301_v62  ;;  %v2530_v50 = vsel %vm2524_vm4, %v2401_v12, %v18302_v59  ;;  %7117 = vrot.lane.b32.xlu0 %v6943_v36, %s10131_s15  ;;  %v6957_v45 = vor.u32 %v6956_v27, %v6952_v8  ;;  %v18304_v39 = vld [vmem:[#allocation299_spill] sm:$0xff]  ;;  %v18306_v33 = vld [vmem:[#allocation300_spill] sm:$0xff]  ;;  %v18307_v2 = vld [vmem:[#allocation265_spill] sm:$0xff]  ;;  %v15383_v0 = vpop.permute.xlu0 %7005 }
 0x538   : > { %v9159_v5 = vcombine.low %v2562_v7, %v2564_v34  ;;  %v4974_v61 = vsel %vm2395_vm3, %v18305_v20, %v18304_v39  ;;  %v4972_v38 = vsel %vm2395_vm3, %v18307_v2, %v18306_v33  ;;  %18308 = vst [vmem:[#allocation262_spill] sm:$0xff] %v15383_v0  ;;  %v5380_v3 = vsel %vm5321_vm2, %v9134_v23, 0  ;;  %v18309_v36 = vld [vmem:[#allocation112_spill] sm:$0xff]  ;;  %v18310_v44 = vld [vmem:[#allocation69_spill] sm:$0xff]  ;;  %v18311_v27 = vld [vmem:[#allocation27_spill] sm:$0xff] }
 0x539   : > { %v5102_v12 = vsel %vm2524_vm4, %v4974_v61, %v18309_v36  ;;  %v5100_v21 = vsel %vm2524_vm4, %v4972_v38, %v18310_v44  ;;  %v9141_v8 = vcombine.low %v5132_v4, %v5134_v52  ;;  %9495 = vmatpush3.bf16.xpose.msra.mxu1 %v5380_v3  ;;  %9513 = vmatpush3.bf16.xpose.msra.mxu0 %v5673_v24  ;;  %v18312_v34 = vld [vmem:[#allocation55_spill] sm:$0xff]  ;;  %v18313_v62 = vld [vmem:[#allocation18_spill] sm:$0xff]  ;;  %v18314_v59 = vld [vmem:[#allocation29_spill] sm:$0xff] }
 0x53a   : > { %v1948_v7 = vsel %vm1906_vm1, %v18312_v34, %v18311_v27  ;;  %v2399_v39 = vsel %vm2395_vm3, %v18314_v59, %v18313_v62  ;;  %v18315_v20 = vld [vmem:[#allocation89_spill] sm:$0xff]  ;;  %7123 = vrot.lane.b32.xlu1 %v6964_v35, %s10131_s15  ;;  %9596 = vmatprep.subr.msk.bf16.mxu0 %vm5321_vm2, %v9159_v5  ;;  %v18316_v61 = vld [vmem:[#allocation324_spill] sm:$0xff]  ;;  %v9151_v2 = vcombine.low %v2530_v50, %v2532_v57  ;;  %v18319_v3 = vld [vmem:[#allocation178_spill] sm:$0xff] }
 0x53b   : > { %v2397_v23 = vsel %vm2395_vm3, %v1908_v10, %v18315_v20  ;;  %v7126_v33 = vrot.slane %v18316_v61, 1  ;;  %v18317_v52 = vld [vmem:[#allocation101_spill] sm:$0xff]  ;;  %v18318_v4 = vld [vmem:[#allocation48_spill] sm:$0xff]  ;;  %7121 = vrot.lane.b32.xlu0 %v6957_v45, %s10131_s15  ;;  %9588 = vmatprep.subr.msk.bf16.mxu1 %vm5321_vm2, %v9141_v8  ;;  %v15409_v10 = vpop.permute.xlu1 %7011  ;;  %v18322_v44 = vld [vmem:[#allocation102_spill] sm:$0xff]  ;;  %v9133_v59 = vcombine.low %v5100_v21, %v5102_v12  ;;  %v15418_v20 = vpop.permute.xlu0 %7009 }
 0x53c   : > { %v2431_v24 = vsel %vm2395_vm3, %v18318_v4, %v18317_v52  ;;  %v10038_v38 = vld [vmem:[%s10164_s14 + $0x230] sm:$0xf]  ;;  %18320 = vst [vmem:[#allocation296_spill] sm:$0xff] %v15409_v10  ;;  %v18321_v35 = vld [vmem:[#allocation325_spill] sm:$0xff]  ;;  %v2429_v27 = vsel %vm2395_vm3, %v1948_v7, %v18322_v44  ;;  %v18324_v57 = vld [vmem:[#allocation271_spill] sm:$0xff] }
 0x53d   : > { %v4357_v36 = vsel %vm1665_vm0, %v10038_v38, %v18319_v3  ;;  %v7125_v5 = vrot.slane %v18321_v35, 1  ;;  %v18323_v34 = vld [vmem:[#allocation140_spill] sm:$0xff]  ;;  %18325 = vst [vmem:[#allocation46_spill] sm:$0xff] %v15418_v20  ;;  %v18326_v61 = vld [vmem:[#allocation154_spill] sm:$0xff]  ;;  %v18327_v8 = vld [vmem:[#allocation155_spill] sm:$0xff] }
 0x53e   : > { %v2528_v62 = vsel %vm2524_vm4, %v2399_v39, %v18323_v34  ;;  %v4536_v50 = vsel %vm1906_vm1, %v4357_v36, %v18324_v57  ;;  %v2560_v45 = vsel %vm2524_vm4, %v2431_v24, %v18326_v61  ;;  %v2558_v52 = vsel %vm2524_vm4, %v2429_v27, %v18327_v8  ;;  %v18328_v4 = vld [vmem:[#allocation311_spill] sm:$0xff]  ;;  %v18330_v7 = vld [vmem:[#allocation312_spill] sm:$0xff]  ;;  %v18331_v44 = vld [vmem:[#allocation258_spill] sm:$0xff]  ;;  %7207 = vrot.lane.b32.xlu1 %v7126_v33, %s10132_s16 }
 0x53f   : > { %v18329_v38 = vld [vmem:[#allocation279_spill] sm:$0xff]  ;;  %v5000_v35 = vsel %vm2395_vm3, %v4536_v50, %v18330_v7  ;;  %v10039_v39 = vld [vmem:[%s10164_s14 + $0x190] sm:$0xf]  ;;  %v18332_v12 = vld [vmem:[#allocation233_spill] sm:$0xff]  ;;  %7205 = vrot.lane.b32.xlu0 %v7125_v5, %s10132_s16  ;;  %v5670_v7 = vsel %vm5321_vm2, %v9151_v2, 0 }
 0x540   : > { %v5002_v3 = vsel %vm2395_vm3, %v18329_v38, %v18328_v4  ;;  %v4297_v36 = vsel %vm1665_vm0, %v10039_v39, %v18331_v44  ;;  %v18333_v34 = vld [vmem:[#allocation256_spill] sm:$0xff]  ;;  %v18335_v61 = vld [vmem:[#allocation141_spill] sm:$0xff]  ;;  %v18336_v4 = vld [vmem:[#allocation239_spill] sm:$0xff]  ;;  %v15443_v38 = vpop.permute.xlu1 %7015  ;;  %v9158_v44 = vcombine.low %v2558_v52, %v2560_v45 }
 0x541   : > { %v5130_v21 = vsel %vm2524_vm4, %v5002_v3, %v18332_v12  ;;  %v5128_v24 = vsel %vm2524_vm4, %v5000_v35, %v18333_v34  ;;  %v18334_v27 = vld [vmem:[#allocation328_spill] sm:$0xff]  ;;  %v2526_v8 = vsel %vm2524_vm4, %v2397_v23, %v18335_v61  ;;  %v4496_v50 = vsel %vm1906_vm1, %v4297_v36, %v18336_v4  ;;  %18337 = vst [vmem:[#allocation22_spill] sm:$0xff] %v15443_v38  ;;  %v18338_v3 = vld [vmem:[#allocation329_spill] sm:$0xff]  ;;  %v18339_v35 = vld [vmem:[#allocation255_spill] sm:$0xff]  ;;  %v15452_v23 = vpop.permute.xlu0 %7013 }
 0x542   : > { %v7128_v57 = vrot.slane %v18334_v27, 1  ;;  %v7127_v39 = vrot.slane %v18338_v3, 1  ;;  %v18340_v12 = vld [vmem:[#allocation266_spill] sm:$0xff]  ;;  %18342 = vst [vmem:[#allocation254_spill] sm:$0xff] %v15452_v23  ;;  %v5377_v36 = vsel %vm5321_vm2, %v9133_v59, 0  ;;  %v18344_v4 = vld [vmem:[#allocation147_spill] sm:$0xff]  ;;  %v9140_v0 = vcombine.low %v5128_v24, %v5130_v21  ;;  %9515 = vmatpush3.bf16.xpose.msra.mxu0 %v5670_v7 }
 0x543   : > { %v4970_v33 = vsel %vm2395_vm3, %v18340_v12, %v18339_v35  ;;  %v18341_v34 = vld [vmem:[#allocation238_spill] sm:$0xff]  ;;  %9497 = vmatpush3.bf16.xpose.msra.mxu1 %v5377_v36  ;;  %9597 = vmatprep.subr.msk.bf16.mxu0 %vm5321_vm2, %v9158_v44  ;;  %v18345_v45 = vld [vmem:[#allocation47_spill] sm:$0xff]  ;;  %v18347_v35 = vld [vmem:[#allocation12_spill] sm:$0xff] }
 0x544   : > { %v4968_v27 = vsel %vm2395_vm3, %v4496_v50, %v18341_v34  ;;  %v18343_v61 = vld [vmem:[#allocation146_spill] sm:$0xff]  ;;  %7211 = vrot.lane.b32.xlu1 %v7128_v57, %s10132_s16  ;;  %v7142_v52 = vrot.slane %v18345_v45, 1  ;;  %7209 = vrot.lane.b32.xlu0 %v7127_v39, %s10132_s16  ;;  %v15464_v59 = vpop.permute.xlu1 %7019  ;;  %v18346_v50 = vld [vmem:[#allocation333_spill] sm:$0xff]  ;;  %v18349_v24 = vld [vmem:[#allocation139_spill] sm:$0xff] }
 0x545   : > { %v5098_v5 = vsel %vm2524_vm4, %v4970_v33, %v18343_v61  ;;  %v5096_v2 = vsel %vm2524_vm4, %v4968_v27, %v18344_v4  ;;  %9589 = vmatprep.subr.msk.bf16.mxu1 %vm5321_vm2, %v9140_v0  ;;  %v7129_v3 = vrot.slane %v18346_v50, 1  ;;  %v18348_v12 = vld [vmem:[#allocation93_spill] sm:$0xff]  ;;  %v9150_v33 = vcombine.low %v2526_v8, %v2528_v62  ;;  %v15473_v34 = vpop.permute.xlu0 %7017  ;;  %v18352_v27 = vld [vmem:[#allocation228_spill] sm:$0xff]  ;;  %v18356_v50 = vld [vmem:[#allocation62_spill] sm:$0xff] }
 0x546   : > { %v2523_v21 = vsel %vm2395_vm3, %v18348_v12, %v18347_v35  ;;  %v18350_v7 = vld [vmem:[#allocation17_spill] sm:$0xff]  ;;  %v9132_v44 = vcombine.low %v5096_v2, %v5098_v5  ;;  %18351 = vst [vmem:[#allocation215_spill] sm:$0xff] %v15473_v34  ;;  %v18358_v8 = vld [vmem:[#allocation100_spill] sm:$0xff]  ;;  %v18359_v2 = vld [vmem:[#allocation126_spill] sm:$0xff] }
 0x547   : > { %v2521_v57 = vsel %vm2395_vm3, %v18350_v7, %v18349_v24  ;;  %v2652_v39 = vsel %vm2524_vm4, %v2523_v21, %v18352_v27  ;;  %v18353_v0 = vld [vmem:[#allocation229_spill] sm:$0xff]  ;;  %v7143_v5 = vrot.slane %v18358_v8, 1  ;;  %v18361_v27 = vld [vmem:[#allocation196_spill] sm:$0xff]  ;;  %v18392_v47 = vld [vmem:[#allocation14_spill] sm:$0xff] }
 0x548   : > { %v2650_v36 = vsel %vm2524_vm4, %v2521_v57, %v18353_v0  ;;  %7239 = vrot.lane.b32.xlu1 %v7142_v52, %s10132_s16  ;;  %v18354_v61 = vld [vmem:[#allocation21_spill] sm:$0xff]  ;;  %7213 = vrot.lane.b32.xlu0 %v7129_v3, %s10132_s16  ;;  %v15485_v62 = vpop.permute.xlu1 %7023  ;;  %v5374_v52 = vsel %vm5321_vm2, %v9132_v44, 0  ;;  %v5667_v57 = vsel %vm5321_vm2, %v9150_v33, 0  ;;  %v18364_v44 = vld [vmem:[#allocation151_spill] sm:$0xff]  ;;  %v18366_v8 = vld [vmem:[#allocation92_spill] sm:$0xff] }
 0x549   : > { %v7162_v4 = vrot.slane %v18354_v61, 1  ;;  %v18355_v45 = vld [vmem:[#allocation125_spill] sm:$0xff]  ;;  %18357 = vst [vmem:[#allocation293_spill] sm:$0xff] %v15485_v62  ;;  %v9181_v24 = vcombine.low %v2650_v36, %v2652_v39  ;;  %v15491_v7 = vpop.permute.xlu0 %7021  ;;  %v18362_v61 = vld [vmem:[#allocation198_spill] sm:$0xff]  ;;  %v7163_v33 = vrot.slane %v18364_v44, 1  ;;  %v7183_v44 = vrot.slane %v14931_v28, 1 }
 0x54a   : > { %v2491_v35 = vsel %vm2395_vm3, %v18356_v50, %v18355_v45  ;;  %v18360_v12 = vld [vmem:[#allocation85_spill] sm:$0xff]  ;;  %9517 = vmatpush3.bf16.xpose.msra.mxu0 %v5667_v57  ;;  %v18365_v50 = vld [vmem:[#allocation11_spill] sm:$0xff]  ;;  %v18409_v23 = vld [vmem:[#allocation184_spill] sm:$0xff] }
 0x54b   : > { %v2489_v21 = vsel %vm2395_vm3, %v18360_v12, %v18359_v2  ;;  %v2620_v0 = vsel %vm2524_vm4, %v2491_v35, %v18361_v27  ;;  %9499 = vmatpush3.bf16.xpose.msra.mxu1 %v5374_v52  ;;  %v18363_v45 = vld [vmem:[#allocation297_spill] sm:$0xff]  ;;  %v2519_v35 = vsel %vm2395_vm3, %v18366_v8, %v18365_v50  ;;  %v18367_v2 = vld [vmem:[#allocation138_spill] sm:$0xff]  ;;  %v18368_v12 = vld [vmem:[#allocation15_spill] sm:$0xff] }
 0x54c   : > { %v2618_v3 = vsel %vm2524_vm4, %v2489_v21, %v18362_v61  ;;  %7279 = vrot.lane.b32.xlu1 %v7162_v4, %s10132_s16  ;;  %9598 = vmatprep.subr.msk.bf16.mxu1 %vm5321_vm2, %v9181_v24  ;;  %v7182_v39 = vrot.slane %v18363_v45, 1  ;;  %v15503_v36 = vpop.permute.xlu1 %7027  ;;  %v2517_v21 = vsel %vm2395_vm3, %v18368_v12, %v18367_v2  ;;  %v18370_v24 = vld [vmem:[#allocation224_spill] sm:$0xff]  ;;  %v18371_v27 = vld [vmem:[#allocation225_spill] sm:$0xff]  ;;  %v7202_v61 = vrot.slane %v15241_v63, 1  ;;  %v18375_v2 = vld [vmem:[#allocation83_spill] sm:$0xff] }
 0x54d   : > { %7241 = vrot.lane.b32.xlu0 %v7143_v5, %s10132_s16  ;;  %v9173_v52 = vcombine.low %v2618_v3, %v2620_v0  ;;  %v15512_v4 = vpop.permute.xlu0 %7025  ;;  %v2648_v57 = vsel %vm2524_vm4, %v2519_v35, %v18370_v24  ;;  %v2646_v5 = vsel %vm2524_vm4, %v2517_v21, %v18371_v27  ;;  %v18372_v50 = vld [vmem:[#allocation60_spill] sm:$0xff]  ;;  %v18373_v0 = vld [vmem:[#allocation86_spill] sm:$0xff]  ;;  %v18377_v28 = vld [vmem:[#allocation193_spill] sm:$0xff] }
 0x54e   : > { %18369 = vst [vmem:[#allocation249_spill] sm:$0xff] %v15512_v4  ;;  %v2487_v3 = vsel %vm2395_vm3, %v18373_v0, %v18372_v50  ;;  %v18374_v8 = vld [vmem:[#allocation124_spill] sm:$0xff]  ;;  %v9180_v12 = vcombine.low %v2646_v5, %v2648_v57  ;;  %v18380_v50 = vld [vmem:[#allocation90_spill] sm:$0xff]  ;;  %v18459_v10 = vld [vmem:[#allocation73_spill] sm:$0xff] }
 0x54f   : > { %v2485_v35 = vsel %vm2395_vm3, %v18375_v2, %v18374_v8  ;;  %v5736_v63 = vsel %vm5321_vm2, %v9173_v52, 0  ;;  %v18378_v27 = vld [vmem:[#allocation44_spill] sm:$0xff]  ;;  %v18382_v8 = vld [vmem:[#allocation13_spill] sm:$0xff]  ;;  %v18477_v38 = vld [vmem:[#allocation170_spill] sm:$0xff] }
 0x550   : > { %7319 = vrot.lane.b32.xlu1 %v7182_v39, %s10132_s16  ;;  %v15521_v45 = vpop.permute.xlu1 %7031  ;;  %v18376_v39 = vld [vmem:[#allocation192_spill] sm:$0xff]  ;;  %v2614_v24 = vsel %vm2524_vm4, %v2485_v35, %v18377_v28  ;;  %v7144_v57 = vrot.slane %v18378_v27, 1  ;;  %v18385_v27 = vld [vmem:[#allocation150_spill] sm:$0xff] }
 0x551   : > { %7281 = vrot.lane.b32.xlu0 %v7163_v33, %s10132_s16  ;;  %v15530_v21 = vpop.permute.xlu0 %7029  ;;  %v2616_v33 = vsel %vm2524_vm4, %v2487_v3, %v18376_v39  ;;  %v18379_v52 = vld [vmem:[#allocation136_spill] sm:$0xff]  ;;  %v18381_v3 = vld [vmem:[#allocation137_spill] sm:$0xff] }
 0x552   : > { %9501 = vmatmul.mubr.msk.bf16.vlgmr.msra.gmra.mxu1 %vm5321_vm2, %v15051_v31  ;;  %v7203_v31 = vrot.slane %v15282_v26, 1  ;;  %v2515_v0 = vsel %vm2395_vm3, %v18380_v50, %v18379_v52  ;;  %v2513_v2 = vsel %vm2395_vm3, %v18382_v8, %v18381_v3  ;;  %v9172_v35 = vcombine.low %v2614_v24, %v2616_v33  ;;  %v18386_v33 = vld [vmem:[#allocation122_spill] sm:$0xff]  ;;  %v18387_v24 = vld [vmem:[#allocation84_spill] sm:$0xff]  ;;  %v18388_v3 = vld [vmem:[#allocation123_spill] sm:$0xff] }
 0x553   : > { %9521 = vmatpush3.bf16.xpose.msra.mxu1 %v5736_v63  ;;  %v7184_v26 = vrot.slane %v14929_v40, 1  ;;  %v7164_v52 = vrot.slane %v18385_v27, 1  ;;  %v2483_v50 = vsel %vm2395_vm3, %v18387_v24, %v18386_v33  ;;  %v18389_v8 = vld [vmem:[#allocation81_spill] sm:$0xff]  ;;  %v18390_v40 = vld [vmem:[#allocation188_spill] sm:$0xff]  ;;  %v18394_v24 = vld [vmem:[#allocation3_spill] sm:$0xff] }
 0x554   : > { %7359 = vrot.lane.b32.xlu1 %v7202_v61, %s10132_s16  ;;  %9599 = vmatprep.subr.msk.bf16.mxu1 %vm5321_vm2, %v9180_v12  ;;  %v15543_v5 = vpop.permute.xlu1 %7035  ;;  %v18383_v12 = vld [vmem:[#allocation220_spill] sm:$0xff] }
 0x555   : > { %7321 = vrot.lane.b32.xlu0 %v7183_v44, %s10132_s16  ;;  %v15552_v61 = vpop.permute.xlu0 %7033  ;;  %v2644_v63 = vsel %vm2524_vm4, %v2515_v0, %v18383_v12  ;;  %v18384_v44 = vld [vmem:[#allocation221_spill] sm:$0xff]  ;;  %v2481_v0 = vsel %vm2395_vm3, %v18389_v8, %v18388_v3  ;;  %v10040_v27 = vld [vmem:[%s10164_s14 + $0x230] sm:$0xf]  ;;  %v7204_v3 = vrot.slane %v15273_v14, 1  ;;  %v18395_v8 = vld [vmem:[#allocation134_spill] sm:$0xff] }
 0x556   : > { %v2642_v39 = vsel %vm2524_vm4, %v2513_v2, %v18384_v44  ;;  %v18391_v44 = vld [vmem:[#allocation189_spill] sm:$0xff]  ;;  %v1878_v33 = vsel %vm1665_vm0, %v10040_v27, %v18392_v47  ;;  %v18397_v47 = vld [vmem:[#allocation135_spill] sm:$0xff]  ;;  %v18401_v4 = vld [vmem:[#allocation148_spill] sm:$0xff] }
 0x557   : > { %v9179_v12 = vcombine.low %v2642_v39, %v2644_v63  ;;  %v2610_v20 = vsel %vm2524_vm4, %v2481_v0, %v18391_v44  ;;  %v18393_v63 = vld [vmem:[#allocation99_spill] sm:$0xff]  ;;  %v18396_v0 = vld [vmem:[#allocation88_spill] sm:$0xff] }
 0x558   : > { %7243 = vrot.lane.b32.xlu1 %v7144_v57, %s10132_s16  ;;  %v15561_v28 = vpop.permute.xlu1 %7039  ;;  %v5733_v57 = vsel %vm5321_vm2, %v9172_v35, 0  ;;  %v7140_v39 = vrot.slane %v18393_v63, 1  ;;  %v2048_v35 = vsel %vm1906_vm1, %v1878_v33, %v18394_v24  ;;  %v18398_v44 = vld [vmem:[#allocation216_spill] sm:$0xff]  ;;  %v18399_v33 = vld [vmem:[#allocation217_spill] sm:$0xff] }
 0x559   : > { %7361 = vrot.lane.b32.xlu0 %v7203_v31, %s10132_s16  ;;  %v15570_v2 = vpop.permute.xlu0 %7037  ;;  %v2612_v31 = vsel %vm2524_vm4, %v2483_v50, %v18390_v40  ;;  %v10041_v63 = vld [vmem:[%s10164_s14 + $0x190] sm:$0xf]  ;;  %v18400_v24 = vld [vmem:[#allocation61_spill] sm:$0xff] }
 0x55a   : > { %v9171_v40 = vcombine.low %v2610_v20, %v2612_v31  ;;  %v1818_v14 = vsel %vm1665_vm0, %v10041_v63, %v18400_v24  ;;  %v18404_v31 = vld [vmem:[#allocation24_spill] sm:$0xff] }
 0x55b   : > { %9523 = vmatpush3.bf16.xpose.msra.mxu1 %v5733_v57  ;;  %v2511_v57 = vsel %vm2395_vm3, %v18396_v0, %v18395_v8  ;;  %v7160_v8 = vrot.slane %v18401_v4, 1  ;;  %v18402_v0 = vld [vmem:[#allocation70_spill] sm:$0xff]  ;;  %v18462_v34 = vld [vmem:[#allocation4_spill] sm:$0xff] }
 0x55c   : > { %7323 = vrot.lane.b32.xlu1 %v7184_v26, %s10132_s16  ;;  %9600 = vmatprep.subr.msk.bf16.mxu1 %vm5321_vm2, %v9179_v12  ;;  %v15586_v50 = vpop.permute.xlu1 %7043  ;;  %v2509_v26 = vsel %vm2395_vm3, %v2048_v35, %v18397_v47  ;;  %v2640_v27 = vsel %vm2524_vm4, %v2511_v57, %v18398_v44  ;;  %v2008_v35 = vsel %vm1906_vm1, %v1818_v14, %v18402_v0  ;;  %v7141_v57 = vrot.slane %v18404_v31, 1  ;;  %v18405_v47 = vld [vmem:[#allocation120_spill] sm:$0xff]  ;;  %v18406_v44 = vld [vmem:[#allocation82_spill] sm:$0xff] }
 0x55d   : > { %7283 = vrot.lane.b32.xlu0 %v7164_v52, %s10132_s16  ;;  %v15594_v12 = vpop.permute.xlu0 %7041  ;;  %v2638_v52 = vsel %vm2524_vm4, %v2509_v26, %v18399_v33  ;;  %v2479_v26 = vsel %vm2395_vm3, %v18406_v44, %v18405_v47  ;;  %v18407_v33 = vld [vmem:[#allocation121_spill] sm:$0xff]  ;;  %v5730_v4 = vsel %vm5321_vm2, %v9171_v40, 0  ;;  %v18411_v31 = vld [vmem:[#allocation290_spill] sm:$0xff]  ;;  %v18414_v40 = vld [vmem:[#allocation132_spill] sm:$0xff] }
 0x55e   : > { %v2477_v63 = vsel %vm2395_vm3, %v2008_v35, %v18407_v33  ;;  %v9178_v24 = vcombine.low %v2638_v52, %v2640_v27  ;;  %v2608_v14 = vsel %vm2524_vm4, %v2479_v26, %v18409_v23  ;;  %v7180_v47 = vrot.slane %v18411_v31, 1  ;;  %v18413_v52 = vld [vmem:[#allocation16_spill] sm:$0xff]  ;;  %v18415_v44 = vld [vmem:[#allocation9_spill] sm:$0xff]  ;;  %v18417_v33 = vld [vmem:[#allocation10_spill] sm:$0xff] }
 0x55f   : > { %v7161_v35 = vrot.slane %v18413_v52, 1  ;;  %v2507_v23 = vsel %vm2395_vm3, %v18415_v44, %v18414_v40  ;;  %v18416_v26 = vld [vmem:[#allocation133_spill] sm:$0xff]  ;;  %v7200_v52 = vrot.slane %v15192_v46, 1  ;;  %v7181_v44 = vrot.slane %v14922_v58, 1  ;;  %v18427_v46 = vld [vmem:[#allocation180_spill] sm:$0xff]  ;;  %v18429_v58 = vld [vmem:[#allocation42_spill] sm:$0xff] }
 0x560   : > { %7235 = vrot.lane.b32.xlu1 %v7140_v39, %s10132_s16  ;;  %v15608_v20 = vpop.permute.xlu1 %7047  ;;  %v18420_v31 = vld [vmem:[#allocation213_spill] sm:$0xff] }
 0x561   : > { %7363 = vrot.lane.b32.xlu0 %v7204_v3, %s10132_s16  ;;  %18403 = vst [vmem:[#allocation294_spill] sm:$0xff] %v15608_v20  ;;  %v15616_v39 = vpop.permute.xlu0 %7045  ;;  %v18410_v3 = vld [vmem:[#allocation185_spill] sm:$0xff] }
 0x562   : > { %18408 = vst [vmem:[#allocation243_spill] sm:$0xff] %v15616_v39  ;;  %v2606_v0 = vsel %vm2524_vm4, %v2477_v63, %v18410_v3  ;;  %v2505_v63 = vsel %vm2395_vm3, %v18417_v33, %v18416_v26  ;;  %v18422_v26 = vld [vmem:[#allocation118_spill] sm:$0xff]  ;;  %v18424_v33 = vld [vmem:[#allocation119_spill] sm:$0xff]  ;;  %v18425_v39 = vld [vmem:[#allocation77_spill] sm:$0xff] }
 0x563   : > { %9525 = vmatpush3.bf16.xpose.msra.mxu1 %v5730_v4  ;;  %v9170_v4 = vcombine.low %v2606_v0, %v2608_v14  ;;  %v18423_v14 = vld [vmem:[#allocation80_spill] sm:$0xff] }
 0x564   : > { %7275 = vrot.lane.b32.xlu1 %v7160_v8, %s10132_s16  ;;  %9601 = vmatprep.subr.msk.bf16.mxu1 %vm5321_vm2, %v9178_v24  ;;  %v15627_v27 = vpop.permute.xlu1 %7051  ;;  %v18419_v24 = vld [vmem:[#allocation212_spill] sm:$0xff]  ;;  %v2475_v0 = vsel %vm2395_vm3, %v18423_v14, %v18422_v26  ;;  %v7138_v26 = vrot.slane %v18429_v58, 1 }
 0x565   : > { %7237 = vrot.lane.b32.xlu0 %v7141_v57, %s10132_s16  ;;  %18412 = vst [vmem:[#allocation286_spill] sm:$0xff] %v15627_v27  ;;  %v15636_v8 = vpop.permute.xlu0 %7049  ;;  %v2636_v3 = vsel %vm2524_vm4, %v2507_v23, %v18419_v24  ;;  %v2634_v57 = vsel %vm2524_vm4, %v2505_v63, %v18420_v31  ;;  %v2473_v23 = vsel %vm2395_vm3, %v18425_v39, %v18424_v33  ;;  %v18428_v31 = vld [vmem:[#allocation181_spill] sm:$0xff]  ;;  %v18433_v33 = vld [vmem:[#allocation8_spill] sm:$0xff] }
 0x566   : > { %18418 = vst [vmem:[#allocation242_spill] sm:$0xff] %v15636_v8  ;;  %v9177_v24 = vcombine.low %v2634_v57, %v2636_v3  ;;  %v2602_v8 = vsel %vm2524_vm4, %v2473_v23, %v18428_v31  ;;  %v7201_v3 = vrot.slane %v15247_v56, 1  ;;  %v18431_v57 = vld [vmem:[#allocation7_spill] sm:$0xff]  ;;  %v18436_v31 = vld [vmem:[#allocation209_spill] sm:$0xff]  ;;  %v18437_v56 = vld [vmem:[#allocation144_spill] sm:$0xff] }
 0x567   : > { %v7158_v58 = vrot.slane %v18437_v56, 1  ;;  %v18445_v56 = vld [vmem:[#allocation177_spill] sm:$0xff] }
 0x568   : > { %7315 = vrot.lane.b32.xlu1 %v7180_v47, %s10132_s16  ;;  %v15645_v40 = vpop.permute.xlu1 %7055  ;;  %v5727_v47 = vsel %vm5321_vm2, %v9170_v4, 0  ;;  %v18430_v4 = vld [vmem:[#allocation2_spill] sm:$0xff] }
 0x569   : > { %7277 = vrot.lane.b32.xlu0 %v7161_v35, %s10132_s16  ;;  %18421 = vst [vmem:[#allocation287_spill] sm:$0xff] %v15645_v40  ;;  %v15654_v63 = vpop.permute.xlu0 %7053  ;;  %v2604_v35 = vsel %vm2524_vm4, %v2475_v0, %v18427_v46  ;;  %v2503_v14 = vsel %vm2395_vm3, %v18431_v57, %v18430_v4  ;;  %v18432_v0 = vld [vmem:[#allocation131_spill] sm:$0xff]  ;;  %v18439_v57 = vld [vmem:[#allocation45_spill] sm:$0xff] }
 0x56a   : > { %18426 = vst [vmem:[#allocation234_spill] sm:$0xff] %v15654_v63  ;;  %v2501_v23 = vsel %vm2395_vm3, %v18433_v33, %v18432_v0  ;;  %v7139_v20 = vrot.slane %v18439_v57, 1  ;;  %v18440_v0 = vld [vmem:[#allocation58_spill] sm:$0xff]  ;;  %v18442_v33 = vld [vmem:[#allocation117_spill] sm:$0xff]  ;;  %v18443_v63 = vld [vmem:[#allocation75_spill] sm:$0xff] }
 0x56b   : > { %9527 = vmatpush3.bf16.xpose.msra.mxu1 %v5727_v47  ;;  %v9169_v47 = vcombine.low %v2602_v8, %v2604_v35  ;;  %v18441_v8 = vld [vmem:[#allocation78_spill] sm:$0xff]  ;;  %v18471_v40 = vld [vmem:[#allocation111_spill] sm:$0xff] }
 0x56c   : > { %7355 = vrot.lane.b32.xlu1 %v7200_v52, %s10132_s16  ;;  %9602 = vmatprep.subr.msk.bf16.mxu1 %vm5321_vm2, %v9177_v24  ;;  %v15665_v39 = vpop.permute.xlu1 %7059  ;;  %v18435_v24 = vld [vmem:[#allocation208_spill] sm:$0xff]  ;;  %v2471_v35 = vsel %vm2395_vm3, %v18441_v8, %v18440_v0  ;;  %v18446_v57 = vld [vmem:[#allocation98_spill] sm:$0xff]  ;;  %v18449_v8 = vld [vmem:[#allocation5_spill] sm:$0xff] }
 0x56d   : > { %7317 = vrot.lane.b32.xlu0 %v7181_v44, %s10132_s16  ;;  %v15674_v52 = vpop.permute.xlu0 %7057  ;;  %v2632_v46 = vsel %vm2524_vm4, %v2503_v14, %v18435_v24  ;;  %v2630_v44 = vsel %vm2524_vm4, %v2501_v23, %v18436_v31  ;;  %v2469_v14 = vsel %vm2395_vm3, %v18443_v63, %v18442_v33  ;;  %v18444_v31 = vld [vmem:[#allocation176_spill] sm:$0xff]  ;;  %v7178_v0 = vrot.slane %v18446_v57, 1  ;;  %v18450_v33 = vld [vmem:[#allocation130_spill] sm:$0xff] }
 0x56e   : > { %18434 = vst [vmem:[#allocation57_spill] sm:$0xff] %v15674_v52  ;;  %v9176_v24 = vcombine.low %v2630_v44, %v2632_v46  ;;  %v2598_v27 = vsel %vm2524_vm4, %v2469_v14, %v18445_v56  ;;  %v18447_v46 = vld [vmem:[#allocation149_spill] sm:$0xff] }
 0x56f   : > { %v7159_v44 = vrot.slane %v18447_v46, 1  ;;  %v7198_v46 = vrot.slane %v15170_v37, 1  ;;  %v18460_v37 = vld [vmem:[#allocation172_spill] sm:$0xff] }
 0x570   : > { %7231 = vrot.lane.b32.xlu1 %v7138_v26, %s10132_s16  ;;  %v15683_v4 = vpop.permute.xlu1 %7063  ;;  %v5724_v26 = vsel %vm5321_vm2, %v9169_v47, 0  ;;  %v18448_v47 = vld [vmem:[#allocation129_spill] sm:$0xff] }
 0x571   : > { %7357 = vrot.lane.b32.xlu0 %v7201_v3, %s10132_s16  ;;  %18438 = vst [vmem:[#allocation25_spill] sm:$0xff] %v15683_v4  ;;  %v15692_v23 = vpop.permute.xlu0 %7061  ;;  %v2600_v3 = vsel %vm2524_vm4, %v2471_v35, %v18444_v31  ;;  %v2499_v35 = vsel %vm2395_vm3, %v18449_v8, %v18448_v47  ;;  %v18451_v31 = vld [vmem:[#allocation6_spill] sm:$0xff]  ;;  %v18455_v8 = vld [vmem:[#allocation232_spill] sm:$0xff] }
 0x572   : > { %v2497_v14 = vsel %vm2395_vm3, %v18451_v31, %v18450_v33  ;;  %v7179_v33 = vrot.slane %v18455_v8, 1  ;;  %v10042_v8 = vld [vmem:[%s10164_s14 + $0x1e0] sm:$0xf] }
 0x573   : > { %9529 = vmatpush3.bf16.xpose.msra.mxu1 %v5724_v26  ;;  %v9168_v26 = vcombine.low %v2598_v27, %v2600_v3  ;;  %v18456_v27 = vld [vmem:[#allocation115_spill] sm:$0xff]  ;;  %v18457_v3 = vld [vmem:[#allocation76_spill] sm:$0xff] }
 0x574   : > { %7271 = vrot.lane.b32.xlu1 %v7158_v58, %s10132_s16  ;;  %9603 = vmatprep.subr.msk.bf16.mxu1 %vm5321_vm2, %v9176_v24  ;;  %v15703_v63 = vpop.permute.xlu1 %7067  ;;  %v18453_v24 = vld [vmem:[#allocation204_spill] sm:$0xff]  ;;  %v2467_v31 = vsel %vm2395_vm3, %v18457_v3, %v18456_v27  ;;  %v1848_v27 = vsel %vm1665_vm0, %v10042_v8, %v18462_v34  ;;  %v7199_v3 = vrot.slane %v15219_v22, 1 }
 0x575   : > { %7233 = vrot.lane.b32.xlu0 %v7139_v20, %s10132_s16  ;;  %v15712_v58 = vpop.permute.xlu0 %7065  ;;  %v2628_v56 = vsel %vm2524_vm4, %v2499_v35, %v18453_v24  ;;  %v18454_v20 = vld [vmem:[#allocation205_spill] sm:$0xff]  ;;  %v18467_v34 = vld [vmem:[#allocation128_spill] sm:$0xff] }
 0x576   : > { %18452 = vst [vmem:[#allocation210_spill] sm:$0xff] %v15712_v58  ;;  %v2626_v57 = vsel %vm2524_vm4, %v2497_v14, %v18454_v20  ;;  %v18458_v58 = vld [vmem:[#allocation116_spill] sm:$0xff]  ;;  %v18461_v20 = vld [vmem:[#allocation173_spill] sm:$0xff] }
 0x577   : > { %v2465_v35 = vsel %vm2395_vm3, %v18459_v10, %v18458_v58  ;;  %v9175_v24 = vcombine.low %v2626_v57, %v2628_v56  ;;  %v18463_v10 = vld [vmem:[#allocation35_spill] sm:$0xff] }
 0x578   : > { %7311 = vrot.lane.b32.xlu1 %v7178_v0, %s10132_s16  ;;  %v15721_v47 = vpop.permute.xlu1 %7071  ;;  %v5721_v0 = vsel %vm5321_vm2, %v9168_v26, 0  ;;  %v2594_v52 = vsel %vm2524_vm4, %v2465_v35, %v18461_v20  ;;  %v7136_v58 = vrot.slane %v18463_v10, 1  ;;  %v18464_v56 = vld [vmem:[#allocation79_spill] sm:$0xff]  ;;  %v18468_v20 = vld [vmem:[#allocation200_spill] sm:$0xff]  ;;  %v10043_v10 = vld [vmem:[%s10164_s14 + $0x140] sm:$0xf] }
 0x579   : > { %7273 = vrot.lane.b32.xlu0 %v7159_v44, %s10132_s16  ;;  %v15730_v14 = vpop.permute.xlu0 %7069  ;;  %v2596_v44 = vsel %vm2524_vm4, %v2467_v31, %v18460_v37  ;;  %v2028_v26 = vsel %vm1906_vm1, %v1848_v27, %v18464_v56  ;;  %v18465_v31 = vld [vmem:[#allocation127_spill] sm:$0xff]  ;;  %v18469_v27 = vld [vmem:[#allocation201_spill] sm:$0xff] }
 0x57a   : > { %v18466_v35 = vld [vmem:[#allocation87_spill] sm:$0xff]  ;;  %v9167_v37 = vcombine.low %v2594_v52, %v2596_v44 }
 0x57b   : > { %9531 = vmatpush3.bf16.xpose.msra.mxu1 %v5721_v0  ;;  %v2495_v0 = vsel %vm2395_vm3, %v18466_v35, %v18465_v31  ;;  %v18470_v56 = vld [vmem:[#allocation59_spill] sm:$0xff]  ;;  %v7156_v31 = vrot.slane %v18471_v40, 1  ;;  %v18472_v35 = vld [vmem:[#allocation53_spill] sm:$0xff] }
 0x57c   : > { %7351 = vrot.lane.b32.xlu1 %v7198_v46, %s10132_s16  ;;  %9604 = vmatprep.subr.msk.bf16.mxu1 %vm5321_vm2, %v9175_v24  ;;  %v15746_v57 = vpop.permute.xlu1 %7075  ;;  %v2493_v46 = vsel %vm2395_vm3, %v2028_v26, %v18467_v34  ;;  %v2624_v8 = vsel %vm2524_vm4, %v2495_v0, %v18468_v20  ;;  %v1788_v22 = vsel %vm1665_vm0, %v10043_v10, %v18470_v56  ;;  %v18473_v44 = vld [vmem:[#allocation95_spill] sm:$0xff]  ;;  %v18474_v34 = vld [vmem:[#allocation113_spill] sm:$0xff]  ;;  %v18475_v20 = vld [vmem:[#allocation74_spill] sm:$0xff]  ;;  %v5718_v40 = vsel %vm5321_vm2, %v9167_v37, 0 }
 0x57d   : > { %7313 = vrot.lane.b32.xlu0 %v7179_v33, %s10132_s16  ;;  %v15754_v24 = vpop.permute.xlu0 %7073  ;;  %v2622_v33 = vsel %vm2524_vm4, %v2493_v46, %v18469_v27  ;;  %v1988_v26 = vsel %vm1906_vm1, %v1788_v22, %v18472_v35  ;;  %v7137_v0 = vrot.slane %v18473_v44, 1  ;;  %v2463_v46 = vsel %vm2395_vm3, %v18475_v20, %v18474_v34  ;;  %v18476_v27 = vld [vmem:[#allocation114_spill] sm:$0xff] }
 0x57e   : > { %v2461_v10 = vsel %vm2395_vm3, %v1988_v26, %v18476_v27  ;;  %v9174_v56 = vcombine.low %v2622_v33, %v2624_v8  ;;  %v2592_v22 = vsel %vm2524_vm4, %v2463_v46, %v18477_v38  ;;  %v18479_v44 = vld [vmem:[#allocation250_spill] sm:$0xff]  ;;  %v18480_v8 = vld [vmem:[#allocation145_spill] sm:$0xff]  ;;  %v7196_v38 = vrot.slane %v15131_v49, 1 }
 0x57f   : > { %v7176_v34 = vrot.slane %v18479_v44, 1  ;;  %v7157_v33 = vrot.slane %v18480_v8, 1 }
 0x580   : > { %7227 = vrot.lane.b32.xlu1 %v7136_v58, %s10132_s16  ;;  %v15768_v52 = vpop.permute.xlu1 %7079 }
 0x581   : > { %7353 = vrot.lane.b32.xlu0 %v7199_v3, %s10132_s16  ;;  %v15776_v58 = vpop.permute.xlu0 %7077  ;;  %v18478_v3 = vld [vmem:[#allocation171_spill] sm:$0xff] }
 0x582   : > { %v2590_v35 = vsel %vm2524_vm4, %v2461_v10, %v18478_v3 }
 0x583   : > { %9533 = vmatpush3.bf16.xpose.msra.mxu1 %v5718_v40  ;;  %v9166_v26 = vcombine.low %v2590_v35, %v2592_v22  ;;  %v7197_v22 = vrot.slane %v15180_v30, 1  ;;  %v18487_v35 = vld [vmem:[#allocation56_spill] sm:$0xff] }
 0x584   : > { %7267 = vrot.lane.b32.xlu1 %v7156_v31, %s10132_s16  ;;  %9605 = vmatprep.subr.msk.bf16.mxu1 %vm5321_vm2, %v9174_v56  ;;  %v15788_v20 = vpop.permute.xlu1 %7083  ;;  %v18481_v31 = vld [vmem:[#allocation246_spill] sm:$0xff]  ;;  %v7152_v44 = vrot.slane %v18487_v35, 1 }
 0x585   : > { %7229 = vrot.lane.b32.xlu0 %v7137_v0, %s10132_s16  ;;  %v15790_v37 = vpop.permute.xlu0 %7081  ;;  %v7177_v46 = vrot.slane %v18481_v31, 1  ;;  %v5715_v0 = vsel %vm5321_vm2, %v9166_v26, 0  ;;  %v18484_v56 = vld [vmem:[#allocation202_spill] sm:$0xff]  ;;  %v18492_v31 = vld [vmem:[#allocation67_spill] sm:$0xff] }
 0x586   : > { %v7132_v40 = vrot.slane %v18484_v56, 1 }
 0x588   : > { %7307 = vrot.lane.b32.xlu1 %v7176_v34, %s10132_s16  ;;  %v15796_v27 = vpop.permute.xlu1 %7087  ;;  %v18488_v34 = vld [vmem:[#allocation336_spill] sm:$0xff] }
 0x589   : > { %7269 = vrot.lane.b32.xlu0 %v7157_v33, %s10132_s16  ;;  %18482 = vst [vmem:[#allocation231_spill] sm:$0xff] %v15796_v27  ;;  %v15798_v10 = vpop.permute.xlu0 %7085  ;;  %v7133_v8 = vrot.slane %v18488_v34, 1 }
 0x58a   : > { %18483 = vst [vmem:[#allocation214_spill] sm:$0xff] %v15798_v10 }
 0x58b   : > { %9535 = vmatpush3.bf16.xpose.msra.mxu1 %v5715_v0 }
 0x58c   : > { %7347 = vrot.lane.b32.xlu1 %v7196_v38, %s10132_s16  ;;  %v15805_v49 = vpop.permute.xlu1 %7091  ;;  %v18491_v38 = vld [vmem:[#allocation166_spill] sm:$0xff] }
 0x58d   : > { %7309 = vrot.lane.b32.xlu0 %v7177_v46, %s10132_s16  ;;  %18485 = vst [vmem:[#allocation237_spill] sm:$0xff] %v15805_v49  ;;  %v15807_v3 = vpop.permute.xlu0 %7089  ;;  %v7172_v30 = vrot.slane %v18491_v38, 1  ;;  %v7153_v46 = vrot.slane %v18492_v31, 1  ;;  %v7193_v31 = vrot.slane %v15122_v16, 1 }
 0x58e   : > { %18486 = vst [vmem:[#allocation253_spill] sm:$0xff] %v15807_v3 }
 0x590   : > { %7219 = vrot.lane.b32.xlu1 %v7132_v40, %s10132_s16  ;;  %v15813_v33 = vpop.permute.xlu1 %7095  ;;  %v7192_v40 = vrot.slane %v15056_v51, 1  ;;  %v18500_v51 = vld [vmem:[#allocation168_spill] sm:$0xff] }
 0x591   : > { %7349 = vrot.lane.b32.xlu0 %v7197_v22, %s10132_s16  ;;  %18489 = vst [vmem:[#allocation252_spill] sm:$0xff] %v15813_v33  ;;  %v15815_v26 = vpop.permute.xlu0 %7093  ;;  %v18495_v22 = vld [vmem:[#allocation169_spill] sm:$0xff] }
 0x592   : > { %18490 = vst [vmem:[#allocation222_spill] sm:$0xff] %v15815_v26  ;;  %v7173_v35 = vrot.slane %v18495_v22, 1  ;;  %v18501_v22 = vld [vmem:[#allocation38_spill] sm:$0xff] }
 0x593   : > { %v7154_v3 = vrot.slane %v18501_v22, 1  ;;  %v18504_v22 = vld [vmem:[#allocation334_spill] sm:$0xff] }
 0x594   : > { %7259 = vrot.lane.b32.xlu1 %v7152_v44, %s10132_s16  ;;  %v15821_v0 = vpop.permute.xlu1 %7099  ;;  %v7131_v26 = vrot.slane %v18504_v22, 1 }
 0x595   : > { %7221 = vrot.lane.b32.xlu0 %v7133_v8, %s10132_s16  ;;  %18493 = vst [vmem:[#allocation244_spill] sm:$0xff] %v15821_v0  ;;  %v15823_v56 = vpop.permute.xlu0 %7097  ;;  %v18498_v8 = vld [vmem:[#allocation335_spill] sm:$0xff]  ;;  %v10050_v0 = vld [vmem:[%s10164_s14 + $0x270] sm:$0xf] }
 0x596   : > { %18494 = vst [vmem:[#allocation207_spill] sm:$0xff] %v15823_v56  ;;  %v7134_v38 = vrot.slane %v18498_v8, 1  ;;  %v7194_v8 = vrot.slane %v15112_v9, 1 }
 0x598   : > { %7299 = vrot.lane.b32.xlu1 %v7172_v30, %s10132_s16  ;;  %v15829_v34 = vpop.permute.xlu1 %7103 }
 0x599   : > { %7261 = vrot.lane.b32.xlu0 %v7153_v46, %s10132_s16  ;;  %18496 = vst [vmem:[#allocation230_spill] sm:$0xff] %v15829_v34  ;;  %v15831_v44 = vpop.permute.xlu0 %7101  ;;  %v7174_v46 = vrot.slane %v18500_v51, 1 }
 0x59a   : > { %18497 = vst [vmem:[#allocation211_spill] sm:$0xff] %v15831_v44 }
 0x59c   : > { %7339 = vrot.lane.b32.xlu1 %v7192_v40, %s10132_s16  ;;  %v15837_v10 = vpop.permute.xlu1 %7107 }
 0x59d   : > { %7301 = vrot.lane.b32.xlu0 %v7173_v35, %s10132_s16  ;;  %v15839_v30 = vpop.permute.xlu0 %7105  ;;  %v18502_v35 = vld [vmem:[#allocation332_spill] sm:$0xff] }
 0x59e   : > { %18499 = vst [vmem:[#allocation51_spill] sm:$0xff] %v15839_v30  ;;  %v7130_v16 = vrot.slane %v18502_v35, 1  ;;  %v18506_v35 = vld [vmem:[#allocation71_spill] sm:$0xff] }
 0x59f   : > { %v7151_v56 = vrot.slane %v18506_v35, 1  ;;  %v7191_v35 = vrot.slane %v15090_v29, 1  ;;  %v18516_v29 = vld [vmem:[#allocation165_spill] sm:$0xff] }
 0x5a0   : > { %7223 = vrot.lane.b32.xlu1 %v7134_v38, %s10132_s16  ;;  %v15845_v27 = vpop.permute.xlu1 %7111 }
 0x5a1   : > { %7341 = vrot.lane.b32.xlu0 %v7193_v31, %s10132_s16  ;;  %v15847_v40 = vpop.permute.xlu0 %7109  ;;  %v18503_v31 = vld [vmem:[#allocation110_spill] sm:$0xff] }
 0x5a2   : > { %v7150_v51 = vrot.slane %v18503_v31, 1  ;;  %v18507_v31 = vld [vmem:[#allocation167_spill] sm:$0xff] }
 0x5a3   : > { %v7171_v22 = vrot.slane %v18507_v31, 1  ;;  %v18514_v31 = vld [vmem:[#allocation65_spill] sm:$0xff] }
 0x5a4   : > { %7303 = vrot.lane.b32.xlu1 %v7174_v46, %s10132_s16  ;;  %v15853_v30 = vpop.permute.xlu1 %7115 }
 0x5a5   : > { %7263 = vrot.lane.b32.xlu0 %v7154_v3, %s10132_s16  ;;  %v15855_v38 = vpop.permute.xlu0 %7113  ;;  %v18505_v3 = vld [vmem:[#allocation164_spill] sm:$0xff] }
 0x5a6   : > { %v7170_v9 = vrot.slane %v18505_v3, 1 }
 0x5a8   : > { %7215 = vrot.lane.b32.xlu1 %v7130_v16, %s10132_s16  ;;  %v15861_v49 = vpop.permute.xlu1 %7119 }
 0x5a9   : > { %7343 = vrot.lane.b32.xlu0 %v7194_v8, %s10132_s16  ;;  %v15863_v46 = vpop.permute.xlu0 %7117  ;;  %v7190_v8 = vrot.slane %v15026_v19, 1  ;;  %v18513_v19 = vld [vmem:[#allocation162_spill] sm:$0xff] }
 0x5ac   : > { %7255 = vrot.lane.b32.xlu1 %v7150_v51, %s10132_s16  ;;  %v15869_v33 = vpop.permute.xlu1 %7123 }
 0x5ad   : > { %7217 = vrot.lane.b32.xlu0 %v7131_v26, %s10132_s16  ;;  %v15871_v16 = vpop.permute.xlu0 %7121  ;;  %v18510_v26 = vld [vmem:[#allocation52_spill] sm:$0xff] }
 0x5ae   : > { %v7148_v3 = vrot.slane %v18510_v26, 1  ;;  %v7169_v26 = vrot.slane %v18516_v29, 1 }
 0x5b0   : > { %7295 = vrot.lane.b32.xlu1 %v7170_v9, %s10132_s16  ;;  %v15877_v34 = vpop.permute.xlu1 %7207 }
 0x5b1   : > { %7257 = vrot.lane.b32.xlu0 %v7151_v56, %s10132_s16  ;;  %18508 = vst [vmem:[#allocation241_spill] sm:$0xff] %v15877_v34  ;;  %v15879_v51 = vpop.permute.xlu0 %7205  ;;  %v7168_v56 = vrot.slane %v18513_v19, 1 }
 0x5b2   : > { %18509 = vst [vmem:[#allocation248_spill] sm:$0xff] %v15879_v51  ;;  %v7149_v51 = vrot.slane %v18514_v31, 1 }
 0x5b4   : > { %7335 = vrot.lane.b32.xlu1 %v7190_v8, %s10132_s16 }
 0x5b5   : > { %7297 = vrot.lane.b32.xlu0 %v7171_v22, %s10132_s16  ;;  %v7188_v22 = vrot.slane %v14988_v17, 1  ;;  %v18518_v17 = vld [vmem:[#allocation152_spill] sm:$0xff] }
 0x5b6   : > { %v15885_v4 = vpop.permute.xlu1 %7211  ;;  %v15887_v9 = vpop.permute.xlu0 %7209 }
 0x5b7   : > { %18511 = vst [vmem:[#allocation292_spill] sm:$0xff] %v15885_v4  ;;  %18512 = vst [vmem:[#allocation240_spill] sm:$0xff] %v15887_v9 }
 0x5b8   : > { %7251 = vrot.lane.b32.xlu1 %v7148_v3, %s10132_s16  ;;  %v18517_v3 = vld [vmem:[#allocation26_spill] sm:$0xff] }
 0x5b9   : > { %7337 = vrot.lane.b32.xlu0 %v7191_v35, %s10132_s16  ;;  %v7146_v19 = vrot.slane %v18517_v3, 1  ;;  %v7189_v35 = vrot.slane %v15033_v15, 1  ;;  %v18520_v15 = vld [vmem:[#allocation163_spill] sm:$0xff] }
 0x5ba   : > { %v7240_v34 = vpop.permute.xlu1 %7239  ;;  %v15893_v8 = vpop.permute.xlu0 %7213 }
 0x5bb   : > { %18515 = vst [vmem:[#allocation283_spill] sm:$0xff] %v15893_v8 }
 0x5bc   : > { %7291 = vrot.lane.b32.xlu1 %v7168_v56, %s10132_s16  ;;  %v7166_v56 = vrot.slane %v18518_v17, 1  ;;  %v10044_v17 = vld [vmem:[%s10164_s14 + $0x128] sm:$0xf] }
 0x5bd   : > { %7253 = vrot.lane.b32.xlu0 %v7149_v51, %s10132_s16  ;;  %v18519_v51 = vld [vmem:[#allocation107_spill] sm:$0xff] }
 0x5be   : > { %v7280_v9 = vpop.permute.xlu1 %7279  ;;  %v7147_v29 = vrot.slane %v18519_v51, 1 }
 0x5bf   : > { %v7242_v4 = vpop.permute.xlu0 %7241 }
 0x5c0   : > { %7331 = vrot.lane.b32.xlu1 %v7188_v22, %s10132_s16  ;;  %v7186_v22 = vrot.slane %v14978_v41, 1 }
 0x5c1   : > { %7293 = vrot.lane.b32.xlu0 %v7169_v26, %s10132_s16  ;;  %v7167_v26 = vrot.slane %v18520_v15, 1 }
 0x5c2   : > { %v7320_v31 = vpop.permute.xlu1 %7319 }
 0x5c3   : > { %v7282_v8 = vpop.permute.xlu0 %7281 }
 0x5c4   : > { %7247 = vrot.lane.b32.xlu1 %v7146_v19, %s10132_s16 }
 0x5c5   : > { %7333 = vrot.lane.b32.xlu0 %v7189_v35, %s10132_s16  ;;  %v7187_v35 = vrot.slane %v14994_v32, 1 }
 0x5c6   : > { %v7360_v62 = vpop.permute.xlu1 %7359 }
 0x5c7   : > { %v7322_v44 = vpop.permute.xlu0 %7321 }
 0x5c8   : > { %7287 = vrot.lane.b32.xlu1 %v7166_v56, %s10132_s16  ;;  %v7418_v56 = vsel %vm1665_vm0, %v10044_v17, %v15310_v6  ;;  %v10046_v6 = vld [vmem:[%s10164_s14 + $0x130] sm:$0xf] }
 0x5c9   : > { %7249 = vrot.lane.b32.xlu0 %v7147_v29, %s10132_s16  ;;  %v15920_v41 = vsel %vm1906_vm1, %v7418_v56, %v7240_v34 }
 0x5ca   : > { %v7244_v3 = vpop.permute.xlu1 %7243 }
 0x5cb   : > { %v7362_v19 = vpop.permute.xlu0 %7361 }
 0x5cc   : > { %7327 = vrot.lane.b32.xlu1 %v7186_v22, %s10132_s16  ;;  %v10045_v22 = vld [vmem:[%s10164_s14 + $0x1c8] sm:$0xf] }
 0x5cd   : > { %7289 = vrot.lane.b32.xlu0 %v7167_v26, %s10132_s16  ;;  %v7478_v32 = vsel %vm1665_vm0, %v10045_v22, %v15561_v28  ;;  %v7421_v26 = vsel %vm1665_vm0, %v10046_v6, %v15349_v18  ;;  %v10047_v28 = vld [vmem:[%s10164_s14 + $0x268] sm:$0xf]  ;;  %v10048_v18 = vld [vmem:[%s10164_s14 + $0x1d0] sm:$0xf] }
 0x5ce   : > { %v15917_v51 = vpop.permute.xlu1 %7323  ;;  %v15934_v34 = vsel %vm1906_vm1, %v7478_v32, %v7280_v9  ;;  %v7642_v56 = vsel %vm1906_vm1, %v7421_v26, %v7242_v4  ;;  %v7481_v9 = vsel %vm1665_vm0, %v10048_v18, %v15594_v12  ;;  %v10049_v26 = vld [vmem:[%s10164_s14 + $0x308] sm:$0xf]  ;;  %v7541_v12 = vsel %vm1665_vm0, %v10050_v0, %v15790_v37 }
 0x5cf   : > { %v7284_v29 = vpop.permute.xlu0 %7283  ;;  %v7682_v6 = vsel %vm1906_vm1, %v7481_v9, %v7282_v8  ;;  %v7722_v8 = vsel %vm1906_vm1, %v7541_v12, %v7322_v44  ;;  %v10051_v9 = vld [vmem:[%s10164_s14 + $0x138] sm:$0xf] }
 0x5d0   : > { %7857 = vrot.lane.b32.xlu1 %v15920_v41, %s10133_s17 }
 0x5d1   : > { %7329 = vrot.lane.b32.xlu0 %v7187_v35, %s10132_s16  ;;  %v7538_v35 = vsel %vm1665_vm0, %v10047_v28, %v15768_v52  ;;  %v7598_v52 = vsel %vm1665_vm0, %v10049_v26, %v15861_v49  ;;  %v2653_v49 = vld [vmem:[%s17049_s1] sm:$0xf]  ;;  %v7424_v26 = vsel %vm1665_vm0, %v10051_v9, %v15337_v53 }
 0x5d2   : > { %v15928_v15 = vpop.permute.xlu1 %7235  ;;  %v15951_v32 = vsel %vm1906_vm1, %v7538_v35, %v7320_v31  ;;  %v15968_v31 = vsel %vm1906_vm1, %v7598_v52, %v7360_v62  ;;  %9518 = vmatprep.mubr.msk.bf16.mxu0 %vm5321_vm2, %v2653_v49  ;;  %9536 = vmatprep.mubr.msk.bf16.mxu1 %vm5321_vm2, %v2653_v49  ;;  %v7601_v62 = vsel %vm1665_vm0, %v15262_v13, %v15871_v16 }
 0x5d3   : > { %v15936_v17 = vpop.permute.xlu0 %7363  ;;  %9519 = vmatmul.mubr.msk.bf16.vlgmr.msra.gmra.mxu0 %vm5321_vm2, %v2653_v49  ;;  %9537 = vmatmul.mubr.msk.bf16.vlgmr.msra.gmra.mxu1 %vm5321_vm2, %v2653_v49  ;;  %v7762_v0 = vsel %vm1906_vm1, %v7601_v62, %v7362_v19  ;;  %v7644_v16 = vsel %vm1906_vm1, %v7424_v26, %v7244_v3  ;;  %v10055_v26 = vld [vmem:[%s10164_s14 + $0x318] sm:$0xf] }
 0x5d4   : > { %7889 = vrot.lane.b32.xlu1 %v15934_v34, %s10133_s17 }
 0x5d5   : > { %7859 = vrot.lane.b32.xlu0 %v7642_v56, %s10133_s17 }
 0x5d6   : > { %v15945_v22 = vpop.permute.xlu1 %7275 }
 0x5d7   : > { %v15953_v4 = vpop.permute.xlu0 %7237 }
 0x5d8   : > { %7921 = vrot.lane.b32.xlu1 %v15951_v32, %s10133_s17 }
 0x5d9   : > { %7891 = vrot.lane.b32.xlu0 %v7682_v6, %s10133_s17 }
 0x5da   : > { %v15962_v28 = vpop.permute.xlu1 %7315 }
 0x5db   : > { %v15970_v35 = vpop.permute.xlu0 %7277 }
 0x5dc   : > { %7953 = vrot.lane.b32.xlu1 %v15968_v31, %s10133_s17 }
 0x5dd   : > { %7923 = vrot.lane.b32.xlu0 %v7722_v8, %s10133_s17 }
 0x5de   : > { %v15979_v18 = vpop.permute.xlu1 %7355 }
 0x5df   : > { %v15986_v37 = vpop.permute.xlu0 %7317 }
 0x5e0   : > { %7993 = vrot.lane.b32.xlu1 %v7642_v56, %s10134_s18  ;;  %v10052_v56 = vld [vmem:[%s10164_s14 + $0x1d8] sm:$0xf] }
 0x5e1   : > { %7955 = vrot.lane.b32.xlu0 %v7762_v0, %s10133_s17  ;;  %v7484_v52 = vsel %vm1665_vm0, %v10052_v56, %v15586_v50 }
 0x5e2   : > { %v15993_v44 = vpop.permute.xlu1 %7231  ;;  %v7684_v53 = vsel %vm1906_vm1, %v7484_v52, %v7284_v29  ;;  %v10054_v29 = vld [vmem:[%s10164_s14 + $0x118] sm:$0xf]  ;;  %v10057_v52 = vld [vmem:[%s10164_s14 + $0x120] sm:$0xf] }
 0x5e3   : > { %v15998_v13 = vpop.permute.xlu0 %7357 }
 0x5e4   : > { %8025 = vrot.lane.b32.xlu1 %v7682_v6, %s10134_s18  ;;  %v10053_v6 = vld [vmem:[%s10164_s14 + $0x278] sm:$0xf] }
 0x5e5   : > { %7995 = vrot.lane.b32.xlu0 %v7644_v16, %s10134_s18  ;;  %v7544_v49 = vsel %vm1665_vm0, %v10053_v6, %v15788_v20  ;;  %v7604_v20 = vsel %vm1665_vm0, %v10055_v26, %v15869_v33 }
 0x5e6   : > { %v16003_v19 = vpop.permute.xlu1 %7271  ;;  %v7724_v50 = vsel %vm1906_vm1, %v7544_v49, %v15917_v51 }
 0x5e7   : > { %v16008_v12 = vpop.permute.xlu0 %7233 }
 0x5e8   : > { %8057 = vrot.lane.b32.xlu1 %v7722_v8, %s10134_s18  ;;  %v7412_v8 = vsel %vm1665_vm0, %v10054_v29, %v15277_v48  ;;  %v10056_v48 = vld [vmem:[%s10164_s14 + $0x1b8] sm:$0xf] }
 0x5e9   : > { %8027 = vrot.lane.b32.xlu0 %v7684_v53, %s10134_s18  ;;  %v16034_v16 = vsel %vm1906_vm1, %v7412_v8, %v15928_v15  ;;  %v7472_v33 = vsel %vm1665_vm0, %v10056_v48, %v15543_v5  ;;  %v7415_v15 = vsel %vm1665_vm0, %v10057_v52, %v15320_v43  ;;  %v10058_v5 = vld [vmem:[%s10164_s14 + $0x258] sm:$0xf] }
 0x5ea   : > { %v16013_v3 = vpop.permute.xlu1 %7311  ;;  %v16059_v6 = vsel %vm1906_vm1, %v7415_v15, %v15953_v4  ;;  %v7532_v43 = vsel %vm1665_vm0, %v10058_v5, %v15746_v57  ;;  %v10060_v57 = vld [vmem:[%s10164_s14 + $0x2f8] sm:$0xf] }
 0x5eb   : > { %v16018_v62 = vpop.permute.xlu0 %7273  ;;  %v16075_v4 = vsel %vm1906_vm1, %v7532_v43, %v15962_v28  ;;  %v10061_v28 = vld [vmem:[%s10164_s14 + $0x260] sm:$0xf] }
 0x5ec   : > { %8089 = vrot.lane.b32.xlu1 %v7762_v0, %s10134_s18  ;;  %v7764_v0 = vsel %vm1906_vm1, %v7604_v20, %v15936_v17  ;;  %v16053_v17 = vsel %vm1906_vm1, %v7472_v33, %v15945_v22  ;;  %v10059_v22 = vld [vmem:[%s10164_s14 + $0x1c0] sm:$0xf]  ;;  %v7535_v20 = vsel %vm1665_vm0, %v10061_v28, %v15776_v58 }
 0x5ed   : > { %8059 = vrot.lane.b32.xlu0 %v7724_v50, %s10134_s18  ;;  %v7475_v50 = vsel %vm1665_vm0, %v10059_v22, %v15570_v2  ;;  %v7592_v2 = vsel %vm1665_vm0, %v10060_v57, %v15853_v30  ;;  %v16103_v48 = vsel %vm1906_vm1, %v7535_v20, %v15986_v37  ;;  %v10062_v33 = vld [vmem:[%s10164_s14 + $0x300] sm:$0xf]  ;;  %v10063_v22 = vld [vmem:[%s10164_s14 + $0x108] sm:$0xf] }
 0x5ee   : > { %v16027_v9 = vpop.permute.xlu1 %7351  ;;  %v16081_v8 = vsel %vm1906_vm1, %v7475_v50, %v15970_v35  ;;  %v16097_v35 = vsel %vm1906_vm1, %v7592_v2, %v15979_v18  ;;  %v7595_v58 = vsel %vm1665_vm0, %v10062_v33, %v15863_v46  ;;  %v7406_v50 = vsel %vm1665_vm0, %v10063_v22, %v15244_v42  ;;  %v10064_v20 = vld [vmem:[%s10164_s14 + $0x1a8] sm:$0xf] }
 0x5ef   : > { %v16036_v51 = vpop.permute.xlu0 %7313  ;;  %v16118_v52 = vsel %vm1906_vm1, %v7595_v58, %v15998_v13  ;;  %v16155_v2 = vsel %vm1906_vm1, %v7406_v50, %v15993_v44  ;;  %v7466_v42 = vsel %vm1665_vm0, %v10064_v20, %v15521_v45  ;;  %v10065_v58 = vld [vmem:[%s10164_s14 + $0x110] sm:$0xf]  ;;  %v10066_v45 = vld [vmem:[%s10164_s14 + $0x248] sm:$0xf] }
 0x5f0   : > { %7853 = vrot.lane.b32.xlu1 %v16034_v16, %s10133_s17  ;;  %v7409_v44 = vsel %vm1665_vm0, %v10065_v58, %v15290_v11  ;;  %v16173_v22 = vsel %vm1906_vm1, %v7466_v42, %v16003_v19  ;;  %v7526_v11 = vsel %vm1665_vm0, %v10066_v45, %v15721_v47  ;;  %v10067_v19 = vld [vmem:[%s10164_s14 + $0x1b0] sm:$0xf]  ;;  %v10068_v47 = vld [vmem:[%s10164_s14 + $0x2e8] sm:$0xf] }
 0x5f1   : > { %8091 = vrot.lane.b32.xlu0 %v7764_v0, %s10134_s18  ;;  %v7469_v42 = vsel %vm1665_vm0, %v10067_v19, %v15552_v61  ;;  %v7586_v61 = vsel %vm1665_vm0, %v10068_v47, %v15845_v27  ;;  %v10070_v47 = vld [vmem:[%s10164_s14 + $0x2f0] sm:$0xf] }
 0x5f2   : > { %v16046_v56 = vpop.permute.xlu1 %7227 }
 0x5f3   : > { %v16055_v53 = vpop.permute.xlu0 %7353 }
 0x5f4   : > { %7885 = vrot.lane.b32.xlu1 %v16053_v17, %s10133_s17 }
 0x5f5   : > { %7855 = vrot.lane.b32.xlu0 %v16059_v6, %s10133_s17 }
 0x5f6   : > { %v16068_v49 = vpop.permute.xlu1 %7267 }
 0x5f7   : > { %v16077_v29 = vpop.permute.xlu0 %7229 }
 0x5f8   : > { %7917 = vrot.lane.b32.xlu1 %v16075_v4, %s10133_s17 }
 0x5f9   : > { %7887 = vrot.lane.b32.xlu0 %v16081_v8, %s10133_s17 }
 0x5fa   : > { %v16090_v26 = vpop.permute.xlu1 %7307 }
 0x5fb   : > { %v16099_v0 = vpop.permute.xlu0 %7269 }
 0x5fc   : > { %7949 = vrot.lane.b32.xlu1 %v16097_v35, %s10133_s17 }
 0x5fd   : > { %7919 = vrot.lane.b32.xlu0 %v16103_v48, %s10133_s17 }
 0x5fe   : > { %v16109_v30 = vpop.permute.xlu1 %7347 }
 0x5ff   : > { %v16114_v18 = vpop.permute.xlu0 %7309 }
 0x600   : > { %7989 = vrot.lane.b32.xlu1 %v16059_v6, %s10134_s18 }
 0x601   : > { %7951 = vrot.lane.b32.xlu0 %v16118_v52, %s10133_s17 }
 0x602   : > { %v16124_v37 = vpop.permute.xlu1 %7219 }
 0x603   : > { %v16126_v15 = vpop.permute.xlu0 %7349 }
 0x604   : > { %8021 = vrot.lane.b32.xlu1 %v16081_v8, %s10134_s18 }
 0x605   : > { %7991 = vrot.lane.b32.xlu0 %v15920_v41, %s10134_s18 }
 0x606   : > { %v16132_v46 = vpop.permute.xlu1 %7259 }
 0x607   : > { %v16134_v13 = vpop.permute.xlu0 %7221 }
 0x608   : > { %8053 = vrot.lane.b32.xlu1 %v16103_v48, %s10134_s18 }
 0x609   : > { %8023 = vrot.lane.b32.xlu0 %v15934_v34, %s10134_s18 }
 0x60a   : > { %v16140_v5 = vpop.permute.xlu1 %7299 }
 0x60b   : > { %v16142_v43 = vpop.permute.xlu0 %7261 }
 0x60c   : > { %8085 = vrot.lane.b32.xlu1 %v16118_v52, %s10134_s18 }
 0x60d   : > { %8055 = vrot.lane.b32.xlu0 %v15951_v32, %s10134_s18 }
 0x60e   : > { %v16151_v57 = vpop.permute.xlu1 %7339 }
 0x60f   : > { %v16157_v28 = vpop.permute.xlu0 %7301 }
 0x610   : > { %18521 = vst [vmem:[#allocation226_spill] sm:$0xff] %v16157_v28  ;;  %7849 = vrot.lane.b32.xlu1 %v16155_v2, %s10133_s17  ;;  %v16179_v28 = vsel %vm1906_vm1, %v7409_v44, %v16008_v12  ;;  %v16195_v12 = vsel %vm1906_vm1, %v7526_v11, %v16013_v3  ;;  %v16201_v44 = vsel %vm1906_vm1, %v7469_v42, %v16018_v62  ;;  %v10069_v3 = vld [vmem:[%s10164_s14 + $0x250] sm:$0xf] }
 0x611   : > { %8087 = vrot.lane.b32.xlu0 %v15968_v31, %s10134_s18  ;;  %v7529_v11 = vsel %vm1665_vm0, %v10069_v3, %v15754_v24  ;;  %v16217_v62 = vsel %vm1906_vm1, %v7586_v61, %v16027_v9  ;;  %v7589_v24 = vsel %vm1665_vm0, %v10070_v47, %v15855_v38 }
 0x612   : > { %v16166_v33 = vpop.permute.xlu1 %7223  ;;  %v16223_v42 = vsel %vm1906_vm1, %v7529_v11, %v16036_v51  ;;  %v16238_v61 = vsel %vm1906_vm1, %v7589_v24, %v16055_v53  ;;  %v18530_v24 = vld [vmem:[#allocation19_spill] sm:$0xff] }
 0x613   : > { %v16175_v50 = vpop.permute.xlu0 %7341  ;;  %18522 = vst [vmem:[#allocation330_spill] sm:$0xff] %v16223_v42  ;;  %18523 = vst [vmem:[#allocation331_spill] sm:$0xff] %v16238_v61 }
 0x614   : > { %7881 = vrot.lane.b32.xlu1 %v16173_v22, %s10133_s17 }
 0x615   : > { %7851 = vrot.lane.b32.xlu0 %v16179_v28, %s10133_s17 }
 0x616   : > { %v16188_v20 = vpop.permute.xlu1 %7303 }
 0x617   : > { %v16197_v58 = vpop.permute.xlu0 %7263 }
 0x618   : > { %7913 = vrot.lane.b32.xlu1 %v16195_v12, %s10133_s17 }
 0x619   : > { %7883 = vrot.lane.b32.xlu0 %v16201_v44, %s10133_s17 }
 0x61a   : > { %v16210_v45 = vpop.permute.xlu1 %7215 }
 0x61b   : > { %v16219_v19 = vpop.permute.xlu0 %7343 }
 0x61c   : > { %7945 = vrot.lane.b32.xlu1 %v16217_v62, %s10133_s17 }
 0x61d   : > { %7915 = vrot.lane.b32.xlu0 %v16223_v42, %s10133_s17 }
 0x61e   : > { %v16229_v27 = vpop.permute.xlu1 %7255 }
 0x61f   : > { %v16234_v9 = vpop.permute.xlu0 %7217 }
 0x620   : > { %7985 = vrot.lane.b32.xlu1 %v16179_v28, %s10134_s18 }
 0x621   : > { %7947 = vrot.lane.b32.xlu0 %v16238_v61, %s10133_s17 }
 0x622   : > { %v16244_v51 = vpop.permute.xlu1 %7295 }
 0x623   : > { %18524 = vst [vmem:[#allocation223_spill] sm:$0xff] %v16244_v51  ;;  %v16246_v3 = vpop.permute.xlu0 %7257 }
 0x624   : > { %18525 = vst [vmem:[#allocation206_spill] sm:$0xff] %v16246_v3  ;;  %8017 = vrot.lane.b32.xlu1 %v16201_v44, %s10134_s18  ;;  %v7135_v3 = vrot.slane %v18530_v24, 1 }
 0x625   : > { %7987 = vrot.lane.b32.xlu0 %v16034_v16, %s10134_s18 }
 0x626   : > { %v16252_v38 = vpop.permute.xlu1 %7335 }
 0x627   : > { %18526 = vst [vmem:[#allocation227_spill] sm:$0xff] %v16252_v38  ;;  %v16254_v53 = vpop.permute.xlu0 %7297 }
 0x628   : > { %18527 = vst [vmem:[#allocation281_spill] sm:$0xff] %v16254_v53  ;;  %8049 = vrot.lane.b32.xlu1 %v16223_v42, %s10134_s18  ;;  %v18533_v42 = vld [vmem:[#allocation219_spill] sm:$0xff] }
 0x629   : > { %8019 = vrot.lane.b32.xlu0 %v16053_v17, %s10134_s18 }
 0x62a   : > { %v16260_v11 = vpop.permute.xlu1 %7251 }
 0x62b   : > { %18528 = vst [vmem:[#allocation247_spill] sm:$0xff] %v16260_v11  ;;  %v16262_v47 = vpop.permute.xlu0 %7337  ;;  %v7175_v11 = vrot.slane %v18533_v42, 1 }
 0x62c   : > { %18529 = vst [vmem:[#allocation235_spill] sm:$0xff] %v16262_v47  ;;  %8081 = vrot.lane.b32.xlu1 %v16238_v61, %s10134_s18  ;;  %v18534_v47 = vld [vmem:[#allocation72_spill] sm:$0xff] }
 0x62d   : > { %8051 = vrot.lane.b32.xlu0 %v16075_v4, %s10134_s18  ;;  %v7155_v51 = vrot.slane %v18534_v47, 1 }
 0x62e   : > { %v16269_v53 = vpop.permute.xlu1 %7291 }
 0x62f   : > { %18531 = vst [vmem:[#allocation218_spill] sm:$0xff] %v16269_v53  ;;  %v16271_v38 = vpop.permute.xlu0 %7253 }
 0x630   : > { %18532 = vst [vmem:[#allocation41_spill] sm:$0xff] %v16271_v38  ;;  %7225 = vrot.lane.b32.xlu1 %v7135_v3, %s10132_s16  ;;  %v7195_v38 = vrot.slane %v15156_v55, 1  ;;  %v10071_v3 = vld [vmem:[%s10164_s14 + $0xf8] sm:$0xf] }
 0x631   : > { %8083 = vrot.lane.b32.xlu0 %v16097_v35, %s10134_s18  ;;  %v7400_v42 = vsel %vm1665_vm0, %v10071_v3, %v15216_v54  ;;  %v10072_v55 = vld [vmem:[%s10164_s14 + $0x198] sm:$0xf] }
 0x632   : > { %v16278_v61 = vpop.permute.xlu1 %7331  ;;  %v16292_v47 = vsel %vm1906_vm1, %v7400_v42, %v16046_v56 }
 0x633   : > { %18535 = vst [vmem:[#allocation326_spill] sm:$0xff] %v16278_v61  ;;  %v16280_v24 = vpop.permute.xlu0 %7293 }
 0x634   : > { %7305 = vrot.lane.b32.xlu1 %v7175_v11, %s10132_s16  ;;  %v10073_v11 = vld [vmem:[%s10164_s14 + $0x100] sm:$0xf] }
 0x635   : > { %7265 = vrot.lane.b32.xlu0 %v7155_v51, %s10132_s16  ;;  %v7460_v51 = vsel %vm1665_vm0, %v10072_v55, %v15503_v36  ;;  %v7403_v3 = vsel %vm1665_vm0, %v10073_v11, %v15257_v25  ;;  %v10074_v36 = vld [vmem:[%s10164_s14 + $0x238] sm:$0xf] }
 0x636   : > { %v16288_v53 = vpop.permute.xlu1 %7247  ;;  %v16309_v56 = vsel %vm1906_vm1, %v7460_v51, %v16068_v49  ;;  %v7520_v25 = vsel %vm1665_vm0, %v10074_v36, %v15703_v63  ;;  %v10075_v49 = vld [vmem:[%s10164_s14 + $0x1a0] sm:$0xf]  ;;  %v10076_v63 = vld [vmem:[%s10164_s14 + $0x2d8] sm:$0xf] }
 0x637   : > { %18536 = vst [vmem:[#allocation327_spill] sm:$0xff] %v16288_v53  ;;  %v16294_v61 = vpop.permute.xlu0 %7333  ;;  %v7463_v51 = vsel %vm1665_vm0, %v10075_v49, %v15530_v21  ;;  %v7580_v21 = vsel %vm1665_vm0, %v10076_v63, %v15837_v10  ;;  %v10078_v63 = vld [vmem:[%s10164_s14 + $0x2e0] sm:$0xf] }
 0x638   : > { %7845 = vrot.lane.b32.xlu1 %v16292_v47, %s10133_s17  ;;  %v16351_v49 = vsel %vm1906_vm1, %v7580_v21, %v16109_v30 }
 0x639   : > { %7345 = vrot.lane.b32.xlu0 %v7195_v38, %s10132_s16  ;;  %v16315_v38 = vsel %vm1906_vm1, %v7403_v3, %v16077_v29  ;;  %v16331_v29 = vsel %vm1906_vm1, %v7520_v25, %v16090_v26  ;;  %v16337_v3 = vsel %vm1906_vm1, %v7463_v51, %v16099_v0  ;;  %v10077_v26 = vld [vmem:[%s10164_s14 + $0x240] sm:$0xf]  ;;  %18541 = vst [vmem:[#allocation277_spill] sm:$0xff] %v16351_v49 }
 0x63a   : > { %v16302_v54 = vpop.permute.xlu1 %7287  ;;  %18539 = vst [vmem:[#allocation261_spill] sm:$0xff] %v16331_v29  ;;  %v7523_v25 = vsel %vm1665_vm0, %v10077_v26, %v15730_v14  ;;  %v7583_v14 = vsel %vm1665_vm0, %v10078_v63, %v15847_v40 }
 0x63b   : > { %18537 = vst [vmem:[#allocation260_spill] sm:$0xff] %v16302_v54  ;;  %v16311_v42 = vpop.permute.xlu0 %7249  ;;  %v16357_v51 = vsel %vm1906_vm1, %v7523_v25, %v16114_v18  ;;  %v16368_v30 = vsel %vm1906_vm1, %v7583_v14, %v16126_v15  ;;  %v10079_v14 = vld [vmem:[%s10164_s14 + $0xd8] sm:$0xf] }
 0x63c   : > { %7877 = vrot.lane.b32.xlu1 %v16309_v56, %s10133_s17 }
 0x63d   : > { %7847 = vrot.lane.b32.xlu0 %v16315_v38, %s10133_s17 }
 0x63e   : > { %v16324_v55 = vpop.permute.xlu1 %7327 }
 0x63f   : > { %18538 = vst [vmem:[#allocation309_spill] sm:$0xff] %v16324_v55  ;;  %v16333_v11 = vpop.permute.xlu0 %7289  ;;  %v7388_v55 = vsel %vm1665_vm0, %v10079_v14, %v15153_v1  ;;  %v10080_v1 = vld [vmem:[%s10164_s14 + $0xe0] sm:$0xf] }
 0x640   : > { %18540 = vst [vmem:[#allocation310_spill] sm:$0xff] %v16333_v11  ;;  %7909 = vrot.lane.b32.xlu1 %v16331_v29, %s10133_s17 }
 0x641   : > { %7879 = vrot.lane.b32.xlu0 %v16337_v3, %s10133_s17 }
 0x642   : > { %v7858_v36 = vpop.permute.xlu1 %7857 }
 0x643   : > { %v16353_v0 = vpop.permute.xlu0 %7329  ;;  %v8122_v53 = vsel %vm2395_vm3, %v16059_v6, %v7858_v36 }
 0x644   : > { %18542 = vst [vmem:[#allocation191_spill] sm:$0xff] %v16353_v0  ;;  %7941 = vrot.lane.b32.xlu1 %v16351_v49, %s10133_s17  ;;  %v16391_v0 = vsel %vm1906_vm1, %v7388_v55, %v16124_v37  ;;  %v7391_v37 = vsel %vm1665_vm0, %v10080_v1, %v15189_v60  ;;  %v10081_v55 = vld [vmem:[%s10164_s14 + $0x178] sm:$0xf] }
 0x645   : > { %7911 = vrot.lane.b32.xlu0 %v16357_v51, %s10133_s17  ;;  %v7622_v1 = vsel %vm1906_vm1, %v7391_v37, %v16134_v13 }
 0x646   : > { %v7890_v10 = vpop.permute.xlu1 %7889 }
 0x647   : > { %v7860_v26 = vpop.permute.xlu0 %7859  ;;  %v8154_v6 = vsel %vm2395_vm3, %v16081_v8, %v7890_v10 }
 0x648   : > { %7981 = vrot.lane.b32.xlu1 %v16315_v38, %s10134_s18  ;;  %v8124_v54 = vsel %vm2395_vm3, %v15920_v41, %v7860_v26  ;;  %v7448_v41 = vsel %vm1665_vm0, %v10081_v55, %v15464_v59 }
 0x649   : > { %7943 = vrot.lane.b32.xlu0 %v16368_v30, %s10133_s17  ;;  %v16411_v26 = vsel %vm1906_vm1, %v7448_v41, %v16132_v46  ;;  %v18543_v41 = vld [vmem:[#allocation244_spill] sm:$0xff] }
 0x64a   : > { %v7922_v18 = vpop.permute.xlu1 %7921 }
 0x64b   : > { %v7892_v21 = vpop.permute.xlu0 %7891 }
 0x64c   : > { %8013 = vrot.lane.b32.xlu1 %v16337_v3, %s10134_s18  ;;  %v8156_v36 = vsel %vm2395_vm3, %v15934_v34, %v7892_v21 }
 0x64d   : > { %7983 = vrot.lane.b32.xlu0 %v16155_v2, %s10134_s18 }
 0x64e   : > { %v7954_v40 = vpop.permute.xlu1 %7953 }
 0x64f   : > { %v7924_v25 = vpop.permute.xlu0 %7923 }
 0x650   : > { %8045 = vrot.lane.b32.xlu1 %v16357_v51, %s10134_s18  ;;  %v8188_v10 = vsel %vm2395_vm3, %v15951_v32, %v7924_v25  ;;  %v10084_v32 = vld [vmem:[%s10164_s14 + $0x220] sm:$0xf]  ;;  %v10085_v25 = vld [vmem:[%s10164_s14 + $0x2b8] sm:$0xf] }
 0x651   : > { %8015 = vrot.lane.b32.xlu0 %v16173_v22, %s10134_s18 }
 0x652   : > { %v7994_v15 = vpop.permute.xlu1 %7993 }
 0x653   : > { %v7956_v63 = vpop.permute.xlu0 %7955 }
 0x654   : > { %8077 = vrot.lane.b32.xlu1 %v16368_v30, %s10134_s18 }
 0x655   : > { %8047 = vrot.lane.b32.xlu0 %v16195_v12, %s10134_s18 }
 0x656   : > { %v8026_v49 = vpop.permute.xlu1 %8025 }
 0x657   : > { %v7996_v29 = vpop.permute.xlu0 %7995  ;;  %v8282_v59 = vsel %vm2524_vm4, %v8154_v6, %v8026_v49 }
 0x658   : > { %v8252_v11 = vsel %vm2524_vm4, %v8124_v54, %v7996_v29  ;;  %7841 = vrot.lane.b32.xlu1 %v16391_v0, %s10133_s17  ;;  %v8250_v54 = vsel %vm2524_vm4, %v8122_v53, %v7994_v15  ;;  %v10082_v15 = vld [vmem:[%s10164_s14 + $0x218] sm:$0xf] }
 0x659   : > { %8079 = vrot.lane.b32.xlu0 %v16217_v62, %s10134_s18  ;;  %v9432_v60 = vcombine.low %v8250_v54, %v8252_v11  ;;  %v7508_v34 = vsel %vm1665_vm0, %v10082_v15, %v15665_v39  ;;  %v10083_v11 = vld [vmem:[%s10164_s14 + $0x180] sm:$0xf] }
 0x65a   : > { %v8058_v29 = vpop.permute.xlu1 %8057  ;;  %v7451_v13 = vsel %vm1665_vm0, %v10083_v11, %v15491_v7  ;;  %v16432_v49 = vsel %vm1906_vm1, %v7508_v34, %v16140_v5  ;;  %v8186_v7 = vsel %vm2395_vm3, %v16103_v48, %v7922_v18  ;;  %v7511_v5 = vsel %vm1665_vm0, %v10084_v32, %v15692_v23  ;;  %v10087_v11 = vld [vmem:[%s10164_s14 + $0xe8] sm:$0xf] }
 0x65b   : > { %v8028_v14 = vpop.permute.xlu0 %8027  ;;  %v8536_v37 = vsel %vm5321_vm2, %v9432_v60, 0  ;;  %v7662_v39 = vsel %vm1906_vm1, %v7451_v13, %v16142_v43  ;;  %v7568_v43 = vsel %vm1665_vm0, %v10085_v25, %v18543_v41  ;;  %v8314_v54 = vsel %vm2524_vm4, %v8186_v7, %v8058_v29  ;;  %v18546_v13 = vld [vmem:[#allocation236_spill] sm:$0xff]  ;;  %v18548_v25 = vld [vmem:[#allocation25_spill] sm:$0xff] }
 0x65c   : > { %v8284_v53 = vsel %vm2524_vm4, %v8156_v36, %v8028_v14  ;;  %7873 = vrot.lane.b32.xlu1 %v16411_v26, %s10133_s17  ;;  %v16455_v36 = vsel %vm1906_vm1, %v7568_v43, %v16151_v57  ;;  %v8218_v48 = vsel %vm2395_vm3, %v16118_v52, %v7954_v40  ;;  %v8220_v18 = vsel %vm2395_vm3, %v15968_v31, %v7956_v63  ;;  %v18544_v14 = vld [vmem:[#allocation226_spill] sm:$0xff] }
 0x65d   : > { %v9440_v46 = vcombine.low %v8282_v59, %v8284_v53  ;;  %7843 = vrot.lane.b32.xlu0 %v7622_v1, %s10133_s17  ;;  %v7702_v59 = vsel %vm1906_vm1, %v7511_v5, %v18544_v14  ;;  %v10086_v40 = vld [vmem:[%s10164_s14 + $0x2c0] sm:$0xf] }
 0x65e   : > { %v8090_v8 = vpop.permute.xlu1 %8089  ;;  %v18550_v14 = vld [vmem:[#allocation230_spill] sm:$0xff] }
 0x65f   : > { %9606 = vmatprep.subr.msk.bf16.mxu0 %vm5321_vm2, %v9440_v46  ;;  %v8060_v21 = vpop.permute.xlu0 %8059  ;;  %v8346_v53 = vsel %vm2524_vm4, %v8218_v48, %v8090_v8  ;;  %v18545_v46 = vld [vmem:[#allocation211_spill] sm:$0xff]  ;;  %v18549_v48 = vld [vmem:[#allocation30_spill] sm:$0xff] }
 0x660   : > { %v8316_v55 = vsel %vm2524_vm4, %v8188_v10, %v8060_v21  ;;  %9539 = vmatpush3.bf16.xpose.msra.mxu0 %v8536_v37  ;;  %7905 = vrot.lane.b32.xlu1 %v16432_v49, %s10133_s17  ;;  %v7571_v31 = vsel %vm1665_vm0, %v10086_v40, %v18545_v46  ;;  %v7394_v10 = vsel %vm1665_vm0, %v10087_v11, %v18546_v13 }
 0x661   : > { %7875 = vrot.lane.b32.xlu0 %v7662_v39, %s10133_s17  ;;  %v9448_v60 = vcombine.low %v8314_v54, %v8316_v55  ;;  %v7742_v34 = vsel %vm1906_vm1, %v7571_v31, %v16175_v50  ;;  %v7624_v37 = vsel %vm1906_vm1, %v7394_v10, %v16166_v33  ;;  %v18547_v55 = vld [vmem:[#allocation293_spill] sm:$0xff]  ;;  %v10092_v31 = vld [vmem:[%s10164_s14 + $0xd0] sm:$0xf] }
 0x662   : > { %v7854_v6 = vpop.permute.xlu1 %7853 }
 0x663   : > { %v8092_v23 = vpop.permute.xlu0 %8091  ;;  %v8584_v15 = vsel %vm5321_vm2, %v9448_v60, 0  ;;  %v8118_v46 = vsel %vm2395_vm3, %v16179_v28, %v7854_v6 }
 0x664   : > { %v8348_v29 = vsel %vm2524_vm4, %v8220_v18, %v8092_v23  ;;  %7937 = vrot.lane.b32.xlu1 %v16455_v36, %s10133_s17  ;;  %v10091_v23 = vld [vmem:[%s10164_s14 + $0x2c8] sm:$0xf] }
 0x665   : > { %v9456_v57 = vcombine.low %v8346_v53, %v8348_v29  ;;  %7907 = vrot.lane.b32.xlu0 %v7702_v59, %s10133_s17 }
 0x666   : > { %v7886_v52 = vpop.permute.xlu1 %7885 }
 0x667   : > { %9614 = vmatprep.subr.msk.bf16.mxu1 %vm5321_vm2, %v9456_v57  ;;  %v7856_v63 = vpop.permute.xlu0 %7855  ;;  %v8150_v28 = vsel %vm2395_vm3, %v16201_v44, %v7886_v52  ;;  %v10094_v44 = vld [vmem:[%s10164_s14 + $0x208] sm:$0xf] }
 0x668   : > { %9557 = vmatpush3.bf16.xpose.msra.mxu1 %v8584_v15  ;;  %7977 = vrot.lane.b32.xlu1 %v7622_v1, %s10134_s18  ;;  %v10088_v1 = vld [vmem:[%s10164_s14 + $0x188] sm:$0xf] }
 0x669   : > { %7939 = vrot.lane.b32.xlu0 %v7742_v34, %s10133_s17  ;;  %v7454_v7 = vsel %vm1665_vm0, %v10088_v1, %v18547_v55  ;;  %v18553_v52 = vld [vmem:[#allocation287_spill] sm:$0xff] }
 0x66a   : > { %v16477_v8 = vpop.permute.xlu1 %7917  ;;  %v7664_v5 = vsel %vm1906_vm1, %v7454_v7, %v16197_v58  ;;  %v10090_v58 = vld [vmem:[%s10164_s14 + $0xc8] sm:$0xf] }
 0x66b   : > { %v7888_v21 = vpop.permute.xlu0 %7887  ;;  %v7382_v18 = vsel %vm1665_vm0, %v10090_v58, %v18549_v48  ;;  %v18556_v48 = vld [vmem:[#allocation206_spill] sm:$0xff] }
 0x66c   : > { %8009 = vrot.lane.b32.xlu1 %v7662_v39, %s10134_s18  ;;  %v10089_v39 = vld [vmem:[%s10164_s14 + $0x228] sm:$0xf]  ;;  %v16510_v53 = vsel %vm1906_vm1, %v7382_v18, %v16210_v45  ;;  %v18551_v45 = vld [vmem:[#allocation288_spill] sm:$0xff]  ;;  %v8152_v6 = vsel %vm2395_vm3, %v16053_v17, %v7888_v21  ;;  %v7502_v17 = vsel %vm1665_vm0, %v10094_v44, %v18553_v52 }
 0x66d   : > { %7979 = vrot.lane.b32.xlu0 %v7624_v37, %s10134_s18  ;;  %v7514_v41 = vsel %vm1665_vm0, %v10089_v39, %v18548_v25  ;;  %v7385_v15 = vsel %vm1665_vm0, %v10092_v31, %v18551_v45  ;;  %v18555_v39 = vld [vmem:[#allocation223_spill] sm:$0xff] }
 0x66e   : > { %v16486_v50 = vpop.permute.xlu1 %7949  ;;  %v7704_v54 = vsel %vm1906_vm1, %v7514_v41, %v16188_v20  ;;  %v8120_v20 = vsel %vm2395_vm3, %v16034_v16, %v7856_v63  ;;  %v10093_v16 = vld [vmem:[%s10164_s14 + $0x168] sm:$0xf]  ;;  %v18552_v63 = vld [vmem:[#allocation22_spill] sm:$0xff]  ;;  %v16539_v1 = vsel %vm1906_vm1, %v7385_v15, %v16234_v9  ;;  %v10095_v9 = vld [vmem:[%s10164_s14 + $0x170] sm:$0xf]  ;;  %v16555_v25 = vsel %vm1906_vm1, %v7502_v17, %v18555_v39 }
 0x66f   : > { %v7920_v32 = vpop.permute.xlu0 %7919  ;;  %v18560_v31 = vld [vmem:[#allocation227_spill] sm:$0xff]  ;;  %v10099_v39 = vld [vmem:[%s10164_s14 + $0xb8] sm:$0xf] }
 0x670   : > { %8041 = vrot.lane.b32.xlu1 %v7702_v59, %s10134_s18  ;;  %v7574_v59 = vsel %vm1665_vm0, %v10091_v23, %v18550_v14  ;;  %v8184_v41 = vsel %vm2395_vm3, %v16075_v4, %v7920_v32  ;;  %v18557_v23 = vld [vmem:[#allocation330_spill] sm:$0xff]  ;;  %v10096_v4 = vld [vmem:[%s10164_s14 + $0x210] sm:$0xf]  ;;  %v18558_v32 = vld [vmem:[#allocation57_spill] sm:$0xff] }
 0x671   : > { %8011 = vrot.lane.b32.xlu0 %v7664_v5, %s10134_s18  ;;  %v7744_v57 = vsel %vm1906_vm1, %v7574_v59, %v16219_v19  ;;  %v18554_v5 = vld [vmem:[#allocation215_spill] sm:$0xff]  ;;  %v8182_v14 = vsel %vm2395_vm3, %v18557_v23, %v16477_v8  ;;  %v7505_v59 = vsel %vm1665_vm0, %v10096_v4, %v18558_v32 }
 0x672   : > { %v7990_v33 = vpop.permute.xlu1 %7989  ;;  %v18561_v8 = vld [vmem:[#allocation331_spill] sm:$0xff] }
 0x673   : > { %v7952_v43 = vpop.permute.xlu0 %7951  ;;  %v8246_v19 = vsel %vm2524_vm4, %v8118_v46, %v7990_v33  ;;  %v7445_v33 = vsel %vm1665_vm0, %v10095_v9, %v18554_v5  ;;  %v8214_v15 = vsel %vm2395_vm3, %v18561_v8, %v16486_v50 }
 0x674   : > { %8073 = vrot.lane.b32.xlu1 %v7742_v34, %s10134_s18  ;;  %v7442_v34 = vsel %vm1665_vm0, %v10093_v16, %v18552_v63  ;;  %v16563_v18 = vsel %vm1906_vm1, %v7445_v33, %v18556_v48  ;;  %v8216_v16 = vsel %vm2395_vm3, %v16097_v35, %v7952_v43  ;;  %v18563_v35 = vld [vmem:[#allocation207_spill] sm:$0xff]  ;;  %v18566_v48 = vld [vmem:[#allocation292_spill] sm:$0xff] }
 0x675   : > { %8043 = vrot.lane.b32.xlu0 %v7704_v54, %s10134_s18  ;;  %v16531_v13 = vsel %vm1906_vm1, %v7442_v34, %v16229_v27 }
 0x676   : > { %v8022_v60 = vpop.permute.xlu1 %8021 }
 0x677   : > { %v7992_v29 = vpop.permute.xlu0 %7991  ;;  %v8278_v55 = vsel %vm2524_vm4, %v8150_v28, %v8022_v60 }
 0x678   : > { %v8248_v40 = vsel %vm2524_vm4, %v8120_v20, %v7992_v29  ;;  %7837 = vrot.lane.b32.xlu1 %v16510_v53, %s10133_s17  ;;  %v10097_v20 = vld [vmem:[%s10164_s14 + $0x2a8] sm:$0xf]  ;;  %v18559_v29 = vld [vmem:[#allocation252_spill] sm:$0xff] }
 0x679   : > { %8075 = vrot.lane.b32.xlu0 %v7744_v57, %s10134_s18  ;;  %v9431_v10 = vcombine.low %v8246_v19, %v8248_v40  ;;  %v7562_v57 = vsel %vm1665_vm0, %v10097_v20, %v18559_v29  ;;  %v18562_v19 = vld [vmem:[#allocation281_spill] sm:$0xff]  ;;  %v18567_v20 = vld [vmem:[#allocation94_spill] sm:$0xff] }
 0x67a   : > { %v8054_v11 = vpop.permute.xlu1 %8053  ;;  %v16582_v45 = vsel %vm1906_vm1, %v7562_v57, %v18560_v31  ;;  %v16591_v28 = vsel %vm1906_vm1, %v7505_v59, %v18562_v19  ;;  %v10100_v59 = vld [vmem:[%s10164_s14 + $0xc0] sm:$0xf]  ;;  %v10101_v57 = vld [vmem:[%s10164_s14 + $0x158] sm:$0xf]  ;;  %v18570_v19 = vld [vmem:[#allocation283_spill] sm:$0xff] }
 0x67b   : > { %v8024_v37 = vpop.permute.xlu0 %8023  ;;  %v8533_v58 = vsel %vm5321_vm2, %v9431_v10, 0  ;;  %v8310_v40 = vsel %vm2524_vm4, %v8182_v14, %v8054_v11  ;;  %v7379_v29 = vsel %vm1665_vm0, %v10100_v59, %v18567_v20 }
 0x67c   : > { %v8280_v7 = vsel %vm2524_vm4, %v8152_v6, %v8024_v37  ;;  %7869 = vrot.lane.b32.xlu1 %v16531_v13, %s10133_s17  ;;  %v10098_v37 = vld [vmem:[%s10164_s14 + $0x2b0] sm:$0xf] }
 0x67d   : > { %v9439_v27 = vcombine.low %v8278_v55, %v8280_v7  ;;  %7839 = vrot.lane.b32.xlu0 %v16539_v1, %s10133_s17  ;;  %v7565_v43 = vsel %vm1665_vm0, %v10098_v37, %v18563_v35 }
 0x67e   : > { %v8086_v21 = vpop.permute.xlu1 %8085 }
 0x67f   : > { %9607 = vmatprep.subr.msk.bf16.mxu0 %vm5321_vm2, %v9439_v27  ;;  %v8056_v54 = vpop.permute.xlu0 %8055  ;;  %v8342_v11 = vsel %vm2524_vm4, %v8214_v15, %v8086_v21  ;;  %v18564_v27 = vld [vmem:[#allocation235_spill] sm:$0xff] }
 0x680   : > { %v8312_v60 = vsel %vm2524_vm4, %v8184_v41, %v8056_v54  ;;  %9541 = vmatpush3.bf16.xpose.msra.mxu0 %v8533_v58  ;;  %7901 = vrot.lane.b32.xlu1 %v16555_v25, %s10133_s17  ;;  %v16606_v44 = vsel %vm1906_vm1, %v7565_v43, %v18564_v27  ;;  %v18565_v41 = vld [vmem:[#allocation291_spill] sm:$0xff]  ;;  %v10103_v43 = vld [vmem:[%s10164_s14 + $0x160] sm:$0xf] }
 0x681   : > { %7871 = vrot.lane.b32.xlu0 %v16563_v18, %s10133_s17  ;;  %v9447_v63 = vcombine.low %v8310_v40, %v8312_v60  ;;  %v7376_v54 = vsel %vm1665_vm0, %v10099_v39, %v18565_v41  ;;  %v18568_v40 = vld [vmem:[#allocation296_spill] sm:$0xff]  ;;  %v18569_v15 = vld [vmem:[#allocation247_spill] sm:$0xff]  ;;  %v18573_v27 = vld [vmem:[#allocation218_spill] sm:$0xff] }
 0x682   : > { %v7850_v46 = vpop.permute.xlu1 %7849  ;;  %v16629_v60 = vsel %vm1906_vm1, %v7376_v54, %v18566_v48  ;;  %v18574_v54 = vld [vmem:[#allocation41_spill] sm:$0xff] }
 0x683   : > { %v8088_v34 = vpop.permute.xlu0 %8087  ;;  %v8581_v7 = vsel %vm5321_vm2, %v9447_v63, 0  ;;  %v8114_v32 = vsel %vm2395_vm3, %v16315_v38, %v7850_v46 }
 0x684   : > { %v8344_v6 = vsel %vm2524_vm4, %v8216_v16, %v8088_v34  ;;  %7933 = vrot.lane.b32.xlu1 %v16582_v45, %s10133_s17 }
 0x685   : > { %v9455_v10 = vcombine.low %v8342_v11, %v8344_v6  ;;  %7903 = vrot.lane.b32.xlu0 %v16591_v28, %s10133_s17  ;;  %v16657_v11 = vsel %vm1906_vm1, %v7379_v29, %v18570_v19 }
 0x686   : > { %v7882_v50 = vpop.permute.xlu1 %7881 }
 0x687   : > { %9615 = vmatprep.subr.msk.bf16.mxu1 %vm5321_vm2, %v9455_v10  ;;  %v7852_v55 = vpop.permute.xlu0 %7851  ;;  %v8146_v38 = vsel %vm2395_vm3, %v16337_v3, %v7882_v50  ;;  %v10102_v3 = vld [vmem:[%s10164_s14 + $0x1f8] sm:$0xf]  ;;  %v18571_v50 = vld [vmem:[#allocation286_spill] sm:$0xff] }
 0x688   : > { %9559 = vmatpush3.bf16.xpose.msra.mxu1 %v8581_v7  ;;  %7973 = vrot.lane.b32.xlu1 %v16539_v1, %s10134_s18  ;;  %v8116_v23 = vsel %vm2395_vm3, %v16155_v2, %v7852_v55  ;;  %v7436_v2 = vsel %vm1665_vm0, %v10101_v57, %v18568_v40  ;;  %v18572_v55 = vld [vmem:[#allocation254_spill] sm:$0xff] }
 0x689   : > { %7935 = vrot.lane.b32.xlu0 %v16606_v44, %s10133_s17  ;;  %v16649_v16 = vsel %vm1906_vm1, %v7436_v2, %v18569_v15  ;;  %v7439_v7 = vsel %vm1665_vm0, %v10103_v43, %v18572_v55  ;;  %v18577_v57 = vld [vmem:[#allocation326_spill] sm:$0xff]  ;;  %v18580_v55 = vld [vmem:[#allocation263_spill] sm:$0xff] }
 0x68a   : > { %v7914_v52 = vpop.permute.xlu1 %7913 }
 0x68b   : > { %v7884_v17 = vpop.permute.xlu0 %7883 }
 0x68c   : > { %8005 = vrot.lane.b32.xlu1 %v16563_v18, %s10134_s18  ;;  %v8148_v46 = vsel %vm2395_vm3, %v16173_v22, %v7884_v17  ;;  %v7496_v22 = vsel %vm1665_vm0, %v10102_v3, %v18571_v50  ;;  %v18579_v50 = vld [vmem:[#allocation43_spill] sm:$0xff] }
 0x68d   : > { %7975 = vrot.lane.b32.xlu0 %v16391_v0, %s10134_s18  ;;  %v16673_v17 = vsel %vm1906_vm1, %v7496_v22, %v18573_v27  ;;  %v7145_v22 = vrot.slane %v18579_v50, 1  ;;  %v18581_v27 = vld [vmem:[#allocation153_spill] sm:$0xff] }
 0x68e   : > { %v7946_v21 = vpop.permute.xlu1 %7945 }
 0x68f   : > { %v7916_v9 = vpop.permute.xlu0 %7915 }
 0x690   : > { %8037 = vrot.lane.b32.xlu1 %v16591_v28, %s10134_s18 }
 0x691   : > { %8007 = vrot.lane.b32.xlu0 %v16411_v26, %s10134_s18 }
 0x692   : > { %v7986_v5 = vpop.permute.xlu1 %7985 }
 0x693   : > { %v7948_v33 = vpop.permute.xlu0 %7947  ;;  %v8242_v31 = vsel %vm2524_vm4, %v8114_v32, %v7986_v5  ;;  %v8180_v5 = vsel %vm2395_vm3, %v16195_v12, %v7916_v9  ;;  %v10104_v12 = vld [vmem:[%s10164_s14 + $0x200] sm:$0xf]  ;;  %v18576_v32 = vld [vmem:[#allocation237_spill] sm:$0xff] }
 0x694   : > { %8069 = vrot.lane.b32.xlu1 %v16606_v44, %s10134_s18  ;;  %v18575_v9 = vld [vmem:[#allocation234_spill] sm:$0xff] }
 0x695   : > { %8039 = vrot.lane.b32.xlu0 %v16432_v49, %s10134_s18 }
 0x696   : > { %v8018_v58 = vpop.permute.xlu1 %8017 }
 0x697   : > { %v7988_v14 = vpop.permute.xlu0 %7987  ;;  %v8274_v6 = vsel %vm2524_vm4, %v8146_v38, %v8018_v58  ;;  %v16681_v58 = vsel %vm1906_vm1, %v7439_v7, %v18574_v54  ;;  %v7185_v7 = vrot.slane %v18580_v55, 1  ;;  %v10107_v54 = vld [vmem:[%s10164_s14 + $0xb0] sm:$0xf] }
 0x698   : > { %v8244_v4 = vsel %vm2524_vm4, %v8116_v23, %v7988_v14  ;;  %7833 = vrot.lane.b32.xlu1 %v16629_v60, %s10133_s17  ;;  %v8178_v23 = vsel %vm2395_vm3, %v16357_v51, %v7914_v52  ;;  %v7499_v14 = vsel %vm1665_vm0, %v10104_v12, %v18575_v9  ;;  %v8210_v51 = vsel %vm2395_vm3, %v16368_v30, %v7946_v21  ;;  %v18578_v21 = vld [vmem:[#allocation222_spill] sm:$0xff]  ;;  %v10108_v9 = vld [vmem:[%s10164_s14 + $0xa8] sm:$0xf] }
 0x699   : > { %8071 = vrot.lane.b32.xlu0 %v16455_v36, %s10134_s18  ;;  %v9430_v63 = vcombine.low %v8242_v31, %v8244_v4  ;;  %v10105_v4 = vld [vmem:[%s10164_s14 + $0x298] sm:$0xf]  ;;  %v8212_v52 = vsel %vm2395_vm3, %v16217_v62, %v7948_v33  ;;  %v16707_v15 = vsel %vm1906_vm1, %v7499_v14, %v16280_v24  ;;  %v10106_v62 = vld [vmem:[%s10164_s14 + $0x2a0] sm:$0xf] }
 0x69a   : > { %v8050_v8 = vpop.permute.xlu1 %8049  ;;  %v7556_v59 = vsel %vm1665_vm0, %v10105_v4, %v18576_v32  ;;  %v7559_v33 = vsel %vm1665_vm0, %v10106_v62, %v18578_v21  ;;  %v18583_v14 = vld [vmem:[#allocation298_spill] sm:$0xff]  ;;  %v10109_v32 = vld [vmem:[%s10164_s14 + $0xf0] sm:$0xf]  ;;  %v18587_v21 = vld [vmem:[#allocation249_spill] sm:$0xff] }
 0x69b   : > { %v8020_v34 = vpop.permute.xlu0 %8019  ;;  %v8530_v41 = vsel %vm5321_vm2, %v9430_v63, 0  ;;  %v8306_v20 = vsel %vm2524_vm4, %v8178_v23, %v8050_v8  ;;  %v16699_v40 = vsel %vm1906_vm1, %v7556_v59, %v18577_v57  ;;  %v7370_v4 = vsel %vm1665_vm0, %v10108_v9, %v18583_v14  ;;  %v18584_v59 = vld [vmem:[#allocation289_spill] sm:$0xff]  ;;  %v18585_v57 = vld [vmem:[#allocation240_spill] sm:$0xff]  ;;  %v18590_v14 = vld [vmem:[#allocation327_spill] sm:$0xff] }
 0x69c   : > { %v8276_v10 = vsel %vm2524_vm4, %v8148_v46, %v8020_v34  ;;  %7865 = vrot.lane.b32.xlu1 %v16649_v16, %s10133_s17  ;;  %v16724_v34 = vsel %vm1906_vm1, %v7559_v33, %v16294_v61  ;;  %v10110_v62 = vld [vmem:[%s10164_s14 + $0x190] sm:$0xf] }
 0x69d   : > { %v9438_v37 = vcombine.low %v8274_v6, %v8276_v10  ;;  %7835 = vrot.lane.b32.xlu0 %v16657_v11, %s10133_s17  ;;  %v7457_v33 = vsel %vm1665_vm0, %v10110_v62, %v18587_v21 }
 0x69e   : > { %v8082_v35 = vpop.permute.xlu1 %8081 }
 0x69f   : > { %9608 = vmatprep.subr.msk.bf16.mxu0 %vm5321_vm2, %v9438_v37  ;;  %v8052_v39 = vpop.permute.xlu0 %8051  ;;  %v8338_v38 = vsel %vm2524_vm4, %v8210_v51, %v8082_v35 }
 0x6a0   : > { %v8308_v48 = vsel %vm2524_vm4, %v8180_v5, %v8052_v39  ;;  %9543 = vmatpush3.bf16.xpose.msra.mxu0 %v8530_v41  ;;  %7897 = vrot.lane.b32.xlu1 %v16673_v17, %s10133_s17  ;;  %v7165_v5 = vrot.slane %v18581_v27, 1 }
 0x6a1   : > { %7867 = vrot.lane.b32.xlu0 %v16681_v58, %s10133_s17  ;;  %v9446_v2 = vcombine.low %v8306_v20, %v8308_v48  ;;  %v18582_v48 = vld [vmem:[#allocation245_spill] sm:$0xff]  ;;  %v7397_v20 = vsel %vm1665_vm0, %v10109_v32, %v18584_v59  ;;  %v18591_v32 = vld [vmem:[#allocation294_spill] sm:$0xff] }
 0x6a2   : > { %v7226_v29 = vpop.permute.xlu1 %7225  ;;  %v7373_v23 = vsel %vm1665_vm0, %v10107_v54, %v18582_v48  ;;  %v18592_v59 = vld [vmem:[#allocation242_spill] sm:$0xff] }
 0x6a3   : > { %v8084_v31 = vpop.permute.xlu0 %8083  ;;  %v8578_v63 = vsel %vm5321_vm2, %v9446_v2, 0  ;;  %v16769_v51 = vsel %vm1906_vm1, %v7373_v23, %v18585_v57 }
 0x6a4   : > { %v8340_v8 = vsel %vm2524_vm4, %v8212_v52, %v8084_v31  ;;  %7929 = vrot.lane.b32.xlu1 %v16699_v40, %s10133_s17  ;;  %v18586_v31 = vld [vmem:[#allocation241_spill] sm:$0xff] }
 0x6a5   : > { %v9454_v46 = vcombine.low %v8338_v38, %v8340_v8  ;;  %7899 = vrot.lane.b32.xlu0 %v16707_v15, %s10133_s17  ;;  %v16775_v38 = vsel %vm1906_vm1, %v7370_v4, %v18586_v31  ;;  %v7626_v8 = vsel %vm1906_vm1, %v7397_v20, %v7226_v29  ;;  %v18589_v29 = vld [vmem:[#allocation46_spill] sm:$0xff] }
 0x6a6   : > { %v16715_v30 = vpop.permute.xlu1 %7305  ;;  %v18594_v31 = vld [vmem:[#allocation310_spill] sm:$0xff] }
 0x6a7   : > { %9616 = vmatprep.subr.msk.bf16.mxu1 %vm5321_vm2, %v9454_v46  ;;  %v7266_v24 = vpop.permute.xlu0 %7265 }
 0x6a8   : > { %9561 = vmatpush3.bf16.xpose.msra.mxu1 %v8578_v63  ;;  %7969 = vrot.lane.b32.xlu1 %v16657_v11, %s10134_s18 }
 0x6a9   : > { %7931 = vrot.lane.b32.xlu0 %v16724_v34, %s10133_s17 }
 0x6aa   : > { %v7846_v19 = vpop.permute.xlu1 %7845 }
 0x6ab   : > { %v16730_v6 = vpop.permute.xlu0 %7345  ;;  %v8110_v63 = vsel %vm2395_vm3, %v7626_v8, %v7846_v19 }
 0x6ac   : > { %8001 = vrot.lane.b32.xlu1 %v16681_v58, %s10134_s18 }
 0x6ad   : > { %7971 = vrot.lane.b32.xlu0 %v16510_v53, %s10134_s18 }
 0x6ae   : > { %v7878_v10 = vpop.permute.xlu1 %7877 }
 0x6af   : > { %v7848_v37 = vpop.permute.xlu0 %7847 }
 0x6b0   : > { %8033 = vrot.lane.b32.xlu1 %v16707_v15, %s10134_s18  ;;  %v8112_v52 = vsel %vm2395_vm3, %v16292_v47, %v7848_v37  ;;  %v10111_v47 = vld [vmem:[%s10164_s14 + $0x148] sm:$0xf] }
 0x6b1   : > { %8003 = vrot.lane.b32.xlu0 %v16531_v13, %s10134_s18  ;;  %v18588_v37 = vld [vmem:[#allocation295_spill] sm:$0xff] }
 0x6b2   : > { %v16740_v61 = vpop.permute.xlu1 %7909  ;;  %v7430_v50 = vsel %vm1665_vm0, %v10111_v47, %v18588_v37 }
 0x6b3   : > { %v7880_v3 = vpop.permute.xlu0 %7879  ;;  %v16804_v4 = vsel %vm1906_vm1, %v7430_v50, %v18590_v14 }
 0x6b4   : > { %8065 = vrot.lane.b32.xlu1 %v16724_v34, %s10134_s18  ;;  %v8144_v48 = vsel %vm2395_vm3, %v16309_v56, %v7880_v3  ;;  %v10114_v3 = vld [vmem:[%s10164_s14 + $0x1f0] sm:$0xf] }
 0x6b5   : > { %8035 = vrot.lane.b32.xlu0 %v16555_v25, %s10134_s18  ;;  %v7493_v20 = vsel %vm1665_vm0, %v10114_v3, %v18592_v59  ;;  %v18602_v59 = vld [vmem:[#allocation309_spill] sm:$0xff] }
 0x6b6   : > { %v16747_v35 = vpop.permute.xlu1 %7941  ;;  %v16823_v8 = vsel %vm1906_vm1, %v7493_v20, %v18594_v31 }
 0x6b7   : > { %v7912_v43 = vpop.permute.xlu0 %7911 }
 0x6b8   : > { %7245 = vrot.lane.b32.xlu1 %v7145_v22, %s10132_s16  ;;  %v10112_v22 = vld [vmem:[%s10164_s14 + $0x150] sm:$0xf] }
 0x6b9   : > { %8067 = vrot.lane.b32.xlu0 %v16582_v45, %s10134_s18  ;;  %v7433_v55 = vsel %vm1665_vm0, %v10112_v22, %v18589_v29  ;;  %v10116_v22 = vld [vmem:[%s10164_s14 + $0x2d0] sm:$0xf] }
 0x6ba   : > { %v7982_v39 = vpop.permute.xlu1 %7981  ;;  %v16797_v19 = vsel %vm1906_vm1, %v7433_v55, %v16311_v42 }
 0x6bb   : > { %v16754_v41 = vpop.permute.xlu0 %7943  ;;  %v8238_v27 = vsel %vm2524_vm4, %v8110_v63, %v7982_v39  ;;  %v18596_v63 = vld [vmem:[#allocation260_spill] sm:$0xff] }
 0x6bc   : > { %7325 = vrot.lane.b32.xlu1 %v7185_v7, %s10132_s16  ;;  %v7666_v7 = vsel %vm1906_vm1, %v7457_v33, %v7266_v24 }
 0x6bd   : > { %7285 = vrot.lane.b32.xlu0 %v7165_v5, %s10132_s16  ;;  %v8142_v54 = vsel %vm2395_vm3, %v7666_v7, %v7878_v10  ;;  %v10113_v10 = vld [vmem:[%s10164_s14 + $0x1e8] sm:$0xf] }
 0x6be   : > { %v8014_v12 = vpop.permute.xlu1 %8013  ;;  %v7490_v56 = vsel %vm1665_vm0, %v10113_v10, %v18591_v32  ;;  %v10117_v7 = vld [vmem:[%s10164_s14 + $0x288] sm:$0xf]  ;;  %v18601_v10 = vld [vmem:[#allocation277_spill] sm:$0xff] }
 0x6bf   : > { %v7984_v2 = vpop.permute.xlu0 %7983  ;;  %v8270_v24 = vsel %vm2524_vm4, %v8142_v54, %v8014_v12  ;;  %v10115_v12 = vld [vmem:[%s10164_s14 + $0x230] sm:$0xf]  ;;  %v16831_v47 = vsel %vm1906_vm1, %v7490_v56, %v18596_v63  ;;  %v8208_v32 = vsel %vm2395_vm3, %v18601_v10, %v16754_v41  ;;  %v5455_v63 = vpop.f32.mrf.mxu0 }
 0x6c0   : > { %v8240_v46 = vsel %vm2524_vm4, %v8112_v52, %v7984_v2  ;;  %7831 = vrot.lane.b32.xlu1 %v16769_v51, %s10133_s17  ;;  %v18593_v52 = vld [vmem:[#allocation210_spill] sm:$0xff]  ;;  %v10118_v54 = vld [vmem:[%s10164_s14 + $0x290] sm:$0xf] }
 0x6c1   : > { %7829 = vrot.lane.b32.xlu0 %v16775_v38, %s10133_s17  ;;  %v9429_v23 = vcombine.low %v8238_v27, %v8240_v46  ;;  %v7517_v2 = vsel %vm1665_vm0, %v10115_v12, %v18593_v52  ;;  %v18595_v46 = vld [vmem:[#allocation261_spill] sm:$0xff]  ;;  %v18598_v27 = vld [vmem:[#allocation231_spill] sm:$0xff] }
 0x6c2   : > { %v8046_v5 = vpop.permute.xlu1 %8045  ;;  %v8176_v62 = vsel %vm2395_vm3, %v18595_v46, %v7912_v43  ;;  %v7706_v37 = vsel %vm1906_vm1, %v7517_v2, %v16715_v30  ;;  %v18597_v43 = vld [vmem:[#allocation51_spill] sm:$0xff]  ;;  %v7550_v30 = vsel %vm1665_vm0, %v10117_v7, %v18598_v27 }
 0x6c3   : > { %v8016_v9 = vpop.permute.xlu0 %8015  ;;  %v8527_v33 = vsel %vm5321_vm2, %v9429_v23, 0  ;;  %v7577_v29 = vsel %vm1665_vm0, %v10116_v22, %v18597_v43  ;;  %v8174_v55 = vsel %vm2395_vm3, %v7706_v37, %v16740_v61  ;;  %v16865_v20 = vsel %vm1906_vm1, %v7550_v30, %v18602_v59  ;;  %v5496_v37 = vpop.f32.mrf.mxu1 }
 0x6c4   : > { %v8272_v39 = vsel %vm2524_vm4, %v8144_v48, %v8016_v9  ;;  %7863 = vrot.lane.b32.xlu1 %v16797_v19, %s10133_s17  ;;  %v18599_v48 = vld [vmem:[#allocation253_spill] sm:$0xff]  ;;  %v7746_v9 = vsel %vm1906_vm1, %v7577_v29, %v16730_v6  ;;  %v8302_v14 = vsel %vm2524_vm4, %v8174_v55, %v8046_v5 }
 0x6c5   : > { %v9437_v42 = vcombine.low %v8270_v24, %v8272_v39  ;;  %7861 = vrot.lane.b32.xlu0 %v16804_v4, %s10133_s17  ;;  %v7553_v23 = vsel %vm1665_vm0, %v10118_v54, %v18599_v48  ;;  %v18600_v39 = vld [vmem:[#allocation191_spill] sm:$0xff]  ;;  %v5498_v43 = vpop.f32.mrf.mxu1 }
 0x6c6   : > { %v8078_v57 = vpop.permute.xlu1 %8077  ;;  %v16856_v61 = vsel %vm1906_vm1, %v7553_v23, %v18600_v39 }
 0x6c7   : > { %9609 = vmatprep.subr.msk.bf16.mxu0 %vm5321_vm2, %v9437_v42  ;;  %v8048_v21 = vpop.permute.xlu0 %8047  ;;  %v8206_v42 = vsel %vm2395_vm3, %v7746_v9, %v16747_v35  ;;  %v5500_v30 = vpop.f32.mrf.mxu1 }
 0x6c8   : > { %v8304_v50 = vsel %vm2524_vm4, %v8176_v62, %v8048_v21  ;;  %9545 = vmatpush3.bf16.xpose.msra.mxu0 %v8527_v33  ;;  %7895 = vrot.lane.b32.xlu1 %v16823_v8, %s10133_s17  ;;  %v8334_v6 = vsel %vm2524_vm4, %v8206_v42, %v8078_v57  ;;  %v16882_v57 = vld [vmem:[%s17049_s1 + $0x8] sm:$0xf] }
 0x6c9   : > { %7893 = vrot.lane.b32.xlu0 %v16831_v47, %s10133_s17  ;;  %v9445_v56 = vcombine.low %v8302_v14, %v8304_v50  ;;  %9554 = vmatprep.mubr.msk.bf16.mxu0 %vm5321_vm2, %v16882_v57  ;;  %v5457_v50 = vpop.f32.mrf.mxu0  ;;  %v5501_v14 = vpop.f32.mrf.mxu1 }
 0x6ca   : > { %v7842_v24 = vpop.permute.xlu1 %7841  ;;  %9572 = vmatprep.mubr.msk.bf16.mxu1 %vm5321_vm2, %v16882_v57 }
 0x6cb   : > { %v8080_v3 = vpop.permute.xlu0 %8079  ;;  %v8575_v52 = vsel %vm5321_vm2, %v9445_v56, 0  ;;  %v5459_v7 = vpop.f32.mrf.mxu0  ;;  %v8106_v54 = vsel %vm2395_vm3, %v16539_v1, %v7842_v24 }
 0x6cc   : > { %v8336_v5 = vsel %vm2524_vm4, %v8208_v32, %v8080_v3  ;;  %7927 = vrot.lane.b32.xlu1 %v16856_v61, %s10133_s17  ;;  %v5837_v1 = vpop.f32.mrf.mxu1 }
 0x6cd   : > { %v9453_v12 = vcombine.low %v8334_v6, %v8336_v5  ;;  %7925 = vrot.lane.b32.xlu0 %v16865_v20, %s10133_s17  ;;  %v5460_v48 = vpop.f32.mrf.mxu0  ;;  %v16914_v6 = vadd.f32 %v5837_v1, %v5496_v37 }
 0x6ce   : > { %v7874_v35 = vpop.permute.xlu1 %7873 }
 0x6cf   : > { %9617 = vmatprep.subr.msk.bf16.mxu1 %vm5321_vm2, %v9453_v12  ;;  %v7844_v41 = vpop.permute.xlu0 %7843  ;;  %v8138_v39 = vsel %vm2395_vm3, %v16563_v18, %v7874_v35  ;;  %v5796_v32 = vpop.f32.mrf.mxu0 }
 0x6d0   : > { %9563 = vmatpush3.bf16.xpose.msra.mxu1 %v8575_v52  ;;  %7967 = vrot.lane.b32.xlu1 %v16629_v60, %s10134_s18  ;;  %v8108_v29 = vsel %vm2395_vm3, %v16391_v0, %v7844_v41  ;;  %v16912_v59 = vadd.f32 %v5796_v32, %v5455_v63  ;;  %v5839_v18 = vpop.f32.mrf.mxu1 }
 0x6d1   : > { %7965 = vrot.lane.b32.xlu0 %v16769_v51, %s10134_s18  ;;  %v5798_v5 = vpop.f32.mrf.mxu0 }
 0x6d2   : > { %v7906_v2 = vpop.permute.xlu1 %7905  ;;  %v16916_v41 = vadd.f32 %v5798_v5, %v5457_v50  ;;  %v5841_v37 = vpop.f32.mrf.mxu1 }
 0x6d3   : > { %v7876_v31 = vpop.permute.xlu0 %7875  ;;  %v8170_v50 = vsel %vm2395_vm3, %v16591_v28, %v7906_v2 }
 0x6d4   : > { %7999 = vrot.lane.b32.xlu1 %v16649_v16, %s10134_s18  ;;  %v8140_v42 = vsel %vm2395_vm3, %v16411_v26, %v7876_v31  ;;  %v16922_v31 = vadd.f32 %v5839_v18, %v5498_v43 }
 0x6d5   : > { %7997 = vrot.lane.b32.xlu0 %v16797_v19, %s10134_s18 }
 0x6d6   : > { %v7938_v46 = vpop.permute.xlu1 %7937 }
 0x6d7   : > { %v7908_v62 = vpop.permute.xlu0 %7907 }
 0x6d8   : > { %8031 = vrot.lane.b32.xlu1 %v16673_v17, %s10134_s18  ;;  %v8172_v26 = vsel %vm2395_vm3, %v16432_v49, %v7908_v62  ;;  %v5842_v49 = vpop.f32.mrf.mxu1  ;;  %v8202_v62 = vsel %vm2395_vm3, %v16606_v44, %v7938_v46 }
 0x6d9   : > { %8029 = vrot.lane.b32.xlu0 %v16823_v8, %s10134_s18 }
 0x6da   : > { %v7978_v21 = vpop.permute.xlu1 %7977 }
 0x6db   : > { %v7940_v33 = vpop.permute.xlu0 %7939  ;;  %v8234_v23 = vsel %vm2524_vm4, %v8106_v54, %v7978_v21  ;;  %v5800_v21 = vpop.f32.mrf.mxu0 }
 0x6dc   : > { %8063 = vrot.lane.b32.xlu1 %v16699_v40, %s10134_s18  ;;  %v8204_v43 = vsel %vm2395_vm3, %v16455_v36, %v7940_v33 }
 0x6dd   : > { %8061 = vrot.lane.b32.xlu0 %v16856_v61, %s10134_s18 }
 0x6de   : > { %v8010_v22 = vpop.permute.xlu1 %8009 }
 0x6df   : > { %v7980_v55 = vpop.permute.xlu0 %7979  ;;  %v8266_v56 = vsel %vm2524_vm4, %v8138_v39, %v8010_v22  ;;  %v5801_v22 = vpop.f32.mrf.mxu0 }
 0x6e0   : > { %v8236_v27 = vsel %vm2524_vm4, %v8108_v29, %v7980_v55 }
 0x6e1   : > { %v9428_v0 = vcombine.low %v8234_v23, %v8236_v27 }
 0x6e2   : > { %v8042_v9 = vpop.permute.xlu1 %8041 }
 0x6e3   : > { %v8012_v10 = vpop.permute.xlu0 %8011  ;;  %v8524_v52 = vsel %vm5321_vm2, %v9428_v0, 0  ;;  %v8298_v29 = vsel %vm2524_vm4, %v8170_v50, %v8042_v9 }
 0x6e4   : > { %v8268_v3 = vsel %vm2524_vm4, %v8140_v42, %v8012_v10 }
 0x6e5   : > { %v9436_v24 = vcombine.low %v8266_v56, %v8268_v3 }
 0x6e6   : > { %v8074_v12 = vpop.permute.xlu1 %8073 }
 0x6e7   : > { %9610 = vmatprep.subr.msk.bf16.mxu0 %vm5321_vm2, %v9436_v24  ;;  %v8044_v35 = vpop.permute.xlu0 %8043  ;;  %v8330_v30 = vsel %vm2524_vm4, %v8202_v62, %v8074_v12 }
 0x6e8   : > { %v8300_v63 = vsel %vm2524_vm4, %v8172_v26, %v8044_v35  ;;  %9547 = vmatpush3.bf16.xpose.msra.mxu0 %v8524_v52 }
 0x6e9   : > { %v9444_v7 = vcombine.low %v8298_v29, %v8300_v63 }
 0x6ea   : > { %v7838_v55 = vpop.permute.xlu1 %7837 }
 0x6eb   : > { %v8076_v27 = vpop.permute.xlu0 %8075  ;;  %v8572_v2 = vsel %vm5321_vm2, %v9444_v7, 0  ;;  %v8102_v32 = vsel %vm2395_vm3, %v16657_v11, %v7838_v55 }
 0x6ec   : > { %v8332_v54 = vsel %vm2524_vm4, %v8204_v43, %v8076_v27 }
 0x6ed   : > { %v9452_v48 = vcombine.low %v8330_v30, %v8332_v54 }
 0x6ee   : > { %v7870_v23 = vpop.permute.xlu1 %7869 }
 0x6ef   : > { %9618 = vmatprep.subr.msk.bf16.mxu1 %vm5321_vm2, %v9452_v48  ;;  %v7840_v28 = vpop.permute.xlu0 %7839  ;;  %v8134_v1 = vsel %vm2395_vm3, %v16681_v58, %v7870_v23 }
 0x6f0   : > { %9565 = vmatpush3.bf16.xpose.msra.mxu1 %v8572_v2  ;;  %v8104_v42 = vsel %vm2395_vm3, %v16510_v53, %v7840_v28 }
 0x6f2   : > { %v7902_v9 = vpop.permute.xlu1 %7901 }
 0x6f3   : > { %v7872_v14 = vpop.permute.xlu0 %7871 }
 0x6f4   : > { %v8136_v24 = vsel %vm2395_vm3, %v16531_v13, %v7872_v14  ;;  %v8166_v13 = vsel %vm2395_vm3, %v16707_v15, %v7902_v9 }
 0x6f6   : > { %v7934_v44 = vpop.permute.xlu1 %7933 }
 0x6f7   : > { %v7904_v46 = vpop.permute.xlu0 %7903  ;;  %v8198_v50 = vsel %vm2395_vm3, %v16724_v34, %v7934_v44 }
 0x6f8   : > { %v8168_v11 = vsel %vm2395_vm3, %v16555_v25, %v7904_v46 }
 0x6fa   : > { %v7974_v39 = vpop.permute.xlu1 %7973 }
 0x6fb   : > { %v7936_v36 = vpop.permute.xlu0 %7935  ;;  %v8230_v56 = vsel %vm2524_vm4, %v8102_v32, %v7974_v39 }
 0x6fc   : > { %v8200_v25 = vsel %vm2395_vm3, %v16582_v45, %v7936_v36 }
 0x6fe   : > { %v8006_v33 = vpop.permute.xlu1 %8005 }
 0x6ff   : > { %v7976_v0 = vpop.permute.xlu0 %7975  ;;  %v8262_v18 = vsel %vm2524_vm4, %v8134_v1, %v8006_v33 }
 0x700   : > { %v8232_v10 = vsel %vm2524_vm4, %v8104_v42, %v7976_v0 }
 0x701   : > { %v9427_v5 = vcombine.low %v8230_v56, %v8232_v10 }
 0x702   : > { %v8038_v3 = vpop.permute.xlu1 %8037 }
 0x703   : > { %v8008_v12 = vpop.permute.xlu0 %8007  ;;  %v8521_v21 = vsel %vm5321_vm2, %v9427_v5, 0  ;;  %v8294_v63 = vsel %vm2524_vm4, %v8166_v13, %v8038_v3 }
 0x704   : > { %v8264_v53 = vsel %vm2524_vm4, %v8136_v24, %v8008_v12 }
 0x705   : > { %v9435_v26 = vcombine.low %v8262_v18, %v8264_v53 }
 0x706   : > { %v8070_v35 = vpop.permute.xlu1 %8069 }
 0x707   : > { %9611 = vmatprep.subr.msk.bf16.mxu0 %vm5321_vm2, %v9435_v26  ;;  %v8040_v52 = vpop.permute.xlu0 %8039  ;;  %v8326_v55 = vsel %vm2524_vm4, %v8198_v50, %v8070_v35 }
 0x708   : > { %v8296_v58 = vsel %vm2524_vm4, %v8168_v11, %v8040_v52  ;;  %9549 = vmatpush3.bf16.xpose.msra.mxu0 %v8521_v21 }
 0x709   : > { %v9443_v22 = vcombine.low %v8294_v63, %v8296_v58 }
 0x70a   : > { %v7834_v37 = vpop.permute.xlu1 %7833 }
 0x70b   : > { %v8072_v29 = vpop.permute.xlu0 %8071  ;;  %v8569_v7 = vsel %vm5321_vm2, %v9443_v22, 0  ;;  %v8098_v14 = vsel %vm2395_vm3, %v16769_v51, %v7834_v37  ;;  %v18603_v22 = vld [vmem:[#allocation251_spill] sm:$0xff] }
 0x70c   : > { %v8328_v49 = vsel %vm2524_vm4, %v8200_v25, %v8072_v29  ;;  %v10119_v25 = vld [vmem:[%s10164_s14 + $0xa0] sm:$0xf] }
 0x70d   : > { %v9451_v62 = vcombine.low %v8326_v55, %v8328_v49  ;;  %v7367_v29 = vsel %vm1665_vm0, %v10119_v25, %v18603_v22  ;;  %v18604_v55 = vld [vmem:[#allocation248_spill] sm:$0xff] }
 0x70e   : > { %v7866_v43 = vpop.permute.xlu1 %7865  ;;  %v7606_v49 = vsel %vm1906_vm1, %v7367_v29, %v18604_v55 }
 0x70f   : > { %9619 = vmatprep.subr.msk.bf16.mxu1 %vm5321_vm2, %v9451_v62  ;;  %v7836_v15 = vpop.permute.xlu0 %7835  ;;  %v8130_v39 = vsel %vm2395_vm3, %v16797_v19, %v7866_v43 }
 0x710   : > { %9567 = vmatpush3.bf16.xpose.msra.mxu1 %v8569_v7  ;;  %v8100_v28 = vsel %vm2395_vm3, %v16629_v60, %v7836_v15 }
 0x712   : > { %v7898_v27 = vpop.permute.xlu1 %7897 }
 0x713   : > { %v7868_v30 = vpop.permute.xlu0 %7867 }
 0x714   : > { %v8132_v36 = vsel %vm2395_vm3, %v16649_v16, %v7868_v30  ;;  %v8162_v16 = vsel %vm2395_vm3, %v16823_v8, %v7898_v27 }
 0x716   : > { %v7930_v34 = vpop.permute.xlu1 %7929 }
 0x717   : > { %v7900_v54 = vpop.permute.xlu0 %7899  ;;  %v8194_v5 = vsel %vm2395_vm3, %v16856_v61, %v7930_v34  ;;  %v10120_v34 = vld [vmem:[%s10164_s14 + $0x140] sm:$0xf] }
 0x718   : > { %v8164_v51 = vsel %vm2395_vm3, %v16673_v17, %v7900_v54  ;;  %v18605_v54 = vld [vmem:[#allocation262_spill] sm:$0xff] }
 0x71a   : > { %v7970_v48 = vpop.permute.xlu1 %7969 }
 0x71b   : > { %v7932_v45 = vpop.permute.xlu0 %7931  ;;  %v8226_v44 = vsel %vm2524_vm4, %v8098_v14, %v7970_v48  ;;  %v7427_v48 = vsel %vm1665_vm0, %v10120_v34, %v18605_v54 }
 0x71c   : > { %v8196_v17 = vsel %vm2395_vm3, %v16699_v40, %v7932_v45 }
 0x71e   : > { %v8002_v23 = vpop.permute.xlu1 %8001 }
 0x71f   : > { %v7972_v2 = vpop.permute.xlu0 %7971  ;;  %v8258_v0 = vsel %vm2524_vm4, %v8130_v39, %v8002_v23  ;;  %v18606_v39 = vld [vmem:[#allocation243_spill] sm:$0xff] }
 0x720   : > { %v8228_v9 = vsel %vm2524_vm4, %v8100_v28, %v7972_v2 }
 0x721   : > { %v9426_v33 = vcombine.low %v8226_v44, %v8228_v9 }
 0x722   : > { %v8034_v46 = vpop.permute.xlu1 %8033 }
 0x723   : > { %v8004_v42 = vpop.permute.xlu0 %8003  ;;  %v8518_v3 = vsel %vm5321_vm2, %v9426_v33, 0  ;;  %v8290_v1 = vsel %vm2524_vm4, %v8162_v16, %v8034_v46  ;;  %v10121_v46 = vld [vmem:[%s10164_s14 + $0x1e0] sm:$0xf] }
 0x724   : > { %v8260_v60 = vsel %vm2524_vm4, %v8132_v36, %v8004_v42  ;;  %v7487_v36 = vsel %vm1665_vm0, %v10121_v46, %v18606_v39 }
 0x725   : > { %v9434_v10 = vcombine.low %v8258_v0, %v8260_v60 }
 0x726   : > { %v8066_v32 = vpop.permute.xlu1 %8065 }
 0x727   : > { %9612 = vmatprep.subr.msk.bf16.mxu0 %vm5321_vm2, %v9434_v10  ;;  %v8036_v56 = vpop.permute.xlu0 %8035  ;;  %v8322_v53 = vsel %vm2524_vm4, %v8194_v5, %v8066_v32 }
 0x728   : > { %v8292_v19 = vsel %vm2524_vm4, %v8164_v51, %v8036_v56  ;;  %9551 = vmatpush3.bf16.xpose.msra.mxu0 %v8518_v3  ;;  %v10122_v3 = vld [vmem:[%s10164_s14 + $0x280] sm:$0xf] }
 0x729   : > { %v9442_v12 = vcombine.low %v8290_v1, %v8292_v19  ;;  %v18607_v19 = vld [vmem:[#allocation214_spill] sm:$0xff] }
 0x72a   : > { %v7246_v24 = vpop.permute.xlu1 %7245  ;;  %v7547_v16 = vsel %vm1665_vm0, %v10122_v3, %v18607_v19 }
 0x72b   : > { %v8068_v18 = vpop.permute.xlu0 %8067  ;;  %v8566_v52 = vsel %vm5321_vm2, %v9442_v12, 0  ;;  %v7646_v45 = vsel %vm1906_vm1, %v7427_v48, %v7246_v24 }
 0x72c   : > { %v8324_v26 = vsel %vm2524_vm4, %v8196_v17, %v8068_v18 }
 0x72d   : > { %v9450_v35 = vcombine.low %v8322_v53, %v8324_v26 }
 0x72e   : > { %v7326_v11 = vpop.permute.xlu1 %7325 }
 0x72f   : > { %9620 = vmatprep.subr.msk.bf16.mxu1 %vm5321_vm2, %v9450_v35  ;;  %v7286_v8 = vpop.permute.xlu0 %7285  ;;  %v7726_v1 = vsel %vm1906_vm1, %v7547_v16, %v7326_v11 }
 0x730   : > { %9569 = vmatpush3.bf16.xpose.msra.mxu1 %v8566_v52  ;;  %v7686_v42 = vsel %vm1906_vm1, %v7487_v36, %v7286_v8 }
 0x732   : > { %v7832_v21 = vpop.permute.xlu1 %7831 }
 0x733   : > { %v7830_v61 = vpop.permute.xlu0 %7829  ;;  %v8096_v43 = vsel %vm2395_vm3, %v16775_v38, %v7832_v21 }
 0x734   : > { %v8094_v15 = vsel %vm2395_vm3, %v7606_v49, %v7830_v61 }
 0x736   : > { %v7864_v58 = vpop.permute.xlu1 %7863 }
 0x737   : > { %v7862_v40 = vpop.permute.xlu0 %7861  ;;  %v8128_v23 = vsel %vm2395_vm3, %v16804_v4, %v7864_v58 }
 0x738   : > { %v8126_v2 = vsel %vm2395_vm3, %v7646_v45, %v7862_v40 }
 0x73a   : > { %v7896_v13 = vpop.permute.xlu1 %7895 }
 0x73b   : > { %v7894_v63 = vpop.permute.xlu0 %7893  ;;  %v8160_v4 = vsel %vm2395_vm3, %v16831_v47, %v7896_v13 }
 0x73c   : > { %v8158_v60 = vsel %vm2395_vm3, %v7686_v42, %v7894_v63 }
 0x73e   : > { %v7928_v37 = vpop.permute.xlu1 %7927 }
 0x73f   : > { %v7926_v50 = vpop.permute.xlu0 %7925  ;;  %v8192_v47 = vsel %vm2395_vm3, %v16865_v20, %v7928_v37 }
 0x740   : > { %v8190_v5 = vsel %vm2395_vm3, %v7726_v1, %v7926_v50 }
 0x742   : > { %v7968_v62 = vpop.permute.xlu1 %7967 }
 0x743   : > { %v7966_v7 = vpop.permute.xlu0 %7965  ;;  %v8224_v27 = vsel %vm2524_vm4, %v8096_v43, %v7968_v62 }
 0x744   : > { %v8222_v30 = vsel %vm2524_vm4, %v8094_v15, %v7966_v7 }
 0x745   : > { %v9425_v38 = vcombine.low %v8222_v30, %v8224_v27 }
 0x746   : > { %v8000_v28 = vpop.permute.xlu1 %7999 }
 0x747   : > { %v8256_v9 = vsel %vm2524_vm4, %v8128_v23, %v8000_v28  ;;  %v7998_v14 = vpop.permute.xlu0 %7997  ;;  %v8515_v32 = vsel %vm5321_vm2, %v9425_v38, 0 }
 0x748   : > { %v8254_v44 = vsel %vm2524_vm4, %v8126_v2, %v7998_v14 }
 0x749   : > { %v9433_v33 = vcombine.low %v8254_v44, %v8256_v9 }
 0x74a   : > { %v8032_v0 = vpop.permute.xlu1 %8031 }
 0x74b   : > { %9613 = vmatprep.subr.msk.bf16.mxu0 %vm5321_vm2, %v9433_v33  ;;  %v8030_v10 = vpop.permute.xlu0 %8029  ;;  %v8288_v51 = vsel %vm2524_vm4, %v8160_v4, %v8032_v0 }
 0x74c   : > { %v8286_v56 = vsel %vm2524_vm4, %v8158_v60, %v8030_v10  ;;  %9553 = vmatpush3.bf16.xpose.msra.mxu0 %v8515_v32 }
 0x74d   : > { %v9441_v17 = vcombine.low %v8286_v56, %v8288_v51 }
 0x74e   : > { %v8064_v24 = vpop.permute.xlu1 %8063 }
 0x74f   : > { %v8320_v12 = vsel %vm2524_vm4, %v8192_v47, %v8064_v24  ;;  %v8062_v18 = vpop.permute.xlu0 %8061  ;;  %v8563_v35 = vsel %vm5321_vm2, %v9441_v17, 0 }
 0x750   : > { %v8318_v53 = vsel %vm2524_vm4, %v8190_v5, %v8062_v18 }
 0x751   : > { %v9449_v26 = vcombine.low %v8318_v53, %v8320_v12 }
 0x753   : > { %9555 = vmatmul.mubr.msk.bf16.vlgmr.msra.gmra.mxu0 %vm5321_vm2, %v16882_v57  ;;  %9621 = vmatprep.subr.msk.bf16.mxu1 %vm5321_vm2, %v9449_v26 }
 0x754   : > { %9571 = vmatpush3.bf16.xpose.msra.mxu1 %v8563_v35 }
 0x75b   : > { %9573 = vmatmul.mubr.msk.bf16.vlgmr.msra.gmra.mxu1 %vm5321_vm2, %v16882_v57 }
 0x813   : > { %v8644_v20 = vpop.f32.mrf.mxu0 }
 0x814   : > { %v8692_v11 = vadd.f32 %v8644_v20, %v16912_v59 }
 0x815   : > { %v8646_v8 = vpop.f32.mrf.mxu0 }
 0x816   : > { %v8700_v52 = vmin.f32 %v8692_v11, 0.0  ;;  %v8693_v21 = vadd.f32 %v8646_v8, %v16916_v41  ;;  %vm8696_vm5 = vcmp.gt.f32.partialorder %v8692_v11, 0.0 }
 0x817   : > { %v8648_v61 = vpop.f32.mrf.mxu0 }
 0x818   : > { %v8704_v58 = vmul.f32 1.442695, %v8700_v52  ;;  %v8701_v40 = vmin.f32 %v8693_v21, 0.0  ;;  %vm8697_vm6 = vcmp.gt.f32.partialorder %v8693_v21, 0.0 }
 0x819   : > { %v8649_v13 = vpop.f32.mrf.mxu0 }
 0x81a   : > { %9875 = vpow2.f32 %v8704_v58  ;;  %v8706_v63 = vmul.f32 1.442695, %v8701_v40 }
 0x81b   : > { %v8685_v37 = vpop.f32.mrf.mxu1 }
 0x81c   : > { %9877 = vpow2.f32 %v8706_v63  ;;  %v8694_v50 = vadd.f32 %v8685_v37, %v16914_v6 }
 0x81d   : > { %v8687_v25 = vpop.f32.mrf.mxu1 }
 0x81e   : > { %v8702_v57 = vmin.f32 %v8694_v50, 0.0  ;;  %v8695_v22 = vadd.f32 %v8687_v25, %v16922_v31  ;;  %vm8698_vm7 = vcmp.gt.f32.partialorder %v8694_v50, 0.0 }
 0x81f   : > { %v8689_v59 = vpop.f32.mrf.mxu1 }
 0x820   : > { %v8708_v29 = vmul.f32 1.442695, %v8702_v57  ;;  %v8703_v55 = vmin.f32 %v8695_v22, 0.0  ;;  %vm8699_vm8 = vcmp.gt.f32.partialorder %v8695_v22, 0.0 }
 0x821   : > { %v8690_v49 = vpop.f32.mrf.mxu1 }
 0x822   : > { %9879 = vpow2.f32 %v8708_v29  ;;  %v8710_v41 = vmul.f32 1.442695, %v8703_v55 }
 0x824   : > { %9881 = vpow2.f32 %v8710_v41 }
 0x827   : > { %v9876_v62 = vpop.eup %9875 }
 0x828   : > { %v9459_v43 = vadd.f32 -1.0, %v9876_v62 }
 0x829   : > { %v9878_v15 = vpop.eup %9877 }
 0x82a   : > { %v8716_v7 = vmul.f32 1.6732632, %v9459_v43  ;;  %v9460_v27 = vadd.f32 -1.0, %v9878_v15 }
 0x82c   : > { %v8720_v6 = vsel %vm8696_vm5, %v8692_v11, %v8716_v7  ;;  %v8717_v31 = vmul.f32 1.6732632, %v9460_v27 }
 0x82d   : > { %v8724_v30 = vmul.f32 1.050701, %v8720_v6 }
 0x82e   : > { %v8721_v34 = vsel %vm8697_vm6, %v8693_v21, %v8717_v31 }
 0x82f   : > { %v9880_v54 = vpop.eup %9879  ;;  %8728 = vst [vmem:[%s143_s30] sm:$0xff] %v8724_v30  ;;  %v8725_v48 = vmul.f32 1.050701, %v8721_v34 }
 0x830   : > { %v9461_v45 = vadd.f32 -1.0, %v9880_v54 }
 0x831   : > { %v9882_v23 = vpop.eup %9881  ;;  %8729 = vst [vmem:[%s143_s30 + $0x8] sm:$0xff] %v8725_v48 }
 0x832   : > { %v8718_v28 = vmul.f32 1.6732632, %v9461_v45  ;;  %v9462_v2 = vadd.f32 -1.0, %v9882_v23 }
 0x834   : > { %v8722_v38 = vsel %vm8698_vm7, %v8694_v50, %v8718_v28  ;;  %v8719_v9 = vmul.f32 1.6732632, %v9462_v2 }
 0x835   : > { %v8726_v14 = vmul.f32 1.050701, %v8722_v38 }
 0x836   : > { %v8723_v44 = vsel %vm8699_vm8, %v8695_v22, %v8719_v9 }
 0x837   : > { %8730 = vst [vmem:[%s143_s30 + $0x10] sm:$0xff] %v8726_v14  ;;  %v8727_v46 = vmul.f32 1.050701, %v8723_v44 }
 0x839   : > { %8731 = vst [vmem:[%s143_s30 + $0x18] sm:$0xff] %v8727_v46 }
 0x83a PF: > { %s12_s9 = sadd.s32 1, %s10129_s9  }
 0x83b   : > { %p9_p4 = scmp.ge.s32.totalorder %s12_s9, 4  }
 0x83d   :  { %11 = sbr.rel (!%p9_p4) target bundleno = 1 (0x1), region = 62 }

</bundles_post_ra>
